<compile_context>
chip_gen: v7x
topology: tpu7x:2x2x1
jax: 0.10.0
libtpu: 0.0.40
codegen_flags: <defaults>
</compile_context>

<pallas_src>
import functools

import jax
import jax.numpy as jnp
from jax.experimental import pallas as pl
from jax.experimental.pallas import tpu as pltpu


# ---------------------------------------------------------------------------
# Fused Pallas kernel
# ---------------------------------------------------------------------------

def _gru_gate(gs, gh, h_prev, bhn, H):
    """One GRU cell update (PyTorch gate order [r|z|n]); gs has folded biases."""
    rz = jax.nn.sigmoid(gs[:, :2 * H] + gh[:, :2 * H])
    r = rz[:, :H]
    z = rz[:, H:]
    n = jnp.tanh(gs[:, 2 * H:] + r * (gh[:, 2 * H:] + bhn))
    return n + z * (h_prev - n)                      # == (1 - z) * n + z * h_prev


def _captcha_kernel(p_ref, w1_ref, b1_ref, w2_ref, b2_ref,
                    fc1w_ref, fc1b_ref, wih_ref, whh_ref, gib_ref, bhn_ref,
                    fc2w_ref, fc2b_ref, o_ref, x2_scr, *, h2, w2, hgru):
    """Whole-model forward for one block of images.

    p_ref:    (Bb, 4*h2*w2, 32) bf16 conv1 im2col patches, rows ordered
              (pool-phase q=2*py+px, output-col parity, i, j//2), taps (dy,dx,c).
    w1_ref:   (32, 32) bf16 conv1 weights (K padded 27->32), b1_ref (1,32) f32.
    w2_ref:   (9, 32, 64) bf16 conv2 weights per tap dy*3+dx, b2_ref (1,64) f32.
    fc1w_ref: (12, 64, 64) bf16 fc1 regrouped by conv2-output row h, fc1b (1,64).
    wih_ref:  (4, 64, 96) bf16 input->gates (idx 2*layer+dir, gate cols [r|z|n]).
    whh_ref:  (2, 64, 192) bf16 block-diagonal [fwd|bwd] hidden->gates per layer.
    gib_ref:  (4, 1, 96) f32 folded gate bias [b_ir+b_hr | b_iz+b_hz | b_in].
    bhn_ref:  (4, 1, 32) f32 b_hn (applied inside r * (.)).
    fc2w_ref: (64, 128) bf16 zero-padded, fc2b_ref (1, 128) f32 zero-padded.
    o_ref:    (Bb, T, 128) f32 padded logits (lane-dense store).
    x2_scr:   (4, h2//2+1, w2//2+1, 32) bf16 zero-padded, parity-split conv2
              input: index [2*p2+hp, ihalf, q, c] <-> padded coords
              (y2p, x2p) = (2*ihalf+hp, 2*q+p2).
    """
    f32 = jnp.float32
    bf16 = jnp.bfloat16
    c1 = 32                       # conv1 output channels
    h3, w3 = h2 // 2, w2 // 2     # conv2 pooled output spatial; T == w3
    whf = w2 // 2                 # conv2-input half width (== w3)
    T = w3
    H = hgru
    m1 = h2 * w2                  # conv1 pooled pixels (rows per pool-phase block)
    bb = p_ref.shape[0]

    for ib in range(bb):
        # ---- conv1(+bias)+ReLU+MaxPool: one bf16 MXU matmul, pool = max of the
        #      4 aligned pool-phase row blocks; relu(max(.)+b) == max(relu(.+b)).
        y1 = jnp.dot(p_ref[ib], w1_ref[...], preferred_element_type=f32)   # (4*m1, 32)
        pooled1 = jnp.maximum(jnp.maximum(y1[0:m1], y1[m1:2 * m1]),
                              jnp.maximum(y1[2 * m1:3 * m1], y1[3 * m1:4 * m1]))
        z1 = jnp.maximum(pooled1 + b1_ref[...], 0.0).astype(bf16)          # (m1, 32)
        z1 = z1.reshape(2, h2, whf, c1)        # (j-parity, i, j//2, c)

        # ---- scatter (static slices only) into the padded conv2-input scratch.
        x2_scr[...] = jnp.zeros(x2_scr.shape, bf16)
        for jpar in range(2):
            g = z1[jpar].reshape(h3, 2, whf, c1)       # split rows i by parity
            p2 = 1 - jpar                               # even j -> odd x2p slab
            c0 = jpar                                   # column offset inside slab
            x2_scr[2 * p2 + 1, 0:h3, c0:c0 + whf, :] = g[:, 0]      # even i rows
            x2_scr[2 * p2 + 0, 1:h3 + 1, c0:c0 + whf, :] = g[:, 1]  # odd  i rows

        # ---- conv2(+bias)+ReLU+MaxPool: in-kernel im2col; 4 pool phases x 9 taps
        #      accumulated on the MXU (bf16 operands, f32 accumulation).
        accs = []
        for py in range(2):
            for px in range(2):
                acc = None
                for dy in range(3):
                    for dx in range(3):
                        sy, sx = py + dy, px + dx
                        lhs = x2_scr[2 * (sx % 2) + (sy % 2),
                                     sy // 2:sy // 2 + h3,
                                     sx // 2:sx // 2 + w3, :]        # (h3, w3, 32)
                        lhs = lhs.reshape(h3 * w3, c1)
                        part = jnp.dot(lhs, w2_ref[dy * 3 + dx],
                                       preferred_element_type=f32)   # (h3*w3, 64)
                        acc = part if acc is None else acc + part
                accs.append(acc)
        pooled2 = jnp.maximum(jnp.maximum(accs[0], accs[1]),
                              jnp.maximum(accs[2], accs[3]))
        out2 = jnp.maximum(pooled2 + b2_ref[...], 0.0).astype(bf16)  # rows (h, w)

        # ---- fc1 (+ReLU): permute(0,3,1,2).view folded into fc1_w's 12 blocks.
        s = None
        for h in range(h3):
            part = jnp.dot(out2[h * w3:(h + 1) * w3, :], fc1w_ref[h],
                           preferred_element_type=f32)               # (T, 64)
            s = part if s is None else s + part
        x = jnp.maximum(s + fc1b_ref[...], 0.0)                      # (T, 64) f32
        # TODO(synk): Dropout(0.2) after fc1 is identity (eval semantics).

        # ---- 2-layer bidirectional GRU, forward/backward fused per step.
        for layer in range(2):
            xb = x.astype(bf16)
            gi_f = jnp.dot(xb, wih_ref[2 * layer],
                           preferred_element_type=f32) + gib_ref[2 * layer]
            gi_b = jnp.dot(xb, wih_ref[2 * layer + 1],
                           preferred_element_type=f32) + gib_ref[2 * layer + 1]
            bhn_f = bhn_ref[2 * layer]
            bhn_b = bhn_ref[2 * layer + 1]
            whh_bd = whh_ref[layer]                                   # (2H, 6H)
            h_f = jnp.zeros((1, H), f32)
            h_b = jnp.zeros((1, H), f32)
            outs_f = [None] * T
            outs_b = [None] * T
            for t in range(T):
                h_fb = jnp.concatenate([h_f, h_b], axis=1).astype(bf16)   # (1, 2H)
                gh = jnp.dot(h_fb, whh_bd, preferred_element_type=f32)    # (1, 6H)
                h_f = _gru_gate(gi_f[t:t + 1], gh[:, :3 * H], h_f, bhn_f, H)
                h_b = _gru_gate(gi_b[T - 1 - t:T - t], gh[:, 3 * H:], h_b, bhn_b, H)
                outs_f[t] = h_f
                outs_b[T - 1 - t] = h_b
            x = jnp.concatenate(
                [jnp.concatenate([outs_f[t], outs_b[t]], axis=1) for t in range(T)],
                axis=0)                                               # (T, 2H) f32
            # TODO(synk): inter-layer GRU dropout(0.25) is identity (eval semantics).

        # ---- fc2, zero-padded to 128 lanes -> single unmasked lane-dense store.
        logits = jnp.dot(x.astype(bf16), fc2w_ref[...],
                         preferred_element_type=f32) + fc2b_ref[...]  # (T, 128)
        o_ref[ib] = logits.astype(o_ref.dtype)


# ---------------------------------------------------------------------------
# Wrapper (cheap XLA glue on the tiny input / output only)
# ---------------------------------------------------------------------------

def _conv1_pool_patches(x_nhwc):
    """(B,H,W,3) -> (B, 4*(H/2)*(W/2), 32) bf16 conv1 patches.

    Rows ordered (pool-phase q=2*py+px, output-col parity, i, j//2); taps are
    (dy, dx, c)-minor to match conv1_w; K padded 27 -> 32.  Input is ~18 KB so
    this one fused XLA op is negligible.
    """
    B, Hi, Wi, C = x_nhwc.shape
    xp = jnp.pad(x_nhwc, ((0, 0), (1, 1), (1, 1), (0, 0)))
    taps = [xp[:, dy:dy + Hi, dx:dx + Wi, :] for dy in range(3) for dx in range(3)]
    p = jnp.stack(taps, axis=3).reshape(B, Hi, Wi, 9 * C)
    Ho, Wo = Hi // 2, Wi // 2
    Wh = Wo // 2
    p = p.reshape(B, Ho, 2, Wh, 2, 2, 9 * C)           # (b, i, py, j2, jpar, px, K)
    p = jnp.transpose(p, (0, 2, 5, 4, 1, 3, 6))        # (b, py, px, jpar, i, j2, K)
    p = p.reshape(B, 4 * Ho * Wo, 9 * C)
    p = jnp.pad(p, ((0, 0), (0, 0), (0, 32 - 9 * C)))
    return p.astype(jnp.bfloat16)


def captcha_forward(images_nchw, params, *, num_classes):
    """Equivalent of CaptchaModel.forward(images, targets=None) in eval mode."""
    B, Cin, Hi, Wi = images_nchw.shape
    assert Cin == 3
    assert Hi == 48, "Linear(768, 64) requires 64 * (H/4) == 768, i.e. H == 48"
    assert Wi % 32 == 0, "W must be a multiple of 32 for the in-kernel tiling"
    assert num_classes <= 128

    x = jnp.transpose(images_nchw, (0, 2, 3, 1))       # NCHW -> NHWC (tiny)
    patches = _conv1_pool_patches(x)                   # (B, 4*(H/2)*(W/2), 32) bf16

    h2, w2 = Hi // 2, Wi // 2
    T = Wi // 4
    # 2 blocks keep both v7x TensorCores busy; on single-core v5e/v6e this only
    # adds one ~0.35us grid step vs. a single block.
    G = 2 if B % 2 == 0 else 1
    Bb = B // G
    m4 = patches.shape[1]

    kernel = functools.partial(_captcha_kernel, h2=h2, w2=w2, hgru=32)
    out_pad = pl.pallas_call(
        kernel,
        out_shape=jax.ShapeDtypeStruct((B, T, 128), jnp.float32),
        grid=(G,),
        in_specs=[
            pl.BlockSpec((Bb, m4, 32), lambda g: (g, 0, 0)),
            pl.BlockSpec(params["conv1_w"].shape, lambda g: (0, 0)),
            pl.BlockSpec(params["conv1_b"].shape, lambda g: (0, 0)),
            pl.BlockSpec(params["conv2_w"].shape, lambda g: (0, 0, 0)),
            pl.BlockSpec(params["conv2_b"].shape, lambda g: (0, 0)),
            pl.BlockSpec(params["fc1_w"].shape, lambda g: (0, 0, 0)),
            pl.BlockSpec(params["fc1_b"].shape, lambda g: (0, 0)),
            pl.BlockSpec(params["gru_wih"].shape, lambda g: (0, 0, 0)),
            pl.BlockSpec(params["gru_whh"].shape, lambda g: (0, 0, 0)),
            pl.BlockSpec(params["gru_gib"].shape, lambda g: (0, 0, 0)),
            pl.BlockSpec(params["gru_bhn"].shape, lambda g: (0, 0, 0)),
            pl.BlockSpec(params["fc2_w"].shape, lambda g: (0, 0)),
            pl.BlockSpec(params["fc2_b"].shape, lambda g: (0, 0)),
        ],
        out_specs=pl.BlockSpec((Bb, T, 128), lambda g: (g, 0, 0)),
        scratch_shapes=[pltpu.VMEM((4, h2 // 2 + 1, w2 // 2 + 1, 32), jnp.bfloat16)],
        compiler_params=pltpu.CompilerParams(dimension_semantics=("parallel",)),
    )(patches, params["conv1_w"], params["conv1_b"], params["conv2_w"],
      params["conv2_b"], params["fc1_w"], params["fc1_b"], params["gru_wih"],
      params["gru_whh"], params["gru_gib"], params["gru_bhn"],
      params["fc2_w"], params["fc2_b"])

    # Tiny (B,T,128) -> (T,B,num_chars+1) slice/relayout; one fused XLA op.
    out = jnp.transpose(out_pad, (1, 0, 2))[:, :, :num_classes]
    # TODO(synk): CTC loss branch (targets is not None) not implemented; this is
    # the `targets=None` path which returns (out, None).
    return out, None


# ---------------------------------------------------------------------------
# Deterministic synthetic parameters (shapes match the PyTorch module)
# ---------------------------------------------------------------------------

def init_params(key, num_chars):
    keys = iter(jax.random.split(key, 40))
    bf16 = jnp.bfloat16

    def nrm(shape, scale=0.1):
        return scale * jax.random.normal(next(keys), shape, jnp.float32)

    p = {}
    # layer1: Conv2d(3, 32, 3x3, pad=1) -- PyTorch weight (32, 3, 3, 3)
    w1 = nrm((32, 3, 3, 3))
    w1m = jnp.transpose(w1, (2, 3, 1, 0)).reshape(27, 32)        # rows (dy, dx, cin)
    p["conv1_w"] = jnp.pad(w1m, ((0, 5), (0, 0))).astype(bf16)   # K padded 27 -> 32
    p["conv1_b"] = nrm((32,)).reshape(1, 32)
    # layer2: Conv2d(32, 64, 3x3, pad=1) -- PyTorch weight (64, 32, 3, 3)
    w2 = nrm((64, 32, 3, 3))
    p["conv2_w"] = jnp.transpose(w2, (2, 3, 1, 0)).reshape(9, 32, 64).astype(bf16)
    p["conv2_b"] = nrm((64,)).reshape(1, 64)
    # layer3: Linear(768, 64) -- PyTorch weight (64, 768); feature index c*12 + h.
    fc1t = nrm((64, 768)).T                                      # (768, 64)
    p["fc1_w"] = jnp.stack([fc1t[h::12, :] for h in range(12)]).astype(bf16)
    p["fc1_b"] = nrm((64,)).reshape(1, 64)
    # layer4: GRU(64, 32, bidirectional, 2 layers); rows of each (96, .) = [r|z|n].
    H = 32
    wih, gib, bhn, whh_bd = [], [], [], []
    for _layer in range(2):
        per_dir = []
        for _direction in range(2):
            w_ih = nrm((3 * H, 64))
            w_hh = nrm((3 * H, H))
            b_ih = nrm((3 * H,))
            b_hh = nrm((3 * H,))
            wih.append(w_ih.T)                                   # (64, 96)
            per_dir.append(w_hh.T)                               # (32, 96)
            gib.append(jnp.concatenate([b_ih[:2 * H] + b_hh[:2 * H],
                                        b_ih[2 * H:]])[None, :])  # (1, 96)
            bhn.append(b_hh[2 * H:][None, :])                    # (1, 32)
        bd = jnp.zeros((2 * H, 6 * H), jnp.float32)
        bd = bd.at[:H, :3 * H].set(per_dir[0]).at[H:, 3 * H:].set(per_dir[1])
        whh_bd.append(bd)                                        # block-diag [fwd|bwd]
    p["gru_wih"] = jnp.stack(wih).astype(bf16)                   # (4, 64, 96)
    p["gru_whh"] = jnp.stack(whh_bd).astype(bf16)                # (2, 64, 192)
    p["gru_gib"] = jnp.stack(gib)                                # (4, 1, 96) f32
    p["gru_bhn"] = jnp.stack(bhn)                                # (4, 1, 32) f32
    # layer5: Linear(64, num_chars + 1), zero-padded to 128 output lanes.
    nc = num_chars + 1
    fc2 = nrm((nc, 64)).T                                        # (64, nc)
    p["fc2_w"] = jnp.pad(fc2, ((0, 0), (0, 128 - nc))).astype(bf16)
    p["fc2_b"] = jnp.pad(nrm((nc,)), (0, 128 - nc)).reshape(1, 128)
    return p


# ---------------------------------------------------------------------------

if __name__ == "__main__":
    num_chars = 19
    key = jax.random.PRNGKey(0)
    params = init_params(key, num_chars)

    # Module-consistent small shape: H must be 48 (Linear(768,64) == 64 * H/4),
    # W=32 -> sequence length T = 8 after the two MaxPools.
    images = jax.random.normal(jax.random.fold_in(key, 999), (2, 3, 48, 32), jnp.float32)

    fwd = jax.jit(functools.partial(captcha_forward, num_classes=num_chars + 1))
    out, loss = fwd(images, params)
    out = jax.block_until_ready(out)

    assert out.shape == (8, 2, num_chars + 1), out.shape
    assert out.dtype == jnp.float32
    assert loss is None
    assert bool(jnp.all(jnp.isfinite(out)))
    print("KERNEL_OK")
</pallas_src>

<mosaic_0001>
module attributes {stable_mosaic.version = 11 : i64} {
  func.func @_captcha_kernel(%arg0: i32, %arg1: memref<1x1536x32xbf16, #tpu.memory_space<vmem>>, %arg2: memref<32x32xbf16, #tpu.memory_space<vmem>>, %arg3: memref<1x32xf32, #tpu.memory_space<vmem>>, %arg4: memref<9x32x64xbf16, #tpu.memory_space<vmem>>, %arg5: memref<1x64xf32, #tpu.memory_space<vmem>>, %arg6: memref<12x64x64xbf16, #tpu.memory_space<vmem>>, %arg7: memref<1x64xf32, #tpu.memory_space<vmem>>, %arg8: memref<4x64x96xbf16, #tpu.memory_space<vmem>>, %arg9: memref<2x64x192xbf16, #tpu.memory_space<vmem>>, %arg10: memref<4x1x96xf32, #tpu.memory_space<vmem>>, %arg11: memref<4x1x32xf32, #tpu.memory_space<vmem>>, %arg12: memref<64x128xbf16, #tpu.memory_space<vmem>>, %arg13: memref<1x128xf32, #tpu.memory_space<vmem>>, %arg14: memref<1x8x128xf32, #tpu.memory_space<vmem>>, %arg15: memref<4x13x9x32xbf16, #tpu.memory_space<vmem>>) attributes {dimension_semantics = [#tpu.dimension_semantics<parallel>], iteration_bounds = array<i64: 2>, scalar_prefetch = 0 : i64, scratch_operands = 1 : i64, tpu.core_type = #tpu.core_type<tc>, window_params = [{transform_indices = @transform_0, window_bounds = array<i64: 1, 1536, 32>}, {pipeline_mode = #tpu.pipeline_mode<synchronous>, transform_indices = @transform_1, window_bounds = array<i64: 32, 32>}, {pipeline_mode = #tpu.pipeline_mode<synchronous>, transform_indices = @transform_2, window_bounds = array<i64: 1, 32>}, {pipeline_mode = #tpu.pipeline_mode<synchronous>, transform_indices = @transform_3, window_bounds = array<i64: 9, 32, 64>}, {pipeline_mode = #tpu.pipeline_mode<synchronous>, transform_indices = @transform_4, window_bounds = array<i64: 1, 64>}, {pipeline_mode = #tpu.pipeline_mode<synchronous>, transform_indices = @transform_5, window_bounds = array<i64: 12, 64, 64>}, {pipeline_mode = #tpu.pipeline_mode<synchronous>, transform_indices = @transform_6, window_bounds = array<i64: 1, 64>}, {pipeline_mode = #tpu.pipeline_mode<synchronous>, transform_indices = @transform_7, window_bounds = array<i64: 4, 64, 96>}, {pipeline_mode = #tpu.pipeline_mode<synchronous>, transform_indices = @transform_8, window_bounds = array<i64: 2, 64, 192>}, {pipeline_mode = #tpu.pipeline_mode<synchronous>, transform_indices = @transform_9, window_bounds = array<i64: 4, 1, 96>}, {pipeline_mode = #tpu.pipeline_mode<synchronous>, transform_indices = @transform_10, window_bounds = array<i64: 4, 1, 32>}, {pipeline_mode = #tpu.pipeline_mode<synchronous>, transform_indices = @transform_11, window_bounds = array<i64: 64, 128>}, {pipeline_mode = #tpu.pipeline_mode<synchronous>, transform_indices = @transform_12, window_bounds = array<i64: 1, 128>}, {transform_indices = @transform_13, window_bounds = array<i64: 1, 8, 128>}]} {
    %c0 = arith.constant 0 : index
    %c0_0 = arith.constant 0 : index
    %c0_1 = arith.constant 0 : index
    %0 = vector.load %arg1[%c0, %c0_0, %c0_1] : memref<1x1536x32xbf16, #tpu.memory_space<vmem>>, vector<1x1536x32xbf16>
    %1 = vector.shape_cast %0 : vector<1x1536x32xbf16> to vector<1536x32xbf16>
    %c0_2 = arith.constant 0 : index
    %c0_3 = arith.constant 0 : index
    %2 = vector.load %arg2[%c0_2, %c0_3] : memref<32x32xbf16, #tpu.memory_space<vmem>>, vector<32x32xbf16>
    %cst = arith.constant dense<0.000000e+00> : vector<1536x32xf32>
    %3 = tpu.matmul %1, %2, %cst {dimension_numbers = #tpu.dot_dimension_numbers<[1], [0], [0], [1], [0, 0, 1, 1], [], []>} : vector<1536x32xbf16>, vector<32x32xbf16>, vector<1536x32xf32> -> vector<1536x32xf32>
    %4 = vector.extract_strided_slice %3 {offsets = [0, 0], sizes = [384, 32], strides = [1, 1]} : vector<1536x32xf32> to vector<384x32xf32>
    %5 = vector.extract_strided_slice %3 {offsets = [384, 0], sizes = [384, 32], strides = [1, 1]} : vector<1536x32xf32> to vector<384x32xf32>
    %6 = arith.maximumf %4, %5 : vector<384x32xf32>
    %7 = vector.extract_strided_slice %3 {offsets = [768, 0], sizes = [384, 32], strides = [1, 1]} : vector<1536x32xf32> to vector<384x32xf32>
    %8 = vector.extract_strided_slice %3 {offsets = [1152, 0], sizes = [384, 32], strides = [1, 1]} : vector<1536x32xf32> to vector<384x32xf32>
    %9 = arith.maximumf %7, %8 : vector<384x32xf32>
    %10 = arith.maximumf %6, %9 : vector<384x32xf32>
    %c0_4 = arith.constant 0 : index
    %c0_5 = arith.constant 0 : index
    %11 = vector.load %arg3[%c0_4, %c0_5] : memref<1x32xf32, #tpu.memory_space<vmem>>, vector<1x32xf32>
    %12 = vector.broadcast %11 : vector<1x32xf32> to vector<384x32xf32>
    %13 = arith.addf %10, %12 : vector<384x32xf32>
    %cst_6 = arith.constant 0.000000e+00 : f32
    %14 = vector.broadcast %cst_6 : f32 to vector<384x32xf32>
    %15 = arith.maximumf %13, %14 : vector<384x32xf32>
    %16 = arith.truncf %15 : vector<384x32xf32> to vector<384x32xbf16>
    %17 = vector.shape_cast %16 : vector<384x32xbf16> to vector<2x24x8x32xbf16>
    %cst_7 = arith.constant 0.000000e+00 : bf16
    %18 = vector.broadcast %cst_7 : bf16 to vector<4x13x9x32xbf16>
    %c0_8 = arith.constant 0 : index
    %c0_9 = arith.constant 0 : index
    %c0_10 = arith.constant 0 : index
    %c0_11 = arith.constant 0 : index
    %19 = vector.load %arg15[%c0_8, %c0_9, %c0_10, %c0_11] : memref<4x13x9x32xbf16, #tpu.memory_space<vmem>>, vector<4x13x9x32xbf16>
    tpu.vector_store %arg15[%c0_8, %c0_9, %c0_10, %c0_11], %18 {strides = array<i32>} : memref<4x13x9x32xbf16, #tpu.memory_space<vmem>>, vector<4x13x9x32xbf16>,
    %20 = vector.extract_strided_slice %17 {offsets = [0, 0, 0, 0], sizes = [1, 24, 8, 32], strides = [1, 1, 1, 1]} : vector<2x24x8x32xbf16> to vector<1x24x8x32xbf16>
    %21 = vector.shape_cast %20 : vector<1x24x8x32xbf16> to vector<24x8x32xbf16>
    %22 = vector.shape_cast %21 : vector<24x8x32xbf16> to vector<12x2x8x32xbf16>
    %23 = vector.extract_strided_slice %22 {offsets = [0, 0, 0, 0], sizes = [12, 1, 8, 32], strides = [1, 1, 1, 1]} : vector<12x2x8x32xbf16> to vector<12x1x8x32xbf16>
    %24 = vector.shape_cast %23 : vector<12x1x8x32xbf16> to vector<12x8x32xbf16>
    %c3 = arith.constant 3 : index
    %c0_12 = arith.constant 0 : index
    %c0_13 = arith.constant 0 : index
    %c0_14 = arith.constant 0 : index
    %25 = vector.load %arg15[%c3, %c0_12, %c0_13, %c0_14] : memref<4x13x9x32xbf16, #tpu.memory_space<vmem>>, vector<1x12x8x32xbf16>
    %26 = vector.shape_cast %25 : vector<1x12x8x32xbf16> to vector<12x8x32xbf16>
    %27 = vector.shape_cast %24 : vector<12x8x32xbf16> to vector<1x12x8x32xbf16>
    tpu.vector_store %arg15[%c3, %c0_12, %c0_13, %c0_14], %27 {strides = array<i32>} : memref<4x13x9x32xbf16, #tpu.memory_space<vmem>>, vector<1x12x8x32xbf16>,
    %28 = vector.extract_strided_slice %22 {offsets = [0, 1, 0, 0], sizes = [12, 1, 8, 32], strides = [1, 1, 1, 1]} : vector<12x2x8x32xbf16> to vector<12x1x8x32xbf16>
    %29 = vector.shape_cast %28 : vector<12x1x8x32xbf16> to vector<12x8x32xbf16>
    %c2 = arith.constant 2 : index
    %c1 = arith.constant 1 : index
    %c0_15 = arith.constant 0 : index
    %c0_16 = arith.constant 0 : index
    %30 = vector.load %arg15[%c2, %c1, %c0_15, %c0_16] : memref<4x13x9x32xbf16, #tpu.memory_space<vmem>>, vector<1x12x8x32xbf16>
    %31 = vector.shape_cast %30 : vector<1x12x8x32xbf16> to vector<12x8x32xbf16>
    %32 = vector.shape_cast %29 : vector<12x8x32xbf16> to vector<1x12x8x32xbf16>
    tpu.vector_store %arg15[%c2, %c1, %c0_15, %c0_16], %32 {strides = array<i32>} : memref<4x13x9x32xbf16, #tpu.memory_space<vmem>>, vector<1x12x8x32xbf16>,
    %33 = vector.extract_strided_slice %17 {offsets = [1, 0, 0, 0], sizes = [1, 24, 8, 32], strides = [1, 1, 1, 1]} : vector<2x24x8x32xbf16> to vector<1x24x8x32xbf16>
    %34 = vector.shape_cast %33 : vector<1x24x8x32xbf16> to vector<24x8x32xbf16>
    %35 = vector.shape_cast %34 : vector<24x8x32xbf16> to vector<12x2x8x32xbf16>
    %36 = vector.extract_strided_slice %35 {offsets = [0, 0, 0, 0], sizes = [12, 1, 8, 32], strides = [1, 1, 1, 1]} : vector<12x2x8x32xbf16> to vector<12x1x8x32xbf16>
    %37 = vector.shape_cast %36 : vector<12x1x8x32xbf16> to vector<12x8x32xbf16>
    %c1_17 = arith.constant 1 : index
    %c0_18 = arith.constant 0 : index
    %c1_19 = arith.constant 1 : index
    %c0_20 = arith.constant 0 : index
    %38 = vector.load %arg15[%c1_17, %c0_18, %c1_19, %c0_20] : memref<4x13x9x32xbf16, #tpu.memory_space<vmem>>, vector<1x12x8x32xbf16>
    %39 = vector.shape_cast %38 : vector<1x12x8x32xbf16> to vector<12x8x32xbf16>
    %40 = vector.shape_cast %37 : vector<12x8x32xbf16> to vector<1x12x8x32xbf16>
    tpu.vector_store %arg15[%c1_17, %c0_18, %c1_19, %c0_20], %40 {strides = array<i32>} : memref<4x13x9x32xbf16, #tpu.memory_space<vmem>>, vector<1x12x8x32xbf16>,
    %41 = vector.extract_strided_slice %35 {offsets = [0, 1, 0, 0], sizes = [12, 1, 8, 32], strides = [1, 1, 1, 1]} : vector<12x2x8x32xbf16> to vector<12x1x8x32xbf16>
    %42 = vector.shape_cast %41 : vector<12x1x8x32xbf16> to vector<12x8x32xbf16>
    %c0_21 = arith.constant 0 : index
    %c1_22 = arith.constant 1 : index
    %c1_23 = arith.constant 1 : index
    %c0_24 = arith.constant 0 : index
    %43 = vector.load %arg15[%c0_21, %c1_22, %c1_23, %c0_24] : memref<4x13x9x32xbf16, #tpu.memory_space<vmem>>, vector<1x12x8x32xbf16>
    %44 = vector.shape_cast %43 : vector<1x12x8x32xbf16> to vector<12x8x32xbf16>
    %45 = vector.shape_cast %42 : vector<12x8x32xbf16> to vector<1x12x8x32xbf16>
    tpu.vector_store %arg15[%c0_21, %c1_22, %c1_23, %c0_24], %45 {strides = array<i32>} : memref<4x13x9x32xbf16, #tpu.memory_space<vmem>>, vector<1x12x8x32xbf16>,
    %c0_25 = arith.constant 0 : index
    %c0_26 = arith.constant 0 : index
    %c0_27 = arith.constant 0 : index
    %c0_28 = arith.constant 0 : index
    %46 = vector.load %arg15[%c0_25, %c0_26, %c0_27, %c0_28] : memref<4x13x9x32xbf16, #tpu.memory_space<vmem>>, vector<1x12x8x32xbf16>
    %47 = vector.shape_cast %46 : vector<1x12x8x32xbf16> to vector<12x8x32xbf16>
    %48 = vector.shape_cast %47 : vector<12x8x32xbf16> to vector<96x32xbf16>
    %c0_29 = arith.constant 0 : index
    %c0_30 = arith.constant 0 : index
    %c0_31 = arith.constant 0 : index
    %49 = vector.load %arg4[%c0_29, %c0_30, %c0_31] : memref<9x32x64xbf16, #tpu.memory_space<vmem>>, vector<1x32x64xbf16>
    %50 = vector.shape_cast %49 : vector<1x32x64xbf16> to vector<32x64xbf16>
    %cst_32 = arith.constant dense<0.000000e+00> : vector<96x64xf32>
    %51 = tpu.matmul %48, %50, %cst_32 {dimension_numbers = #tpu.dot_dimension_numbers<[1], [0], [0], [1], [0, 0, 1, 1], [], []>} : vector<96x32xbf16>, vector<32x64xbf16>, vector<96x64xf32> -> vector<96x64xf32>
    %c2_33 = arith.constant 2 : index
    %c0_34 = arith.constant 0 : index
    %c0_35 = arith.constant 0 : index
    %c0_36 = arith.constant 0 : index
    %52 = vector.load %arg15[%c2_33, %c0_34, %c0_35, %c0_36] : memref<4x13x9x32xbf16, #tpu.memory_space<vmem>>, vector<1x12x8x32xbf16>
    %53 = vector.shape_cast %52 : vector<1x12x8x32xbf16> to vector<12x8x32xbf16>
    %54 = vector.shape_cast %53 : vector<12x8x32xbf16> to vector<96x32xbf16>
    %c1_37 = arith.constant 1 : index
    %c0_38 = arith.constant 0 : index
    %c0_39 = arith.constant 0 : index
    %55 = vector.load %arg4[%c1_37, %c0_38, %c0_39] : memref<9x32x64xbf16, #tpu.memory_space<vmem>>, vector<1x32x64xbf16>
    %56 = vector.shape_cast %55 : vector<1x32x64xbf16> to vector<32x64xbf16>
    %cst_40 = arith.constant dense<0.000000e+00> : vector<96x64xf32>
    %57 = tpu.matmul %54, %56, %cst_40 {dimension_numbers = #tpu.dot_dimension_numbers<[1], [0], [0], [1], [0, 0, 1, 1], [], []>} : vector<96x32xbf16>, vector<32x64xbf16>, vector<96x64xf32> -> vector<96x64xf32>
    %58 = arith.addf %51, %57 : vector<96x64xf32>
    %c0_41 = arith.constant 0 : index
    %c0_42 = arith.constant 0 : index
    %c1_43 = arith.constant 1 : index
    %c0_44 = arith.constant 0 : index
    %59 = vector.load %arg15[%c0_41, %c0_42, %c1_43, %c0_44] : memref<4x13x9x32xbf16, #tpu.memory_space<vmem>>, vector<1x12x8x32xbf16>
    %60 = vector.shape_cast %59 : vector<1x12x8x32xbf16> to vector<12x8x32xbf16>
    %61 = vector.shape_cast %60 : vector<12x8x32xbf16> to vector<96x32xbf16>
    %c2_45 = arith.constant 2 : index
    %c0_46 = arith.constant 0 : index
    %c0_47 = arith.constant 0 : index
    %62 = vector.load %arg4[%c2_45, %c0_46, %c0_47] : memref<9x32x64xbf16, #tpu.memory_space<vmem>>, vector<1x32x64xbf16>
    %63 = vector.shape_cast %62 : vector<1x32x64xbf16> to vector<32x64xbf16>
    %cst_48 = arith.constant dense<0.000000e+00> : vector<96x64xf32>
    %64 = tpu.matmul %61, %63, %cst_48 {dimension_numbers = #tpu.dot_dimension_numbers<[1], [0], [0], [1], [0, 0, 1, 1], [], []>} : vector<96x32xbf16>, vector<32x64xbf16>, vector<96x64xf32> -> vector<96x64xf32>
    %65 = arith.addf %58, %64 : vector<96x64xf32>
    %c1_49 = arith.constant 1 : index
    %c0_50 = arith.constant 0 : index
    %c0_51 = arith.constant 0 : index
    %c0_52 = arith.constant 0 : index
    %66 = vector.load %arg15[%c1_49, %c0_50, %c0_51, %c0_52] : memref<4x13x9x32xbf16, #tpu.memory_space<vmem>>, vector<1x12x8x32xbf16>
    %67 = vector.shape_cast %66 : vector<1x12x8x32xbf16> to vector<12x8x32xbf16>
    %68 = vector.shape_cast %67 : vector<12x8x32xbf16> to vector<96x32xbf16>
    %c3_53 = arith.constant 3 : index
    %c0_54 = arith.constant 0 : index
    %c0_55 = arith.constant 0 : index
    %69 = vector.load %arg4[%c3_53, %c0_54, %c0_55] : memref<9x32x64xbf16, #tpu.memory_space<vmem>>, vector<1x32x64xbf16>
    %70 = vector.shape_cast %69 : vector<1x32x64xbf16> to vector<32x64xbf16>
    %cst_56 = arith.constant dense<0.000000e+00> : vector<96x64xf32>
    %71 = tpu.matmul %68, %70, %cst_56 {dimension_numbers = #tpu.dot_dimension_numbers<[1], [0], [0], [1], [0, 0, 1, 1], [], []>} : vector<96x32xbf16>, vector<32x64xbf16>, vector<96x64xf32> -> vector<96x64xf32>
    %72 = arith.addf %65, %71 : vector<96x64xf32>
    %c3_57 = arith.constant 3 : index
    %c0_58 = arith.constant 0 : index
    %c0_59 = arith.constant 0 : index
    %c0_60 = arith.constant 0 : index
    %73 = vector.load %arg15[%c3_57, %c0_58, %c0_59, %c0_60] : memref<4x13x9x32xbf16, #tpu.memory_space<vmem>>, vector<1x12x8x32xbf16>
    %74 = vector.shape_cast %73 : vector<1x12x8x32xbf16> to vector<12x8x32xbf16>
    %75 = vector.shape_cast %74 : vector<12x8x32xbf16> to vector<96x32xbf16>
    %c4 = arith.constant 4 : index
    %c0_61 = arith.constant 0 : index
    %c0_62 = arith.constant 0 : index
    %76 = vector.load %arg4[%c4, %c0_61, %c0_62] : memref<9x32x64xbf16, #tpu.memory_space<vmem>>, vector<1x32x64xbf16>
    %77 = vector.shape_cast %76 : vector<1x32x64xbf16> to vector<32x64xbf16>
    %cst_63 = arith.constant dense<0.000000e+00> : vector<96x64xf32>
    %78 = tpu.matmul %75, %77, %cst_63 {dimension_numbers = #tpu.dot_dimension_numbers<[1], [0], [0], [1], [0, 0, 1, 1], [], []>} : vector<96x32xbf16>, vector<32x64xbf16>, vector<96x64xf32> -> vector<96x64xf32>
    %79 = arith.addf %72, %78 : vector<96x64xf32>
    %c1_64 = arith.constant 1 : index
    %c0_65 = arith.constant 0 : index
    %c1_66 = arith.constant 1 : index
    %c0_67 = arith.constant 0 : index
    %80 = vector.load %arg15[%c1_64, %c0_65, %c1_66, %c0_67] : memref<4x13x9x32xbf16, #tpu.memory_space<vmem>>, vector<1x12x8x32xbf16>
    %81 = vector.shape_cast %80 : vector<1x12x8x32xbf16> to vector<12x8x32xbf16>
    %82 = vector.shape_cast %81 : vector<12x8x32xbf16> to vector<96x32xbf16>
    %c5 = arith.constant 5 : index
    %c0_68 = arith.constant 0 : index
    %c0_69 = arith.constant 0 : index
    %83 = vector.load %arg4[%c5, %c0_68, %c0_69] : memref<9x32x64xbf16, #tpu.memory_space<vmem>>, vector<1x32x64xbf16>
    %84 = vector.shape_cast %83 : vector<1x32x64xbf16> to vector<32x64xbf16>
    %cst_70 = arith.constant dense<0.000000e+00> : vector<96x64xf32>
    %85 = tpu.matmul %82, %84, %cst_70 {dimension_numbers = #tpu.dot_dimension_numbers<[1], [0], [0], [1], [0, 0, 1, 1], [], []>} : vector<96x32xbf16>, vector<32x64xbf16>, vector<96x64xf32> -> vector<96x64xf32>
    %86 = arith.addf %79, %85 : vector<96x64xf32>
    %c0_71 = arith.constant 0 : index
    %c1_72 = arith.constant 1 : index
    %c0_73 = arith.constant 0 : index
    %c0_74 = arith.constant 0 : index
    %87 = vector.load %arg15[%c0_71, %c1_72, %c0_73, %c0_74] : memref<4x13x9x32xbf16, #tpu.memory_space<vmem>>, vector<1x12x8x32xbf16>
    %88 = vector.shape_cast %87 : vector<1x12x8x32xbf16> to vector<12x8x32xbf16>
    %89 = vector.shape_cast %88 : vector<12x8x32xbf16> to vector<96x32xbf16>
    %c6 = arith.constant 6 : index
    %c0_75 = arith.constant 0 : index
    %c0_76 = arith.constant 0 : index
    %90 = vector.load %arg4[%c6, %c0_75, %c0_76] : memref<9x32x64xbf16, #tpu.memory_space<vmem>>, vector<1x32x64xbf16>
    %91 = vector.shape_cast %90 : vector<1x32x64xbf16> to vector<32x64xbf16>
    %cst_77 = arith.constant dense<0.000000e+00> : vector<96x64xf32>
    %92 = tpu.matmul %89, %91, %cst_77 {dimension_numbers = #tpu.dot_dimension_numbers<[1], [0], [0], [1], [0, 0, 1, 1], [], []>} : vector<96x32xbf16>, vector<32x64xbf16>, vector<96x64xf32> -> vector<96x64xf32>
    %93 = arith.addf %86, %92 : vector<96x64xf32>
    %c2_78 = arith.constant 2 : index
    %c1_79 = arith.constant 1 : index
    %c0_80 = arith.constant 0 : index
    %c0_81 = arith.constant 0 : index
    %94 = vector.load %arg15[%c2_78, %c1_79, %c0_80, %c0_81] : memref<4x13x9x32xbf16, #tpu.memory_space<vmem>>, vector<1x12x8x32xbf16>
    %95 = vector.shape_cast %94 : vector<1x12x8x32xbf16> to vector<12x8x32xbf16>
    %96 = vector.shape_cast %95 : vector<12x8x32xbf16> to vector<96x32xbf16>
    %c7 = arith.constant 7 : index
    %c0_82 = arith.constant 0 : index
    %c0_83 = arith.constant 0 : index
    %97 = vector.load %arg4[%c7, %c0_82, %c0_83] : memref<9x32x64xbf16, #tpu.memory_space<vmem>>, vector<1x32x64xbf16>
    %98 = vector.shape_cast %97 : vector<1x32x64xbf16> to vector<32x64xbf16>
    %cst_84 = arith.constant dense<0.000000e+00> : vector<96x64xf32>
    %99 = tpu.matmul %96, %98, %cst_84 {dimension_numbers = #tpu.dot_dimension_numbers<[1], [0], [0], [1], [0, 0, 1, 1], [], []>} : vector<96x32xbf16>, vector<32x64xbf16>, vector<96x64xf32> -> vector<96x64xf32>
    %100 = arith.addf %93, %99 : vector<96x64xf32>
    %c0_85 = arith.constant 0 : index
    %c1_86 = arith.constant 1 : index
    %c1_87 = arith.constant 1 : index
    %c0_88 = arith.constant 0 : index
    %101 = vector.load %arg15[%c0_85, %c1_86, %c1_87, %c0_88] : memref<4x13x9x32xbf16, #tpu.memory_space<vmem>>, vector<1x12x8x32xbf16>
    %102 = vector.shape_cast %101 : vector<1x12x8x32xbf16> to vector<12x8x32xbf16>
    %103 = vector.shape_cast %102 : vector<12x8x32xbf16> to vector<96x32xbf16>
    %c8 = arith.constant 8 : index
    %c0_89 = arith.constant 0 : index
    %c0_90 = arith.constant 0 : index
    %104 = vector.load %arg4[%c8, %c0_89, %c0_90] : memref<9x32x64xbf16, #tpu.memory_space<vmem>>, vector<1x32x64xbf16>
    %105 = vector.shape_cast %104 : vector<1x32x64xbf16> to vector<32x64xbf16>
    %cst_91 = arith.constant dense<0.000000e+00> : vector<96x64xf32>
    %106 = tpu.matmul %103, %105, %cst_91 {dimension_numbers = #tpu.dot_dimension_numbers<[1], [0], [0], [1], [0, 0, 1, 1], [], []>} : vector<96x32xbf16>, vector<32x64xbf16>, vector<96x64xf32> -> vector<96x64xf32>
    %107 = arith.addf %100, %106 : vector<96x64xf32>
    %c2_92 = arith.constant 2 : index
    %c0_93 = arith.constant 0 : index
    %c0_94 = arith.constant 0 : index
    %c0_95 = arith.constant 0 : index
    %108 = vector.load %arg15[%c2_92, %c0_93, %c0_94, %c0_95] : memref<4x13x9x32xbf16, #tpu.memory_space<vmem>>, vector<1x12x8x32xbf16>
    %109 = vector.shape_cast %108 : vector<1x12x8x32xbf16> to vector<12x8x32xbf16>
    %110 = vector.shape_cast %109 : vector<12x8x32xbf16> to vector<96x32xbf16>
    %c0_96 = arith.constant 0 : index
    %c0_97 = arith.constant 0 : index
    %c0_98 = arith.constant 0 : index
    %111 = vector.load %arg4[%c0_96, %c0_97, %c0_98] : memref<9x32x64xbf16, #tpu.memory_space<vmem>>, vector<1x32x64xbf16>
    %112 = vector.shape_cast %111 : vector<1x32x64xbf16> to vector<32x64xbf16>
    %cst_99 = arith.constant dense<0.000000e+00> : vector<96x64xf32>
    %113 = tpu.matmul %110, %112, %cst_99 {dimension_numbers = #tpu.dot_dimension_numbers<[1], [0], [0], [1], [0, 0, 1, 1], [], []>} : vector<96x32xbf16>, vector<32x64xbf16>, vector<96x64xf32> -> vector<96x64xf32>
    %c0_100 = arith.constant 0 : index
    %c0_101 = arith.constant 0 : index
    %c1_102 = arith.constant 1 : index
    %c0_103 = arith.constant 0 : index
    %114 = vector.load %arg15[%c0_100, %c0_101, %c1_102, %c0_103] : memref<4x13x9x32xbf16, #tpu.memory_space<vmem>>, vector<1x12x8x32xbf16>
    %115 = vector.shape_cast %114 : vector<1x12x8x32xbf16> to vector<12x8x32xbf16>
    %116 = vector.shape_cast %115 : vector<12x8x32xbf16> to vector<96x32xbf16>
    %c1_104 = arith.constant 1 : index
    %c0_105 = arith.constant 0 : index
    %c0_106 = arith.constant 0 : index
    %117 = vector.load %arg4[%c1_104, %c0_105, %c0_106] : memref<9x32x64xbf16, #tpu.memory_space<vmem>>, vector<1x32x64xbf16>
    %118 = vector.shape_cast %117 : vector<1x32x64xbf16> to vector<32x64xbf16>
    %cst_107 = arith.constant dense<0.000000e+00> : vector<96x64xf32>
    %119 = tpu.matmul %116, %118, %cst_107 {dimension_numbers = #tpu.dot_dimension_numbers<[1], [0], [0], [1], [0, 0, 1, 1], [], []>} : vector<96x32xbf16>, vector<32x64xbf16>, vector<96x64xf32> -> vector<96x64xf32>
    %120 = arith.addf %113, %119 : vector<96x64xf32>
    %c2_108 = arith.constant 2 : index
    %c0_109 = arith.constant 0 : index
    %c1_110 = arith.constant 1 : index
    %c0_111 = arith.constant 0 : index
    %121 = vector.load %arg15[%c2_108, %c0_109, %c1_110, %c0_111] : memref<4x13x9x32xbf16, #tpu.memory_space<vmem>>, vector<1x12x8x32xbf16>
    %122 = vector.shape_cast %121 : vector<1x12x8x32xbf16> to vector<12x8x32xbf16>
    %123 = vector.shape_cast %122 : vector<12x8x32xbf16> to vector<96x32xbf16>
    %c2_112 = arith.constant 2 : index
    %c0_113 = arith.constant 0 : index
    %c0_114 = arith.constant 0 : index
    %124 = vector.load %arg4[%c2_112, %c0_113, %c0_114] : memref<9x32x64xbf16, #tpu.memory_space<vmem>>, vector<1x32x64xbf16>
    %125 = vector.shape_cast %124 : vector<1x32x64xbf16> to vector<32x64xbf16>
    %cst_115 = arith.constant dense<0.000000e+00> : vector<96x64xf32>
    %126 = tpu.matmul %123, %125, %cst_115 {dimension_numbers = #tpu.dot_dimension_numbers<[1], [0], [0], [1], [0, 0, 1, 1], [], []>} : vector<96x32xbf16>, vector<32x64xbf16>, vector<96x64xf32> -> vector<96x64xf32>
    %127 = arith.addf %120, %126 : vector<96x64xf32>
    %c3_116 = arith.constant 3 : index
    %c0_117 = arith.constant 0 : index
    %c0_118 = arith.constant 0 : index
    %c0_119 = arith.constant 0 : index
    %128 = vector.load %arg15[%c3_116, %c0_117, %c0_118, %c0_119] : memref<4x13x9x32xbf16, #tpu.memory_space<vmem>>, vector<1x12x8x32xbf16>
    %129 = vector.shape_cast %128 : vector<1x12x8x32xbf16> to vector<12x8x32xbf16>
    %130 = vector.shape_cast %129 : vector<12x8x32xbf16> to vector<96x32xbf16>
    %c3_120 = arith.constant 3 : index
    %c0_121 = arith.constant 0 : index
    %c0_122 = arith.constant 0 : index
    %131 = vector.load %arg4[%c3_120, %c0_121, %c0_122] : memref<9x32x64xbf16, #tpu.memory_space<vmem>>, vector<1x32x64xbf16>
    %132 = vector.shape_cast %131 : vector<1x32x64xbf16> to vector<32x64xbf16>
    %cst_123 = arith.constant dense<0.000000e+00> : vector<96x64xf32>
    %133 = tpu.matmul %130, %132, %cst_123 {dimension_numbers = #tpu.dot_dimension_numbers<[1], [0], [0], [1], [0, 0, 1, 1], [], []>} : vector<96x32xbf16>, vector<32x64xbf16>, vector<96x64xf32> -> vector<96x64xf32>
    %134 = arith.addf %127, %133 : vector<96x64xf32>
    %c1_124 = arith.constant 1 : index
    %c0_125 = arith.constant 0 : index
    %c1_126 = arith.constant 1 : index
    %c0_127 = arith.constant 0 : index
    %135 = vector.load %arg15[%c1_124, %c0_125, %c1_126, %c0_127] : memref<4x13x9x32xbf16, #tpu.memory_space<vmem>>, vector<1x12x8x32xbf16>
    %136 = vector.shape_cast %135 : vector<1x12x8x32xbf16> to vector<12x8x32xbf16>
    %137 = vector.shape_cast %136 : vector<12x8x32xbf16> to vector<96x32xbf16>
    %c4_128 = arith.constant 4 : index
    %c0_129 = arith.constant 0 : index
    %c0_130 = arith.constant 0 : index
    %138 = vector.load %arg4[%c4_128, %c0_129, %c0_130] : memref<9x32x64xbf16, #tpu.memory_space<vmem>>, vector<1x32x64xbf16>
    %139 = vector.shape_cast %138 : vector<1x32x64xbf16> to vector<32x64xbf16>
    %cst_131 = arith.constant dense<0.000000e+00> : vector<96x64xf32>
    %140 = tpu.matmul %137, %139, %cst_131 {dimension_numbers = #tpu.dot_dimension_numbers<[1], [0], [0], [1], [0, 0, 1, 1], [], []>} : vector<96x32xbf16>, vector<32x64xbf16>, vector<96x64xf32> -> vector<96x64xf32>
    %141 = arith.addf %134, %140 : vector<96x64xf32>
    %c3_132 = arith.constant 3 : index
    %c0_133 = arith.constant 0 : index
    %c1_134 = arith.constant 1 : index
    %c0_135 = arith.constant 0 : index
    %142 = vector.load %arg15[%c3_132, %c0_133, %c1_134, %c0_135] : memref<4x13x9x32xbf16, #tpu.memory_space<vmem>>, vector<1x12x8x32xbf16>
    %143 = vector.shape_cast %142 : vector<1x12x8x32xbf16> to vector<12x8x32xbf16>
    %144 = vector.shape_cast %143 : vector<12x8x32xbf16> to vector<96x32xbf16>
    %c5_136 = arith.constant 5 : index
    %c0_137 = arith.constant 0 : index
    %c0_138 = arith.constant 0 : index
    %145 = vector.load %arg4[%c5_136, %c0_137, %c0_138] : memref<9x32x64xbf16, #tpu.memory_space<vmem>>, vector<1x32x64xbf16>
    %146 = vector.shape_cast %145 : vector<1x32x64xbf16> to vector<32x64xbf16>
    %cst_139 = arith.constant dense<0.000000e+00> : vector<96x64xf32>
    %147 = tpu.matmul %144, %146, %cst_139 {dimension_numbers = #tpu.dot_dimension_numbers<[1], [0], [0], [1], [0, 0, 1, 1], [], []>} : vector<96x32xbf16>, vector<32x64xbf16>, vector<96x64xf32> -> vector<96x64xf32>
    %148 = arith.addf %141, %147 : vector<96x64xf32>
    %c2_140 = arith.constant 2 : index
    %c1_141 = arith.constant 1 : index
    %c0_142 = arith.constant 0 : index
    %c0_143 = arith.constant 0 : index
    %149 = vector.load %arg15[%c2_140, %c1_141, %c0_142, %c0_143] : memref<4x13x9x32xbf16, #tpu.memory_space<vmem>>, vector<1x12x8x32xbf16>
    %150 = vector.shape_cast %149 : vector<1x12x8x32xbf16> to vector<12x8x32xbf16>
    %151 = vector.shape_cast %150 : vector<12x8x32xbf16> to vector<96x32xbf16>
    %c6_144 = arith.constant 6 : index
    %c0_145 = arith.constant 0 : index
    %c0_146 = arith.constant 0 : index
    %152 = vector.load %arg4[%c6_144, %c0_145, %c0_146] : memref<9x32x64xbf16, #tpu.memory_space<vmem>>, vector<1x32x64xbf16>
    %153 = vector.shape_cast %152 : vector<1x32x64xbf16> to vector<32x64xbf16>
    %cst_147 = arith.constant dense<0.000000e+00> : vector<96x64xf32>
    %154 = tpu.matmul %151, %153, %cst_147 {dimension_numbers = #tpu.dot_dimension_numbers<[1], [0], [0], [1], [0, 0, 1, 1], [], []>} : vector<96x32xbf16>, vector<32x64xbf16>, vector<96x64xf32> -> vector<96x64xf32>
    %155 = arith.addf %148, %154 : vector<96x64xf32>
    %c0_148 = arith.constant 0 : index
    %c1_149 = arith.constant 1 : index
    %c1_150 = arith.constant 1 : index
    %c0_151 = arith.constant 0 : index
    %156 = vector.load %arg15[%c0_148, %c1_149, %c1_150, %c0_151] : memref<4x13x9x32xbf16, #tpu.memory_space<vmem>>, vector<1x12x8x32xbf16>
    %157 = vector.shape_cast %156 : vector<1x12x8x32xbf16> to vector<12x8x32xbf16>
    %158 = vector.shape_cast %157 : vector<12x8x32xbf16> to vector<96x32xbf16>
    %c7_152 = arith.constant 7 : index
    %c0_153 = arith.constant 0 : index
    %c0_154 = arith.constant 0 : index
    %159 = vector.load %arg4[%c7_152, %c0_153, %c0_154] : memref<9x32x64xbf16, #tpu.memory_space<vmem>>, vector<1x32x64xbf16>
    %160 = vector.shape_cast %159 : vector<1x32x64xbf16> to vector<32x64xbf16>
    %cst_155 = arith.constant dense<0.000000e+00> : vector<96x64xf32>
    %161 = tpu.matmul %158, %160, %cst_155 {dimension_numbers = #tpu.dot_dimension_numbers<[1], [0], [0], [1], [0, 0, 1, 1], [], []>} : vector<96x32xbf16>, vector<32x64xbf16>, vector<96x64xf32> -> vector<96x64xf32>
    %162 = arith.addf %155, %161 : vector<96x64xf32>
    %c2_156 = arith.constant 2 : index
    %c1_157 = arith.constant 1 : index
    %c1_158 = arith.constant 1 : index
    %c0_159 = arith.constant 0 : index
    %163 = vector.load %arg15[%c2_156, %c1_157, %c1_158, %c0_159] : memref<4x13x9x32xbf16, #tpu.memory_space<vmem>>, vector<1x12x8x32xbf16>
    %164 = vector.shape_cast %163 : vector<1x12x8x32xbf16> to vector<12x8x32xbf16>
    %165 = vector.shape_cast %164 : vector<12x8x32xbf16> to vector<96x32xbf16>
    %c8_160 = arith.constant 8 : index
    %c0_161 = arith.constant 0 : index
    %c0_162 = arith.constant 0 : index
    %166 = vector.load %arg4[%c8_160, %c0_161, %c0_162] : memref<9x32x64xbf16, #tpu.memory_space<vmem>>, vector<1x32x64xbf16>
    %167 = vector.shape_cast %166 : vector<1x32x64xbf16> to vector<32x64xbf16>
    %cst_163 = arith.constant dense<0.000000e+00> : vector<96x64xf32>
    %168 = tpu.matmul %165, %167, %cst_163 {dimension_numbers = #tpu.dot_dimension_numbers<[1], [0], [0], [1], [0, 0, 1, 1], [], []>} : vector<96x32xbf16>, vector<32x64xbf16>, vector<96x64xf32> -> vector<96x64xf32>
    %169 = arith.addf %162, %168 : vector<96x64xf32>
    %c1_164 = arith.constant 1 : index
    %c0_165 = arith.constant 0 : index
    %c0_166 = arith.constant 0 : index
    %c0_167 = arith.constant 0 : index
    %170 = vector.load %arg15[%c1_164, %c0_165, %c0_166, %c0_167] : memref<4x13x9x32xbf16, #tpu.memory_space<vmem>>, vector<1x12x8x32xbf16>
    %171 = vector.shape_cast %170 : vector<1x12x8x32xbf16> to vector<12x8x32xbf16>
    %172 = vector.shape_cast %171 : vector<12x8x32xbf16> to vector<96x32xbf16>
    %c0_168 = arith.constant 0 : index
    %c0_169 = arith.constant 0 : index
    %c0_170 = arith.constant 0 : index
    %173 = vector.load %arg4[%c0_168, %c0_169, %c0_170] : memref<9x32x64xbf16, #tpu.memory_space<vmem>>, vector<1x32x64xbf16>
    %174 = vector.shape_cast %173 : vector<1x32x64xbf16> to vector<32x64xbf16>
    %cst_171 = arith.constant dense<0.000000e+00> : vector<96x64xf32>
    %175 = tpu.matmul %172, %174, %cst_171 {dimension_numbers = #tpu.dot_dimension_numbers<[1], [0], [0], [1], [0, 0, 1, 1], [], []>} : vector<96x32xbf16>, vector<32x64xbf16>, vector<96x64xf32> -> vector<96x64xf32>
    %c3_172 = arith.constant 3 : index
    %c0_173 = arith.constant 0 : index
    %c0_174 = arith.constant 0 : index
    %c0_175 = arith.constant 0 : index
    %176 = vector.load %arg15[%c3_172, %c0_173, %c0_174, %c0_175] : memref<4x13x9x32xbf16, #tpu.memory_space<vmem>>, vector<1x12x8x32xbf16>
    %177 = vector.shape_cast %176 : vector<1x12x8x32xbf16> to vector<12x8x32xbf16>
    %178 = vector.shape_cast %177 : vector<12x8x32xbf16> to vector<96x32xbf16>
    %c1_176 = arith.constant 1 : index
    %c0_177 = arith.constant 0 : index
    %c0_178 = arith.constant 0 : index
    %179 = vector.load %arg4[%c1_176, %c0_177, %c0_178] : memref<9x32x64xbf16, #tpu.memory_space<vmem>>, vector<1x32x64xbf16>
    %180 = vector.shape_cast %179 : vector<1x32x64xbf16> to vector<32x64xbf16>
    %cst_179 = arith.constant dense<0.000000e+00> : vector<96x64xf32>
    %181 = tpu.matmul %178, %180, %cst_179 {dimension_numbers = #tpu.dot_dimension_numbers<[1], [0], [0], [1], [0, 0, 1, 1], [], []>} : vector<96x32xbf16>, vector<32x64xbf16>, vector<96x64xf32> -> vector<96x64xf32>
    %182 = arith.addf %175, %181 : vector<96x64xf32>
    %c1_180 = arith.constant 1 : index
    %c0_181 = arith.constant 0 : index
    %c1_182 = arith.constant 1 : index
    %c0_183 = arith.constant 0 : index
    %183 = vector.load %arg15[%c1_180, %c0_181, %c1_182, %c0_183] : memref<4x13x9x32xbf16, #tpu.memory_space<vmem>>, vector<1x12x8x32xbf16>
    %184 = vector.shape_cast %183 : vector<1x12x8x32xbf16> to vector<12x8x32xbf16>
    %185 = vector.shape_cast %184 : vector<12x8x32xbf16> to vector<96x32xbf16>
    %c2_184 = arith.constant 2 : index
    %c0_185 = arith.constant 0 : index
    %c0_186 = arith.constant 0 : index
    %186 = vector.load %arg4[%c2_184, %c0_185, %c0_186] : memref<9x32x64xbf16, #tpu.memory_space<vmem>>, vector<1x32x64xbf16>
    %187 = vector.shape_cast %186 : vector<1x32x64xbf16> to vector<32x64xbf16>
    %cst_187 = arith.constant dense<0.000000e+00> : vector<96x64xf32>
    %188 = tpu.matmul %185, %187, %cst_187 {dimension_numbers = #tpu.dot_dimension_numbers<[1], [0], [0], [1], [0, 0, 1, 1], [], []>} : vector<96x32xbf16>, vector<32x64xbf16>, vector<96x64xf32> -> vector<96x64xf32>
    %189 = arith.addf %182, %188 : vector<96x64xf32>
    %c0_188 = arith.constant 0 : index
    %c1_189 = arith.constant 1 : index
    %c0_190 = arith.constant 0 : index
    %c0_191 = arith.constant 0 : index
    %190 = vector.load %arg15[%c0_188, %c1_189, %c0_190, %c0_191] : memref<4x13x9x32xbf16, #tpu.memory_space<vmem>>, vector<1x12x8x32xbf16>
    %191 = vector.shape_cast %190 : vector<1x12x8x32xbf16> to vector<12x8x32xbf16>
    %192 = vector.shape_cast %191 : vector<12x8x32xbf16> to vector<96x32xbf16>
    %c3_192 = arith.constant 3 : index
    %c0_193 = arith.constant 0 : index
    %c0_194 = arith.constant 0 : index
    %193 = vector.load %arg4[%c3_192, %c0_193, %c0_194] : memref<9x32x64xbf16, #tpu.memory_space<vmem>>, vector<1x32x64xbf16>
    %194 = vector.shape_cast %193 : vector<1x32x64xbf16> to vector<32x64xbf16>
    %cst_195 = arith.constant dense<0.000000e+00> : vector<96x64xf32>
    %195 = tpu.matmul %192, %194, %cst_195 {dimension_numbers = #tpu.dot_dimension_numbers<[1], [0], [0], [1], [0, 0, 1, 1], [], []>} : vector<96x32xbf16>, vector<32x64xbf16>, vector<96x64xf32> -> vector<96x64xf32>
    %196 = arith.addf %189, %195 : vector<96x64xf32>
    %c2_196 = arith.constant 2 : index
    %c1_197 = arith.constant 1 : index
    %c0_198 = arith.constant 0 : index
    %c0_199 = arith.constant 0 : index
    %197 = vector.load %arg15[%c2_196, %c1_197, %c0_198, %c0_199] : memref<4x13x9x32xbf16, #tpu.memory_space<vmem>>, vector<1x12x8x32xbf16>
    %198 = vector.shape_cast %197 : vector<1x12x8x32xbf16> to vector<12x8x32xbf16>
    %199 = vector.shape_cast %198 : vector<12x8x32xbf16> to vector<96x32xbf16>
    %c4_200 = arith.constant 4 : index
    %c0_201 = arith.constant 0 : index
    %c0_202 = arith.constant 0 : index
    %200 = vector.load %arg4[%c4_200, %c0_201, %c0_202] : memref<9x32x64xbf16, #tpu.memory_space<vmem>>, vector<1x32x64xbf16>
    %201 = vector.shape_cast %200 : vector<1x32x64xbf16> to vector<32x64xbf16>
    %cst_203 = arith.constant dense<0.000000e+00> : vector<96x64xf32>
    %202 = tpu.matmul %199, %201, %cst_203 {dimension_numbers = #tpu.dot_dimension_numbers<[1], [0], [0], [1], [0, 0, 1, 1], [], []>} : vector<96x32xbf16>, vector<32x64xbf16>, vector<96x64xf32> -> vector<96x64xf32>
    %203 = arith.addf %196, %202 : vector<96x64xf32>
    %c0_204 = arith.constant 0 : index
    %c1_205 = arith.constant 1 : index
    %c1_206 = arith.constant 1 : index
    %c0_207 = arith.constant 0 : index
    %204 = vector.load %arg15[%c0_204, %c1_205, %c1_206, %c0_207] : memref<4x13x9x32xbf16, #tpu.memory_space<vmem>>, vector<1x12x8x32xbf16>
    %205 = vector.shape_cast %204 : vector<1x12x8x32xbf16> to vector<12x8x32xbf16>
    %206 = vector.shape_cast %205 : vector<12x8x32xbf16> to vector<96x32xbf16>
    %c5_208 = arith.constant 5 : index
    %c0_209 = arith.constant 0 : index
    %c0_210 = arith.constant 0 : index
    %207 = vector.load %arg4[%c5_208, %c0_209, %c0_210] : memref<9x32x64xbf16, #tpu.memory_space<vmem>>, vector<1x32x64xbf16>
    %208 = vector.shape_cast %207 : vector<1x32x64xbf16> to vector<32x64xbf16>
    %cst_211 = arith.constant dense<0.000000e+00> : vector<96x64xf32>
    %209 = tpu.matmul %206, %208, %cst_211 {dimension_numbers = #tpu.dot_dimension_numbers<[1], [0], [0], [1], [0, 0, 1, 1], [], []>} : vector<96x32xbf16>, vector<32x64xbf16>, vector<96x64xf32> -> vector<96x64xf32>
    %210 = arith.addf %203, %209 : vector<96x64xf32>
    %c1_212 = arith.constant 1 : index
    %c1_213 = arith.constant 1 : index
    %c0_214 = arith.constant 0 : index
    %c0_215 = arith.constant 0 : index
    %211 = vector.load %arg15[%c1_212, %c1_213, %c0_214, %c0_215] : memref<4x13x9x32xbf16, #tpu.memory_space<vmem>>, vector<1x12x8x32xbf16>
    %212 = vector.shape_cast %211 : vector<1x12x8x32xbf16> to vector<12x8x32xbf16>
    %213 = vector.shape_cast %212 : vector<12x8x32xbf16> to vector<96x32xbf16>
    %c6_216 = arith.constant 6 : index
    %c0_217 = arith.constant 0 : index
    %c0_218 = arith.constant 0 : index
    %214 = vector.load %arg4[%c6_216, %c0_217, %c0_218] : memref<9x32x64xbf16, #tpu.memory_space<vmem>>, vector<1x32x64xbf16>
    %215 = vector.shape_cast %214 : vector<1x32x64xbf16> to vector<32x64xbf16>
    %cst_219 = arith.constant dense<0.000000e+00> : vector<96x64xf32>
    %216 = tpu.matmul %213, %215, %cst_219 {dimension_numbers = #tpu.dot_dimension_numbers<[1], [0], [0], [1], [0, 0, 1, 1], [], []>} : vector<96x32xbf16>, vector<32x64xbf16>, vector<96x64xf32> -> vector<96x64xf32>
    %217 = arith.addf %210, %216 : vector<96x64xf32>
    %c3_220 = arith.constant 3 : index
    %c1_221 = arith.constant 1 : index
    %c0_222 = arith.constant 0 : index
    %c0_223 = arith.constant 0 : index
    %218 = vector.load %arg15[%c3_220, %c1_221, %c0_222, %c0_223] : memref<4x13x9x32xbf16, #tpu.memory_space<vmem>>, vector<1x12x8x32xbf16>
    %219 = vector.shape_cast %218 : vector<1x12x8x32xbf16> to vector<12x8x32xbf16>
    %220 = vector.shape_cast %219 : vector<12x8x32xbf16> to vector<96x32xbf16>
    %c7_224 = arith.constant 7 : index
    %c0_225 = arith.constant 0 : index
    %c0_226 = arith.constant 0 : index
    %221 = vector.load %arg4[%c7_224, %c0_225, %c0_226] : memref<9x32x64xbf16, #tpu.memory_space<vmem>>, vector<1x32x64xbf16>
    %222 = vector.shape_cast %221 : vector<1x32x64xbf16> to vector<32x64xbf16>
    %cst_227 = arith.constant dense<0.000000e+00> : vector<96x64xf32>
    %223 = tpu.matmul %220, %222, %cst_227 {dimension_numbers = #tpu.dot_dimension_numbers<[1], [0], [0], [1], [0, 0, 1, 1], [], []>} : vector<96x32xbf16>, vector<32x64xbf16>, vector<96x64xf32> -> vector<96x64xf32>
    %224 = arith.addf %217, %223 : vector<96x64xf32>
    %c1_228 = arith.constant 1 : index
    %c1_229 = arith.constant 1 : index
    %c1_230 = arith.constant 1 : index
    %c0_231 = arith.constant 0 : index
    %225 = vector.load %arg15[%c1_228, %c1_229, %c1_230, %c0_231] : memref<4x13x9x32xbf16, #tpu.memory_space<vmem>>, vector<1x12x8x32xbf16>
    %226 = vector.shape_cast %225 : vector<1x12x8x32xbf16> to vector<12x8x32xbf16>
    %227 = vector.shape_cast %226 : vector<12x8x32xbf16> to vector<96x32xbf16>
    %c8_232 = arith.constant 8 : index
    %c0_233 = arith.constant 0 : index
    %c0_234 = arith.constant 0 : index
    %228 = vector.load %arg4[%c8_232, %c0_233, %c0_234] : memref<9x32x64xbf16, #tpu.memory_space<vmem>>, vector<1x32x64xbf16>
    %229 = vector.shape_cast %228 : vector<1x32x64xbf16> to vector<32x64xbf16>
    %cst_235 = arith.constant dense<0.000000e+00> : vector<96x64xf32>
    %230 = tpu.matmul %227, %229, %cst_235 {dimension_numbers = #tpu.dot_dimension_numbers<[1], [0], [0], [1], [0, 0, 1, 1], [], []>} : vector<96x32xbf16>, vector<32x64xbf16>, vector<96x64xf32> -> vector<96x64xf32>
    %231 = arith.addf %224, %230 : vector<96x64xf32>
    %c3_236 = arith.constant 3 : index
    %c0_237 = arith.constant 0 : index
    %c0_238 = arith.constant 0 : index
    %c0_239 = arith.constant 0 : index
    %232 = vector.load %arg15[%c3_236, %c0_237, %c0_238, %c0_239] : memref<4x13x9x32xbf16, #tpu.memory_space<vmem>>, vector<1x12x8x32xbf16>
    %233 = vector.shape_cast %232 : vector<1x12x8x32xbf16> to vector<12x8x32xbf16>
    %234 = vector.shape_cast %233 : vector<12x8x32xbf16> to vector<96x32xbf16>
    %c0_240 = arith.constant 0 : index
    %c0_241 = arith.constant 0 : index
    %c0_242 = arith.constant 0 : index
    %235 = vector.load %arg4[%c0_240, %c0_241, %c0_242] : memref<9x32x64xbf16, #tpu.memory_space<vmem>>, vector<1x32x64xbf16>
    %236 = vector.shape_cast %235 : vector<1x32x64xbf16> to vector<32x64xbf16>
    %cst_243 = arith.constant dense<0.000000e+00> : vector<96x64xf32>
    %237 = tpu.matmul %234, %236, %cst_243 {dimension_numbers = #tpu.dot_dimension_numbers<[1], [0], [0], [1], [0, 0, 1, 1], [], []>} : vector<96x32xbf16>, vector<32x64xbf16>, vector<96x64xf32> -> vector<96x64xf32>
    %c1_244 = arith.constant 1 : index
    %c0_245 = arith.constant 0 : index
    %c1_246 = arith.constant 1 : index
    %c0_247 = arith.constant 0 : index
    %238 = vector.load %arg15[%c1_244, %c0_245, %c1_246, %c0_247] : memref<4x13x9x32xbf16, #tpu.memory_space<vmem>>, vector<1x12x8x32xbf16>
    %239 = vector.shape_cast %238 : vector<1x12x8x32xbf16> to vector<12x8x32xbf16>
    %240 = vector.shape_cast %239 : vector<12x8x32xbf16> to vector<96x32xbf16>
    %c1_248 = arith.constant 1 : index
    %c0_249 = arith.constant 0 : index
    %c0_250 = arith.constant 0 : index
    %241 = vector.load %arg4[%c1_248, %c0_249, %c0_250] : memref<9x32x64xbf16, #tpu.memory_space<vmem>>, vector<1x32x64xbf16>
    %242 = vector.shape_cast %241 : vector<1x32x64xbf16> to vector<32x64xbf16>
    %cst_251 = arith.constant dense<0.000000e+00> : vector<96x64xf32>
    %243 = tpu.matmul %240, %242, %cst_251 {dimension_numbers = #tpu.dot_dimension_numbers<[1], [0], [0], [1], [0, 0, 1, 1], [], []>} : vector<96x32xbf16>, vector<32x64xbf16>, vector<96x64xf32> -> vector<96x64xf32>
    %244 = arith.addf %237, %243 : vector<96x64xf32>
    %c3_252 = arith.constant 3 : index
    %c0_253 = arith.constant 0 : index
    %c1_254 = arith.constant 1 : index
    %c0_255 = arith.constant 0 : index
    %245 = vector.load %arg15[%c3_252, %c0_253, %c1_254, %c0_255] : memref<4x13x9x32xbf16, #tpu.memory_space<vmem>>, vector<1x12x8x32xbf16>
    %246 = vector.shape_cast %245 : vector<1x12x8x32xbf16> to vector<12x8x32xbf16>
    %247 = vector.shape_cast %246 : vector<12x8x32xbf16> to vector<96x32xbf16>
    %c2_256 = arith.constant 2 : index
    %c0_257 = arith.constant 0 : index
    %c0_258 = arith.constant 0 : index
    %248 = vector.load %arg4[%c2_256, %c0_257, %c0_258] : memref<9x32x64xbf16, #tpu.memory_space<vmem>>, vector<1x32x64xbf16>
    %249 = vector.shape_cast %248 : vector<1x32x64xbf16> to vector<32x64xbf16>
    %cst_259 = arith.constant dense<0.000000e+00> : vector<96x64xf32>
    %250 = tpu.matmul %247, %249, %cst_259 {dimension_numbers = #tpu.dot_dimension_numbers<[1], [0], [0], [1], [0, 0, 1, 1], [], []>} : vector<96x32xbf16>, vector<32x64xbf16>, vector<96x64xf32> -> vector<96x64xf32>
    %251 = arith.addf %244, %250 : vector<96x64xf32>
    %c2_260 = arith.constant 2 : index
    %c1_261 = arith.constant 1 : index
    %c0_262 = arith.constant 0 : index
    %c0_263 = arith.constant 0 : index
    %252 = vector.load %arg15[%c2_260, %c1_261, %c0_262, %c0_263] : memref<4x13x9x32xbf16, #tpu.memory_space<vmem>>, vector<1x12x8x32xbf16>
    %253 = vector.shape_cast %252 : vector<1x12x8x32xbf16> to vector<12x8x32xbf16>
    %254 = vector.shape_cast %253 : vector<12x8x32xbf16> to vector<96x32xbf16>
    %c3_264 = arith.constant 3 : index
    %c0_265 = arith.constant 0 : index
    %c0_266 = arith.constant 0 : index
    %255 = vector.load %arg4[%c3_264, %c0_265, %c0_266] : memref<9x32x64xbf16, #tpu.memory_space<vmem>>, vector<1x32x64xbf16>
    %256 = vector.shape_cast %255 : vector<1x32x64xbf16> to vector<32x64xbf16>
    %cst_267 = arith.constant dense<0.000000e+00> : vector<96x64xf32>
    %257 = tpu.matmul %254, %256, %cst_267 {dimension_numbers = #tpu.dot_dimension_numbers<[1], [0], [0], [1], [0, 0, 1, 1], [], []>} : vector<96x32xbf16>, vector<32x64xbf16>, vector<96x64xf32> -> vector<96x64xf32>
    %258 = arith.addf %251, %257 : vector<96x64xf32>
    %c0_268 = arith.constant 0 : index
    %c1_269 = arith.constant 1 : index
    %c1_270 = arith.constant 1 : index
    %c0_271 = arith.constant 0 : index
    %259 = vector.load %arg15[%c0_268, %c1_269, %c1_270, %c0_271] : memref<4x13x9x32xbf16, #tpu.memory_space<vmem>>, vector<1x12x8x32xbf16>
    %260 = vector.shape_cast %259 : vector<1x12x8x32xbf16> to vector<12x8x32xbf16>
    %261 = vector.shape_cast %260 : vector<12x8x32xbf16> to vector<96x32xbf16>
    %c4_272 = arith.constant 4 : index
    %c0_273 = arith.constant 0 : index
    %c0_274 = arith.constant 0 : index
    %262 = vector.load %arg4[%c4_272, %c0_273, %c0_274] : memref<9x32x64xbf16, #tpu.memory_space<vmem>>, vector<1x32x64xbf16>
    %263 = vector.shape_cast %262 : vector<1x32x64xbf16> to vector<32x64xbf16>
    %cst_275 = arith.constant dense<0.000000e+00> : vector<96x64xf32>
    %264 = tpu.matmul %261, %263, %cst_275 {dimension_numbers = #tpu.dot_dimension_numbers<[1], [0], [0], [1], [0, 0, 1, 1], [], []>} : vector<96x32xbf16>, vector<32x64xbf16>, vector<96x64xf32> -> vector<96x64xf32>
    %265 = arith.addf %258, %264 : vector<96x64xf32>
    %c2_276 = arith.constant 2 : index
    %c1_277 = arith.constant 1 : index
    %c1_278 = arith.constant 1 : index
    %c0_279 = arith.constant 0 : index
    %266 = vector.load %arg15[%c2_276, %c1_277, %c1_278, %c0_279] : memref<4x13x9x32xbf16, #tpu.memory_space<vmem>>, vector<1x12x8x32xbf16>
    %267 = vector.shape_cast %266 : vector<1x12x8x32xbf16> to vector<12x8x32xbf16>
    %268 = vector.shape_cast %267 : vector<12x8x32xbf16> to vector<96x32xbf16>
    %c5_280 = arith.constant 5 : index
    %c0_281 = arith.constant 0 : index
    %c0_282 = arith.constant 0 : index
    %269 = vector.load %arg4[%c5_280, %c0_281, %c0_282] : memref<9x32x64xbf16, #tpu.memory_space<vmem>>, vector<1x32x64xbf16>
    %270 = vector.shape_cast %269 : vector<1x32x64xbf16> to vector<32x64xbf16>
    %cst_283 = arith.constant dense<0.000000e+00> : vector<96x64xf32>
    %271 = tpu.matmul %268, %270, %cst_283 {dimension_numbers = #tpu.dot_dimension_numbers<[1], [0], [0], [1], [0, 0, 1, 1], [], []>} : vector<96x32xbf16>, vector<32x64xbf16>, vector<96x64xf32> -> vector<96x64xf32>
    %272 = arith.addf %265, %271 : vector<96x64xf32>
    %c3_284 = arith.constant 3 : index
    %c1_285 = arith.constant 1 : index
    %c0_286 = arith.constant 0 : index
    %c0_287 = arith.constant 0 : index
    %273 = vector.load %arg15[%c3_284, %c1_285, %c0_286, %c0_287] : memref<4x13x9x32xbf16, #tpu.memory_space<vmem>>, vector<1x12x8x32xbf16>
    %274 = vector.shape_cast %273 : vector<1x12x8x32xbf16> to vector<12x8x32xbf16>
    %275 = vector.shape_cast %274 : vector<12x8x32xbf16> to vector<96x32xbf16>
    %c6_288 = arith.constant 6 : index
    %c0_289 = arith.constant 0 : index
    %c0_290 = arith.constant 0 : index
    %276 = vector.load %arg4[%c6_288, %c0_289, %c0_290] : memref<9x32x64xbf16, #tpu.memory_space<vmem>>, vector<1x32x64xbf16>
    %277 = vector.shape_cast %276 : vector<1x32x64xbf16> to vector<32x64xbf16>
    %cst_291 = arith.constant dense<0.000000e+00> : vector<96x64xf32>
    %278 = tpu.matmul %275, %277, %cst_291 {dimension_numbers = #tpu.dot_dimension_numbers<[1], [0], [0], [1], [0, 0, 1, 1], [], []>} : vector<96x32xbf16>, vector<32x64xbf16>, vector<96x64xf32> -> vector<96x64xf32>
    %279 = arith.addf %272, %278 : vector<96x64xf32>
    %c1_292 = arith.constant 1 : index
    %c1_293 = arith.constant 1 : index
    %c1_294 = arith.constant 1 : index
    %c0_295 = arith.constant 0 : index
    %280 = vector.load %arg15[%c1_292, %c1_293, %c1_294, %c0_295] : memref<4x13x9x32xbf16, #tpu.memory_space<vmem>>, vector<1x12x8x32xbf16>
    %281 = vector.shape_cast %280 : vector<1x12x8x32xbf16> to vector<12x8x32xbf16>
    %282 = vector.shape_cast %281 : vector<12x8x32xbf16> to vector<96x32xbf16>
    %c7_296 = arith.constant 7 : index
    %c0_297 = arith.constant 0 : index
    %c0_298 = arith.constant 0 : index
    %283 = vector.load %arg4[%c7_296, %c0_297, %c0_298] : memref<9x32x64xbf16, #tpu.memory_space<vmem>>, vector<1x32x64xbf16>
    %284 = vector.shape_cast %283 : vector<1x32x64xbf16> to vector<32x64xbf16>
    %cst_299 = arith.constant dense<0.000000e+00> : vector<96x64xf32>
    %285 = tpu.matmul %282, %284, %cst_299 {dimension_numbers = #tpu.dot_dimension_numbers<[1], [0], [0], [1], [0, 0, 1, 1], [], []>} : vector<96x32xbf16>, vector<32x64xbf16>, vector<96x64xf32> -> vector<96x64xf32>
    %286 = arith.addf %279, %285 : vector<96x64xf32>
    %c3_300 = arith.constant 3 : index
    %c1_301 = arith.constant 1 : index
    %c1_302 = arith.constant 1 : index
    %c0_303 = arith.constant 0 : index
    %287 = vector.load %arg15[%c3_300, %c1_301, %c1_302, %c0_303] : memref<4x13x9x32xbf16, #tpu.memory_space<vmem>>, vector<1x12x8x32xbf16>
    %288 = vector.shape_cast %287 : vector<1x12x8x32xbf16> to vector<12x8x32xbf16>
    %289 = vector.shape_cast %288 : vector<12x8x32xbf16> to vector<96x32xbf16>
    %c8_304 = arith.constant 8 : index
    %c0_305 = arith.constant 0 : index
    %c0_306 = arith.constant 0 : index
    %290 = vector.load %arg4[%c8_304, %c0_305, %c0_306] : memref<9x32x64xbf16, #tpu.memory_space<vmem>>, vector<1x32x64xbf16>
    %291 = vector.shape_cast %290 : vector<1x32x64xbf16> to vector<32x64xbf16>
    %cst_307 = arith.constant dense<0.000000e+00> : vector<96x64xf32>
    %292 = tpu.matmul %289, %291, %cst_307 {dimension_numbers = #tpu.dot_dimension_numbers<[1], [0], [0], [1], [0, 0, 1, 1], [], []>} : vector<96x32xbf16>, vector<32x64xbf16>, vector<96x64xf32> -> vector<96x64xf32>
    %293 = arith.addf %286, %292 : vector<96x64xf32>
    %294 = arith.maximumf %107, %169 : vector<96x64xf32>
    %295 = arith.maximumf %231, %293 : vector<96x64xf32>
    %296 = arith.maximumf %294, %295 : vector<96x64xf32>
    %c0_308 = arith.constant 0 : index
    %c0_309 = arith.constant 0 : index
    %297 = vector.load %arg5[%c0_308, %c0_309] : memref<1x64xf32, #tpu.memory_space<vmem>>, vector<1x64xf32>
    %298 = vector.broadcast %297 : vector<1x64xf32> to vector<96x64xf32>
    %299 = arith.addf %296, %298 : vector<96x64xf32>
    %cst_310 = arith.constant 0.000000e+00 : f32
    %300 = vector.broadcast %cst_310 : f32 to vector<96x64xf32>
    %301 = arith.maximumf %299, %300 : vector<96x64xf32>
    %302 = arith.truncf %301 : vector<96x64xf32> to vector<96x64xbf16>
    %303 = vector.extract_strided_slice %302 {offsets = [0, 0], sizes = [8, 64], strides = [1, 1]} : vector<96x64xbf16> to vector<8x64xbf16>
    %c0_311 = arith.constant 0 : index
    %c0_312 = arith.constant 0 : index
    %c0_313 = arith.constant 0 : index
    %304 = vector.load %arg6[%c0_311, %c0_312, %c0_313] : memref<12x64x64xbf16, #tpu.memory_space<vmem>>, vector<1x64x64xbf16>
    %305 = vector.shape_cast %304 : vector<1x64x64xbf16> to vector<64x64xbf16>
    %cst_314 = arith.constant dense<0.000000e+00> : vector<8x64xf32>
    %306 = tpu.matmul %303, %305, %cst_314 {dimension_numbers = #tpu.dot_dimension_numbers<[1], [0], [0], [1], [0, 0, 1, 1], [], []>} : vector<8x64xbf16>, vector<64x64xbf16>, vector<8x64xf32> -> vector<8x64xf32>
    %307 = vector.extract_strided_slice %302 {offsets = [8, 0], sizes = [8, 64], strides = [1, 1]} : vector<96x64xbf16> to vector<8x64xbf16>
    %c1_315 = arith.constant 1 : index
    %c0_316 = arith.constant 0 : index
    %c0_317 = arith.constant 0 : index
    %308 = vector.load %arg6[%c1_315, %c0_316, %c0_317] : memref<12x64x64xbf16, #tpu.memory_space<vmem>>, vector<1x64x64xbf16>
    %309 = vector.shape_cast %308 : vector<1x64x64xbf16> to vector<64x64xbf16>
    %cst_318 = arith.constant dense<0.000000e+00> : vector<8x64xf32>
    %310 = tpu.matmul %307, %309, %cst_318 {dimension_numbers = #tpu.dot_dimension_numbers<[1], [0], [0], [1], [0, 0, 1, 1], [], []>} : vector<8x64xbf16>, vector<64x64xbf16>, vector<8x64xf32> -> vector<8x64xf32>
    %311 = arith.addf %306, %310 : vector<8x64xf32>
    %312 = vector.extract_strided_slice %302 {offsets = [16, 0], sizes = [8, 64], strides = [1, 1]} : vector<96x64xbf16> to vector<8x64xbf16>
    %c2_319 = arith.constant 2 : index
    %c0_320 = arith.constant 0 : index
    %c0_321 = arith.constant 0 : index
    %313 = vector.load %arg6[%c2_319, %c0_320, %c0_321] : memref<12x64x64xbf16, #tpu.memory_space<vmem>>, vector<1x64x64xbf16>
    %314 = vector.shape_cast %313 : vector<1x64x64xbf16> to vector<64x64xbf16>
    %cst_322 = arith.constant dense<0.000000e+00> : vector<8x64xf32>
    %315 = tpu.matmul %312, %314, %cst_322 {dimension_numbers = #tpu.dot_dimension_numbers<[1], [0], [0], [1], [0, 0, 1, 1], [], []>} : vector<8x64xbf16>, vector<64x64xbf16>, vector<8x64xf32> -> vector<8x64xf32>
    %316 = arith.addf %311, %315 : vector<8x64xf32>
    %317 = vector.extract_strided_slice %302 {offsets = [24, 0], sizes = [8, 64], strides = [1, 1]} : vector<96x64xbf16> to vector<8x64xbf16>
    %c3_323 = arith.constant 3 : index
    %c0_324 = arith.constant 0 : index
    %c0_325 = arith.constant 0 : index
    %318 = vector.load %arg6[%c3_323, %c0_324, %c0_325] : memref<12x64x64xbf16, #tpu.memory_space<vmem>>, vector<1x64x64xbf16>
    %319 = vector.shape_cast %318 : vector<1x64x64xbf16> to vector<64x64xbf16>
    %cst_326 = arith.constant dense<0.000000e+00> : vector<8x64xf32>
    %320 = tpu.matmul %317, %319, %cst_326 {dimension_numbers = #tpu.dot_dimension_numbers<[1], [0], [0], [1], [0, 0, 1, 1], [], []>} : vector<8x64xbf16>, vector<64x64xbf16>, vector<8x64xf32> -> vector<8x64xf32>
    %321 = arith.addf %316, %320 : vector<8x64xf32>
    %322 = vector.extract_strided_slice %302 {offsets = [32, 0], sizes = [8, 64], strides = [1, 1]} : vector<96x64xbf16> to vector<8x64xbf16>
    %c4_327 = arith.constant 4 : index
    %c0_328 = arith.constant 0 : index
    %c0_329 = arith.constant 0 : index
    %323 = vector.load %arg6[%c4_327, %c0_328, %c0_329] : memref<12x64x64xbf16, #tpu.memory_space<vmem>>, vector<1x64x64xbf16>
    %324 = vector.shape_cast %323 : vector<1x64x64xbf16> to vector<64x64xbf16>
    %cst_330 = arith.constant dense<0.000000e+00> : vector<8x64xf32>
    %325 = tpu.matmul %322, %324, %cst_330 {dimension_numbers = #tpu.dot_dimension_numbers<[1], [0], [0], [1], [0, 0, 1, 1], [], []>} : vector<8x64xbf16>, vector<64x64xbf16>, vector<8x64xf32> -> vector<8x64xf32>
    %326 = arith.addf %321, %325 : vector<8x64xf32>
    %327 = vector.extract_strided_slice %302 {offsets = [40, 0], sizes = [8, 64], strides = [1, 1]} : vector<96x64xbf16> to vector<8x64xbf16>
    %c5_331 = arith.constant 5 : index
    %c0_332 = arith.constant 0 : index
    %c0_333 = arith.constant 0 : index
    %328 = vector.load %arg6[%c5_331, %c0_332, %c0_333] : memref<12x64x64xbf16, #tpu.memory_space<vmem>>, vector<1x64x64xbf16>
    %329 = vector.shape_cast %328 : vector<1x64x64xbf16> to vector<64x64xbf16>
    %cst_334 = arith.constant dense<0.000000e+00> : vector<8x64xf32>
    %330 = tpu.matmul %327, %329, %cst_334 {dimension_numbers = #tpu.dot_dimension_numbers<[1], [0], [0], [1], [0, 0, 1, 1], [], []>} : vector<8x64xbf16>, vector<64x64xbf16>, vector<8x64xf32> -> vector<8x64xf32>
    %331 = arith.addf %326, %330 : vector<8x64xf32>
    %332 = vector.extract_strided_slice %302 {offsets = [48, 0], sizes = [8, 64], strides = [1, 1]} : vector<96x64xbf16> to vector<8x64xbf16>
    %c6_335 = arith.constant 6 : index
    %c0_336 = arith.constant 0 : index
    %c0_337 = arith.constant 0 : index
    %333 = vector.load %arg6[%c6_335, %c0_336, %c0_337] : memref<12x64x64xbf16, #tpu.memory_space<vmem>>, vector<1x64x64xbf16>
    %334 = vector.shape_cast %333 : vector<1x64x64xbf16> to vector<64x64xbf16>
    %cst_338 = arith.constant dense<0.000000e+00> : vector<8x64xf32>
    %335 = tpu.matmul %332, %334, %cst_338 {dimension_numbers = #tpu.dot_dimension_numbers<[1], [0], [0], [1], [0, 0, 1, 1], [], []>} : vector<8x64xbf16>, vector<64x64xbf16>, vector<8x64xf32> -> vector<8x64xf32>
    %336 = arith.addf %331, %335 : vector<8x64xf32>
    %337 = vector.extract_strided_slice %302 {offsets = [56, 0], sizes = [8, 64], strides = [1, 1]} : vector<96x64xbf16> to vector<8x64xbf16>
    %c7_339 = arith.constant 7 : index
    %c0_340 = arith.constant 0 : index
    %c0_341 = arith.constant 0 : index
    %338 = vector.load %arg6[%c7_339, %c0_340, %c0_341] : memref<12x64x64xbf16, #tpu.memory_space<vmem>>, vector<1x64x64xbf16>
    %339 = vector.shape_cast %338 : vector<1x64x64xbf16> to vector<64x64xbf16>
    %cst_342 = arith.constant dense<0.000000e+00> : vector<8x64xf32>
    %340 = tpu.matmul %337, %339, %cst_342 {dimension_numbers = #tpu.dot_dimension_numbers<[1], [0], [0], [1], [0, 0, 1, 1], [], []>} : vector<8x64xbf16>, vector<64x64xbf16>, vector<8x64xf32> -> vector<8x64xf32>
    %341 = arith.addf %336, %340 : vector<8x64xf32>
    %342 = vector.extract_strided_slice %302 {offsets = [64, 0], sizes = [8, 64], strides = [1, 1]} : vector<96x64xbf16> to vector<8x64xbf16>
    %c8_343 = arith.constant 8 : index
    %c0_344 = arith.constant 0 : index
    %c0_345 = arith.constant 0 : index
    %343 = vector.load %arg6[%c8_343, %c0_344, %c0_345] : memref<12x64x64xbf16, #tpu.memory_space<vmem>>, vector<1x64x64xbf16>
    %344 = vector.shape_cast %343 : vector<1x64x64xbf16> to vector<64x64xbf16>
    %cst_346 = arith.constant dense<0.000000e+00> : vector<8x64xf32>
    %345 = tpu.matmul %342, %344, %cst_346 {dimension_numbers = #tpu.dot_dimension_numbers<[1], [0], [0], [1], [0, 0, 1, 1], [], []>} : vector<8x64xbf16>, vector<64x64xbf16>, vector<8x64xf32> -> vector<8x64xf32>
    %346 = arith.addf %341, %345 : vector<8x64xf32>
    %347 = vector.extract_strided_slice %302 {offsets = [72, 0], sizes = [8, 64], strides = [1, 1]} : vector<96x64xbf16> to vector<8x64xbf16>
    %c9 = arith.constant 9 : index
    %c0_347 = arith.constant 0 : index
    %c0_348 = arith.constant 0 : index
    %348 = vector.load %arg6[%c9, %c0_347, %c0_348] : memref<12x64x64xbf16, #tpu.memory_space<vmem>>, vector<1x64x64xbf16>
    %349 = vector.shape_cast %348 : vector<1x64x64xbf16> to vector<64x64xbf16>
    %cst_349 = arith.constant dense<0.000000e+00> : vector<8x64xf32>
    %350 = tpu.matmul %347, %349, %cst_349 {dimension_numbers = #tpu.dot_dimension_numbers<[1], [0], [0], [1], [0, 0, 1, 1], [], []>} : vector<8x64xbf16>, vector<64x64xbf16>, vector<8x64xf32> -> vector<8x64xf32>
    %351 = arith.addf %346, %350 : vector<8x64xf32>
    %352 = vector.extract_strided_slice %302 {offsets = [80, 0], sizes = [8, 64], strides = [1, 1]} : vector<96x64xbf16> to vector<8x64xbf16>
    %c10 = arith.constant 10 : index
    %c0_350 = arith.constant 0 : index
    %c0_351 = arith.constant 0 : index
    %353 = vector.load %arg6[%c10, %c0_350, %c0_351] : memref<12x64x64xbf16, #tpu.memory_space<vmem>>, vector<1x64x64xbf16>
    %354 = vector.shape_cast %353 : vector<1x64x64xbf16> to vector<64x64xbf16>
    %cst_352 = arith.constant dense<0.000000e+00> : vector<8x64xf32>
    %355 = tpu.matmul %352, %354, %cst_352 {dimension_numbers = #tpu.dot_dimension_numbers<[1], [0], [0], [1], [0, 0, 1, 1], [], []>} : vector<8x64xbf16>, vector<64x64xbf16>, vector<8x64xf32> -> vector<8x64xf32>
    %356 = arith.addf %351, %355 : vector<8x64xf32>
    %357 = vector.extract_strided_slice %302 {offsets = [88, 0], sizes = [8, 64], strides = [1, 1]} : vector<96x64xbf16> to vector<8x64xbf16>
    %c11 = arith.constant 11 : index
    %c0_353 = arith.constant 0 : index
    %c0_354 = arith.constant 0 : index
    %358 = vector.load %arg6[%c11, %c0_353, %c0_354] : memref<12x64x64xbf16, #tpu.memory_space<vmem>>, vector<1x64x64xbf16>
    %359 = vector.shape_cast %358 : vector<1x64x64xbf16> to vector<64x64xbf16>
    %cst_355 = arith.constant dense<0.000000e+00> : vector<8x64xf32>
    %360 = tpu.matmul %357, %359, %cst_355 {dimension_numbers = #tpu.dot_dimension_numbers<[1], [0], [0], [1], [0, 0, 1, 1], [], []>} : vector<8x64xbf16>, vector<64x64xbf16>, vector<8x64xf32> -> vector<8x64xf32>
    %361 = arith.addf %356, %360 : vector<8x64xf32>
    %c0_356 = arith.constant 0 : index
    %c0_357 = arith.constant 0 : index
    %362 = vector.load %arg7[%c0_356, %c0_357] : memref<1x64xf32, #tpu.memory_space<vmem>>, vector<1x64xf32>
    %363 = vector.broadcast %362 : vector<1x64xf32> to vector<8x64xf32>
    %364 = arith.addf %361, %363 : vector<8x64xf32>
    %cst_358 = arith.constant 0.000000e+00 : f32
    %365 = vector.broadcast %cst_358 : f32 to vector<8x64xf32>
    %366 = arith.maximumf %364, %365 : vector<8x64xf32>
    %367 = arith.truncf %366 : vector<8x64xf32> to vector<8x64xbf16>
    %c0_359 = arith.constant 0 : index
    %c0_360 = arith.constant 0 : index
    %c0_361 = arith.constant 0 : index
    %368 = vector.load %arg8[%c0_359, %c0_360, %c0_361] : memref<4x64x96xbf16, #tpu.memory_space<vmem>>, vector<1x64x96xbf16>
    %369 = vector.shape_cast %368 : vector<1x64x96xbf16> to vector<64x96xbf16>
    %cst_362 = arith.constant dense<0.000000e+00> : vector<8x96xf32>
    %370 = tpu.matmul %367, %369, %cst_362 {dimension_numbers = #tpu.dot_dimension_numbers<[1], [0], [0], [1], [0, 0, 1, 1], [], []>} : vector<8x64xbf16>, vector<64x96xbf16>, vector<8x96xf32> -> vector<8x96xf32>
    %c0_363 = arith.constant 0 : index
    %c0_364 = arith.constant 0 : index
    %c0_365 = arith.constant 0 : index
    %371 = vector.load %arg10[%c0_363, %c0_364, %c0_365] : memref<4x1x96xf32, #tpu.memory_space<vmem>>, vector<1x1x96xf32>
    %372 = vector.shape_cast %371 : vector<1x1x96xf32> to vector<1x96xf32>
    %373 = vector.broadcast %372 : vector<1x96xf32> to vector<8x96xf32>
    %374 = arith.addf %370, %373 : vector<8x96xf32>
    %c1_366 = arith.constant 1 : index
    %c0_367 = arith.constant 0 : index
    %c0_368 = arith.constant 0 : index
    %375 = vector.load %arg8[%c1_366, %c0_367, %c0_368] : memref<4x64x96xbf16, #tpu.memory_space<vmem>>, vector<1x64x96xbf16>
    %376 = vector.shape_cast %375 : vector<1x64x96xbf16> to vector<64x96xbf16>
    %cst_369 = arith.constant dense<0.000000e+00> : vector<8x96xf32>
    %377 = tpu.matmul %367, %376, %cst_369 {dimension_numbers = #tpu.dot_dimension_numbers<[1], [0], [0], [1], [0, 0, 1, 1], [], []>} : vector<8x64xbf16>, vector<64x96xbf16>, vector<8x96xf32> -> vector<8x96xf32>
    %c1_370 = arith.constant 1 : index
    %c0_371 = arith.constant 0 : index
    %c0_372 = arith.constant 0 : index
    %378 = vector.load %arg10[%c1_370, %c0_371, %c0_372] : memref<4x1x96xf32, #tpu.memory_space<vmem>>, vector<1x1x96xf32>
    %379 = vector.shape_cast %378 : vector<1x1x96xf32> to vector<1x96xf32>
    %380 = vector.broadcast %379 : vector<1x96xf32> to vector<8x96xf32>
    %381 = arith.addf %377, %380 : vector<8x96xf32>
    %c0_373 = arith.constant 0 : index
    %c0_374 = arith.constant 0 : index
    %c0_375 = arith.constant 0 : index
    %382 = vector.load %arg11[%c0_373, %c0_374, %c0_375] : memref<4x1x32xf32, #tpu.memory_space<vmem>>, vector<1x1x32xf32>
    %383 = vector.shape_cast %382 : vector<1x1x32xf32> to vector<1x32xf32>
    %c1_376 = arith.constant 1 : index
    %c0_377 = arith.constant 0 : index
    %c0_378 = arith.constant 0 : index
    %384 = vector.load %arg11[%c1_376, %c0_377, %c0_378] : memref<4x1x32xf32, #tpu.memory_space<vmem>>, vector<1x1x32xf32>
    %385 = vector.shape_cast %384 : vector<1x1x32xf32> to vector<1x32xf32>
    %c0_379 = arith.constant 0 : index
    %c0_380 = arith.constant 0 : index
    %c0_381 = arith.constant 0 : index
    %386 = vector.load %arg9[%c0_379, %c0_380, %c0_381] : memref<2x64x192xbf16, #tpu.memory_space<vmem>>, vector<1x64x192xbf16>
    %387 = vector.shape_cast %386 : vector<1x64x192xbf16> to vector<64x192xbf16>
    %cst_382 = arith.constant 0.000000e+00 : f32
    %388 = vector.broadcast %cst_382 : f32 to vector<1x32xf32>
    %cst_383 = arith.constant 0.000000e+00 : f32
    %389 = vector.broadcast %cst_383 : f32 to vector<1x32xf32>
    %390 = tpu.concatenate %388, %389 in 1 : vector<1x32xf32>, vector<1x32xf32> -> vector<1x64xf32>
    %391 = arith.truncf %390 : vector<1x64xf32> to vector<1x64xbf16>
    %cst_384 = arith.constant dense<0.000000e+00> : vector<1x192xf32>
    %392 = tpu.matmul %391, %387, %cst_384 {dimension_numbers = #tpu.dot_dimension_numbers<[1], [0], [0], [1], [0, 0, 1, 1], [], []>} : vector<1x64xbf16>, vector<64x192xbf16>, vector<1x192xf32> -> vector<1x192xf32>
    %393 = vector.extract_strided_slice %374 {offsets = [0, 0], sizes = [1, 96], strides = [1, 1]} : vector<8x96xf32> to vector<1x96xf32>
    %394 = vector.extract_strided_slice %392 {offsets = [0, 0], sizes = [1, 96], strides = [1, 1]} : vector<1x192xf32> to vector<1x96xf32>
    %395 = vector.extract_strided_slice %393 {offsets = [0, 0], sizes = [1, 64], strides = [1, 1]} : vector<1x96xf32> to vector<1x64xf32>
    %396 = vector.extract_strided_slice %394 {offsets = [0, 0], sizes = [1, 64], strides = [1, 1]} : vector<1x96xf32> to vector<1x64xf32>
    %397 = arith.addf %395, %396 : vector<1x64xf32>
    %398 = arith.negf %397 : vector<1x64xf32>
    %399 = math.exp %398 : vector<1x64xf32>
    %cst_385 = arith.constant 1.000000e+00 : f32
    %400 = vector.broadcast %cst_385 : f32 to vector<1x64xf32>
    %401 = arith.addf %400, %399 : vector<1x64xf32>
    %402 = arith.divf %400, %401 : vector<1x64xf32>
    %403 = vector.extract_strided_slice %402 {offsets = [0, 0], sizes = [1, 32], strides = [1, 1]} : vector<1x64xf32> to vector<1x32xf32>
    %404 = vector.extract_strided_slice %402 {offsets = [0, 32], sizes = [1, 32], strides = [1, 1]} : vector<1x64xf32> to vector<1x32xf32>
    %405 = vector.extract_strided_slice %393 {offsets = [0, 64], sizes = [1, 32], strides = [1, 1]} : vector<1x96xf32> to vector<1x32xf32>
    %406 = vector.extract_strided_slice %394 {offsets = [0, 64], sizes = [1, 32], strides = [1, 1]} : vector<1x96xf32> to vector<1x32xf32>
    %407 = arith.addf %406, %383 : vector<1x32xf32>
    %408 = arith.mulf %403, %407 : vector<1x32xf32>
    %409 = arith.addf %405, %408 : vector<1x32xf32>
    %410 = math.tanh %409 : vector<1x32xf32>
    %411 = arith.subf %388, %410 : vector<1x32xf32>
    %412 = arith.mulf %404, %411 : vector<1x32xf32>
    %413 = arith.addf %410, %412 : vector<1x32xf32>
    %414 = vector.extract_strided_slice %381 {offsets = [7, 0], sizes = [1, 96], strides = [1, 1]} : vector<8x96xf32> to vector<1x96xf32>
    %415 = vector.extract_strided_slice %392 {offsets = [0, 96], sizes = [1, 96], strides = [1, 1]} : vector<1x192xf32> to vector<1x96xf32>
    %416 = vector.extract_strided_slice %414 {offsets = [0, 0], sizes = [1, 64], strides = [1, 1]} : vector<1x96xf32> to vector<1x64xf32>
    %417 = vector.extract_strided_slice %415 {offsets = [0, 0], sizes = [1, 64], strides = [1, 1]} : vector<1x96xf32> to vector<1x64xf32>
    %418 = arith.addf %416, %417 : vector<1x64xf32>
    %419 = arith.negf %418 : vector<1x64xf32>
    %420 = math.exp %419 : vector<1x64xf32>
    %cst_386 = arith.constant 1.000000e+00 : f32
    %421 = vector.broadcast %cst_386 : f32 to vector<1x64xf32>
    %422 = arith.addf %421, %420 : vector<1x64xf32>
    %423 = arith.divf %421, %422 : vector<1x64xf32>
    %424 = vector.extract_strided_slice %423 {offsets = [0, 0], sizes = [1, 32], strides = [1, 1]} : vector<1x64xf32> to vector<1x32xf32>
    %425 = vector.extract_strided_slice %423 {offsets = [0, 32], sizes = [1, 32], strides = [1, 1]} : vector<1x64xf32> to vector<1x32xf32>
    %426 = vector.extract_strided_slice %414 {offsets = [0, 64], sizes = [1, 32], strides = [1, 1]} : vector<1x96xf32> to vector<1x32xf32>
    %427 = vector.extract_strided_slice %415 {offsets = [0, 64], sizes = [1, 32], strides = [1, 1]} : vector<1x96xf32> to vector<1x32xf32>
    %428 = arith.addf %427, %385 : vector<1x32xf32>
    %429 = arith.mulf %424, %428 : vector<1x32xf32>
    %430 = arith.addf %426, %429 : vector<1x32xf32>
    %431 = math.tanh %430 : vector<1x32xf32>
    %432 = arith.subf %389, %431 : vector<1x32xf32>
    %433 = arith.mulf %425, %432 : vector<1x32xf32>
    %434 = arith.addf %431, %433 : vector<1x32xf32>
    %435 = tpu.concatenate %413, %434 in 1 : vector<1x32xf32>, vector<1x32xf32> -> vector<1x64xf32>
    %436 = arith.truncf %435 : vector<1x64xf32> to vector<1x64xbf16>
    %cst_387 = arith.constant dense<0.000000e+00> : vector<1x192xf32>
    %437 = tpu.matmul %436, %387, %cst_387 {dimension_numbers = #tpu.dot_dimension_numbers<[1], [0], [0], [1], [0, 0, 1, 1], [], []>} : vector<1x64xbf16>, vector<64x192xbf16>, vector<1x192xf32> -> vector<1x192xf32>
    %438 = vector.extract_strided_slice %374 {offsets = [1, 0], sizes = [1, 96], strides = [1, 1]} : vector<8x96xf32> to vector<1x96xf32>
    %439 = vector.extract_strided_slice %437 {offsets = [0, 0], sizes = [1, 96], strides = [1, 1]} : vector<1x192xf32> to vector<1x96xf32>
    %440 = vector.extract_strided_slice %438 {offsets = [0, 0], sizes = [1, 64], strides = [1, 1]} : vector<1x96xf32> to vector<1x64xf32>
    %441 = vector.extract_strided_slice %439 {offsets = [0, 0], sizes = [1, 64], strides = [1, 1]} : vector<1x96xf32> to vector<1x64xf32>
    %442 = arith.addf %440, %441 : vector<1x64xf32>
    %443 = arith.negf %442 : vector<1x64xf32>
    %444 = math.exp %443 : vector<1x64xf32>
    %cst_388 = arith.constant 1.000000e+00 : f32
    %445 = vector.broadcast %cst_388 : f32 to vector<1x64xf32>
    %446 = arith.addf %445, %444 : vector<1x64xf32>
    %447 = arith.divf %445, %446 : vector<1x64xf32>
    %448 = vector.extract_strided_slice %447 {offsets = [0, 0], sizes = [1, 32], strides = [1, 1]} : vector<1x64xf32> to vector<1x32xf32>
    %449 = vector.extract_strided_slice %447 {offsets = [0, 32], sizes = [1, 32], strides = [1, 1]} : vector<1x64xf32> to vector<1x32xf32>
    %450 = vector.extract_strided_slice %438 {offsets = [0, 64], sizes = [1, 32], strides = [1, 1]} : vector<1x96xf32> to vector<1x32xf32>
    %451 = vector.extract_strided_slice %439 {offsets = [0, 64], sizes = [1, 32], strides = [1, 1]} : vector<1x96xf32> to vector<1x32xf32>
    %452 = arith.addf %451, %383 : vector<1x32xf32>
    %453 = arith.mulf %448, %452 : vector<1x32xf32>
    %454 = arith.addf %450, %453 : vector<1x32xf32>
    %455 = math.tanh %454 : vector<1x32xf32>
    %456 = arith.subf %413, %455 : vector<1x32xf32>
    %457 = arith.mulf %449, %456 : vector<1x32xf32>
    %458 = arith.addf %455, %457 : vector<1x32xf32>
    %459 = vector.extract_strided_slice %381 {offsets = [6, 0], sizes = [1, 96], strides = [1, 1]} : vector<8x96xf32> to vector<1x96xf32>
    %460 = vector.extract_strided_slice %437 {offsets = [0, 96], sizes = [1, 96], strides = [1, 1]} : vector<1x192xf32> to vector<1x96xf32>
    %461 = vector.extract_strided_slice %459 {offsets = [0, 0], sizes = [1, 64], strides = [1, 1]} : vector<1x96xf32> to vector<1x64xf32>
    %462 = vector.extract_strided_slice %460 {offsets = [0, 0], sizes = [1, 64], strides = [1, 1]} : vector<1x96xf32> to vector<1x64xf32>
    %463 = arith.addf %461, %462 : vector<1x64xf32>
    %464 = arith.negf %463 : vector<1x64xf32>
    %465 = math.exp %464 : vector<1x64xf32>
    %cst_389 = arith.constant 1.000000e+00 : f32
    %466 = vector.broadcast %cst_389 : f32 to vector<1x64xf32>
    %467 = arith.addf %466, %465 : vector<1x64xf32>
    %468 = arith.divf %466, %467 : vector<1x64xf32>
    %469 = vector.extract_strided_slice %468 {offsets = [0, 0], sizes = [1, 32], strides = [1, 1]} : vector<1x64xf32> to vector<1x32xf32>
    %470 = vector.extract_strided_slice %468 {offsets = [0, 32], sizes = [1, 32], strides = [1, 1]} : vector<1x64xf32> to vector<1x32xf32>
    %471 = vector.extract_strided_slice %459 {offsets = [0, 64], sizes = [1, 32], strides = [1, 1]} : vector<1x96xf32> to vector<1x32xf32>
    %472 = vector.extract_strided_slice %460 {offsets = [0, 64], sizes = [1, 32], strides = [1, 1]} : vector<1x96xf32> to vector<1x32xf32>
    %473 = arith.addf %472, %385 : vector<1x32xf32>
    %474 = arith.mulf %469, %473 : vector<1x32xf32>
    %475 = arith.addf %471, %474 : vector<1x32xf32>
    %476 = math.tanh %475 : vector<1x32xf32>
    %477 = arith.subf %434, %476 : vector<1x32xf32>
    %478 = arith.mulf %470, %477 : vector<1x32xf32>
    %479 = arith.addf %476, %478 : vector<1x32xf32>
    %480 = tpu.concatenate %458, %479 in 1 : vector<1x32xf32>, vector<1x32xf32> -> vector<1x64xf32>
    %481 = arith.truncf %480 : vector<1x64xf32> to vector<1x64xbf16>
    %cst_390 = arith.constant dense<0.000000e+00> : vector<1x192xf32>
    %482 = tpu.matmul %481, %387, %cst_390 {dimension_numbers = #tpu.dot_dimension_numbers<[1], [0], [0], [1], [0, 0, 1, 1], [], []>} : vector<1x64xbf16>, vector<64x192xbf16>, vector<1x192xf32> -> vector<1x192xf32>
    %483 = vector.extract_strided_slice %374 {offsets = [2, 0], sizes = [1, 96], strides = [1, 1]} : vector<8x96xf32> to vector<1x96xf32>
    %484 = vector.extract_strided_slice %482 {offsets = [0, 0], sizes = [1, 96], strides = [1, 1]} : vector<1x192xf32> to vector<1x96xf32>
    %485 = vector.extract_strided_slice %483 {offsets = [0, 0], sizes = [1, 64], strides = [1, 1]} : vector<1x96xf32> to vector<1x64xf32>
    %486 = vector.extract_strided_slice %484 {offsets = [0, 0], sizes = [1, 64], strides = [1, 1]} : vector<1x96xf32> to vector<1x64xf32>
    %487 = arith.addf %485, %486 : vector<1x64xf32>
    %488 = arith.negf %487 : vector<1x64xf32>
    %489 = math.exp %488 : vector<1x64xf32>
    %cst_391 = arith.constant 1.000000e+00 : f32
    %490 = vector.broadcast %cst_391 : f32 to vector<1x64xf32>
    %491 = arith.addf %490, %489 : vector<1x64xf32>
    %492 = arith.divf %490, %491 : vector<1x64xf32>
    %493 = vector.extract_strided_slice %492 {offsets = [0, 0], sizes = [1, 32], strides = [1, 1]} : vector<1x64xf32> to vector<1x32xf32>
    %494 = vector.extract_strided_slice %492 {offsets = [0, 32], sizes = [1, 32], strides = [1, 1]} : vector<1x64xf32> to vector<1x32xf32>
    %495 = vector.extract_strided_slice %483 {offsets = [0, 64], sizes = [1, 32], strides = [1, 1]} : vector<1x96xf32> to vector<1x32xf32>
    %496 = vector.extract_strided_slice %484 {offsets = [0, 64], sizes = [1, 32], strides = [1, 1]} : vector<1x96xf32> to vector<1x32xf32>
    %497 = arith.addf %496, %383 : vector<1x32xf32>
    %498 = arith.mulf %493, %497 : vector<1x32xf32>
    %499 = arith.addf %495, %498 : vector<1x32xf32>
    %500 = math.tanh %499 : vector<1x32xf32>
    %501 = arith.subf %458, %500 : vector<1x32xf32>
    %502 = arith.mulf %494, %501 : vector<1x32xf32>
    %503 = arith.addf %500, %502 : vector<1x32xf32>
    %504 = vector.extract_strided_slice %381 {offsets = [5, 0], sizes = [1, 96], strides = [1, 1]} : vector<8x96xf32> to vector<1x96xf32>
    %505 = vector.extract_strided_slice %482 {offsets = [0, 96], sizes = [1, 96], strides = [1, 1]} : vector<1x192xf32> to vector<1x96xf32>
    %506 = vector.extract_strided_slice %504 {offsets = [0, 0], sizes = [1, 64], strides = [1, 1]} : vector<1x96xf32> to vector<1x64xf32>
    %507 = vector.extract_strided_slice %505 {offsets = [0, 0], sizes = [1, 64], strides = [1, 1]} : vector<1x96xf32> to vector<1x64xf32>
    %508 = arith.addf %506, %507 : vector<1x64xf32>
    %509 = arith.negf %508 : vector<1x64xf32>
    %510 = math.exp %509 : vector<1x64xf32>
    %cst_392 = arith.constant 1.000000e+00 : f32
    %511 = vector.broadcast %cst_392 : f32 to vector<1x64xf32>
    %512 = arith.addf %511, %510 : vector<1x64xf32>
    %513 = arith.divf %511, %512 : vector<1x64xf32>
    %514 = vector.extract_strided_slice %513 {offsets = [0, 0], sizes = [1, 32], strides = [1, 1]} : vector<1x64xf32> to vector<1x32xf32>
    %515 = vector.extract_strided_slice %513 {offsets = [0, 32], sizes = [1, 32], strides = [1, 1]} : vector<1x64xf32> to vector<1x32xf32>
    %516 = vector.extract_strided_slice %504 {offsets = [0, 64], sizes = [1, 32], strides = [1, 1]} : vector<1x96xf32> to vector<1x32xf32>
    %517 = vector.extract_strided_slice %505 {offsets = [0, 64], sizes = [1, 32], strides = [1, 1]} : vector<1x96xf32> to vector<1x32xf32>
    %518 = arith.addf %517, %385 : vector<1x32xf32>
    %519 = arith.mulf %514, %518 : vector<1x32xf32>
    %520 = arith.addf %516, %519 : vector<1x32xf32>
    %521 = math.tanh %520 : vector<1x32xf32>
    %522 = arith.subf %479, %521 : vector<1x32xf32>
    %523 = arith.mulf %515, %522 : vector<1x32xf32>
    %524 = arith.addf %521, %523 : vector<1x32xf32>
    %525 = tpu.concatenate %503, %524 in 1 : vector<1x32xf32>, vector<1x32xf32> -> vector<1x64xf32>
    %526 = arith.truncf %525 : vector<1x64xf32> to vector<1x64xbf16>
    %cst_393 = arith.constant dense<0.000000e+00> : vector<1x192xf32>
    %527 = tpu.matmul %526, %387, %cst_393 {dimension_numbers = #tpu.dot_dimension_numbers<[1], [0], [0], [1], [0, 0, 1, 1], [], []>} : vector<1x64xbf16>, vector<64x192xbf16>, vector<1x192xf32> -> vector<1x192xf32>
    %528 = vector.extract_strided_slice %374 {offsets = [3, 0], sizes = [1, 96], strides = [1, 1]} : vector<8x96xf32> to vector<1x96xf32>
    %529 = vector.extract_strided_slice %527 {offsets = [0, 0], sizes = [1, 96], strides = [1, 1]} : vector<1x192xf32> to vector<1x96xf32>
    %530 = vector.extract_strided_slice %528 {offsets = [0, 0], sizes = [1, 64], strides = [1, 1]} : vector<1x96xf32> to vector<1x64xf32>
    %531 = vector.extract_strided_slice %529 {offsets = [0, 0], sizes = [1, 64], strides = [1, 1]} : vector<1x96xf32> to vector<1x64xf32>
    %532 = arith.addf %530, %531 : vector<1x64xf32>
    %533 = arith.negf %532 : vector<1x64xf32>
    %534 = math.exp %533 : vector<1x64xf32>
    %cst_394 = arith.constant 1.000000e+00 : f32
    %535 = vector.broadcast %cst_394 : f32 to vector<1x64xf32>
    %536 = arith.addf %535, %534 : vector<1x64xf32>
    %537 = arith.divf %535, %536 : vector<1x64xf32>
    %538 = vector.extract_strided_slice %537 {offsets = [0, 0], sizes = [1, 32], strides = [1, 1]} : vector<1x64xf32> to vector<1x32xf32>
    %539 = vector.extract_strided_slice %537 {offsets = [0, 32], sizes = [1, 32], strides = [1, 1]} : vector<1x64xf32> to vector<1x32xf32>
    %540 = vector.extract_strided_slice %528 {offsets = [0, 64], sizes = [1, 32], strides = [1, 1]} : vector<1x96xf32> to vector<1x32xf32>
    %541 = vector.extract_strided_slice %529 {offsets = [0, 64], sizes = [1, 32], strides = [1, 1]} : vector<1x96xf32> to vector<1x32xf32>
    %542 = arith.addf %541, %383 : vector<1x32xf32>
    %543 = arith.mulf %538, %542 : vector<1x32xf32>
    %544 = arith.addf %540, %543 : vector<1x32xf32>
    %545 = math.tanh %544 : vector<1x32xf32>
    %546 = arith.subf %503, %545 : vector<1x32xf32>
    %547 = arith.mulf %539, %546 : vector<1x32xf32>
    %548 = arith.addf %545, %547 : vector<1x32xf32>
    %549 = vector.extract_strided_slice %381 {offsets = [4, 0], sizes = [1, 96], strides = [1, 1]} : vector<8x96xf32> to vector<1x96xf32>
    %550 = vector.extract_strided_slice %527 {offsets = [0, 96], sizes = [1, 96], strides = [1, 1]} : vector<1x192xf32> to vector<1x96xf32>
    %551 = vector.extract_strided_slice %549 {offsets = [0, 0], sizes = [1, 64], strides = [1, 1]} : vector<1x96xf32> to vector<1x64xf32>
    %552 = vector.extract_strided_slice %550 {offsets = [0, 0], sizes = [1, 64], strides = [1, 1]} : vector<1x96xf32> to vector<1x64xf32>
    %553 = arith.addf %551, %552 : vector<1x64xf32>
    %554 = arith.negf %553 : vector<1x64xf32>
    %555 = math.exp %554 : vector<1x64xf32>
    %cst_395 = arith.constant 1.000000e+00 : f32
    %556 = vector.broadcast %cst_395 : f32 to vector<1x64xf32>
    %557 = arith.addf %556, %555 : vector<1x64xf32>
    %558 = arith.divf %556, %557 : vector<1x64xf32>
    %559 = vector.extract_strided_slice %558 {offsets = [0, 0], sizes = [1, 32], strides = [1, 1]} : vector<1x64xf32> to vector<1x32xf32>
    %560 = vector.extract_strided_slice %558 {offsets = [0, 32], sizes = [1, 32], strides = [1, 1]} : vector<1x64xf32> to vector<1x32xf32>
    %561 = vector.extract_strided_slice %549 {offsets = [0, 64], sizes = [1, 32], strides = [1, 1]} : vector<1x96xf32> to vector<1x32xf32>
    %562 = vector.extract_strided_slice %550 {offsets = [0, 64], sizes = [1, 32], strides = [1, 1]} : vector<1x96xf32> to vector<1x32xf32>
    %563 = arith.addf %562, %385 : vector<1x32xf32>
    %564 = arith.mulf %559, %563 : vector<1x32xf32>
    %565 = arith.addf %561, %564 : vector<1x32xf32>
    %566 = math.tanh %565 : vector<1x32xf32>
    %567 = arith.subf %524, %566 : vector<1x32xf32>
    %568 = arith.mulf %560, %567 : vector<1x32xf32>
    %569 = arith.addf %566, %568 : vector<1x32xf32>
    %570 = tpu.concatenate %548, %569 in 1 : vector<1x32xf32>, vector<1x32xf32> -> vector<1x64xf32>
    %571 = arith.truncf %570 : vector<1x64xf32> to vector<1x64xbf16>
    %cst_396 = arith.constant dense<0.000000e+00> : vector<1x192xf32>
    %572 = tpu.matmul %571, %387, %cst_396 {dimension_numbers = #tpu.dot_dimension_numbers<[1], [0], [0], [1], [0, 0, 1, 1], [], []>} : vector<1x64xbf16>, vector<64x192xbf16>, vector<1x192xf32> -> vector<1x192xf32>
    %573 = vector.extract_strided_slice %374 {offsets = [4, 0], sizes = [1, 96], strides = [1, 1]} : vector<8x96xf32> to vector<1x96xf32>
    %574 = vector.extract_strided_slice %572 {offsets = [0, 0], sizes = [1, 96], strides = [1, 1]} : vector<1x192xf32> to vector<1x96xf32>
    %575 = vector.extract_strided_slice %573 {offsets = [0, 0], sizes = [1, 64], strides = [1, 1]} : vector<1x96xf32> to vector<1x64xf32>
    %576 = vector.extract_strided_slice %574 {offsets = [0, 0], sizes = [1, 64], strides = [1, 1]} : vector<1x96xf32> to vector<1x64xf32>
    %577 = arith.addf %575, %576 : vector<1x64xf32>
    %578 = arith.negf %577 : vector<1x64xf32>
    %579 = math.exp %578 : vector<1x64xf32>
    %cst_397 = arith.constant 1.000000e+00 : f32
    %580 = vector.broadcast %cst_397 : f32 to vector<1x64xf32>
    %581 = arith.addf %580, %579 : vector<1x64xf32>
    %582 = arith.divf %580, %581 : vector<1x64xf32>
    %583 = vector.extract_strided_slice %582 {offsets = [0, 0], sizes = [1, 32], strides = [1, 1]} : vector<1x64xf32> to vector<1x32xf32>
    %584 = vector.extract_strided_slice %582 {offsets = [0, 32], sizes = [1, 32], strides = [1, 1]} : vector<1x64xf32> to vector<1x32xf32>
    %585 = vector.extract_strided_slice %573 {offsets = [0, 64], sizes = [1, 32], strides = [1, 1]} : vector<1x96xf32> to vector<1x32xf32>
    %586 = vector.extract_strided_slice %574 {offsets = [0, 64], sizes = [1, 32], strides = [1, 1]} : vector<1x96xf32> to vector<1x32xf32>
    %587 = arith.addf %586, %383 : vector<1x32xf32>
    %588 = arith.mulf %583, %587 : vector<1x32xf32>
    %589 = arith.addf %585, %588 : vector<1x32xf32>
    %590 = math.tanh %589 : vector<1x32xf32>
    %591 = arith.subf %548, %590 : vector<1x32xf32>
    %592 = arith.mulf %584, %591 : vector<1x32xf32>
    %593 = arith.addf %590, %592 : vector<1x32xf32>
    %594 = vector.extract_strided_slice %381 {offsets = [3, 0], sizes = [1, 96], strides = [1, 1]} : vector<8x96xf32> to vector<1x96xf32>
    %595 = vector.extract_strided_slice %572 {offsets = [0, 96], sizes = [1, 96], strides = [1, 1]} : vector<1x192xf32> to vector<1x96xf32>
    %596 = vector.extract_strided_slice %594 {offsets = [0, 0], sizes = [1, 64], strides = [1, 1]} : vector<1x96xf32> to vector<1x64xf32>
    %597 = vector.extract_strided_slice %595 {offsets = [0, 0], sizes = [1, 64], strides = [1, 1]} : vector<1x96xf32> to vector<1x64xf32>
    %598 = arith.addf %596, %597 : vector<1x64xf32>
    %599 = arith.negf %598 : vector<1x64xf32>
    %600 = math.exp %599 : vector<1x64xf32>
    %cst_398 = arith.constant 1.000000e+00 : f32
    %601 = vector.broadcast %cst_398 : f32 to vector<1x64xf32>
    %602 = arith.addf %601, %600 : vector<1x64xf32>
    %603 = arith.divf %601, %602 : vector<1x64xf32>
    %604 = vector.extract_strided_slice %603 {offsets = [0, 0], sizes = [1, 32], strides = [1, 1]} : vector<1x64xf32> to vector<1x32xf32>
    %605 = vector.extract_strided_slice %603 {offsets = [0, 32], sizes = [1, 32], strides = [1, 1]} : vector<1x64xf32> to vector<1x32xf32>
    %606 = vector.extract_strided_slice %594 {offsets = [0, 64], sizes = [1, 32], strides = [1, 1]} : vector<1x96xf32> to vector<1x32xf32>
    %607 = vector.extract_strided_slice %595 {offsets = [0, 64], sizes = [1, 32], strides = [1, 1]} : vector<1x96xf32> to vector<1x32xf32>
    %608 = arith.addf %607, %385 : vector<1x32xf32>
    %609 = arith.mulf %604, %608 : vector<1x32xf32>
    %610 = arith.addf %606, %609 : vector<1x32xf32>
    %611 = math.tanh %610 : vector<1x32xf32>
    %612 = arith.subf %569, %611 : vector<1x32xf32>
    %613 = arith.mulf %605, %612 : vector<1x32xf32>
    %614 = arith.addf %611, %613 : vector<1x32xf32>
    %615 = tpu.concatenate %593, %614 in 1 : vector<1x32xf32>, vector<1x32xf32> -> vector<1x64xf32>
    %616 = arith.truncf %615 : vector<1x64xf32> to vector<1x64xbf16>
    %cst_399 = arith.constant dense<0.000000e+00> : vector<1x192xf32>
    %617 = tpu.matmul %616, %387, %cst_399 {dimension_numbers = #tpu.dot_dimension_numbers<[1], [0], [0], [1], [0, 0, 1, 1], [], []>} : vector<1x64xbf16>, vector<64x192xbf16>, vector<1x192xf32> -> vector<1x192xf32>
    %618 = vector.extract_strided_slice %374 {offsets = [5, 0], sizes = [1, 96], strides = [1, 1]} : vector<8x96xf32> to vector<1x96xf32>
    %619 = vector.extract_strided_slice %617 {offsets = [0, 0], sizes = [1, 96], strides = [1, 1]} : vector<1x192xf32> to vector<1x96xf32>
    %620 = vector.extract_strided_slice %618 {offsets = [0, 0], sizes = [1, 64], strides = [1, 1]} : vector<1x96xf32> to vector<1x64xf32>
    %621 = vector.extract_strided_slice %619 {offsets = [0, 0], sizes = [1, 64], strides = [1, 1]} : vector<1x96xf32> to vector<1x64xf32>
    %622 = arith.addf %620, %621 : vector<1x64xf32>
    %623 = arith.negf %622 : vector<1x64xf32>
    %624 = math.exp %623 : vector<1x64xf32>
    %cst_400 = arith.constant 1.000000e+00 : f32
    %625 = vector.broadcast %cst_400 : f32 to vector<1x64xf32>
    %626 = arith.addf %625, %624 : vector<1x64xf32>
    %627 = arith.divf %625, %626 : vector<1x64xf32>
    %628 = vector.extract_strided_slice %627 {offsets = [0, 0], sizes = [1, 32], strides = [1, 1]} : vector<1x64xf32> to vector<1x32xf32>
    %629 = vector.extract_strided_slice %627 {offsets = [0, 32], sizes = [1, 32], strides = [1, 1]} : vector<1x64xf32> to vector<1x32xf32>
    %630 = vector.extract_strided_slice %618 {offsets = [0, 64], sizes = [1, 32], strides = [1, 1]} : vector<1x96xf32> to vector<1x32xf32>
    %631 = vector.extract_strided_slice %619 {offsets = [0, 64], sizes = [1, 32], strides = [1, 1]} : vector<1x96xf32> to vector<1x32xf32>
    %632 = arith.addf %631, %383 : vector<1x32xf32>
    %633 = arith.mulf %628, %632 : vector<1x32xf32>
    %634 = arith.addf %630, %633 : vector<1x32xf32>
    %635 = math.tanh %634 : vector<1x32xf32>
    %636 = arith.subf %593, %635 : vector<1x32xf32>
    %637 = arith.mulf %629, %636 : vector<1x32xf32>
    %638 = arith.addf %635, %637 : vector<1x32xf32>
    %639 = vector.extract_strided_slice %381 {offsets = [2, 0], sizes = [1, 96], strides = [1, 1]} : vector<8x96xf32> to vector<1x96xf32>
    %640 = vector.extract_strided_slice %617 {offsets = [0, 96], sizes = [1, 96], strides = [1, 1]} : vector<1x192xf32> to vector<1x96xf32>
    %641 = vector.extract_strided_slice %639 {offsets = [0, 0], sizes = [1, 64], strides = [1, 1]} : vector<1x96xf32> to vector<1x64xf32>
    %642 = vector.extract_strided_slice %640 {offsets = [0, 0], sizes = [1, 64], strides = [1, 1]} : vector<1x96xf32> to vector<1x64xf32>
    %643 = arith.addf %641, %642 : vector<1x64xf32>
    %644 = arith.negf %643 : vector<1x64xf32>
    %645 = math.exp %644 : vector<1x64xf32>
    %cst_401 = arith.constant 1.000000e+00 : f32
    %646 = vector.broadcast %cst_401 : f32 to vector<1x64xf32>
    %647 = arith.addf %646, %645 : vector<1x64xf32>
    %648 = arith.divf %646, %647 : vector<1x64xf32>
    %649 = vector.extract_strided_slice %648 {offsets = [0, 0], sizes = [1, 32], strides = [1, 1]} : vector<1x64xf32> to vector<1x32xf32>
    %650 = vector.extract_strided_slice %648 {offsets = [0, 32], sizes = [1, 32], strides = [1, 1]} : vector<1x64xf32> to vector<1x32xf32>
    %651 = vector.extract_strided_slice %639 {offsets = [0, 64], sizes = [1, 32], strides = [1, 1]} : vector<1x96xf32> to vector<1x32xf32>
    %652 = vector.extract_strided_slice %640 {offsets = [0, 64], sizes = [1, 32], strides = [1, 1]} : vector<1x96xf32> to vector<1x32xf32>
    %653 = arith.addf %652, %385 : vector<1x32xf32>
    %654 = arith.mulf %649, %653 : vector<1x32xf32>
    %655 = arith.addf %651, %654 : vector<1x32xf32>
    %656 = math.tanh %655 : vector<1x32xf32>
    %657 = arith.subf %614, %656 : vector<1x32xf32>
    %658 = arith.mulf %650, %657 : vector<1x32xf32>
    %659 = arith.addf %656, %658 : vector<1x32xf32>
    %660 = tpu.concatenate %638, %659 in 1 : vector<1x32xf32>, vector<1x32xf32> -> vector<1x64xf32>
    %661 = arith.truncf %660 : vector<1x64xf32> to vector<1x64xbf16>
    %cst_402 = arith.constant dense<0.000000e+00> : vector<1x192xf32>
    %662 = tpu.matmul %661, %387, %cst_402 {dimension_numbers = #tpu.dot_dimension_numbers<[1], [0], [0], [1], [0, 0, 1, 1], [], []>} : vector<1x64xbf16>, vector<64x192xbf16>, vector<1x192xf32> -> vector<1x192xf32>
    %663 = vector.extract_strided_slice %374 {offsets = [6, 0], sizes = [1, 96], strides = [1, 1]} : vector<8x96xf32> to vector<1x96xf32>
    %664 = vector.extract_strided_slice %662 {offsets = [0, 0], sizes = [1, 96], strides = [1, 1]} : vector<1x192xf32> to vector<1x96xf32>
    %665 = vector.extract_strided_slice %663 {offsets = [0, 0], sizes = [1, 64], strides = [1, 1]} : vector<1x96xf32> to vector<1x64xf32>
    %666 = vector.extract_strided_slice %664 {offsets = [0, 0], sizes = [1, 64], strides = [1, 1]} : vector<1x96xf32> to vector<1x64xf32>
    %667 = arith.addf %665, %666 : vector<1x64xf32>
    %668 = arith.negf %667 : vector<1x64xf32>
    %669 = math.exp %668 : vector<1x64xf32>
    %cst_403 = arith.constant 1.000000e+00 : f32
    %670 = vector.broadcast %cst_403 : f32 to vector<1x64xf32>
    %671 = arith.addf %670, %669 : vector<1x64xf32>
    %672 = arith.divf %670, %671 : vector<1x64xf32>
    %673 = vector.extract_strided_slice %672 {offsets = [0, 0], sizes = [1, 32], strides = [1, 1]} : vector<1x64xf32> to vector<1x32xf32>
    %674 = vector.extract_strided_slice %672 {offsets = [0, 32], sizes = [1, 32], strides = [1, 1]} : vector<1x64xf32> to vector<1x32xf32>
    %675 = vector.extract_strided_slice %663 {offsets = [0, 64], sizes = [1, 32], strides = [1, 1]} : vector<1x96xf32> to vector<1x32xf32>
    %676 = vector.extract_strided_slice %664 {offsets = [0, 64], sizes = [1, 32], strides = [1, 1]} : vector<1x96xf32> to vector<1x32xf32>
    %677 = arith.addf %676, %383 : vector<1x32xf32>
    %678 = arith.mulf %673, %677 : vector<1x32xf32>
    %679 = arith.addf %675, %678 : vector<1x32xf32>
    %680 = math.tanh %679 : vector<1x32xf32>
    %681 = arith.subf %638, %680 : vector<1x32xf32>
    %682 = arith.mulf %674, %681 : vector<1x32xf32>
    %683 = arith.addf %680, %682 : vector<1x32xf32>
    %684 = vector.extract_strided_slice %381 {offsets = [1, 0], sizes = [1, 96], strides = [1, 1]} : vector<8x96xf32> to vector<1x96xf32>
    %685 = vector.extract_strided_slice %662 {offsets = [0, 96], sizes = [1, 96], strides = [1, 1]} : vector<1x192xf32> to vector<1x96xf32>
    %686 = vector.extract_strided_slice %684 {offsets = [0, 0], sizes = [1, 64], strides = [1, 1]} : vector<1x96xf32> to vector<1x64xf32>
    %687 = vector.extract_strided_slice %685 {offsets = [0, 0], sizes = [1, 64], strides = [1, 1]} : vector<1x96xf32> to vector<1x64xf32>
    %688 = arith.addf %686, %687 : vector<1x64xf32>
    %689 = arith.negf %688 : vector<1x64xf32>
    %690 = math.exp %689 : vector<1x64xf32>
    %cst_404 = arith.constant 1.000000e+00 : f32
    %691 = vector.broadcast %cst_404 : f32 to vector<1x64xf32>
    %692 = arith.addf %691, %690 : vector<1x64xf32>
    %693 = arith.divf %691, %692 : vector<1x64xf32>
    %694 = vector.extract_strided_slice %693 {offsets = [0, 0], sizes = [1, 32], strides = [1, 1]} : vector<1x64xf32> to vector<1x32xf32>
    %695 = vector.extract_strided_slice %693 {offsets = [0, 32], sizes = [1, 32], strides = [1, 1]} : vector<1x64xf32> to vector<1x32xf32>
    %696 = vector.extract_strided_slice %684 {offsets = [0, 64], sizes = [1, 32], strides = [1, 1]} : vector<1x96xf32> to vector<1x32xf32>
    %697 = vector.extract_strided_slice %685 {offsets = [0, 64], sizes = [1, 32], strides = [1, 1]} : vector<1x96xf32> to vector<1x32xf32>
    %698 = arith.addf %697, %385 : vector<1x32xf32>
    %699 = arith.mulf %694, %698 : vector<1x32xf32>
    %700 = arith.addf %696, %699 : vector<1x32xf32>
    %701 = math.tanh %700 : vector<1x32xf32>
    %702 = arith.subf %659, %701 : vector<1x32xf32>
    %703 = arith.mulf %695, %702 : vector<1x32xf32>
    %704 = arith.addf %701, %703 : vector<1x32xf32>
    %705 = tpu.concatenate %683, %704 in 1 : vector<1x32xf32>, vector<1x32xf32> -> vector<1x64xf32>
    %706 = arith.truncf %705 : vector<1x64xf32> to vector<1x64xbf16>
    %cst_405 = arith.constant dense<0.000000e+00> : vector<1x192xf32>
    %707 = tpu.matmul %706, %387, %cst_405 {dimension_numbers = #tpu.dot_dimension_numbers<[1], [0], [0], [1], [0, 0, 1, 1], [], []>} : vector<1x64xbf16>, vector<64x192xbf16>, vector<1x192xf32> -> vector<1x192xf32>
    %708 = vector.extract_strided_slice %374 {offsets = [7, 0], sizes = [1, 96], strides = [1, 1]} : vector<8x96xf32> to vector<1x96xf32>
    %709 = vector.extract_strided_slice %707 {offsets = [0, 0], sizes = [1, 96], strides = [1, 1]} : vector<1x192xf32> to vector<1x96xf32>
    %710 = vector.extract_strided_slice %708 {offsets = [0, 0], sizes = [1, 64], strides = [1, 1]} : vector<1x96xf32> to vector<1x64xf32>
    %711 = vector.extract_strided_slice %709 {offsets = [0, 0], sizes = [1, 64], strides = [1, 1]} : vector<1x96xf32> to vector<1x64xf32>
    %712 = arith.addf %710, %711 : vector<1x64xf32>
    %713 = arith.negf %712 : vector<1x64xf32>
    %714 = math.exp %713 : vector<1x64xf32>
    %cst_406 = arith.constant 1.000000e+00 : f32
    %715 = vector.broadcast %cst_406 : f32 to vector<1x64xf32>
    %716 = arith.addf %715, %714 : vector<1x64xf32>
    %717 = arith.divf %715, %716 : vector<1x64xf32>
    %718 = vector.extract_strided_slice %717 {offsets = [0, 0], sizes = [1, 32], strides = [1, 1]} : vector<1x64xf32> to vector<1x32xf32>
    %719 = vector.extract_strided_slice %717 {offsets = [0, 32], sizes = [1, 32], strides = [1, 1]} : vector<1x64xf32> to vector<1x32xf32>
    %720 = vector.extract_strided_slice %708 {offsets = [0, 64], sizes = [1, 32], strides = [1, 1]} : vector<1x96xf32> to vector<1x32xf32>
    %721 = vector.extract_strided_slice %709 {offsets = [0, 64], sizes = [1, 32], strides = [1, 1]} : vector<1x96xf32> to vector<1x32xf32>
    %722 = arith.addf %721, %383 : vector<1x32xf32>
    %723 = arith.mulf %718, %722 : vector<1x32xf32>
    %724 = arith.addf %720, %723 : vector<1x32xf32>
    %725 = math.tanh %724 : vector<1x32xf32>
    %726 = arith.subf %683, %725 : vector<1x32xf32>
    %727 = arith.mulf %719, %726 : vector<1x32xf32>
    %728 = arith.addf %725, %727 : vector<1x32xf32>
    %729 = vector.extract_strided_slice %381 {offsets = [0, 0], sizes = [1, 96], strides = [1, 1]} : vector<8x96xf32> to vector<1x96xf32>
    %730 = vector.extract_strided_slice %707 {offsets = [0, 96], sizes = [1, 96], strides = [1, 1]} : vector<1x192xf32> to vector<1x96xf32>
    %731 = vector.extract_strided_slice %729 {offsets = [0, 0], sizes = [1, 64], strides = [1, 1]} : vector<1x96xf32> to vector<1x64xf32>
    %732 = vector.extract_strided_slice %730 {offsets = [0, 0], sizes = [1, 64], strides = [1, 1]} : vector<1x96xf32> to vector<1x64xf32>
    %733 = arith.addf %731, %732 : vector<1x64xf32>
    %734 = arith.negf %733 : vector<1x64xf32>
    %735 = math.exp %734 : vector<1x64xf32>
    %cst_407 = arith.constant 1.000000e+00 : f32
    %736 = vector.broadcast %cst_407 : f32 to vector<1x64xf32>
    %737 = arith.addf %736, %735 : vector<1x64xf32>
    %738 = arith.divf %736, %737 : vector<1x64xf32>
    %739 = vector.extract_strided_slice %738 {offsets = [0, 0], sizes = [1, 32], strides = [1, 1]} : vector<1x64xf32> to vector<1x32xf32>
    %740 = vector.extract_strided_slice %738 {offsets = [0, 32], sizes = [1, 32], strides = [1, 1]} : vector<1x64xf32> to vector<1x32xf32>
    %741 = vector.extract_strided_slice %729 {offsets = [0, 64], sizes = [1, 32], strides = [1, 1]} : vector<1x96xf32> to vector<1x32xf32>
    %742 = vector.extract_strided_slice %730 {offsets = [0, 64], sizes = [1, 32], strides = [1, 1]} : vector<1x96xf32> to vector<1x32xf32>
    %743 = arith.addf %742, %385 : vector<1x32xf32>
    %744 = arith.mulf %739, %743 : vector<1x32xf32>
    %745 = arith.addf %741, %744 : vector<1x32xf32>
    %746 = math.tanh %745 : vector<1x32xf32>
    %747 = arith.subf %704, %746 : vector<1x32xf32>
    %748 = arith.mulf %740, %747 : vector<1x32xf32>
    %749 = arith.addf %746, %748 : vector<1x32xf32>
    %750 = tpu.concatenate %413, %749 in 1 : vector<1x32xf32>, vector<1x32xf32> -> vector<1x64xf32>
    %751 = tpu.concatenate %458, %704 in 1 : vector<1x32xf32>, vector<1x32xf32> -> vector<1x64xf32>
    %752 = tpu.concatenate %503, %659 in 1 : vector<1x32xf32>, vector<1x32xf32> -> vector<1x64xf32>
    %753 = tpu.concatenate %548, %614 in 1 : vector<1x32xf32>, vector<1x32xf32> -> vector<1x64xf32>
    %754 = tpu.concatenate %593, %569 in 1 : vector<1x32xf32>, vector<1x32xf32> -> vector<1x64xf32>
    %755 = tpu.concatenate %638, %524 in 1 : vector<1x32xf32>, vector<1x32xf32> -> vector<1x64xf32>
    %756 = tpu.concatenate %683, %479 in 1 : vector<1x32xf32>, vector<1x32xf32> -> vector<1x64xf32>
    %757 = tpu.concatenate %728, %434 in 1 : vector<1x32xf32>, vector<1x32xf32> -> vector<1x64xf32>
    %758 = tpu.concatenate %750, %751, %752, %753, %754, %755, %756, %757 in 0 : vector<1x64xf32>, vector<1x64xf32>, vector<1x64xf32>, vector<1x64xf32>, vector<1x64xf32>, vector<1x64xf32>, vector<1x64xf32>, vector<1x64xf32> -> vector<8x64xf32>
    %759 = arith.truncf %758 : vector<8x64xf32> to vector<8x64xbf16>
    %c2_408 = arith.constant 2 : index
    %c0_409 = arith.constant 0 : index
    %c0_410 = arith.constant 0 : index
    %760 = vector.load %arg8[%c2_408, %c0_409, %c0_410] : memref<4x64x96xbf16, #tpu.memory_space<vmem>>, vector<1x64x96xbf16>
    %761 = vector.shape_cast %760 : vector<1x64x96xbf16> to vector<64x96xbf16>
    %cst_411 = arith.constant dense<0.000000e+00> : vector<8x96xf32>
    %762 = tpu.matmul %759, %761, %cst_411 {dimension_numbers = #tpu.dot_dimension_numbers<[1], [0], [0], [1], [0, 0, 1, 1], [], []>} : vector<8x64xbf16>, vector<64x96xbf16>, vector<8x96xf32> -> vector<8x96xf32>
    %c2_412 = arith.constant 2 : index
    %c0_413 = arith.constant 0 : index
    %c0_414 = arith.constant 0 : index
    %763 = vector.load %arg10[%c2_412, %c0_413, %c0_414] : memref<4x1x96xf32, #tpu.memory_space<vmem>>, vector<1x1x96xf32>
    %764 = vector.shape_cast %763 : vector<1x1x96xf32> to vector<1x96xf32>
    %765 = vector.broadcast %764 : vector<1x96xf32> to vector<8x96xf32>
    %766 = arith.addf %762, %765 : vector<8x96xf32>
    %c3_415 = arith.constant 3 : index
    %c0_416 = arith.constant 0 : index
    %c0_417 = arith.constant 0 : index
    %767 = vector.load %arg8[%c3_415, %c0_416, %c0_417] : memref<4x64x96xbf16, #tpu.memory_space<vmem>>, vector<1x64x96xbf16>
    %768 = vector.shape_cast %767 : vector<1x64x96xbf16> to vector<64x96xbf16>
    %cst_418 = arith.constant dense<0.000000e+00> : vector<8x96xf32>
    %769 = tpu.matmul %759, %768, %cst_418 {dimension_numbers = #tpu.dot_dimension_numbers<[1], [0], [0], [1], [0, 0, 1, 1], [], []>} : vector<8x64xbf16>, vector<64x96xbf16>, vector<8x96xf32> -> vector<8x96xf32>
    %c3_419 = arith.constant 3 : index
    %c0_420 = arith.constant 0 : index
    %c0_421 = arith.constant 0 : index
    %770 = vector.load %arg10[%c3_419, %c0_420, %c0_421] : memref<4x1x96xf32, #tpu.memory_space<vmem>>, vector<1x1x96xf32>
    %771 = vector.shape_cast %770 : vector<1x1x96xf32> to vector<1x96xf32>
    %772 = vector.broadcast %771 : vector<1x96xf32> to vector<8x96xf32>
    %773 = arith.addf %769, %772 : vector<8x96xf32>
    %c2_422 = arith.constant 2 : index
    %c0_423 = arith.constant 0 : index
    %c0_424 = arith.constant 0 : index
    %774 = vector.load %arg11[%c2_422, %c0_423, %c0_424] : memref<4x1x32xf32, #tpu.memory_space<vmem>>, vector<1x1x32xf32>
    %775 = vector.shape_cast %774 : vector<1x1x32xf32> to vector<1x32xf32>
    %c3_425 = arith.constant 3 : index
    %c0_426 = arith.constant 0 : index
    %c0_427 = arith.constant 0 : index
    %776 = vector.load %arg11[%c3_425, %c0_426, %c0_427] : memref<4x1x32xf32, #tpu.memory_space<vmem>>, vector<1x1x32xf32>
    %777 = vector.shape_cast %776 : vector<1x1x32xf32> to vector<1x32xf32>
    %c1_428 = arith.constant 1 : index
    %c0_429 = arith.constant 0 : index
    %c0_430 = arith.constant 0 : index
    %778 = vector.load %arg9[%c1_428, %c0_429, %c0_430] : memref<2x64x192xbf16, #tpu.memory_space<vmem>>, vector<1x64x192xbf16>
    %779 = vector.shape_cast %778 : vector<1x64x192xbf16> to vector<64x192xbf16>
    %cst_431 = arith.constant 0.000000e+00 : f32
    %780 = vector.broadcast %cst_431 : f32 to vector<1x32xf32>
    %cst_432 = arith.constant 0.000000e+00 : f32
    %781 = vector.broadcast %cst_432 : f32 to vector<1x32xf32>
    %782 = tpu.concatenate %780, %781 in 1 : vector<1x32xf32>, vector<1x32xf32> -> vector<1x64xf32>
    %783 = arith.truncf %782 : vector<1x64xf32> to vector<1x64xbf16>
    %cst_433 = arith.constant dense<0.000000e+00> : vector<1x192xf32>
    %784 = tpu.matmul %783, %779, %cst_433 {dimension_numbers = #tpu.dot_dimension_numbers<[1], [0], [0], [1], [0, 0, 1, 1], [], []>} : vector<1x64xbf16>, vector<64x192xbf16>, vector<1x192xf32> -> vector<1x192xf32>
    %785 = vector.extract_strided_slice %766 {offsets = [0, 0], sizes = [1, 96], strides = [1, 1]} : vector<8x96xf32> to vector<1x96xf32>
    %786 = vector.extract_strided_slice %784 {offsets = [0, 0], sizes = [1, 96], strides = [1, 1]} : vector<1x192xf32> to vector<1x96xf32>
    %787 = vector.extract_strided_slice %785 {offsets = [0, 0], sizes = [1, 64], strides = [1, 1]} : vector<1x96xf32> to vector<1x64xf32>
    %788 = vector.extract_strided_slice %786 {offsets = [0, 0], sizes = [1, 64], strides = [1, 1]} : vector<1x96xf32> to vector<1x64xf32>
    %789 = arith.addf %787, %788 : vector<1x64xf32>
    %790 = arith.negf %789 : vector<1x64xf32>
    %791 = math.exp %790 : vector<1x64xf32>
    %cst_434 = arith.constant 1.000000e+00 : f32
    %792 = vector.broadcast %cst_434 : f32 to vector<1x64xf32>
    %793 = arith.addf %792, %791 : vector<1x64xf32>
    %794 = arith.divf %792, %793 : vector<1x64xf32>
    %795 = vector.extract_strided_slice %794 {offsets = [0, 0], sizes = [1, 32], strides = [1, 1]} : vector<1x64xf32> to vector<1x32xf32>
    %796 = vector.extract_strided_slice %794 {offsets = [0, 32], sizes = [1, 32], strides = [1, 1]} : vector<1x64xf32> to vector<1x32xf32>
    %797 = vector.extract_strided_slice %785 {offsets = [0, 64], sizes = [1, 32], strides = [1, 1]} : vector<1x96xf32> to vector<1x32xf32>
    %798 = vector.extract_strided_slice %786 {offsets = [0, 64], sizes = [1, 32], strides = [1, 1]} : vector<1x96xf32> to vector<1x32xf32>
    %799 = arith.addf %798, %775 : vector<1x32xf32>
    %800 = arith.mulf %795, %799 : vector<1x32xf32>
    %801 = arith.addf %797, %800 : vector<1x32xf32>
    %802 = math.tanh %801 : vector<1x32xf32>
    %803 = arith.subf %780, %802 : vector<1x32xf32>
    %804 = arith.mulf %796, %803 : vector<1x32xf32>
    %805 = arith.addf %802, %804 : vector<1x32xf32>
    %806 = vector.extract_strided_slice %773 {offsets = [7, 0], sizes = [1, 96], strides = [1, 1]} : vector<8x96xf32> to vector<1x96xf32>
    %807 = vector.extract_strided_slice %784 {offsets = [0, 96], sizes = [1, 96], strides = [1, 1]} : vector<1x192xf32> to vector<1x96xf32>
    %808 = vector.extract_strided_slice %806 {offsets = [0, 0], sizes = [1, 64], strides = [1, 1]} : vector<1x96xf32> to vector<1x64xf32>
    %809 = vector.extract_strided_slice %807 {offsets = [0, 0], sizes = [1, 64], strides = [1, 1]} : vector<1x96xf32> to vector<1x64xf32>
    %810 = arith.addf %808, %809 : vector<1x64xf32>
    %811 = arith.negf %810 : vector<1x64xf32>
    %812 = math.exp %811 : vector<1x64xf32>
    %cst_435 = arith.constant 1.000000e+00 : f32
    %813 = vector.broadcast %cst_435 : f32 to vector<1x64xf32>
    %814 = arith.addf %813, %812 : vector<1x64xf32>
    %815 = arith.divf %813, %814 : vector<1x64xf32>
    %816 = vector.extract_strided_slice %815 {offsets = [0, 0], sizes = [1, 32], strides = [1, 1]} : vector<1x64xf32> to vector<1x32xf32>
    %817 = vector.extract_strided_slice %815 {offsets = [0, 32], sizes = [1, 32], strides = [1, 1]} : vector<1x64xf32> to vector<1x32xf32>
    %818 = vector.extract_strided_slice %806 {offsets = [0, 64], sizes = [1, 32], strides = [1, 1]} : vector<1x96xf32> to vector<1x32xf32>
    %819 = vector.extract_strided_slice %807 {offsets = [0, 64], sizes = [1, 32], strides = [1, 1]} : vector<1x96xf32> to vector<1x32xf32>
    %820 = arith.addf %819, %777 : vector<1x32xf32>
    %821 = arith.mulf %816, %820 : vector<1x32xf32>
    %822 = arith.addf %818, %821 : vector<1x32xf32>
    %823 = math.tanh %822 : vector<1x32xf32>
    %824 = arith.subf %781, %823 : vector<1x32xf32>
    %825 = arith.mulf %817, %824 : vector<1x32xf32>
    %826 = arith.addf %823, %825 : vector<1x32xf32>
    %827 = tpu.concatenate %805, %826 in 1 : vector<1x32xf32>, vector<1x32xf32> -> vector<1x64xf32>
    %828 = arith.truncf %827 : vector<1x64xf32> to vector<1x64xbf16>
    %cst_436 = arith.constant dense<0.000000e+00> : vector<1x192xf32>
    %829 = tpu.matmul %828, %779, %cst_436 {dimension_numbers = #tpu.dot_dimension_numbers<[1], [0], [0], [1], [0, 0, 1, 1], [], []>} : vector<1x64xbf16>, vector<64x192xbf16>, vector<1x192xf32> -> vector<1x192xf32>
    %830 = vector.extract_strided_slice %766 {offsets = [1, 0], sizes = [1, 96], strides = [1, 1]} : vector<8x96xf32> to vector<1x96xf32>
    %831 = vector.extract_strided_slice %829 {offsets = [0, 0], sizes = [1, 96], strides = [1, 1]} : vector<1x192xf32> to vector<1x96xf32>
    %832 = vector.extract_strided_slice %830 {offsets = [0, 0], sizes = [1, 64], strides = [1, 1]} : vector<1x96xf32> to vector<1x64xf32>
    %833 = vector.extract_strided_slice %831 {offsets = [0, 0], sizes = [1, 64], strides = [1, 1]} : vector<1x96xf32> to vector<1x64xf32>
    %834 = arith.addf %832, %833 : vector<1x64xf32>
    %835 = arith.negf %834 : vector<1x64xf32>
    %836 = math.exp %835 : vector<1x64xf32>
    %cst_437 = arith.constant 1.000000e+00 : f32
    %837 = vector.broadcast %cst_437 : f32 to vector<1x64xf32>
    %838 = arith.addf %837, %836 : vector<1x64xf32>
    %839 = arith.divf %837, %838 : vector<1x64xf32>
    %840 = vector.extract_strided_slice %839 {offsets = [0, 0], sizes = [1, 32], strides = [1, 1]} : vector<1x64xf32> to vector<1x32xf32>
    %841 = vector.extract_strided_slice %839 {offsets = [0, 32], sizes = [1, 32], strides = [1, 1]} : vector<1x64xf32> to vector<1x32xf32>
    %842 = vector.extract_strided_slice %830 {offsets = [0, 64], sizes = [1, 32], strides = [1, 1]} : vector<1x96xf32> to vector<1x32xf32>
    %843 = vector.extract_strided_slice %831 {offsets = [0, 64], sizes = [1, 32], strides = [1, 1]} : vector<1x96xf32> to vector<1x32xf32>
    %844 = arith.addf %843, %775 : vector<1x32xf32>
    %845 = arith.mulf %840, %844 : vector<1x32xf32>
    %846 = arith.addf %842, %845 : vector<1x32xf32>
    %847 = math.tanh %846 : vector<1x32xf32>
    %848 = arith.subf %805, %847 : vector<1x32xf32>
    %849 = arith.mulf %841, %848 : vector<1x32xf32>
    %850 = arith.addf %847, %849 : vector<1x32xf32>
    %851 = vector.extract_strided_slice %773 {offsets = [6, 0], sizes = [1, 96], strides = [1, 1]} : vector<8x96xf32> to vector<1x96xf32>
    %852 = vector.extract_strided_slice %829 {offsets = [0, 96], sizes = [1, 96], strides = [1, 1]} : vector<1x192xf32> to vector<1x96xf32>
    %853 = vector.extract_strided_slice %851 {offsets = [0, 0], sizes = [1, 64], strides = [1, 1]} : vector<1x96xf32> to vector<1x64xf32>
    %854 = vector.extract_strided_slice %852 {offsets = [0, 0], sizes = [1, 64], strides = [1, 1]} : vector<1x96xf32> to vector<1x64xf32>
    %855 = arith.addf %853, %854 : vector<1x64xf32>
    %856 = arith.negf %855 : vector<1x64xf32>
    %857 = math.exp %856 : vector<1x64xf32>
    %cst_438 = arith.constant 1.000000e+00 : f32
    %858 = vector.broadcast %cst_438 : f32 to vector<1x64xf32>
    %859 = arith.addf %858, %857 : vector<1x64xf32>
    %860 = arith.divf %858, %859 : vector<1x64xf32>
    %861 = vector.extract_strided_slice %860 {offsets = [0, 0], sizes = [1, 32], strides = [1, 1]} : vector<1x64xf32> to vector<1x32xf32>
    %862 = vector.extract_strided_slice %860 {offsets = [0, 32], sizes = [1, 32], strides = [1, 1]} : vector<1x64xf32> to vector<1x32xf32>
    %863 = vector.extract_strided_slice %851 {offsets = [0, 64], sizes = [1, 32], strides = [1, 1]} : vector<1x96xf32> to vector<1x32xf32>
    %864 = vector.extract_strided_slice %852 {offsets = [0, 64], sizes = [1, 32], strides = [1, 1]} : vector<1x96xf32> to vector<1x32xf32>
    %865 = arith.addf %864, %777 : vector<1x32xf32>
    %866 = arith.mulf %861, %865 : vector<1x32xf32>
    %867 = arith.addf %863, %866 : vector<1x32xf32>
    %868 = math.tanh %867 : vector<1x32xf32>
    %869 = arith.subf %826, %868 : vector<1x32xf32>
    %870 = arith.mulf %862, %869 : vector<1x32xf32>
    %871 = arith.addf %868, %870 : vector<1x32xf32>
    %872 = tpu.concatenate %850, %871 in 1 : vector<1x32xf32>, vector<1x32xf32> -> vector<1x64xf32>
    %873 = arith.truncf %872 : vector<1x64xf32> to vector<1x64xbf16>
    %cst_439 = arith.constant dense<0.000000e+00> : vector<1x192xf32>
    %874 = tpu.matmul %873, %779, %cst_439 {dimension_numbers = #tpu.dot_dimension_numbers<[1], [0], [0], [1], [0, 0, 1, 1], [], []>} : vector<1x64xbf16>, vector<64x192xbf16>, vector<1x192xf32> -> vector<1x192xf32>
    %875 = vector.extract_strided_slice %766 {offsets = [2, 0], sizes = [1, 96], strides = [1, 1]} : vector<8x96xf32> to vector<1x96xf32>
    %876 = vector.extract_strided_slice %874 {offsets = [0, 0], sizes = [1, 96], strides = [1, 1]} : vector<1x192xf32> to vector<1x96xf32>
    %877 = vector.extract_strided_slice %875 {offsets = [0, 0], sizes = [1, 64], strides = [1, 1]} : vector<1x96xf32> to vector<1x64xf32>
    %878 = vector.extract_strided_slice %876 {offsets = [0, 0], sizes = [1, 64], strides = [1, 1]} : vector<1x96xf32> to vector<1x64xf32>
    %879 = arith.addf %877, %878 : vector<1x64xf32>
    %880 = arith.negf %879 : vector<1x64xf32>
    %881 = math.exp %880 : vector<1x64xf32>
    %cst_440 = arith.constant 1.000000e+00 : f32
    %882 = vector.broadcast %cst_440 : f32 to vector<1x64xf32>
    %883 = arith.addf %882, %881 : vector<1x64xf32>
    %884 = arith.divf %882, %883 : vector<1x64xf32>
    %885 = vector.extract_strided_slice %884 {offsets = [0, 0], sizes = [1, 32], strides = [1, 1]} : vector<1x64xf32> to vector<1x32xf32>
    %886 = vector.extract_strided_slice %884 {offsets = [0, 32], sizes = [1, 32], strides = [1, 1]} : vector<1x64xf32> to vector<1x32xf32>
    %887 = vector.extract_strided_slice %875 {offsets = [0, 64], sizes = [1, 32], strides = [1, 1]} : vector<1x96xf32> to vector<1x32xf32>
    %888 = vector.extract_strided_slice %876 {offsets = [0, 64], sizes = [1, 32], strides = [1, 1]} : vector<1x96xf32> to vector<1x32xf32>
    %889 = arith.addf %888, %775 : vector<1x32xf32>
    %890 = arith.mulf %885, %889 : vector<1x32xf32>
    %891 = arith.addf %887, %890 : vector<1x32xf32>
    %892 = math.tanh %891 : vector<1x32xf32>
    %893 = arith.subf %850, %892 : vector<1x32xf32>
    %894 = arith.mulf %886, %893 : vector<1x32xf32>
    %895 = arith.addf %892, %894 : vector<1x32xf32>
    %896 = vector.extract_strided_slice %773 {offsets = [5, 0], sizes = [1, 96], strides = [1, 1]} : vector<8x96xf32> to vector<1x96xf32>
    %897 = vector.extract_strided_slice %874 {offsets = [0, 96], sizes = [1, 96], strides = [1, 1]} : vector<1x192xf32> to vector<1x96xf32>
    %898 = vector.extract_strided_slice %896 {offsets = [0, 0], sizes = [1, 64], strides = [1, 1]} : vector<1x96xf32> to vector<1x64xf32>
    %899 = vector.extract_strided_slice %897 {offsets = [0, 0], sizes = [1, 64], strides = [1, 1]} : vector<1x96xf32> to vector<1x64xf32>
    %900 = arith.addf %898, %899 : vector<1x64xf32>
    %901 = arith.negf %900 : vector<1x64xf32>
    %902 = math.exp %901 : vector<1x64xf32>
    %cst_441 = arith.constant 1.000000e+00 : f32
    %903 = vector.broadcast %cst_441 : f32 to vector<1x64xf32>
    %904 = arith.addf %903, %902 : vector<1x64xf32>
    %905 = arith.divf %903, %904 : vector<1x64xf32>
    %906 = vector.extract_strided_slice %905 {offsets = [0, 0], sizes = [1, 32], strides = [1, 1]} : vector<1x64xf32> to vector<1x32xf32>
    %907 = vector.extract_strided_slice %905 {offsets = [0, 32], sizes = [1, 32], strides = [1, 1]} : vector<1x64xf32> to vector<1x32xf32>
    %908 = vector.extract_strided_slice %896 {offsets = [0, 64], sizes = [1, 32], strides = [1, 1]} : vector<1x96xf32> to vector<1x32xf32>
    %909 = vector.extract_strided_slice %897 {offsets = [0, 64], sizes = [1, 32], strides = [1, 1]} : vector<1x96xf32> to vector<1x32xf32>
    %910 = arith.addf %909, %777 : vector<1x32xf32>
    %911 = arith.mulf %906, %910 : vector<1x32xf32>
    %912 = arith.addf %908, %911 : vector<1x32xf32>
    %913 = math.tanh %912 : vector<1x32xf32>
    %914 = arith.subf %871, %913 : vector<1x32xf32>
    %915 = arith.mulf %907, %914 : vector<1x32xf32>
    %916 = arith.addf %913, %915 : vector<1x32xf32>
    %917 = tpu.concatenate %895, %916 in 1 : vector<1x32xf32>, vector<1x32xf32> -> vector<1x64xf32>
    %918 = arith.truncf %917 : vector<1x64xf32> to vector<1x64xbf16>
    %cst_442 = arith.constant dense<0.000000e+00> : vector<1x192xf32>
    %919 = tpu.matmul %918, %779, %cst_442 {dimension_numbers = #tpu.dot_dimension_numbers<[1], [0], [0], [1], [0, 0, 1, 1], [], []>} : vector<1x64xbf16>, vector<64x192xbf16>, vector<1x192xf32> -> vector<1x192xf32>
    %920 = vector.extract_strided_slice %766 {offsets = [3, 0], sizes = [1, 96], strides = [1, 1]} : vector<8x96xf32> to vector<1x96xf32>
    %921 = vector.extract_strided_slice %919 {offsets = [0, 0], sizes = [1, 96], strides = [1, 1]} : vector<1x192xf32> to vector<1x96xf32>
    %922 = vector.extract_strided_slice %920 {offsets = [0, 0], sizes = [1, 64], strides = [1, 1]} : vector<1x96xf32> to vector<1x64xf32>
    %923 = vector.extract_strided_slice %921 {offsets = [0, 0], sizes = [1, 64], strides = [1, 1]} : vector<1x96xf32> to vector<1x64xf32>
    %924 = arith.addf %922, %923 : vector<1x64xf32>
    %925 = arith.negf %924 : vector<1x64xf32>
    %926 = math.exp %925 : vector<1x64xf32>
    %cst_443 = arith.constant 1.000000e+00 : f32
    %927 = vector.broadcast %cst_443 : f32 to vector<1x64xf32>
    %928 = arith.addf %927, %926 : vector<1x64xf32>
    %929 = arith.divf %927, %928 : vector<1x64xf32>
    %930 = vector.extract_strided_slice %929 {offsets = [0, 0], sizes = [1, 32], strides = [1, 1]} : vector<1x64xf32> to vector<1x32xf32>
    %931 = vector.extract_strided_slice %929 {offsets = [0, 32], sizes = [1, 32], strides = [1, 1]} : vector<1x64xf32> to vector<1x32xf32>
    %932 = vector.extract_strided_slice %920 {offsets = [0, 64], sizes = [1, 32], strides = [1, 1]} : vector<1x96xf32> to vector<1x32xf32>
    %933 = vector.extract_strided_slice %921 {offsets = [0, 64], sizes = [1, 32], strides = [1, 1]} : vector<1x96xf32> to vector<1x32xf32>
    %934 = arith.addf %933, %775 : vector<1x32xf32>
    %935 = arith.mulf %930, %934 : vector<1x32xf32>
    %936 = arith.addf %932, %935 : vector<1x32xf32>
    %937 = math.tanh %936 : vector<1x32xf32>
    %938 = arith.subf %895, %937 : vector<1x32xf32>
    %939 = arith.mulf %931, %938 : vector<1x32xf32>
    %940 = arith.addf %937, %939 : vector<1x32xf32>
    %941 = vector.extract_strided_slice %773 {offsets = [4, 0], sizes = [1, 96], strides = [1, 1]} : vector<8x96xf32> to vector<1x96xf32>
    %942 = vector.extract_strided_slice %919 {offsets = [0, 96], sizes = [1, 96], strides = [1, 1]} : vector<1x192xf32> to vector<1x96xf32>
    %943 = vector.extract_strided_slice %941 {offsets = [0, 0], sizes = [1, 64], strides = [1, 1]} : vector<1x96xf32> to vector<1x64xf32>
    %944 = vector.extract_strided_slice %942 {offsets = [0, 0], sizes = [1, 64], strides = [1, 1]} : vector<1x96xf32> to vector<1x64xf32>
    %945 = arith.addf %943, %944 : vector<1x64xf32>
    %946 = arith.negf %945 : vector<1x64xf32>
    %947 = math.exp %946 : vector<1x64xf32>
    %cst_444 = arith.constant 1.000000e+00 : f32
    %948 = vector.broadcast %cst_444 : f32 to vector<1x64xf32>
    %949 = arith.addf %948, %947 : vector<1x64xf32>
    %950 = arith.divf %948, %949 : vector<1x64xf32>
    %951 = vector.extract_strided_slice %950 {offsets = [0, 0], sizes = [1, 32], strides = [1, 1]} : vector<1x64xf32> to vector<1x32xf32>
    %952 = vector.extract_strided_slice %950 {offsets = [0, 32], sizes = [1, 32], strides = [1, 1]} : vector<1x64xf32> to vector<1x32xf32>
    %953 = vector.extract_strided_slice %941 {offsets = [0, 64], sizes = [1, 32], strides = [1, 1]} : vector<1x96xf32> to vector<1x32xf32>
    %954 = vector.extract_strided_slice %942 {offsets = [0, 64], sizes = [1, 32], strides = [1, 1]} : vector<1x96xf32> to vector<1x32xf32>
    %955 = arith.addf %954, %777 : vector<1x32xf32>
    %956 = arith.mulf %951, %955 : vector<1x32xf32>
    %957 = arith.addf %953, %956 : vector<1x32xf32>
    %958 = math.tanh %957 : vector<1x32xf32>
    %959 = arith.subf %916, %958 : vector<1x32xf32>
    %960 = arith.mulf %952, %959 : vector<1x32xf32>
    %961 = arith.addf %958, %960 : vector<1x32xf32>
    %962 = tpu.concatenate %940, %961 in 1 : vector<1x32xf32>, vector<1x32xf32> -> vector<1x64xf32>
    %963 = arith.truncf %962 : vector<1x64xf32> to vector<1x64xbf16>
    %cst_445 = arith.constant dense<0.000000e+00> : vector<1x192xf32>
    %964 = tpu.matmul %963, %779, %cst_445 {dimension_numbers = #tpu.dot_dimension_numbers<[1], [0], [0], [1], [0, 0, 1, 1], [], []>} : vector<1x64xbf16>, vector<64x192xbf16>, vector<1x192xf32> -> vector<1x192xf32>
    %965 = vector.extract_strided_slice %766 {offsets = [4, 0], sizes = [1, 96], strides = [1, 1]} : vector<8x96xf32> to vector<1x96xf32>
    %966 = vector.extract_strided_slice %964 {offsets = [0, 0], sizes = [1, 96], strides = [1, 1]} : vector<1x192xf32> to vector<1x96xf32>
    %967 = vector.extract_strided_slice %965 {offsets = [0, 0], sizes = [1, 64], strides = [1, 1]} : vector<1x96xf32> to vector<1x64xf32>
    %968 = vector.extract_strided_slice %966 {offsets = [0, 0], sizes = [1, 64], strides = [1, 1]} : vector<1x96xf32> to vector<1x64xf32>
    %969 = arith.addf %967, %968 : vector<1x64xf32>
    %970 = arith.negf %969 : vector<1x64xf32>
    %971 = math.exp %970 : vector<1x64xf32>
    %cst_446 = arith.constant 1.000000e+00 : f32
    %972 = vector.broadcast %cst_446 : f32 to vector<1x64xf32>
    %973 = arith.addf %972, %971 : vector<1x64xf32>
    %974 = arith.divf %972, %973 : vector<1x64xf32>
    %975 = vector.extract_strided_slice %974 {offsets = [0, 0], sizes = [1, 32], strides = [1, 1]} : vector<1x64xf32> to vector<1x32xf32>
    %976 = vector.extract_strided_slice %974 {offsets = [0, 32], sizes = [1, 32], strides = [1, 1]} : vector<1x64xf32> to vector<1x32xf32>
    %977 = vector.extract_strided_slice %965 {offsets = [0, 64], sizes = [1, 32], strides = [1, 1]} : vector<1x96xf32> to vector<1x32xf32>
    %978 = vector.extract_strided_slice %966 {offsets = [0, 64], sizes = [1, 32], strides = [1, 1]} : vector<1x96xf32> to vector<1x32xf32>
    %979 = arith.addf %978, %775 : vector<1x32xf32>
    %980 = arith.mulf %975, %979 : vector<1x32xf32>
    %981 = arith.addf %977, %980 : vector<1x32xf32>
    %982 = math.tanh %981 : vector<1x32xf32>
    %983 = arith.subf %940, %982 : vector<1x32xf32>
    %984 = arith.mulf %976, %983 : vector<1x32xf32>
    %985 = arith.addf %982, %984 : vector<1x32xf32>
    %986 = vector.extract_strided_slice %773 {offsets = [3, 0], sizes = [1, 96], strides = [1, 1]} : vector<8x96xf32> to vector<1x96xf32>
    %987 = vector.extract_strided_slice %964 {offsets = [0, 96], sizes = [1, 96], strides = [1, 1]} : vector<1x192xf32> to vector<1x96xf32>
    %988 = vector.extract_strided_slice %986 {offsets = [0, 0], sizes = [1, 64], strides = [1, 1]} : vector<1x96xf32> to vector<1x64xf32>
    %989 = vector.extract_strided_slice %987 {offsets = [0, 0], sizes = [1, 64], strides = [1, 1]} : vector<1x96xf32> to vector<1x64xf32>
    %990 = arith.addf %988, %989 : vector<1x64xf32>
    %991 = arith.negf %990 : vector<1x64xf32>
    %992 = math.exp %991 : vector<1x64xf32>
    %cst_447 = arith.constant 1.000000e+00 : f32
    %993 = vector.broadcast %cst_447 : f32 to vector<1x64xf32>
    %994 = arith.addf %993, %992 : vector<1x64xf32>
    %995 = arith.divf %993, %994 : vector<1x64xf32>
    %996 = vector.extract_strided_slice %995 {offsets = [0, 0], sizes = [1, 32], strides = [1, 1]} : vector<1x64xf32> to vector<1x32xf32>
    %997 = vector.extract_strided_slice %995 {offsets = [0, 32], sizes = [1, 32], strides = [1, 1]} : vector<1x64xf32> to vector<1x32xf32>
    %998 = vector.extract_strided_slice %986 {offsets = [0, 64], sizes = [1, 32], strides = [1, 1]} : vector<1x96xf32> to vector<1x32xf32>
    %999 = vector.extract_strided_slice %987 {offsets = [0, 64], sizes = [1, 32], strides = [1, 1]} : vector<1x96xf32> to vector<1x32xf32>
    %1000 = arith.addf %999, %777 : vector<1x32xf32>
    %1001 = arith.mulf %996, %1000 : vector<1x32xf32>
    %1002 = arith.addf %998, %1001 : vector<1x32xf32>
    %1003 = math.tanh %1002 : vector<1x32xf32>
    %1004 = arith.subf %961, %1003 : vector<1x32xf32>
    %1005 = arith.mulf %997, %1004 : vector<1x32xf32>
    %1006 = arith.addf %1003, %1005 : vector<1x32xf32>
    %1007 = tpu.concatenate %985, %1006 in 1 : vector<1x32xf32>, vector<1x32xf32> -> vector<1x64xf32>
    %1008 = arith.truncf %1007 : vector<1x64xf32> to vector<1x64xbf16>
    %cst_448 = arith.constant dense<0.000000e+00> : vector<1x192xf32>
    %1009 = tpu.matmul %1008, %779, %cst_448 {dimension_numbers = #tpu.dot_dimension_numbers<[1], [0], [0], [1], [0, 0, 1, 1], [], []>} : vector<1x64xbf16>, vector<64x192xbf16>, vector<1x192xf32> -> vector<1x192xf32>
    %1010 = vector.extract_strided_slice %766 {offsets = [5, 0], sizes = [1, 96], strides = [1, 1]} : vector<8x96xf32> to vector<1x96xf32>
    %1011 = vector.extract_strided_slice %1009 {offsets = [0, 0], sizes = [1, 96], strides = [1, 1]} : vector<1x192xf32> to vector<1x96xf32>
    %1012 = vector.extract_strided_slice %1010 {offsets = [0, 0], sizes = [1, 64], strides = [1, 1]} : vector<1x96xf32> to vector<1x64xf32>
    %1013 = vector.extract_strided_slice %1011 {offsets = [0, 0], sizes = [1, 64], strides = [1, 1]} : vector<1x96xf32> to vector<1x64xf32>
    %1014 = arith.addf %1012, %1013 : vector<1x64xf32>
    %1015 = arith.negf %1014 : vector<1x64xf32>
    %1016 = math.exp %1015 : vector<1x64xf32>
    %cst_449 = arith.constant 1.000000e+00 : f32
    %1017 = vector.broadcast %cst_449 : f32 to vector<1x64xf32>
    %1018 = arith.addf %1017, %1016 : vector<1x64xf32>
    %1019 = arith.divf %1017, %1018 : vector<1x64xf32>
    %1020 = vector.extract_strided_slice %1019 {offsets = [0, 0], sizes = [1, 32], strides = [1, 1]} : vector<1x64xf32> to vector<1x32xf32>
    %1021 = vector.extract_strided_slice %1019 {offsets = [0, 32], sizes = [1, 32], strides = [1, 1]} : vector<1x64xf32> to vector<1x32xf32>
    %1022 = vector.extract_strided_slice %1010 {offsets = [0, 64], sizes = [1, 32], strides = [1, 1]} : vector<1x96xf32> to vector<1x32xf32>
    %1023 = vector.extract_strided_slice %1011 {offsets = [0, 64], sizes = [1, 32], strides = [1, 1]} : vector<1x96xf32> to vector<1x32xf32>
    %1024 = arith.addf %1023, %775 : vector<1x32xf32>
    %1025 = arith.mulf %1020, %1024 : vector<1x32xf32>
    %1026 = arith.addf %1022, %1025 : vector<1x32xf32>
    %1027 = math.tanh %1026 : vector<1x32xf32>
    %1028 = arith.subf %985, %1027 : vector<1x32xf32>
    %1029 = arith.mulf %1021, %1028 : vector<1x32xf32>
    %1030 = arith.addf %1027, %1029 : vector<1x32xf32>
    %1031 = vector.extract_strided_slice %773 {offsets = [2, 0], sizes = [1, 96], strides = [1, 1]} : vector<8x96xf32> to vector<1x96xf32>
    %1032 = vector.extract_strided_slice %1009 {offsets = [0, 96], sizes = [1, 96], strides = [1, 1]} : vector<1x192xf32> to vector<1x96xf32>
    %1033 = vector.extract_strided_slice %1031 {offsets = [0, 0], sizes = [1, 64], strides = [1, 1]} : vector<1x96xf32> to vector<1x64xf32>
    %1034 = vector.extract_strided_slice %1032 {offsets = [0, 0], sizes = [1, 64], strides = [1, 1]} : vector<1x96xf32> to vector<1x64xf32>
    %1035 = arith.addf %1033, %1034 : vector<1x64xf32>
    %1036 = arith.negf %1035 : vector<1x64xf32>
    %1037 = math.exp %1036 : vector<1x64xf32>
    %cst_450 = arith.constant 1.000000e+00 : f32
    %1038 = vector.broadcast %cst_450 : f32 to vector<1x64xf32>
    %1039 = arith.addf %1038, %1037 : vector<1x64xf32>
    %1040 = arith.divf %1038, %1039 : vector<1x64xf32>
    %1041 = vector.extract_strided_slice %1040 {offsets = [0, 0], sizes = [1, 32], strides = [1, 1]} : vector<1x64xf32> to vector<1x32xf32>
    %1042 = vector.extract_strided_slice %1040 {offsets = [0, 32], sizes = [1, 32], strides = [1, 1]} : vector<1x64xf32> to vector<1x32xf32>
    %1043 = vector.extract_strided_slice %1031 {offsets = [0, 64], sizes = [1, 32], strides = [1, 1]} : vector<1x96xf32> to vector<1x32xf32>
    %1044 = vector.extract_strided_slice %1032 {offsets = [0, 64], sizes = [1, 32], strides = [1, 1]} : vector<1x96xf32> to vector<1x32xf32>
    %1045 = arith.addf %1044, %777 : vector<1x32xf32>
    %1046 = arith.mulf %1041, %1045 : vector<1x32xf32>
    %1047 = arith.addf %1043, %1046 : vector<1x32xf32>
    %1048 = math.tanh %1047 : vector<1x32xf32>
    %1049 = arith.subf %1006, %1048 : vector<1x32xf32>
    %1050 = arith.mulf %1042, %1049 : vector<1x32xf32>
    %1051 = arith.addf %1048, %1050 : vector<1x32xf32>
    %1052 = tpu.concatenate %1030, %1051 in 1 : vector<1x32xf32>, vector<1x32xf32> -> vector<1x64xf32>
    %1053 = arith.truncf %1052 : vector<1x64xf32> to vector<1x64xbf16>
    %cst_451 = arith.constant dense<0.000000e+00> : vector<1x192xf32>
    %1054 = tpu.matmul %1053, %779, %cst_451 {dimension_numbers = #tpu.dot_dimension_numbers<[1], [0], [0], [1], [0, 0, 1, 1], [], []>} : vector<1x64xbf16>, vector<64x192xbf16>, vector<1x192xf32> -> vector<1x192xf32>
    %1055 = vector.extract_strided_slice %766 {offsets = [6, 0], sizes = [1, 96], strides = [1, 1]} : vector<8x96xf32> to vector<1x96xf32>
    %1056 = vector.extract_strided_slice %1054 {offsets = [0, 0], sizes = [1, 96], strides = [1, 1]} : vector<1x192xf32> to vector<1x96xf32>
    %1057 = vector.extract_strided_slice %1055 {offsets = [0, 0], sizes = [1, 64], strides = [1, 1]} : vector<1x96xf32> to vector<1x64xf32>
    %1058 = vector.extract_strided_slice %1056 {offsets = [0, 0], sizes = [1, 64], strides = [1, 1]} : vector<1x96xf32> to vector<1x64xf32>
    %1059 = arith.addf %1057, %1058 : vector<1x64xf32>
    %1060 = arith.negf %1059 : vector<1x64xf32>
    %1061 = math.exp %1060 : vector<1x64xf32>
    %cst_452 = arith.constant 1.000000e+00 : f32
    %1062 = vector.broadcast %cst_452 : f32 to vector<1x64xf32>
    %1063 = arith.addf %1062, %1061 : vector<1x64xf32>
    %1064 = arith.divf %1062, %1063 : vector<1x64xf32>
    %1065 = vector.extract_strided_slice %1064 {offsets = [0, 0], sizes = [1, 32], strides = [1, 1]} : vector<1x64xf32> to vector<1x32xf32>
    %1066 = vector.extract_strided_slice %1064 {offsets = [0, 32], sizes = [1, 32], strides = [1, 1]} : vector<1x64xf32> to vector<1x32xf32>
    %1067 = vector.extract_strided_slice %1055 {offsets = [0, 64], sizes = [1, 32], strides = [1, 1]} : vector<1x96xf32> to vector<1x32xf32>
    %1068 = vector.extract_strided_slice %1056 {offsets = [0, 64], sizes = [1, 32], strides = [1, 1]} : vector<1x96xf32> to vector<1x32xf32>
    %1069 = arith.addf %1068, %775 : vector<1x32xf32>
    %1070 = arith.mulf %1065, %1069 : vector<1x32xf32>
    %1071 = arith.addf %1067, %1070 : vector<1x32xf32>
    %1072 = math.tanh %1071 : vector<1x32xf32>
    %1073 = arith.subf %1030, %1072 : vector<1x32xf32>
    %1074 = arith.mulf %1066, %1073 : vector<1x32xf32>
    %1075 = arith.addf %1072, %1074 : vector<1x32xf32>
    %1076 = vector.extract_strided_slice %773 {offsets = [1, 0], sizes = [1, 96], strides = [1, 1]} : vector<8x96xf32> to vector<1x96xf32>
    %1077 = vector.extract_strided_slice %1054 {offsets = [0, 96], sizes = [1, 96], strides = [1, 1]} : vector<1x192xf32> to vector<1x96xf32>
    %1078 = vector.extract_strided_slice %1076 {offsets = [0, 0], sizes = [1, 64], strides = [1, 1]} : vector<1x96xf32> to vector<1x64xf32>
    %1079 = vector.extract_strided_slice %1077 {offsets = [0, 0], sizes = [1, 64], strides = [1, 1]} : vector<1x96xf32> to vector<1x64xf32>
    %1080 = arith.addf %1078, %1079 : vector<1x64xf32>
    %1081 = arith.negf %1080 : vector<1x64xf32>
    %1082 = math.exp %1081 : vector<1x64xf32>
    %cst_453 = arith.constant 1.000000e+00 : f32
    %1083 = vector.broadcast %cst_453 : f32 to vector<1x64xf32>
    %1084 = arith.addf %1083, %1082 : vector<1x64xf32>
    %1085 = arith.divf %1083, %1084 : vector<1x64xf32>
    %1086 = vector.extract_strided_slice %1085 {offsets = [0, 0], sizes = [1, 32], strides = [1, 1]} : vector<1x64xf32> to vector<1x32xf32>
    %1087 = vector.extract_strided_slice %1085 {offsets = [0, 32], sizes = [1, 32], strides = [1, 1]} : vector<1x64xf32> to vector<1x32xf32>
    %1088 = vector.extract_strided_slice %1076 {offsets = [0, 64], sizes = [1, 32], strides = [1, 1]} : vector<1x96xf32> to vector<1x32xf32>
    %1089 = vector.extract_strided_slice %1077 {offsets = [0, 64], sizes = [1, 32], strides = [1, 1]} : vector<1x96xf32> to vector<1x32xf32>
    %1090 = arith.addf %1089, %777 : vector<1x32xf32>
    %1091 = arith.mulf %1086, %1090 : vector<1x32xf32>
    %1092 = arith.addf %1088, %1091 : vector<1x32xf32>
    %1093 = math.tanh %1092 : vector<1x32xf32>
    %1094 = arith.subf %1051, %1093 : vector<1x32xf32>
    %1095 = arith.mulf %1087, %1094 : vector<1x32xf32>
    %1096 = arith.addf %1093, %1095 : vector<1x32xf32>
    %1097 = tpu.concatenate %1075, %1096 in 1 : vector<1x32xf32>, vector<1x32xf32> -> vector<1x64xf32>
    %1098 = arith.truncf %1097 : vector<1x64xf32> to vector<1x64xbf16>
    %cst_454 = arith.constant dense<0.000000e+00> : vector<1x192xf32>
    %1099 = tpu.matmul %1098, %779, %cst_454 {dimension_numbers = #tpu.dot_dimension_numbers<[1], [0], [0], [1], [0, 0, 1, 1], [], []>} : vector<1x64xbf16>, vector<64x192xbf16>, vector<1x192xf32> -> vector<1x192xf32>
    %1100 = vector.extract_strided_slice %766 {offsets = [7, 0], sizes = [1, 96], strides = [1, 1]} : vector<8x96xf32> to vector<1x96xf32>
    %1101 = vector.extract_strided_slice %1099 {offsets = [0, 0], sizes = [1, 96], strides = [1, 1]} : vector<1x192xf32> to vector<1x96xf32>
    %1102 = vector.extract_strided_slice %1100 {offsets = [0, 0], sizes = [1, 64], strides = [1, 1]} : vector<1x96xf32> to vector<1x64xf32>
    %1103 = vector.extract_strided_slice %1101 {offsets = [0, 0], sizes = [1, 64], strides = [1, 1]} : vector<1x96xf32> to vector<1x64xf32>
    %1104 = arith.addf %1102, %1103 : vector<1x64xf32>
    %1105 = arith.negf %1104 : vector<1x64xf32>
    %1106 = math.exp %1105 : vector<1x64xf32>
    %cst_455 = arith.constant 1.000000e+00 : f32
    %1107 = vector.broadcast %cst_455 : f32 to vector<1x64xf32>
    %1108 = arith.addf %1107, %1106 : vector<1x64xf32>
    %1109 = arith.divf %1107, %1108 : vector<1x64xf32>
    %1110 = vector.extract_strided_slice %1109 {offsets = [0, 0], sizes = [1, 32], strides = [1, 1]} : vector<1x64xf32> to vector<1x32xf32>
    %1111 = vector.extract_strided_slice %1109 {offsets = [0, 32], sizes = [1, 32], strides = [1, 1]} : vector<1x64xf32> to vector<1x32xf32>
    %1112 = vector.extract_strided_slice %1100 {offsets = [0, 64], sizes = [1, 32], strides = [1, 1]} : vector<1x96xf32> to vector<1x32xf32>
    %1113 = vector.extract_strided_slice %1101 {offsets = [0, 64], sizes = [1, 32], strides = [1, 1]} : vector<1x96xf32> to vector<1x32xf32>
    %1114 = arith.addf %1113, %775 : vector<1x32xf32>
    %1115 = arith.mulf %1110, %1114 : vector<1x32xf32>
    %1116 = arith.addf %1112, %1115 : vector<1x32xf32>
    %1117 = math.tanh %1116 : vector<1x32xf32>
    %1118 = arith.subf %1075, %1117 : vector<1x32xf32>
    %1119 = arith.mulf %1111, %1118 : vector<1x32xf32>
    %1120 = arith.addf %1117, %1119 : vector<1x32xf32>
    %1121 = vector.extract_strided_slice %773 {offsets = [0, 0], sizes = [1, 96], strides = [1, 1]} : vector<8x96xf32> to vector<1x96xf32>
    %1122 = vector.extract_strided_slice %1099 {offsets = [0, 96], sizes = [1, 96], strides = [1, 1]} : vector<1x192xf32> to vector<1x96xf32>
    %1123 = vector.extract_strided_slice %1121 {offsets = [0, 0], sizes = [1, 64], strides = [1, 1]} : vector<1x96xf32> to vector<1x64xf32>
    %1124 = vector.extract_strided_slice %1122 {offsets = [0, 0], sizes = [1, 64], strides = [1, 1]} : vector<1x96xf32> to vector<1x64xf32>
    %1125 = arith.addf %1123, %1124 : vector<1x64xf32>
    %1126 = arith.negf %1125 : vector<1x64xf32>
    %1127 = math.exp %1126 : vector<1x64xf32>
    %cst_456 = arith.constant 1.000000e+00 : f32
    %1128 = vector.broadcast %cst_456 : f32 to vector<1x64xf32>
    %1129 = arith.addf %1128, %1127 : vector<1x64xf32>
    %1130 = arith.divf %1128, %1129 : vector<1x64xf32>
    %1131 = vector.extract_strided_slice %1130 {offsets = [0, 0], sizes = [1, 32], strides = [1, 1]} : vector<1x64xf32> to vector<1x32xf32>
    %1132 = vector.extract_strided_slice %1130 {offsets = [0, 32], sizes = [1, 32], strides = [1, 1]} : vector<1x64xf32> to vector<1x32xf32>
    %1133 = vector.extract_strided_slice %1121 {offsets = [0, 64], sizes = [1, 32], strides = [1, 1]} : vector<1x96xf32> to vector<1x32xf32>
    %1134 = vector.extract_strided_slice %1122 {offsets = [0, 64], sizes = [1, 32], strides = [1, 1]} : vector<1x96xf32> to vector<1x32xf32>
    %1135 = arith.addf %1134, %777 : vector<1x32xf32>
    %1136 = arith.mulf %1131, %1135 : vector<1x32xf32>
    %1137 = arith.addf %1133, %1136 : vector<1x32xf32>
    %1138 = math.tanh %1137 : vector<1x32xf32>
    %1139 = arith.subf %1096, %1138 : vector<1x32xf32>
    %1140 = arith.mulf %1132, %1139 : vector<1x32xf32>
    %1141 = arith.addf %1138, %1140 : vector<1x32xf32>
    %1142 = tpu.concatenate %805, %1141 in 1 : vector<1x32xf32>, vector<1x32xf32> -> vector<1x64xf32>
    %1143 = tpu.concatenate %850, %1096 in 1 : vector<1x32xf32>, vector<1x32xf32> -> vector<1x64xf32>
    %1144 = tpu.concatenate %895, %1051 in 1 : vector<1x32xf32>, vector<1x32xf32> -> vector<1x64xf32>
    %1145 = tpu.concatenate %940, %1006 in 1 : vector<1x32xf32>, vector<1x32xf32> -> vector<1x64xf32>
    %1146 = tpu.concatenate %985, %961 in 1 : vector<1x32xf32>, vector<1x32xf32> -> vector<1x64xf32>
    %1147 = tpu.concatenate %1030, %916 in 1 : vector<1x32xf32>, vector<1x32xf32> -> vector<1x64xf32>
    %1148 = tpu.concatenate %1075, %871 in 1 : vector<1x32xf32>, vector<1x32xf32> -> vector<1x64xf32>
    %1149 = tpu.concatenate %1120, %826 in 1 : vector<1x32xf32>, vector<1x32xf32> -> vector<1x64xf32>
    %1150 = tpu.concatenate %1142, %1143, %1144, %1145, %1146, %1147, %1148, %1149 in 0 : vector<1x64xf32>, vector<1x64xf32>, vector<1x64xf32>, vector<1x64xf32>, vector<1x64xf32>, vector<1x64xf32>, vector<1x64xf32>, vector<1x64xf32> -> vector<8x64xf32>
    %1151 = arith.truncf %1150 : vector<8x64xf32> to vector<8x64xbf16>
    %c0_457 = arith.constant 0 : index
    %c0_458 = arith.constant 0 : index
    %1152 = vector.load %arg12[%c0_457, %c0_458] : memref<64x128xbf16, #tpu.memory_space<vmem>>, vector<64x128xbf16>
    %cst_459 = arith.constant dense<0.000000e+00> : vector<8x128xf32>
    %1153 = tpu.matmul %1151, %1152, %cst_459 {dimension_numbers = #tpu.dot_dimension_numbers<[1], [0], [0], [1], [0, 0, 1, 1], [], []>} : vector<8x64xbf16>, vector<64x128xbf16>, vector<8x128xf32> -> vector<8x128xf32>
    %c0_460 = arith.constant 0 : index
    %c0_461 = arith.constant 0 : index
    %1154 = vector.load %arg13[%c0_460, %c0_461] : memref<1x128xf32, #tpu.memory_space<vmem>>, vector<1x128xf32>
    %1155 = vector.broadcast %1154 : vector<1x128xf32> to vector<8x128xf32>
    %1156 = arith.addf %1153, %1155 : vector<8x128xf32>
    %c0_462 = arith.constant 0 : index
    %c0_463 = arith.constant 0 : index
    %c0_464 = arith.constant 0 : index
    %1157 = vector.load %arg14[%c0_462, %c0_463, %c0_464] : memref<1x8x128xf32, #tpu.memory_space<vmem>>, vector<1x8x128xf32>
    %1158 = vector.shape_cast %1157 : vector<1x8x128xf32> to vector<8x128xf32>
    %1159 = vector.shape_cast %1156 : vector<8x128xf32> to vector<1x8x128xf32>
    tpu.vector_store %arg14[%c0_462, %c0_463, %c0_464], %1159 {strides = array<i32>} : memref<1x8x128xf32, #tpu.memory_space<vmem>>, vector<1x8x128xf32>,
    return
  }
  func.func @transform_0(%arg0: i32) -> (i32, i32, i32) {
    %c0_i32 = arith.constant 0 : i32
    %c0_i32_0 = arith.constant 0 : i32
    %c0_i32_1 = arith.constant 0 : i32
    return %arg0, %c0_i32, %c0_i32_0 : i32, i32, i32
  }
  func.func @transform_1(%arg0: i32) -> (i32, i32) {
    %c0_i32 = arith.constant 0 : i32
    %c0_i32_0 = arith.constant 0 : i32
    %c0_i32_1 = arith.constant 0 : i32
    return %c0_i32, %c0_i32_0 : i32, i32
  }
  func.func @transform_2(%arg0: i32) -> (i32, i32) {
    %c0_i32 = arith.constant 0 : i32
    %c0_i32_0 = arith.constant 0 : i32
    %c0_i32_1 = arith.constant 0 : i32
    return %c0_i32, %c0_i32_0 : i32, i32
  }
  func.func @transform_3(%arg0: i32) -> (i32, i32, i32) {
    %c0_i32 = arith.constant 0 : i32
    %c0_i32_0 = arith.constant 0 : i32
    %c0_i32_1 = arith.constant 0 : i32
    %c0_i32_2 = arith.constant 0 : i32
    return %c0_i32, %c0_i32_0, %c0_i32_1 : i32, i32, i32
  }
  func.func @transform_4(%arg0: i32) -> (i32, i32) {
    %c0_i32 = arith.constant 0 : i32
    %c0_i32_0 = arith.constant 0 : i32
    %c0_i32_1 = arith.constant 0 : i32
    return %c0_i32, %c0_i32_0 : i32, i32
  }
  func.func @transform_5(%arg0: i32) -> (i32, i32, i32) {
    %c0_i32 = arith.constant 0 : i32
    %c0_i32_0 = arith.constant 0 : i32
    %c0_i32_1 = arith.constant 0 : i32
    %c0_i32_2 = arith.constant 0 : i32
    return %c0_i32, %c0_i32_0, %c0_i32_1 : i32, i32, i32
  }
  func.func @transform_6(%arg0: i32) -> (i32, i32) {
    %c0_i32 = arith.constant 0 : i32
    %c0_i32_0 = arith.constant 0 : i32
    %c0_i32_1 = arith.constant 0 : i32
    return %c0_i32, %c0_i32_0 : i32, i32
  }
  func.func @transform_7(%arg0: i32) -> (i32, i32, i32) {
    %c0_i32 = arith.constant 0 : i32
    %c0_i32_0 = arith.constant 0 : i32
    %c0_i32_1 = arith.constant 0 : i32
    %c0_i32_2 = arith.constant 0 : i32
    return %c0_i32, %c0_i32_0, %c0_i32_1 : i32, i32, i32
  }
  func.func @transform_8(%arg0: i32) -> (i32, i32, i32) {
    %c0_i32 = arith.constant 0 : i32
    %c0_i32_0 = arith.constant 0 : i32
    %c0_i32_1 = arith.constant 0 : i32
    %c0_i32_2 = arith.constant 0 : i32
    return %c0_i32, %c0_i32_0, %c0_i32_1 : i32, i32, i32
  }
  func.func @transform_9(%arg0: i32) -> (i32, i32, i32) {
    %c0_i32 = arith.constant 0 : i32
    %c0_i32_0 = arith.constant 0 : i32
    %c0_i32_1 = arith.constant 0 : i32
    %c0_i32_2 = arith.constant 0 : i32
    return %c0_i32, %c0_i32_0, %c0_i32_1 : i32, i32, i32
  }
  func.func @transform_10(%arg0: i32) -> (i32, i32, i32) {
    %c0_i32 = arith.constant 0 : i32
    %c0_i32_0 = arith.constant 0 : i32
    %c0_i32_1 = arith.constant 0 : i32
    %c0_i32_2 = arith.constant 0 : i32
    return %c0_i32, %c0_i32_0, %c0_i32_1 : i32, i32, i32
  }
  func.func @transform_11(%arg0: i32) -> (i32, i32) {
    %c0_i32 = arith.constant 0 : i32
    %c0_i32_0 = arith.constant 0 : i32
    %c0_i32_1 = arith.constant 0 : i32
    return %c0_i32, %c0_i32_0 : i32, i32
  }
  func.func @transform_12(%arg0: i32) -> (i32, i32) {
    %c0_i32 = arith.constant 0 : i32
    %c0_i32_0 = arith.constant 0 : i32
    %c0_i32_1 = arith.constant 0 : i32
    return %c0_i32, %c0_i32_0 : i32, i32
  }
  func.func @transform_13(%arg0: i32) -> (i32, i32, i32) {
    %c0_i32 = arith.constant 0 : i32
    %c0_i32_0 = arith.constant 0 : i32
    %c0_i32_1 = arith.constant 0 : i32
    return %arg0, %c0_i32, %c0_i32_0 : i32, i32, i32
  }
}

</mosaic_0001>

<bundles_post_ra>
// kernel: captcha_forward.1
= control target key start
LH: loop header
LB: loop body
LE: loop exit
PB: predicated region body
PF: predicated region fallthrough
CT: control target
= control target key end

     0   :  { %s16286_s25 = smov 0   ;;  %s19825_s0 = inlined_call_operand.vmem [shape: bf16[2,1536,32], index: 0, kind: input, shape index: {}]   ;;  %s19826_s1 = inlined_call_operand.vmem [shape: bf16[32,32], index: 1, kind: input, shape index: {}]   ;;  %s19827_s2 = inlined_call_operand.vmem [shape: f32[1,32], index: 2, kind: input, shape index: {}]   ;;  %s19828_s3 = inlined_call_operand.vmem [shape: bf16[9,32,64], index: 3, kind: input, shape index: {}]   ;;  %s19829_s4 = inlined_call_operand.vmem [shape: f32[1,64], index: 4, kind: input, shape index: {}]   ;;  %s19830_s5 = inlined_call_operand.vmem [shape: bf16[12,64,64], index: 5, kind: input, shape index: {}]   ;;  %s19831_s6 = inlined_call_operand.vmem [shape: f32[1,64], index: 6, kind: input, shape index: {}]   ;;  %s19832_s7 = inlined_call_operand.vmem [shape: bf16[4,64,96], index: 7, kind: input, shape index: {}]   ;;  %s19833_s8 = inlined_call_operand.vmem [shape: bf16[2,64,192], index: 8, kind: input, shape index: {}]   ;;  %s19834_s9 = inlined_call_operand.vmem [shape: f32[4,1,96], index: 9, kind: input, shape index: {}]   ;;  %s19835_s10 = inlined_call_operand.vmem [shape: f32[4,1,32], index: 10, kind: input, shape index: {}]   ;;  %s19836_s11 = inlined_call_operand.vmem [shape: bf16[64,128], index: 11, kind: input, shape index: {}]   ;;  %s19837_s12 = inlined_call_operand.vmem [shape: f32[1,128], index: 12, kind: input, shape index: {}]   ;;  %s19838_s13 = inlined_call_operand.vmem [shape: f32[2,8,128], index: 13, kind: output, shape index: {}]  }
   0x1 LB: > { %s12862_s26 = sadd.s32 4294967295, %s16207_s25   ;;  %p12866_p0 = scmp.ge.s32.totalorder %s16207_s25, 1  ;;  %s16207_s25 = sphi %s16286_s25, %s23_s25  }
   0x2   : > { %p387_p1 = scmp.lt.s32.totalorder %s16207_s25, 3 }
   0x4   : > { %p388_p2 = pnand %p12866_p0, %p387_p1 }
   0x6   : > { %391 = sbr.rel (%p388_p2) target bundleno = 15709 (0x3d5d), region = 72 }
   0xd   : > { %v15695_v0 = vld [vmem:[%s19826_s1] sm:$0xff]   ;;  %p430_p3 = scmp.lt.s32.totalorder %s12862_s26, 1  ;;  %v15696_v1 = vld [vmem:[%s19826_s1 + $0x8] sm:$0xff]   ;;  %vm1128_vm0 = vcmask 261120   ;;  %vm2633_vm1 = vcmask 257024   ;;  %vm2635_vm2 = vcmask 253952  }
   0xe   : > { %14279 = vmatprep.subr.bf16.mxu0 %v15695_v0  ;;  %vm2636_vm3 = vsmask.f32 256  ;;  %vm2993_vm5 = vsmask.f32 7938  ;;  %vm3600_vm7 = vsmask.f32 3328 }
   0xf   : > { %s20236_s26 = smov (!%p430_p3, %s12862_s26), 1  ;;  %14280 = vmatpush3.bf16.msra.mxu0 %v15695_v0  ;;  %vm16922_vm4 = vmand %vm2635_vm2, %vm2636_vm3  ;;  %vm3601_vm8 = vsmask.f32 7440  ;;  %vm16211_vm10 = vmmov 0   ;;  %vm9090_vm11 = vcmask 523264   ;;  %s16215_s21 = smov 96  }
  0x10   : > { %14281 = vmatprep.subr.bf16.mxu0 %v15696_v1  ;;  %s15639_s14 = smul.u32 768, %s20236_s26  ;;  %vm17273_vm6 = vmand %vm2633_vm1, %vm2993_vm5  ;;  %vm11347_vm12 = vcmask 1040384   ;;  %vm11349_vm13 = vcmask 1041408   ;;  %vm11351_vm14 = vcmask 1042432   ;;  %vm11353_vm15 = vcmask 1043456  }
  0x11   : > { %vm17542_vm9 = vmor %vm3600_vm7, %vm3601_vm8  ;;  %vm11357_vm2 = vcmask 1045504   ;;  %vm11359_vm3 = vcmask 1046528  }
  0x12   : > { %s16306_s17 = scalar_lea.vmem %s19825_s0, %s15639_s14  ;;  %s16212_s14 = smov 32  }
  0x13   : > { %14282 = vmatpush3.bf16.msra.mxu0 %v15696_v1  ;;  %v15697_v2 = vld [vmem:[%s16306_s17] sm:$0xff]   ;;  %v15698_v3 = vld [vmem:[%s16306_s17 + $0x8] sm:$0xff]   ;;  %v15699_v4 = vld [vmem:[%s16306_s17 + $0x10] sm:$0xff]  }
  0x14   : > { %14283 = vmatprep.mubr.msk.bf16.mxu0 %vm1128_vm0, %v15697_v2  ;;  %v15700_v5 = vld [vmem:[%s16306_s17 + $0x18] sm:$0xff]   ;;  %v15701_v6 = vld [vmem:[%s16306_s17 + $0x20] sm:$0xff]   ;;  %v15702_v7 = vld [vmem:[%s16306_s17 + $0x28] sm:$0xff]  }
  0x15   : > { %v15703_v8 = vld [vmem:[%s16306_s17 + $0x30] sm:$0xff]   ;;  %v15704_v9 = vld [vmem:[%s16306_s17 + $0x38] sm:$0xff]   ;;  %v15705_v10 = vld [vmem:[%s16306_s17 + $0x40] sm:$0xff]  }
  0x16   : > { %14284 = vmatmul.mubr.msk.bf16.vlgmr.msra.gmra.mrb[0].mxu0 %vm1128_vm0, %v15698_v3  ;;  %v15706_v11 = vld [vmem:[%s16306_s17 + $0x48] sm:$0xff]   ;;  %v15707_v12 = vld [vmem:[%s16306_s17 + $0x50] sm:$0xff]   ;;  %v15708_v13 = vld [vmem:[%s16306_s17 + $0x58] sm:$0xff]  }
  0x17   : > { %14287 = vmatprep.mubr.msk.bf16.mxu0 %vm1128_vm0, %v15699_v4  ;;  %v15709_v14 = vld [vmem:[%s16306_s17 + $0x60] sm:$0xff]   ;;  %v15710_v15 = vld [vmem:[%s16306_s17 + $0x68] sm:$0xff]   ;;  %v15711_v16 = vld [vmem:[%s16306_s17 + $0x70] sm:$0xff]  }
  0x18   : > { %v15712_v17 = vld [vmem:[%s16306_s17 + $0x78] sm:$0xff]   ;;  %v15713_v18 = vld [vmem:[%s16306_s17 + $0x80] sm:$0xff]   ;;  %v15714_v19 = vld [vmem:[%s16306_s17 + $0x88] sm:$0xff]  }
  0x19   : > { %v15715_v20 = vld [vmem:[%s16306_s17 + $0x90] sm:$0xff]   ;;  %v15716_v21 = vld [vmem:[%s16306_s17 + $0x98] sm:$0xff]   ;;  %v15717_v22 = vld [vmem:[%s16306_s17 + $0xa0] sm:$0xff]  }
  0x1a   : > { %v15718_v23 = vld [vmem:[%s16306_s17 + $0xa8] sm:$0xff]   ;;  %v15719_v24 = vld [vmem:[%s16306_s17 + $0xb0] sm:$0xff]   ;;  %v15720_v25 = vld [vmem:[%s16306_s17 + $0xb8] sm:$0xff]  }
  0x1b   : > { %v15721_v26 = vld [vmem:[%s16306_s17 + $0xc0] sm:$0xff]   ;;  %v15722_v27 = vld [vmem:[%s16306_s17 + $0xc8] sm:$0xff]   ;;  %v15723_v28 = vld [vmem:[%s16306_s17 + $0xd0] sm:$0xff]  }
  0x1c   : > { %v15724_v29 = vld [vmem:[%s16306_s17 + $0xd8] sm:$0xff]   ;;  %v15725_v30 = vld [vmem:[%s16306_s17 + $0xe0] sm:$0xff]   ;;  %v15726_v31 = vld [vmem:[%s16306_s17 + $0xe8] sm:$0xff]  }
  0x1d   : > { %v15727_v32 = vld [vmem:[%s16306_s17 + $0xf0] sm:$0xff]   ;;  %v15728_v33 = vld [vmem:[%s16306_s17 + $0xf8] sm:$0xff]   ;;  %v15729_v34 = vld [vmem:[%s16306_s17 + $0x100] sm:$0xff]  }
  0x1e   : > { %14288 = vmatmul.mubr.msk.bf16.gmra.mrb[4].mxu0 %vm1128_vm0, %v15700_v5  ;;  %v15730_v35 = vld [vmem:[%s16306_s17 + $0x108] sm:$0xff]   ;;  %v15731_v36 = vld [vmem:[%s16306_s17 + $0x110] sm:$0xff]   ;;  %v15732_v37 = vld [vmem:[%s16306_s17 + $0x118] sm:$0xff]  }
  0x1f   : > { %14291 = vmatprep.mubr.msk.bf16.mxu0 %vm1128_vm0, %v15701_v6  ;;  %v15733_v38 = vld [vmem:[%s16306_s17 + $0x120] sm:$0xff]   ;;  %v15734_v39 = vld [vmem:[%s16306_s17 + $0x128] sm:$0xff]   ;;  %v15735_v40 = vld [vmem:[%s16306_s17 + $0x130] sm:$0xff]  }
  0x20   : > { %v15736_v41 = vld [vmem:[%s16306_s17 + $0x138] sm:$0xff]   ;;  %v15737_v42 = vld [vmem:[%s16306_s17 + $0x140] sm:$0xff]   ;;  %v15738_v43 = vld [vmem:[%s16306_s17 + $0x148] sm:$0xff]  }
  0x21   : > { %v15739_v44 = vld [vmem:[%s16306_s17 + $0x150] sm:$0xff]   ;;  %v15740_v45 = vld [vmem:[%s16306_s17 + $0x158] sm:$0xff]   ;;  %v15741_v46 = vld [vmem:[%s16306_s17 + $0x160] sm:$0xff]  }
  0x22   : > { %v15742_v47 = vld [vmem:[%s16306_s17 + $0x168] sm:$0xff]   ;;  %v15743_v48 = vld [vmem:[%s16306_s17 + $0x170] sm:$0xff]   ;;  %v15744_v49 = vld [vmem:[%s16306_s17 + $0x178] sm:$0xff]  }
  0x23   : > { %v15745_v50 = vld [vmem:[%s16306_s17 + $0x180] sm:$0xff]   ;;  %v15746_v51 = vld [vmem:[%s16306_s17 + $0x188] sm:$0xff]   ;;  %v15747_v52 = vld [vmem:[%s16306_s17 + $0x190] sm:$0xff]  }
  0x24   : > { %v15748_v53 = vld [vmem:[%s16306_s17 + $0x198] sm:$0xff]   ;;  %v15749_v54 = vld [vmem:[%s16306_s17 + $0x1a0] sm:$0xff]   ;;  %v15750_v55 = vld [vmem:[%s16306_s17 + $0x1a8] sm:$0xff]  }
  0x25   : > { %v15751_v56 = vld [vmem:[%s16306_s17 + $0x1b0] sm:$0xff]   ;;  %v15752_v59 = vld [vmem:[%s16306_s17 + $0x1b8] sm:$0xff]   ;;  %v15753_v61 = vld [vmem:[%s16306_s17 + $0x1c0] sm:$0xff]  }
  0x26   : > { %14292 = vmatmul.mubr.msk.bf16.gmra.mrb[8].mxu0 %vm1128_vm0, %v15702_v7  ;;  %v15754_v1 = vld [vmem:[%s16306_s17 + $0x1c8] sm:$0xff]   ;;  %v15755_v3 = vld [vmem:[%s16306_s17 + $0x1d0] sm:$0xff]   ;;  %v15756_v7 = vld [vmem:[%s16306_s17 + $0x1d8] sm:$0xff]  }
  0x27   : > { %14295 = vmatprep.mubr.msk.bf16.mxu0 %vm1128_vm0, %v15703_v8 }
  0x2e   : > { %14296 = vmatmul.mubr.msk.bf16.gmra.mrb[12].mxu0 %vm1128_vm0, %v15704_v9  ;;  %v15757_v9 = vld [vmem:[%s16306_s17 + $0x1e0] sm:$0xff]  }
  0x2f   : > { %14299 = vmatprep.mubr.msk.bf16.mxu0 %vm1128_vm0, %v15705_v10 }
  0x36   : > { %14300 = vmatmul.mubr.msk.bf16.gmra.mrb[16].mxu0 %vm1128_vm0, %v15706_v11 }
  0x37   : > { %14303 = vmatprep.mubr.msk.bf16.mxu0 %vm1128_vm0, %v15707_v12 }
  0x3e   : > { %14304 = vmatmul.mubr.msk.bf16.gmra.mrb[20].mxu0 %vm1128_vm0, %v15708_v13  ;;  %v15758_v13 = vld [vmem:[%s16306_s17 + $0x1e8] sm:$0xff]  }
  0x3f   : > { %14307 = vmatprep.mubr.msk.bf16.mxu0 %vm1128_vm0, %v15709_v14 }
  0x46   : > { %14308 = vmatmul.mubr.msk.bf16.gmra.mrb[24].mxu0 %vm1128_vm0, %v15710_v15  ;;  %v15759_v15 = vld [vmem:[%s16306_s17 + $0x1f0] sm:$0xff]  }
  0x47   : > { %14311 = vmatprep.mubr.msk.bf16.mxu0 %vm1128_vm0, %v15711_v16 }
  0x4e   : > { %14312 = vmatmul.mubr.msk.bf16.gmra.mrb[28].mxu0 %vm1128_vm0, %v15712_v17 }
  0x4f   : > { %14315 = vmatprep.mubr.msk.bf16.mxu0 %vm1128_vm0, %v15713_v18 }
  0x56   : > { %14316 = vmatmul.mubr.msk.bf16.gmra.mrb[32].mxu0 %vm1128_vm0, %v15714_v19  ;;  %v15760_v19 = vld [vmem:[%s16306_s17 + $0x1f8] sm:$0xff]  }
  0x57   : > { %14319 = vmatprep.mubr.msk.bf16.mxu0 %vm1128_vm0, %v15715_v20 }
  0x5e   : > { %14320 = vmatmul.mubr.msk.bf16.gmra.mrb[36].mxu0 %vm1128_vm0, %v15716_v21  ;;  %v15761_v21 = vld [vmem:[%s16306_s17 + $0x200] sm:$0xff]  }
  0x5f   : > { %14323 = vmatprep.mubr.msk.bf16.mxu0 %vm1128_vm0, %v15717_v22 }
  0x66   : > { %14324 = vmatmul.mubr.msk.bf16.gmra.mrb[40].mxu0 %vm1128_vm0, %v15718_v23 }
  0x67   : > { %14327 = vmatprep.mubr.msk.bf16.mxu0 %vm1128_vm0, %v15719_v24 }
  0x6e   : > { %14328 = vmatmul.mubr.msk.bf16.gmra.mrb[44].mxu0 %vm1128_vm0, %v15720_v25  ;;  %v15762_v25 = vld [vmem:[%s16306_s17 + $0x208] sm:$0xff]  }
  0x6f   : > { %14331 = vmatprep.mubr.msk.bf16.mxu0 %vm1128_vm0, %v15721_v26 }
  0x76   : > { %14332 = vmatmul.mubr.msk.bf16.gmra.mrb[48].mxu0 %vm1128_vm0, %v15722_v27  ;;  %v15763_v27 = vld [vmem:[%s16306_s17 + $0x210] sm:$0xff]  }
  0x77   : > { %14335 = vmatprep.mubr.msk.bf16.mxu0 %vm1128_vm0, %v15723_v28 }
  0x7e   : > { %14336 = vmatmul.mubr.msk.bf16.gmra.mrb[52].mxu0 %vm1128_vm0, %v15724_v29 }
  0x7f   : > { %14339 = vmatprep.mubr.msk.bf16.mxu0 %vm1128_vm0, %v15725_v30 }
  0x86   : > { %14340 = vmatmul.mubr.msk.bf16.gmra.mrb[56].mxu0 %vm1128_vm0, %v15726_v31  ;;  %v15764_v31 = vld [vmem:[%s16306_s17 + $0x218] sm:$0xff]  }
  0x87   : > { %14343 = vmatprep.mubr.msk.bf16.mxu0 %vm1128_vm0, %v15727_v32 }
  0x8e   : > { %14344 = vmatmul.mubr.msk.bf16.gmra.mrb[60].mxu0 %vm1128_vm0, %v15728_v33  ;;  %v15765_v33 = vld [vmem:[%s16306_s17 + $0x220] sm:$0xff]  }
  0x8f   : > { %14347 = vmatprep.mubr.msk.bf16.mxu0 %vm1128_vm0, %v15729_v34 }
  0x96   : > { %14348 = vmatmul.mubr.msk.bf16.gmra.mrb[64].mxu0 %vm1128_vm0, %v15730_v35 }
  0x97   : > { %14351 = vmatprep.mubr.msk.bf16.mxu0 %vm1128_vm0, %v15731_v36 }
  0x9e   : > { %14352 = vmatmul.mubr.msk.bf16.gmra.mrb[68].mxu0 %vm1128_vm0, %v15732_v37  ;;  %v15766_v37 = vld [vmem:[%s16306_s17 + $0x228] sm:$0xff]  }
  0x9f   : > { %14355 = vmatprep.mubr.msk.bf16.mxu0 %vm1128_vm0, %v15733_v38 }
  0xa6   : > { %14356 = vmatmul.mubr.msk.bf16.gmra.mrb[72].mxu0 %vm1128_vm0, %v15734_v39  ;;  %v15767_v39 = vld [vmem:[%s16306_s17 + $0x230] sm:$0xff]  }
  0xa7   : > { %14359 = vmatprep.mubr.msk.bf16.mxu0 %vm1128_vm0, %v15735_v40 }
  0xae   : > { %14360 = vmatmul.mubr.msk.bf16.gmra.mrb[76].mxu0 %vm1128_vm0, %v15736_v41 }
  0xaf   : > { %14363 = vmatprep.mubr.msk.bf16.mxu0 %vm1128_vm0, %v15737_v42 }
  0xb6   : > { %14364 = vmatmul.mubr.msk.bf16.gmra.mrb[80].mxu0 %vm1128_vm0, %v15738_v43  ;;  %v15768_v43 = vld [vmem:[%s16306_s17 + $0x238] sm:$0xff]  }
  0xb7   : > { %14367 = vmatprep.mubr.msk.bf16.mxu0 %vm1128_vm0, %v15739_v44 }
  0xbe   : > { %14368 = vmatmul.mubr.msk.bf16.gmra.mrb[84].mxu0 %vm1128_vm0, %v15740_v45  ;;  %v15769_v45 = vld [vmem:[%s16306_s17 + $0x240] sm:$0xff]  }
  0xbf   : > { %14371 = vmatprep.mubr.msk.bf16.mxu0 %vm1128_vm0, %v15741_v46 }
  0xc6   : > { %14372 = vmatmul.mubr.msk.bf16.gmra.mrb[88].mxu0 %vm1128_vm0, %v15742_v47 }
  0xc7   : > { %14375 = vmatprep.mubr.msk.bf16.mxu0 %vm1128_vm0, %v15743_v48 }
  0xce   : > { %14376 = vmatmul.mubr.msk.bf16.gmra.mrb[92].mxu0 %vm1128_vm0, %v15744_v49  ;;  %v15770_v49 = vld [vmem:[%s16306_s17 + $0x248] sm:$0xff]  }
  0xcf   : > { %14379 = vmatprep.mubr.msk.bf16.mxu0 %vm1128_vm0, %v15745_v50 }
  0xd6   : > { %14380 = vmatmul.mubr.msk.bf16.gmra.mrb[96].mxu0 %vm1128_vm0, %v15746_v51  ;;  %v15771_v51 = vld [vmem:[%s16306_s17 + $0x250] sm:$0xff]  }
  0xd7   : > { %14383 = vmatprep.mubr.msk.bf16.mxu0 %vm1128_vm0, %v15747_v52 }
  0xde   : > { %14384 = vmatmul.mubr.msk.bf16.gmra.mrb[100].mxu0 %vm1128_vm0, %v15748_v53 }
  0xdf   : > { %14387 = vmatprep.mubr.msk.bf16.mxu0 %vm1128_vm0, %v15749_v54 }
  0xe6   : > { %14388 = vmatmul.mubr.msk.bf16.gmra.mrb[104].mxu0 %vm1128_vm0, %v15750_v55  ;;  %v15772_v55 = vld [vmem:[%s16306_s17 + $0x258] sm:$0xff]  }
  0xe7   : > { %14391 = vmatprep.mubr.msk.bf16.mxu0 %vm1128_vm0, %v15751_v56 }
  0xe9   : > { %v16418_v57 = vpop.f32.mrb[0].mxu0 }
  0xea   : > { %v16420_v58 = vpop.f32.mrb[1].mxu0 }
  0xeb   : > { %v16423_v60 = vpop.f32.mrb[2].mxu0 }
  0xec   : > { %v16426_v62 = vpop.f32.mrb[3].mxu0 }
  0xee   : > { %14392 = vmatmul.mubr.msk.bf16.gmra.mrb[108].mxu0 %vm1128_vm0, %v15752_v59  ;;  %v15773_v59 = vld [vmem:[%s16306_s17 + $0x260] sm:$0xff]  }
  0xef   : > { %14395 = vmatprep.mubr.msk.bf16.mxu0 %vm1128_vm0, %v15753_v61 }
  0xf1   : > { %v16430_v63 = vpop.f32.mrb[4].mxu0 }
  0xf2   : > { %v16432_v0 = vpop.f32.mrb[5].mxu0 }
  0xf3   : > { %v16435_v2 = vpop.f32.mrb[6].mxu0 }
  0xf4   : > { %v16438_v4 = vpop.f32.mrb[7].mxu0 }
  0xf6   : > { %14396 = vmatmul.mubr.msk.bf16.gmra.mrb[112].mxu0 %vm1128_vm0, %v15754_v1 }
  0xf7   : > { %14399 = vmatprep.mubr.msk.bf16.mxu0 %vm1128_vm0, %v15755_v3 }
  0xf9   : > { %v16442_v5 = vpop.f32.mrb[8].mxu0 }
  0xfa   : > { %v16444_v6 = vpop.f32.mrb[9].mxu0 }
  0xfb   : > { %19938 = vst [vmem:[#allocation3_spill] sm:$0xff] %v16444_v6  ;;  %v16447_v8 = vpop.f32.mrb[10].mxu0  ;;  %v15782_v6 = vld [vmem:[%s16306_s17 + $0x2a8] sm:$0xff]  }
  0xfc   : > { %v16450_v10 = vpop.f32.mrb[11].mxu0 }
  0xfe   : > { %14400 = vmatmul.mubr.msk.bf16.gmra.mrb[116].mxu0 %vm1128_vm0, %v15756_v7  ;;  %v15774_v7 = vld [vmem:[%s16306_s17 + $0x268] sm:$0xff]  }
  0xff   : > { %14403 = vmatprep.mubr.msk.bf16.mxu0 %vm1128_vm0, %v15757_v9 }
 0x101   : > { %v16454_v11 = vpop.f32.mrb[12].mxu0 }
 0x102   : > { %v16456_v12 = vpop.f32.mrb[13].mxu0 }
 0x103   : > { %19939 = vst [vmem:[#allocation4_spill] sm:$0xff] %v16456_v12  ;;  %v16459_v14 = vpop.f32.mrb[14].mxu0  ;;  %v15784_v12 = vld [vmem:[%s16306_s17 + $0x2b8] sm:$0xff]  }
 0x104   : > { %v16462_v16 = vpop.f32.mrb[15].mxu0 }
 0x106   : > { %14404 = vmatmul.mubr.msk.bf16.gmra.mrb[120].mxu0 %vm1128_vm0, %v15758_v13  ;;  %v15775_v13 = vld [vmem:[%s16306_s17 + $0x270] sm:$0xff]  }
 0x107   : > { %14407 = vmatprep.mubr.msk.bf16.mxu0 %vm1128_vm0, %v15759_v15 }
 0x109   : > { %v16466_v17 = vpop.f32.mrb[16].mxu0 }
 0x10a   : > { %v16468_v18 = vpop.f32.mrb[17].mxu0 }
 0x10b   : > { %19940 = vst [vmem:[#allocation5_spill] sm:$0xff] %v16468_v18  ;;  %v16471_v20 = vpop.f32.mrb[18].mxu0  ;;  %v15786_v18 = vld [vmem:[%s16306_s17 + $0x2c8] sm:$0xff]  }
 0x10c   : > { %v16474_v22 = vpop.f32.mrb[19].mxu0 }
 0x10e   : > { %14408 = vmatmul.mubr.msk.bf16.gmra.mrb[124].mxu0 %vm1128_vm0, %v15760_v19 }
 0x10f   : > { %14411 = vmatprep.mubr.msk.bf16.mxu0 %vm1128_vm0, %v15761_v21  ;;  %v15780_v21 = vld [vmem:[%s16306_s17 + $0x298] sm:$0xff]  }
 0x111   : > { %v16478_v23 = vpop.f32.mrb[20].mxu0 }
 0x112   : > { %v16480_v24 = vpop.f32.mrb[21].mxu0 }
 0x113   : > { %19941 = vst [vmem:[#allocation6_spill] sm:$0xff] %v16480_v24  ;;  %v16483_v26 = vpop.f32.mrb[22].mxu0  ;;  %v15788_v24 = vld [vmem:[%s16306_s17 + $0x2d8] sm:$0xff]  }
 0x114   : > { %19942 = vst [vmem:[#allocation7_spill] sm:$0xff] %v16483_v26  ;;  %v16486_v28 = vpop.f32.mrb[23].mxu0 }
 0x115   : > { %19943 = vst [vmem:[#allocation8_spill] sm:$0xff] %v16486_v28 }
 0x116   : > { %14412 = vmatmul.mubr.msk.bf16.gmra.mrb[128].mxu0 %vm1128_vm0, %v15762_v25 }
 0x117   : > { %14415 = vmatprep.mubr.msk.bf16.mxu0 %vm1128_vm0, %v15763_v27  ;;  %v15776_v27 = vld [vmem:[%s16306_s17 + $0x278] sm:$0xff]  }
 0x119   : > { %v16490_v29 = vpop.f32.mrb[24].mxu0 }
 0x11a   : > { %19944 = vst [vmem:[#allocation9_spill] sm:$0xff] %v16490_v29  ;;  %v16492_v30 = vpop.f32.mrb[25].mxu0  ;;  %v2706_v29 = vld [vmem:[#allocation2 + $0x8c] sm:$0x1] }
 0x11b   : > { %19945 = vst [vmem:[#allocation10_spill] sm:$0xff] %v16492_v30  ;;  %v16495_v32 = vpop.f32.mrb[26].mxu0  ;;  %v15790_v30 = vld [vmem:[%s16306_s17 + $0x2e8] sm:$0xff]  }
 0x11c   : > { %19946 = vst [vmem:[#allocation11_spill] sm:$0xff] %v16495_v32  ;;  %v16498_v34 = vpop.f32.mrb[27].mxu0  ;;  %v15791_v32 = vld [vmem:[%s16306_s17 + $0x2f0] sm:$0xff]  }
 0x11d   : > { %19947 = vst [vmem:[#allocation12_spill] sm:$0xff] %v16498_v34  ;;  %v2650_v34 = vld [vmem:[#allocation2 + $0x1c] sm:$0x1] }
 0x11e   : > { %14416 = vmatmul.mubr.msk.bf16.gmra.mrb[132].mxu0 %vm1128_vm0, %v15764_v31 }
 0x11f   : > { %14419 = vmatprep.mubr.msk.bf16.mxu0 %vm1128_vm0, %v15765_v33 }
 0x121   : > { %v16502_v35 = vpop.f32.mrb[28].mxu0 }
 0x122   : > { %19948 = vst [vmem:[#allocation13_spill] sm:$0xff] %v16502_v35  ;;  %v16504_v36 = vpop.f32.mrb[29].mxu0 }
 0x123   : > { %19949 = vst [vmem:[#allocation14_spill] sm:$0xff] %v16504_v36  ;;  %v16507_v38 = vpop.f32.mrb[30].mxu0  ;;  %v15792_v36 = vld [vmem:[%s16306_s17 + $0x2f8] sm:$0xff]  }
 0x124   : > { %19950 = vst [vmem:[#allocation15_spill] sm:$0xff] %v16507_v38  ;;  %v16510_v40 = vpop.f32.mrb[31].mxu0 }
 0x125   : > { %19951 = vst [vmem:[#allocation16_spill] sm:$0xff] %v16510_v40  ;;  %v2698_v40 = vld [vmem:[#allocation2 + $0x7c] sm:$0x1] }
 0x126   : > { %14420 = vmatmul.mubr.msk.bf16.gmra.mrb[136].mxu0 %vm1128_vm0, %v15766_v37  ;;  %v15777_v37 = vld [vmem:[%s16306_s17 + $0x280] sm:$0xff]  }
 0x127   : > { %14423 = vmatprep.mubr.msk.bf16.mxu0 %vm1128_vm0, %v15767_v39  ;;  %v15781_v39 = vld [vmem:[%s16306_s17 + $0x2a0] sm:$0xff]  }
 0x129   : > { %v16514_v41 = vpop.f32.mrb[32].mxu0 }
 0x12a   : > { %19952 = vst [vmem:[#allocation17_spill] sm:$0xff] %v16514_v41  ;;  %v16516_v42 = vpop.f32.mrb[33].mxu0 }
 0x12b   : > { %19953 = vst [vmem:[#allocation18_spill] sm:$0xff] %v16516_v42  ;;  %v16519_v44 = vpop.f32.mrb[34].mxu0 }
 0x12c   : > { %19954 = vst [vmem:[#allocation19_spill] sm:$0xff] %v16519_v44  ;;  %v16522_v46 = vpop.f32.mrb[35].mxu0 }
 0x12d   : > { %19955 = vst [vmem:[#allocation20_spill] sm:$0xff] %v16522_v46 }
 0x12e   : > { %14424 = vmatmul.mubr.msk.bf16.gmra.mrb[140].mxu0 %vm1128_vm0, %v15768_v43 }
 0x12f   : > { %14427 = vmatprep.mubr.msk.bf16.mxu0 %vm1128_vm0, %v15769_v45  ;;  %v15779_v45 = vld [vmem:[%s16306_s17 + $0x290] sm:$0xff]  }
 0x131   : > { %v16526_v47 = vpop.f32.mrb[36].mxu0 }
 0x132   : > { %19956 = vst [vmem:[#allocation21_spill] sm:$0xff] %v16526_v47  ;;  %v16528_v48 = vpop.f32.mrb[37].mxu0 }
 0x133   : > { %19957 = vst [vmem:[#allocation22_spill] sm:$0xff] %v16528_v48  ;;  %v16531_v50 = vpop.f32.mrb[38].mxu0 }
 0x134   : > { %19958 = vst [vmem:[#allocation23_spill] sm:$0xff] %v16531_v50  ;;  %v16534_v52 = vpop.f32.mrb[39].mxu0  ;;  %v2646_v50 = vld [vmem:[#allocation2 + $0x14] sm:$0x1] }
 0x135   : > { %19959 = vst [vmem:[#allocation24_spill] sm:$0xff] %v16534_v52  ;;  %v2647_v46 = vsel %vm16922_vm4, 0, %v2646_v50 }
 0x136   : > { %14428 = vmatmul.mubr.msk.bf16.gmra.mrb[144].mxu0 %vm1128_vm0, %v15770_v49  ;;  %2648 = vst [vmem:[#allocation2 + $0x14] sm:$0x1] %v2647_v46  ;;  %v2699_v46 = vsel %vm16922_vm4, 0, %v2698_v40 }
 0x137   : > { %14431 = vmatprep.mubr.msk.bf16.mxu0 %vm1128_vm0, %v15771_v51  ;;  %2700 = vst [vmem:[#allocation2 + $0x7c] sm:$0x1] %v2699_v46 }
 0x139   : > { %v16538_v53 = vpop.f32.mrb[40].mxu0 }
 0x13a   : > { %19960 = vst [vmem:[#allocation25_spill] sm:$0xff] %v16538_v53  ;;  %v16540_v54 = vpop.f32.mrb[41].mxu0  ;;  %v2690_v53 = vld [vmem:[#allocation2 + $0x6c] sm:$0x1] }
 0x13b   : > { %19961 = vst [vmem:[#allocation26_spill] sm:$0xff] %v16540_v54  ;;  %v16543_v56 = vpop.f32.mrb[42].mxu0 }
 0x13c   : > { %19962 = vst [vmem:[#allocation27_spill] sm:$0xff] %v16543_v56  ;;  %v16546_v61 = vpop.f32.mrb[43].mxu0 }
 0x13d   : > { %19963 = vst [vmem:[#allocation28_spill] sm:$0xff] %v16546_v61 }
 0x13e   : > { %14432 = vmatmul.mubr.msk.bf16.gmra.mrb[148].mxu0 %vm1128_vm0, %v15772_v55 }
 0x13f   : > { %14435 = vmatprep.mubr.msk.bf16.mxu0 %vm1128_vm0, %v15773_v59  ;;  %v15778_v59 = vld [vmem:[%s16306_s17 + $0x288] sm:$0xff]  }
 0x141   : > { %v16550_v1 = vpop.f32.mrb[44].mxu0 }
 0x142   : > { %19964 = vst [vmem:[#allocation29_spill] sm:$0xff] %v16550_v1  ;;  %v16552_v3 = vpop.f32.mrb[45].mxu0 }
 0x143   : > { %19965 = vst [vmem:[#allocation30_spill] sm:$0xff] %v16552_v3  ;;  %v16555_v9 = vpop.f32.mrb[46].mxu0  ;;  %v2694_v3 = vld [vmem:[#allocation2 + $0x74] sm:$0x1] }
 0x144   : > { %19966 = vst [vmem:[#allocation31_spill] sm:$0xff] %v16555_v9  ;;  %v16558_v15 = vpop.f32.mrb[47].mxu0 }
 0x145   : > { %19967 = vst [vmem:[#allocation32_spill] sm:$0xff] %v16558_v15 }
 0x146   : > { %14436 = vmatmul.mubr.msk.bf16.gmra.mrb[152].mxu0 %vm1128_vm0, %v15774_v7 }
 0x147   : > { %14439 = vmatprep.mubr.msk.bf16.mxu0 %vm1128_vm0, %v15775_v13 }
 0x149   : > { %v16562_v19 = vpop.f32.mrb[48].mxu0 }
 0x14a   : > { %v16566_v25 = vpop.f32.mrb[49].mxu0 }
 0x14b   : > { %v16571_v33 = vpop.f32.mrb[50].mxu0 }
 0x14c   : > { %v16576_v43 = vpop.f32.mrb[51].mxu0 }
 0x14e   : > { %14440 = vmatmul.mubr.msk.bf16.gmra.mrb[156].mxu0 %vm1128_vm0, %v15776_v27 }
 0x14f   : > { %14443 = vmatprep.mubr.msk.bf16.mxu0 %vm1128_vm0, %v15777_v37 }
 0x151   : > { %v16582_v49 = vpop.f32.mrb[52].mxu0 }
 0x152   : > { %v16586_v55 = vpop.f32.mrb[53].mxu0 }
 0x153   : > { %v16591_v13 = vpop.f32.mrb[54].mxu0 }
 0x154   : > { %19968 = vst [vmem:[#allocation33_spill] sm:$0xff] %v16591_v13  ;;  %v16596_v37 = vpop.f32.mrb[55].mxu0 }
 0x155   : > { %19969 = vst [vmem:[#allocation34_spill] sm:$0xff] %v16596_v37  ;;  %v15783_v37 = vld [vmem:[%s16306_s17 + $0x2b0] sm:$0xff]  }
 0x156   : > { %14444 = vmatmul.mubr.msk.bf16.gmra.mrb[160].mxu0 %vm1128_vm0, %v15778_v59 }
 0x157   : > { %14447 = vmatprep.mubr.msk.bf16.mxu0 %vm1128_vm0, %v15779_v45 }
 0x159   : > { %v16602_v51 = vpop.f32.mrb[56].mxu0 }
 0x15a   : > { %v16606_v31 = vpop.f32.mrb[57].mxu0 }
 0x15b   : > { %19970 = vst [vmem:[#allocation35_spill] sm:$0xff] %v16606_v31  ;;  %v16611_v13 = vpop.f32.mrb[58].mxu0 }
 0x15c   : > { %19971 = vst [vmem:[#allocation36_spill] sm:$0xff] %v16611_v13  ;;  %v16616_v45 = vpop.f32.mrb[59].mxu0 }
 0x15d   : > { %19972 = vst [vmem:[#allocation37_spill] sm:$0xff] %v16616_v45  ;;  %v15785_v45 = vld [vmem:[%s16306_s17 + $0x2c0] sm:$0xff]  }
 0x15e   : > { %14448 = vmatmul.mubr.msk.bf16.gmra.mrb[164].mxu0 %vm1128_vm0, %v15780_v21 }
 0x15f   : > { %14451 = vmatprep.mubr.msk.bf16.mxu0 %vm1128_vm0, %v15781_v39 }
 0x161   : > { %v16622_v7 = vpop.f32.mrb[60].mxu0 }
 0x162   : > { %v16626_v31 = vpop.f32.mrb[61].mxu0 }
 0x163   : > { %19973 = vst [vmem:[#allocation38_spill] sm:$0xff] %v16626_v31  ;;  %v16631_v13 = vpop.f32.mrb[62].mxu0 }
 0x164   : > { %19974 = vst [vmem:[#allocation39_spill] sm:$0xff] %v16631_v13  ;;  %v16636_v39 = vpop.f32.mrb[63].mxu0 }
 0x165   : > { %19975 = vst [vmem:[#allocation40_spill] sm:$0xff] %v16636_v39  ;;  %v15787_v39 = vld [vmem:[%s16306_s17 + $0x2d0] sm:$0xff]  }
 0x166   : > { %14452 = vmatmul.mubr.msk.bf16.gmra.mrb[168].mxu0 %vm1128_vm0, %v15782_v6 }
 0x167   : > { %14455 = vmatprep.mubr.msk.bf16.mxu0 %vm1128_vm0, %v15783_v37 }
 0x169   : > { %v16642_v27 = vpop.f32.mrb[64].mxu0 }
 0x16a   : > { %v16646_v31 = vpop.f32.mrb[65].mxu0 }
 0x16b   : > { %19976 = vst [vmem:[#allocation41_spill] sm:$0xff] %v16646_v31  ;;  %v16651_v13 = vpop.f32.mrb[66].mxu0 }
 0x16c   : > { %19977 = vst [vmem:[#allocation42_spill] sm:$0xff] %v16651_v13  ;;  %v16656_v37 = vpop.f32.mrb[67].mxu0 }
 0x16d   : > { %19978 = vst [vmem:[#allocation43_spill] sm:$0xff] %v16656_v37  ;;  %v15789_v37 = vld [vmem:[%s16306_s17 + $0x2e0] sm:$0xff]   ;;  %s16213_s17 = smov 64  }
 0x16e   : > { %14456 = vmatmul.mubr.msk.bf16.gmra.mrb[172].mxu0 %vm1128_vm0, %v15784_v12 }
 0x16f   : > { %14459 = vmatprep.mubr.msk.bf16.mxu0 %vm1128_vm0, %v15785_v45 }
 0x171   : > { %v16662_v59 = vpop.f32.mrb[68].mxu0 }
 0x172   : > { %19979 = vst [vmem:[#allocation44_spill] sm:$0xff] %v16662_v59  ;;  %v16666_v31 = vpop.f32.mrb[69].mxu0  ;;  %v20037_v59 = vmax.f32 %v16423_v60, %v16571_v33 }
 0x173   : > { %19980 = vst [vmem:[#allocation45_spill] sm:$0xff] %v16666_v31  ;;  %v16671_v13 = vpop.f32.mrb[70].mxu0 }
 0x174   : > { %19981 = vst [vmem:[#allocation46_spill] sm:$0xff] %v16671_v13  ;;  %v16676_v45 = vpop.f32.mrb[71].mxu0 }
 0x175   : > { %19982 = vst [vmem:[#allocation47_spill] sm:$0xff] %v16676_v45 }
 0x176   : > { %14460 = vmatmul.mubr.msk.bf16.gmra.mrb[176].mxu0 %vm1128_vm0, %v15786_v18  ;;  %v15793_v18 = vld [vmem:[%s19828_s3 + $0x10] sm:$0xff]  }
 0x177   : > { %14463 = vmatprep.mubr.msk.bf16.mxu0 %vm1128_vm0, %v15787_v39  ;;  %14763 = vmatprep.subr.bf16.mxu0 %v15793_v18 }
 0x178   : > { %14475 = vmatprep.subr.bf16.mxu1 %v15793_v18  ;;  %14764 = vmatpush3.bf16.msra.mxu0 %v15793_v18 }
 0x179   : > { %v16682_v21 = vpop.f32.mrb[72].mxu0  ;;  %14476 = vmatpush3.bf16.msra.mxu1 %v15793_v18 }
 0x17a   : > { %19983 = vst [vmem:[#allocation48_spill] sm:$0xff] %v16682_v21  ;;  %v16686_v31 = vpop.f32.mrb[73].mxu0 }
 0x17b   : > { %19984 = vst [vmem:[#allocation49_spill] sm:$0xff] %v16686_v31  ;;  %v16691_v13 = vpop.f32.mrb[74].mxu0 }
 0x17c   : > { %19985 = vst [vmem:[#allocation50_spill] sm:$0xff] %v16691_v13  ;;  %v16696_v39 = vpop.f32.mrb[75].mxu0 }
 0x17d   : > { %19986 = vst [vmem:[#allocation51_spill] sm:$0xff] %v16696_v39 }
 0x17e   : > { %14464 = vmatmul.mubr.msk.bf16.gmra.mrb[180].mxu0 %vm1128_vm0, %v15788_v24 }
 0x17f   : > { %14467 = vmatprep.mubr.msk.bf16.mxu0 %vm1128_vm0, %v15789_v37  ;;  %v19871_v37 = vmov 0  }
 0x180   : > { %2797 = vst.msk [vmem:[#allocation2 + $0x140] sm:$0xf] %vm2633_vm1, %v19871_v37  ;;  %2634 = vst.msk [vmem:[#allocation2] sm:$0xf] %vm2633_vm1, %v19871_v37 }
 0x181   : > { %v16702_v6 = vpop.f32.mrb[76].mxu0  ;;  %2641 = vst.msk [vmem:[#allocation2 + $0x8] sm:$0xf] %vm2633_vm1, %v19871_v37  ;;  %2645 = vst.msk [vmem:[#allocation2 + $0x10] sm:$0xf] %vm2633_vm1, %v19871_v37 }
 0x182   : > { %19987 = vst [vmem:[#allocation52_spill] sm:$0xff] %v16702_v6  ;;  %v16706_v31 = vpop.f32.mrb[77].mxu0  ;;  %2649 = vst.msk [vmem:[#allocation2 + $0x18] sm:$0xf] %vm2633_vm1, %v19871_v37  ;;  %v2654_v6 = vld [vmem:[#allocation2 + $0x24] sm:$0x1] }
 0x183   : > { %19988 = vst [vmem:[#allocation53_spill] sm:$0xff] %v16706_v31  ;;  %v16711_v13 = vpop.f32.mrb[78].mxu0  ;;  %2653 = vst.msk [vmem:[#allocation2 + $0x20] sm:$0xf] %vm2633_vm1, %v19871_v37  ;;  %v2655_v39 = vsel %vm16922_vm4, 0, %v2654_v6  ;;  %v2707_v6 = vsel %vm16922_vm4, 0, %v2706_v29 }
 0x184   : > { %19989 = vst [vmem:[#allocation54_spill] sm:$0xff] %v16711_v13  ;;  %v16716_v45 = vpop.f32.mrb[79].mxu0  ;;  %2657 = vst.msk [vmem:[#allocation2 + $0x28] sm:$0xf] %vm2633_vm1, %v19871_v37  ;;  %v2718_v29 = vld [vmem:[#allocation2 + $0xa4] sm:$0x1] }
 0x185   : > { %19990 = vst [vmem:[#allocation55_spill] sm:$0xff] %v16716_v45  ;;  %2661 = vst.msk [vmem:[#allocation2 + $0x30] sm:$0xf] %vm2633_vm1, %v19871_v37 }
 0x186   : > { %14468 = vmatmul.mubr.msk.bf16.gmra.mrb[184].mxu0 %vm1128_vm0, %v15790_v30  ;;  %2665 = vst.msk [vmem:[#allocation2 + $0x38] sm:$0xf] %vm2633_vm1, %v19871_v37  ;;  %2669 = vst.msk [vmem:[#allocation2 + $0x40] sm:$0xf] %vm2633_vm1, %v19871_v37 }
 0x187   : > { %14471 = vmatprep.mubr.msk.bf16.mxu0 %vm1128_vm0, %v15791_v32  ;;  %2673 = vst.msk [vmem:[#allocation2 + $0x48] sm:$0xf] %vm2633_vm1, %v19871_v37  ;;  %2677 = vst.msk [vmem:[#allocation2 + $0x50] sm:$0xf] %vm2633_vm1, %v19871_v37 }
 0x188   : > { %2681 = vst.msk [vmem:[#allocation2 + $0x58] sm:$0xf] %vm2633_vm1, %v19871_v37  ;;  %2685 = vst.msk [vmem:[#allocation2 + $0x60] sm:$0xf] %vm2633_vm1, %v19871_v37 }
 0x189   : > { %v16722_v12 = vpop.f32.mrb[80].mxu0  ;;  %2689 = vst.msk [vmem:[#allocation2 + $0x68] sm:$0xf] %vm2633_vm1, %v19871_v37  ;;  %2693 = vst.msk [vmem:[#allocation2 + $0x70] sm:$0xf] %vm2633_vm1, %v19871_v37 }
 0x18a   : > { %19991 = vst [vmem:[#allocation56_spill] sm:$0xff] %v16722_v12  ;;  %v16726_v31 = vpop.f32.mrb[81].mxu0  ;;  %2697 = vst.msk [vmem:[#allocation2 + $0x78] sm:$0xf] %vm2633_vm1, %v19871_v37 }
 0x18b   : > { %19992 = vst [vmem:[#allocation57_spill] sm:$0xff] %v16726_v31  ;;  %v16731_v13 = vpop.f32.mrb[82].mxu0  ;;  %2701 = vst.msk [vmem:[#allocation2 + $0x80] sm:$0xf] %vm2633_vm1, %v19871_v37 }
 0x18c   : > { %19993 = vst [vmem:[#allocation58_spill] sm:$0xff] %v16731_v13  ;;  %v16735_v45 = vpop.f32.mrb[83].mxu0  ;;  %2705 = vst.msk [vmem:[#allocation2 + $0x88] sm:$0xf] %vm2633_vm1, %v19871_v37  ;;  %v2642_v13 = vld [vmem:[#allocation2 + $0xc] sm:$0x1] }
 0x18d   : > { %19994 = vst [vmem:[#allocation59_spill] sm:$0xff] %v16735_v45  ;;  %2709 = vst.msk [vmem:[#allocation2 + $0x90] sm:$0xf] %vm2633_vm1, %v19871_v37 }
 0x18e   : > { %14472 = vmatmul.mubr.msk.bf16.gmra.mrb[188].mxu0 %vm1128_vm0, %v15792_v36  ;;  %2713 = vst.msk [vmem:[#allocation2 + $0x98] sm:$0xf] %vm2633_vm1, %v19871_v37  ;;  %2717 = vst.msk [vmem:[#allocation2 + $0xa0] sm:$0xf] %vm2633_vm1, %v19871_v37 }
 0x18f   : > { %2721 = vst.msk [vmem:[#allocation2 + $0xa8] sm:$0xf] %vm2633_vm1, %v19871_v37  ;;  %2725 = vst.msk [vmem:[#allocation2 + $0xb0] sm:$0xf] %vm2633_vm1, %v19871_v37 }
 0x190   : > { %2729 = vst.msk [vmem:[#allocation2 + $0xb8] sm:$0xf] %vm2633_vm1, %v19871_v37  ;;  %2733 = vst.msk [vmem:[#allocation2 + $0xc0] sm:$0xf] %vm2633_vm1, %v19871_v37 }
 0x191   : > { %v16740_v32 = vpop.f32.mrb[84].mxu0  ;;  %2737 = vst.msk [vmem:[#allocation2 + $0xc8] sm:$0xf] %vm2633_vm1, %v19871_v37  ;;  %2741 = vst.msk [vmem:[#allocation2 + $0xd0] sm:$0xf] %vm2633_vm1, %v19871_v37 }
 0x192   : > { %19995 = vst [vmem:[#allocation60_spill] sm:$0xff] %v16740_v32  ;;  %v16744_v12 = vpop.f32.mrb[85].mxu0  ;;  %2745 = vst.msk [vmem:[#allocation2 + $0xd8] sm:$0xf] %vm2633_vm1, %v19871_v37  ;;  %v15796_v32 = vld [vmem:[%s19828_s3 + $0x18] sm:$0xff]  }
 0x193   : > { %19996 = vst [vmem:[#allocation61_spill] sm:$0xff] %v16744_v12  ;;  %v16748_v31 = vpop.f32.mrb[86].mxu0  ;;  %2749 = vst.msk [vmem:[#allocation2 + $0xe0] sm:$0xf] %vm2633_vm1, %v19871_v37  ;;  %14765 = vmatprep.subr.bf16.mxu0 %v15796_v32  ;;  %14477 = vmatprep.subr.bf16.mxu1 %v15796_v32 }
 0x194   : > { %19997 = vst [vmem:[#allocation62_spill] sm:$0xff] %v16748_v31  ;;  %2753 = vst.msk [vmem:[#allocation2 + $0xe8] sm:$0xf] %vm2633_vm1, %v19871_v37  ;;  %v16856_v24 = vpop.f32.mrb[87].mxu0  ;;  %14766 = vmatpush3.bf16.msra.mxu0 %v15796_v32  ;;  %14478 = vmatpush3.bf16.msra.mxu1 %v15796_v32  ;;  %v2691_v31 = vsel %vm16922_vm4, 0, %v2690_v53 }
 0x195   : > { %2757 = vst.msk [vmem:[#allocation2 + $0xf0] sm:$0xf] %vm2633_vm1, %v19871_v37  ;;  %2761 = vst.msk [vmem:[#allocation2 + $0xf8] sm:$0xf] %vm2633_vm1, %v19871_v37 }
 0x196   : > { %2765 = vst.msk [vmem:[#allocation2 + $0x100] sm:$0xf] %vm2633_vm1, %v19871_v37  ;;  %2769 = vst.msk [vmem:[#allocation2 + $0x108] sm:$0xf] %vm2633_vm1, %v19871_v37 }
 0x197   : > { %2773 = vst.msk [vmem:[#allocation2 + $0x110] sm:$0xf] %vm2633_vm1, %v19871_v37  ;;  %2777 = vst.msk [vmem:[#allocation2 + $0x118] sm:$0xf] %vm2633_vm1, %v19871_v37 }
 0x198   : > { %2781 = vst.msk [vmem:[#allocation2 + $0x120] sm:$0xf] %vm2633_vm1, %v19871_v37  ;;  %2785 = vst.msk [vmem:[#allocation2 + $0x128] sm:$0xf] %vm2633_vm1, %v19871_v37 }
 0x199   : > { %2789 = vst.msk [vmem:[#allocation2 + $0x130] sm:$0xf] %vm2633_vm1, %v19871_v37  ;;  %2793 = vst.msk [vmem:[#allocation2 + $0x138] sm:$0xf] %vm2633_vm1, %v19871_v37  ;;  %v16860_v30 = vpop.f32.mrb[88].mxu0 }
 0x19a   : > { %2801 = vst.msk [vmem:[#allocation2 + $0x148] sm:$0xf] %vm2633_vm1, %v19871_v37  ;;  %2805 = vst.msk [vmem:[#allocation2 + $0x150] sm:$0xf] %vm2633_vm1, %v19871_v37  ;;  %v16864_v48 = vpop.f32.mrb[89].mxu0 }
 0x19b   : > { %2809 = vst.msk [vmem:[#allocation2 + $0x158] sm:$0xf] %vm2633_vm1, %v19871_v37  ;;  %2813 = vst.msk [vmem:[#allocation2 + $0x160] sm:$0xf] %vm2633_vm1, %v19871_v37  ;;  %v16868_v47 = vpop.f32.mrb[90].mxu0 }
 0x19c   : > { %2817 = vst.msk [vmem:[#allocation2 + $0x168] sm:$0xf] %vm2633_vm1, %v19871_v37  ;;  %2821 = vst.msk [vmem:[#allocation2 + $0x170] sm:$0xf] %vm2633_vm1, %v19871_v37  ;;  %v16872_v36 = vpop.f32.mrb[91].mxu0 }
 0x19d   : > { %2825 = vst.msk [vmem:[#allocation2 + $0x178] sm:$0xf] %vm2633_vm1, %v19871_v37  ;;  %2829 = vst.msk [vmem:[#allocation2 + $0x180] sm:$0xf] %vm2633_vm1, %v19871_v37 }
 0x19e   : > { %2833 = vst.msk [vmem:[#allocation2 + $0x188] sm:$0xf] %vm2633_vm1, %v19871_v37  ;;  %2837 = vst.msk [vmem:[#allocation2 + $0x190] sm:$0xf] %vm2633_vm1, %v19871_v37 }
 0x19f   : > { %2841 = vst.msk [vmem:[#allocation2 + $0x198] sm:$0xf] %vm2633_vm1, %v19871_v37  ;;  %19998 = vst [vmem:[#allocation63_spill] sm:$0xff] %v16856_v24 }
 0x1a0   : > { %19999 = vst [vmem:[#allocation64_spill] sm:$0xff] %v16860_v30  ;;  %20000 = vst [vmem:[#allocation65_spill] sm:$0xff] %v16864_v48  ;;  %v2695_v30 = vsel %vm16922_vm4, 0, %v2694_v3  ;;  %v2643_v3 = vsel %vm16922_vm4, 0, %v2642_v13 }
 0x1a1   : > { %20001 = vst [vmem:[#allocation66_spill] sm:$0xff] %v16868_v47  ;;  %20002 = vst [vmem:[#allocation67_spill] sm:$0xff] %v16872_v36  ;;  %v16882_v12 = vpop.f32.mrb[92].mxu0 }
 0x1a2   : > { %20003 = vst [vmem:[#allocation68_spill] sm:$0xff] %v16882_v12  ;;  %v16886_v47 = vpop.f32.mrb[93].mxu0  ;;  %2696 = vst [vmem:[#allocation2 + $0x74] sm:$0x1] %v2695_v30 }
 0x1a3   : > { %20004 = vst [vmem:[#allocation69_spill] sm:$0xff] %v16886_v47  ;;  %v16890_v36 = vpop.f32.mrb[94].mxu0  ;;  %2692 = vst [vmem:[#allocation2 + $0x6c] sm:$0x1] %v2691_v31  ;;  %v2702_v31 = vld [vmem:[#allocation2 + $0x84] sm:$0x1] }
 0x1a4   : > { %20005 = vst [vmem:[#allocation70_spill] sm:$0xff] %v16890_v36  ;;  %v16894_v61 = vpop.f32.mrb[95].mxu0  ;;  %2644 = vst [vmem:[#allocation2 + $0xc] sm:$0x1] %v2643_v3  ;;  %v2703_v50 = vsel %vm16922_vm4, 0, %v2702_v31  ;;  %v2651_v31 = vsel %vm16922_vm4, 0, %v2650_v34 }
 0x1a5   : > { %20006 = vst [vmem:[#allocation71_spill] sm:$0xff] %v16894_v61  ;;  %2704 = vst [vmem:[#allocation2 + $0x84] sm:$0x1] %v2703_v50  ;;  %v2710_v50 = vld [vmem:[#allocation2 + $0x94] sm:$0x1] }
 0x1a6   : > { %2656 = vst [vmem:[#allocation2 + $0x24] sm:$0x1] %v2655_v39  ;;  %2652 = vst [vmem:[#allocation2 + $0x1c] sm:$0x1] %v2651_v31  ;;  %v2711_v21 = vsel %vm16922_vm4, 0, %v2710_v50 }
 0x1a7   : > { %2712 = vst [vmem:[#allocation2 + $0x94] sm:$0x1] %v2711_v21  ;;  %2708 = vst [vmem:[#allocation2 + $0x8c] sm:$0x1] %v2707_v6  ;;  %v2662_v34 = vld [vmem:[#allocation2 + $0x34] sm:$0x1] }
 0x1a8   : > { %v2663_v31 = vsel %vm16922_vm4, 0, %v2662_v34  ;;  %v2719_v6 = vsel %vm16922_vm4, 0, %v2718_v29  ;;  %v16995_v34 = vld [vmem:[%s19828_s3] sm:$0xff]  }
 0x1a9   : > { %v16898_v37 = vpop.f32.mrb[96].mxu0  ;;  %2664 = vst [vmem:[#allocation2 + $0x34] sm:$0x1] %v2663_v31  ;;  %2720 = vst [vmem:[#allocation2 + $0xa4] sm:$0x1] %v2719_v6  ;;  %14779 = vmatprep.subr.bf16.mxu0 %v16995_v34  ;;  %14491 = vmatprep.subr.bf16.mxu1 %v16995_v34 }
 0x1aa   : > { %v16900_v12 = vpop.f32.mrb[97].mxu0 }
 0x1ab   : > { %v16902_v1 = vpop.f32.mrb[98].mxu0 }
 0x1ac   : > { %v16904_v48 = vpop.f32.mrb[99].mxu0 }
 0x1b1   : > { %v16906_v24 = vpop.f32.mrb[100].mxu0 }
 0x1b2   : > { %v16908_v47 = vpop.f32.mrb[101].mxu0 }
 0x1b3   : > { %v16910_v32 = vpop.f32.mrb[102].mxu0 }
 0x1b4   : > { %v16912_v18 = vpop.f32.mrb[103].mxu0 }
 0x1b9   : > { %v16914_v36 = vpop.f32.mrb[104].mxu0 }
 0x1ba   : > { %v16916_v9 = vpop.f32.mrb[105].mxu0 }
 0x1bb   : > { %v16918_v56 = vpop.f32.mrb[106].mxu0 }
 0x1bc   : > { %v16920_v61 = vpop.f32.mrb[107].mxu0 }
 0x1c1   : > { %v16926_v54 = vpop.f32.mrb[108].mxu0 }
 0x1c2   : > { %v16930_v52 = vpop.f32.mrb[109].mxu0 }
 0x1c3   : > { %v16934_v45 = vpop.f32.mrb[110].mxu0 }
 0x1c4   : > { %v16938_v44 = vpop.f32.mrb[111].mxu0 }
 0x1c9   : > { %v16942_v42 = vpop.f32.mrb[112].mxu0 }
 0x1ca   : > { %v16944_v30 = vpop.f32.mrb[113].mxu0 }
 0x1cb   : > { %v16946_v53 = vpop.f32.mrb[114].mxu0 }
 0x1cc   : > { %v16948_v41 = vpop.f32.mrb[115].mxu0 }
 0x1d1   : > { %v16954_v13 = vpop.f32.mrb[116].mxu0 }
 0x1d2   : > { %v16956_v3 = vpop.f32.mrb[117].mxu0 }
 0x1d3   : > { %v16958_v38 = vpop.f32.mrb[118].mxu0 }
 0x1d4   : > { %20009 = vst [vmem:[#allocation72_spill] sm:$0xff] %v16958_v38  ;;  %v16960_v35 = vpop.f32.mrb[119].mxu0 }
 0x1d5   : > { %20010 = vst [vmem:[#allocation73_spill] sm:$0xff] %v16960_v35 }
 0x1d9   : > { %v16966_v40 = vpop.f32.mrb[120].mxu0 }
 0x1da   : > { %20011 = vst [vmem:[#allocation74_spill] sm:$0xff] %v16966_v40  ;;  %v16968_v46 = vpop.f32.mrb[121].mxu0  ;;  %v2658_v40 = vld [vmem:[#allocation2 + $0x2c] sm:$0x1] }
 0x1db   : > { %20012 = vst [vmem:[#allocation75_spill] sm:$0xff] %v16968_v46  ;;  %v16972_v28 = vpop.f32.mrb[122].mxu0  ;;  %v2659_v46 = vsel %vm16922_vm4, 0, %v2658_v40 }
 0x1dc   : > { %20013 = vst [vmem:[#allocation76_spill] sm:$0xff] %v16972_v28  ;;  %v16976_v39 = vpop.f32.mrb[123].mxu0  ;;  %2660 = vst [vmem:[#allocation2 + $0x2c] sm:$0x1] %v2659_v46 }
 0x1dd   : > { %20014 = vst [vmem:[#allocation77_spill] sm:$0xff] %v16976_v39  ;;  %v2714_v39 = vld [vmem:[#allocation2 + $0x9c] sm:$0x1] }
 0x1de   : > { %v2715_v40 = vsel %vm16922_vm4, 0, %v2714_v39 }
 0x1df   : > { %2716 = vst [vmem:[#allocation2 + $0x9c] sm:$0x1] %v2715_v40 }
 0x1e1   : > { %v16982_v50 = vpop.f32.mrb[124].mxu0 }
 0x1e2   : > { %20015 = vst [vmem:[#allocation78_spill] sm:$0xff] %v16982_v50  ;;  %v16984_v28 = vpop.f32.mrb[125].mxu0  ;;  %v2726_v50 = vld [vmem:[#allocation2 + $0xb4] sm:$0x1] }
 0x1e3   : > { %20016 = vst [vmem:[#allocation79_spill] sm:$0xff] %v16984_v28  ;;  %v16986_v21 = vpop.f32.mrb[126].mxu0  ;;  %v2666_v28 = vld [vmem:[#allocation2 + $0x3c] sm:$0x1] }
 0x1e4   : > { %20017 = vst [vmem:[#allocation80_spill] sm:$0xff] %v16986_v21  ;;  %v16988_v26 = vpop.f32.mrb[127].mxu0  ;;  %v2667_v39 = vsel %vm16922_vm4, 0, %v2666_v28  ;;  %v2678_v28 = vld [vmem:[#allocation2 + $0x54] sm:$0x1] }
 0x1e5   : > { %20018 = vst [vmem:[#allocation81_spill] sm:$0xff] %v16988_v26  ;;  %v2670_v26 = vld [vmem:[#allocation2 + $0x44] sm:$0x1]  ;;  %2668 = vst [vmem:[#allocation2 + $0x3c] sm:$0x1] %v2667_v39  ;;  %v2679_v39 = vsel %vm16922_vm4, 0, %v2678_v28 }
 0x1e6   : > { %v2671_v6 = vsel %vm16922_vm4, 0, %v2670_v26  ;;  %2680 = vst [vmem:[#allocation2 + $0x54] sm:$0x1] %v2679_v39 }
 0x1e7   : > { %2672 = vst [vmem:[#allocation2 + $0x44] sm:$0x1] %v2671_v6 }
 0x1e9   : > { %v17001_v46 = vpop.f32.mrb[128].mxu0 }
 0x1ea   : > { %20019 = vst [vmem:[#allocation82_spill] sm:$0xff] %v17001_v46  ;;  %v17003_v31 = vpop.f32.mrb[129].mxu0 }
 0x1eb   : > { %20020 = vst [vmem:[#allocation83_spill] sm:$0xff] %v17003_v31  ;;  %v17005_v29 = vpop.f32.mrb[130].mxu0  ;;  %v2722_v31 = vld [vmem:[#allocation2 + $0xac] sm:$0x1] }
 0x1ec   : > { %20021 = vst [vmem:[#allocation84_spill] sm:$0xff] %v17005_v29  ;;  %v17007_v21 = vpop.f32.mrb[131].mxu0  ;;  %v2727_v29 = vsel %vm16922_vm4, 0, %v2726_v50  ;;  %v2723_v26 = vsel %vm16922_vm4, 0, %v2722_v31  ;;  %v2734_v31 = vld [vmem:[#allocation2 + $0xc4] sm:$0x1] }
 0x1ed   : > { %20022 = vst [vmem:[#allocation85_spill] sm:$0xff] %v17007_v21  ;;  %2728 = vst [vmem:[#allocation2 + $0xb4] sm:$0x1] %v2727_v29 }
 0x1ee   : > { %2724 = vst [vmem:[#allocation2 + $0xac] sm:$0x1] %v2723_v26  ;;  %v2735_v26 = vsel %vm16922_vm4, 0, %v2734_v31 }
 0x1ef   : > { %2736 = vst [vmem:[#allocation2 + $0xc4] sm:$0x1] %v2735_v26 }
 0x1f1   : > { %v17013_v40 = vpop.f32.mrb[132].mxu0 }
 0x1f2   : > { %20023 = vst [vmem:[#allocation86_spill] sm:$0xff] %v17013_v40  ;;  %v17015_v46 = vpop.f32.mrb[133].mxu0  ;;  %v2674_v40 = vld [vmem:[#allocation2 + $0x4c] sm:$0x1] }
 0x1f3   : > { %20024 = vst [vmem:[#allocation87_spill] sm:$0xff] %v17015_v46  ;;  %v17019_v35 = vpop.f32.mrb[134].mxu0  ;;  %v2675_v46 = vsel %vm16922_vm4, 0, %v2674_v40 }
 0x1f4   : > { %20025 = vst [vmem:[#allocation88_spill] sm:$0xff] %v17019_v35  ;;  %v17023_v6 = vpop.f32.mrb[135].mxu0  ;;  %2676 = vst [vmem:[#allocation2 + $0x4c] sm:$0x1] %v2675_v46 }
 0x1f5   : > { %20026 = vst [vmem:[#allocation89_spill] sm:$0xff] %v17023_v6  ;;  %v2730_v6 = vld [vmem:[#allocation2 + $0xbc] sm:$0x1] }
 0x1f6   : > { %v2731_v28 = vsel %vm16922_vm4, 0, %v2730_v6  ;;  %v2638_v6 = vld [vmem:[#allocation2 + $0x4] sm:$0x1] }
 0x1f7   : > { %2732 = vst [vmem:[#allocation2 + $0xbc] sm:$0x1] %v2731_v28  ;;  %v2639_v26 = vsel %vm16922_vm4, 0, %v2638_v6 }
 0x1f8   : > { %2640 = vst [vmem:[#allocation2 + $0x4] sm:$0x1] %v2639_v26  ;;  %v20036_v26 = vmax.f32 %v16420_v58, %v16566_v25 }
 0x1f9   : > { %v17029_v50 = vpop.f32.mrb[136].mxu0 }
 0x1fa   : > { %20027 = vst [vmem:[#allocation90_spill] sm:$0xff] %v17029_v50  ;;  %v17031_v35 = vpop.f32.mrb[137].mxu0  ;;  %v2682_v50 = vld [vmem:[#allocation2 + $0x5c] sm:$0x1] }
 0x1fb   : > { %20028 = vst [vmem:[#allocation91_spill] sm:$0xff] %v17031_v35  ;;  %v17033_v29 = vpop.f32.mrb[138].mxu0  ;;  %v2686_v35 = vld [vmem:[#allocation2 + $0x64] sm:$0x1]  ;;  %v2683_v31 = vsel %vm16922_vm4, 0, %v2682_v50  ;;  %v20035_v50 = vmax.f32 %v16418_v57, %v16562_v19  ;;  %v20038_v57 = vmax.f32 %v16426_v62, %v16576_v43 }
 0x1fc   : > { %20029 = vst [vmem:[#allocation92_spill] sm:$0xff] %v17033_v29  ;;  %v17035_v21 = vpop.f32.mrb[139].mxu0  ;;  %2684 = vst [vmem:[#allocation2 + $0x5c] sm:$0x1] %v2683_v31 }
 0x1fd   : > { %20030 = vst [vmem:[#allocation93_spill] sm:$0xff] %v17035_v21  ;;  %v2687_v21 = vsel %vm16922_vm4, 0, %v2686_v35 }
 0x1fe   : > { %2688 = vst [vmem:[#allocation2 + $0x64] sm:$0x1] %v2687_v21 }
 0x201   : > { %v17041_v40 = vpop.f32.mrb[140].mxu0 }
 0x202   : > { %20031 = vst [vmem:[#allocation94_spill] sm:$0xff] %v17041_v40  ;;  %v17043_v46 = vpop.f32.mrb[141].mxu0 }
 0x203   : > { %20032 = vst [vmem:[#allocation95_spill] sm:$0xff] %v17043_v46  ;;  %v17045_v39 = vpop.f32.mrb[142].mxu0 }
 0x204   : > { %20033 = vst [vmem:[#allocation96_spill] sm:$0xff] %v17045_v39  ;;  %v17047_v29 = vpop.f32.mrb[143].mxu0 }
 0x205   : > { %20034 = vst [vmem:[#allocation97_spill] sm:$0xff] %v17047_v29  ;;  %v17059_v29 = vld [vmem:[%s19827_s2] ss:$0 sm:$0xff] }
 0x209   : > { %v14429_v28 = vpop.f32.mrb[144].mxu0 }
 0x20a   : > { %v2268_v39 = vmax.f32 %v16898_v37, %v14429_v28  ;;  %v2027_v46 = vpop.f32.mrb[145].mxu0 }
 0x20b   : > { %v2266_v35 = vmax.f32 %v16900_v12, %v2027_v46  ;;  %v14430_v21 = vpop.f32.mrb[146].mxu0 }
 0x20c   : > { %v2316_v31 = vmax.f32 %v20035_v50, %v2268_v39  ;;  %v2269_v40 = vmax.f32 %v16902_v1, %v14430_v21  ;;  %v2030_v6 = vpop.f32.mrb[147].mxu0 }
 0x20d   : > { %v2314_v37 = vmax.f32 %v20036_v26, %v2266_v35  ;;  %v2267_v28 = vmax.f32 %v16904_v48, %v2030_v6 }
 0x20e   : > { %v2371_v38 = vadd.f32 %v17059_v29, %v2316_v31  ;;  %v2317_v12 = vmax.f32 %v20037_v59, %v2269_v40 }
 0x20f   : > { %v2369_v46 = vadd.f32 %v17059_v29, %v2314_v37  ;;  %v2315_v19 = vmax.f32 %v20038_v57, %v2267_v28  ;;  %v20043_v57 = vld [vmem:[#allocation34_spill] sm:$0xff] }
 0x210   : > { %v2419_v1 = vmax.f32 %v2371_v38, 0.0  ;;  %v2372_v39 = vadd.f32 %v17059_v29, %v2317_v12  ;;  %v20039_v38 = vmax.f32 %v16430_v63, %v16582_v49 }
 0x211   : > { %v2417_v21 = vmax.f32 %v2369_v46, 0.0  ;;  %v2370_v58 = vadd.f32 %v17059_v29, %v2315_v19  ;;  %v14433_v25 = vpop.f32.mrb[148].mxu0  ;;  %v20041_v46 = vld [vmem:[#allocation33_spill] sm:$0xff]  ;;  %v20044_v19 = vmax.f32 %v16438_v4, %v20043_v57 }
 0x212   : > { %v13762_v48 = vpack.c.bf16 %v2419_v1, %v2419_v1  ;;  %v2420_v35 = vmax.f32 %v2372_v39, 0.0  ;;  %v2272_v50 = vmax.f32 %v16906_v24, %v14433_v25  ;;  %v2043_v31 = vpop.f32.mrb[149].mxu0  ;;  %v20040_v24 = vmax.f32 %v16432_v0, %v16586_v55 }
 0x213   : > { %v13760_v60 = vpack.c.bf16 %v2417_v21, %v2417_v21  ;;  %v2418_v33 = vmax.f32 %v2370_v58, 0.0  ;;  %v2270_v59 = vmax.f32 %v16908_v47, %v2043_v31  ;;  %v14434_v40 = vpop.f32.mrb[150].mxu0  ;;  %v20042_v63 = vmax.f32 %v16435_v2, %v20041_v46 }
 0x214   : > { %2847 = vst.msk [vmem:[#allocation2 + $0x140] sm:$0xf] %vm2633_vm1, %v13762_v48  ;;  %v13763_v62 = vpack.c.bf16 %v2420_v35, %v2420_v35  ;;  %v2320_v43 = vmax.f32 %v20039_v38, %v2272_v50  ;;  %v2273_v6 = vmax.f32 %v16910_v32, %v14434_v40  ;;  %v2046_v26 = vpop.f32.mrb[151].mxu0 }
 0x215   : > { %2846 = vst.msk [vmem:[#allocation2 + $0x138] sm:$0xf] %vm2633_vm1, %v13760_v60  ;;  %v13761_v37 = vpack.c.bf16 %v2418_v33, %v2418_v33  ;;  %v2318_v28 = vmax.f32 %v20040_v24, %v2270_v59  ;;  %v2271_v47 = vmax.f32 %v16912_v18, %v2046_v26  ;;  %v20045_v33 = vmax.f32 %v16442_v5, %v16602_v51  ;;  %v20049_v5 = vld [vmem:[#allocation36_spill] sm:$0xff] }
 0x216   : > { %2860 = vst.msk [vmem:[#allocation2 + $0xe0] sm:$0xf] %vm2633_vm1, %v13763_v62  ;;  %v2375_v12 = vadd.f32 %v17059_v29, %v2320_v43  ;;  %v2321_v49 = vmax.f32 %v20042_v63, %v2273_v6  ;;  %v20046_v43 = vld [vmem:[#allocation3_spill] sm:$0xff]  ;;  %v20050_v51 = vmax.f32 %v16447_v8, %v20049_v5 }
 0x217   : > { %2859 = vst.msk [vmem:[#allocation2 + $0xd8] sm:$0xf] %vm2633_vm1, %v13761_v37  ;;  %v2373_v32 = vadd.f32 %v17059_v29, %v2318_v28  ;;  %v2319_v1 = vmax.f32 %v20044_v19, %v2271_v47  ;;  %v20047_v6 = vld [vmem:[#allocation35_spill] sm:$0xff] }
 0x218   : > { %v2423_v0 = vmax.f32 %v2375_v12, 0.0  ;;  %v2376_v55 = vadd.f32 %v17059_v29, %v2321_v49  ;;  %v20048_v26 = vmax.f32 %v20046_v43, %v20047_v6  ;;  %v20051_v12 = vld [vmem:[#allocation37_spill] sm:$0xff]  ;;  %v2746_v49 = vld [vmem:[#allocation2 + $0xdc] sm:$0x1] }
 0x219   : > { %v2421_v18 = vmax.f32 %v2373_v32, 0.0  ;;  %v2374_v39 = vadd.f32 %v17059_v29, %v2319_v1  ;;  %v14437_v21 = vpop.f32.mrb[152].mxu0  ;;  %v20052_v46 = vmax.f32 %v16450_v10, %v20051_v12  ;;  %v2747_v19 = vsel %vm16922_vm4, 0, %v2746_v49  ;;  %v2750_v1 = vld [vmem:[#allocation2 + $0xe4] sm:$0x1] }
 0x21a   : > { %v13766_v58 = vpack.c.bf16 %v2423_v0, %v2423_v0  ;;  %v2424_v25 = vmax.f32 %v2376_v55, 0.0  ;;  %v2276_v2 = vmax.f32 %v16914_v36, %v14437_v21  ;;  %v2059_v48 = vpop.f32.mrb[153].mxu0  ;;  %2748 = vst [vmem:[#allocation2 + $0xdc] sm:$0x1] %v2747_v19  ;;  %v2751_v10 = vsel %vm16922_vm4, 0, %v2750_v1 }
 0x21b   : > { %v13764_v35 = vpack.c.bf16 %v2421_v18, %v2421_v18  ;;  %v2422_v50 = vmax.f32 %v2374_v39, 0.0  ;;  %v2274_v31 = vmax.f32 %v16916_v9, %v2059_v48  ;;  %v14438_v60 = vpop.f32.mrb[154].mxu0  ;;  %2752 = vst [vmem:[#allocation2 + $0xe4] sm:$0x1] %v2751_v10  ;;  %v20061_v1 = vmax.f32 %v16466_v17, %v16642_v27  ;;  %v20062_v10 = vld [vmem:[#allocation5_spill] sm:$0xff]  ;;  %v20065_v27 = vld [vmem:[#allocation42_spill] sm:$0xff] }
 0x21c   : > { %2849 = vst.msk [vmem:[#allocation2 + $0x150] sm:$0xf] %vm2633_vm1, %v13766_v58  ;;  %v13767_v4 = vpack.c.bf16 %v2424_v25, %v2424_v25  ;;  %v2324_v59 = vmax.f32 %v20045_v33, %v2276_v2  ;;  %v2277_v40 = vmax.f32 %v16918_v56, %v14438_v60  ;;  %v2062_v62 = vpop.f32.mrb[155].mxu0  ;;  %v15794_v38 = vld [vmem:[#allocation2 + $0x138] ss:$8 sps:$4 sm:$0xff]   ;;  %v20053_v60 = vmax.f32 %v16454_v11, %v16622_v7 }
 0x21d   : > { %2848 = vst.msk [vmem:[#allocation2 + $0x148] sm:$0xf] %vm2633_vm1, %v13764_v35  ;;  %v13765_v36 = vpack.c.bf16 %v2422_v50, %v2422_v50  ;;  %v2322_v37 = vmax.f32 %v20048_v26, %v2274_v31  ;;  %v2275_v9 = vmax.f32 %v16920_v61, %v2062_v62  ;;  %14767 = vmatprep.mubr.msk.bf16.mxu0 %vm1128_vm0, %v15794_v38  ;;  %v2742_v61 = vld [vmem:[#allocation2 + $0xd4] sm:$0x1]  ;;  %v20055_v38 = vld [vmem:[#allocation38_spill] sm:$0xff]  ;;  %v20057_v7 = vld [vmem:[#allocation39_spill] sm:$0xff] }
 0x21e   : > { %2862 = vst.msk [vmem:[#allocation2 + $0xf0] sm:$0xf] %vm2633_vm1, %v13767_v4  ;;  %v2379_v24 = vadd.f32 %v17059_v29, %v2324_v59  ;;  %v2325_v28 = vmax.f32 %v20050_v51, %v2277_v40  ;;  %v15795_v56 = vld [vmem:[#allocation2 + $0xd0] ss:$8 sps:$4 sm:$0xff]   ;;  %v2743_v8 = vsel %vm16922_vm4, 0, %v2742_v61 }
 0x21f   : > { %2861 = vst.msk [vmem:[#allocation2 + $0xe8] sm:$0xf] %vm2633_vm1, %v13765_v36  ;;  %v2377_v47 = vadd.f32 %v17059_v29, %v2322_v37  ;;  %v2323_v63 = vmax.f32 %v20052_v46, %v2275_v9  ;;  %14479 = vmatprep.mubr.msk.bf16.mxu1 %vm1128_vm0, %v15795_v56  ;;  %2744 = vst [vmem:[#allocation2 + $0xd4] sm:$0x1] %v2743_v8  ;;  %v16158_v15 = vld [vmem:[#allocation2 + $0xd0] ss:$8 sps:$4 sm:$0xff]  }
 0x220   : > { %v2427_v32 = vmax.f32 %v2379_v24, 0.0  ;;  %v2380_v57 = vadd.f32 %v17059_v29, %v2325_v28  ;;  %v20059_v24 = vld [vmem:[#allocation40_spill] sm:$0xff] }
 0x221   : > { %v2425_v0 = vmax.f32 %v2377_v47, 0.0  ;;  %v2378_v55 = vadd.f32 %v17059_v29, %v2323_v63  ;;  %v14441_v18 = vpop.f32.mrb[156].mxu0  ;;  %v20060_v5 = vmax.f32 %v16462_v16, %v20059_v24 }
 0x222   : > { %v13770_v39 = vpack.c.bf16 %v2427_v32, %v2427_v32  ;;  %v2428_v21 = vmax.f32 %v2380_v57, 0.0  ;;  %v2280_v58 = vmax.f32 %v16926_v54, %v14441_v18  ;;  %v2075_v25 = vpop.f32.mrb[157].mxu0  ;;  %v15810_v54 = vld [vmem:[%s19828_s3 + $0x8] sm:$0xff]  }
 0x223   : > { %v13768_v2 = vpack.c.bf16 %v2425_v0, %v2425_v0  ;;  %v2426_v48 = vmax.f32 %v2378_v55, 0.0  ;;  %v2278_v35 = vmax.f32 %v16930_v52, %v2075_v25  ;;  %v14442_v50 = vpop.f32.mrb[158].mxu0  ;;  %v20054_v52 = vld [vmem:[#allocation4_spill] sm:$0xff] }
 0x224   : > { %2851 = vst.msk [vmem:[#allocation2 + $0x160] sm:$0xf] %vm2633_vm1, %v13770_v39  ;;  %v13771_v31 = vpack.c.bf16 %v2428_v21, %v2428_v21  ;;  %v2328_v4 = vmax.f32 %v20053_v60, %v2280_v58  ;;  %v2281_v33 = vmax.f32 %v16934_v45, %v14442_v50  ;;  %v2078_v59 = vpop.f32.mrb[159].mxu0  ;;  %v15797_v40 = vld [vmem:[#allocation2 + $0x148] ss:$8 sps:$4 sm:$0xff]   ;;  %v20056_v36 = vmax.f32 %v20054_v52, %v20055_v38 }
 0x225   : > { %2850 = vst.msk [vmem:[#allocation2 + $0x158] sm:$0xf] %vm2633_vm1, %v13768_v2  ;;  %v13769_v62 = vpack.c.bf16 %v2426_v48, %v2426_v48  ;;  %v2279_v6 = vmax.f32 %v16938_v44, %v2078_v59  ;;  %v20058_v45 = vmax.f32 %v16459_v14, %v20057_v7  ;;  %14768 = vmatmul.mubr.msk.bf16.vlgmr.msra.gmra.mrb[192].mxu0 %vm1128_vm0, %v15797_v40  ;;  %v17168_v14 = vld [vmem:[%s19828_s3 + $0x20] sm:$0xff]  }
 0x226   : > { %v2326_v43 = vmax.f32 %v20056_v36, %v2278_v35  ;;  %2864 = vst.msk [vmem:[#allocation2 + $0x100] sm:$0xf] %vm2633_vm1, %v13771_v31  ;;  %v2383_v11 = vadd.f32 %v17059_v29, %v2328_v4  ;;  %v15798_v37 = vld [vmem:[#allocation2 + $0xe0] ss:$8 sps:$4 sm:$0xff]   ;;  %14780 = vmatpush3.bf16.msra.mxu0 %v16995_v34  ;;  %v2754_v36 = vld [vmem:[#allocation2 + $0xec] sm:$0x1] }
 0x227   : > { %v2329_v26 = vmax.f32 %v20058_v45, %v2281_v33  ;;  %2863 = vst.msk [vmem:[#allocation2 + $0xf8] sm:$0xf] %vm2633_vm1, %v13769_v62  ;;  %v2327_v51 = vmax.f32 %v20060_v5, %v2279_v6  ;;  %14480 = vmatmul.mubr.msk.bf16.vlgmr.msra.gmra.mrb[0].mxu1 %vm1128_vm0, %v15798_v37  ;;  %14781 = vmatprep.subr.bf16.mxu0 %v15810_v54  ;;  %v3576_v31 = vld [vmem:[#allocation2] sm:$0xf]  ;;  %v20069_v45 = vld [vmem:[#allocation44_spill] sm:$0xff] }
 0x228   : > { %v2381_v9 = vadd.f32 %v17059_v29, %v2326_v43  ;;  %v2431_v44 = vmax.f32 %v2383_v11, 0.0  ;;  %14492 = vmatpush3.bf16.msra.mxu1 %v16995_v34  ;;  %v3604_v38 = vshrl.u32 %v3576_v31, 16 }
 0x229   : > { %v2384_v28 = vadd.f32 %v17059_v29, %v2329_v26  ;;  %v2382_v47 = vadd.f32 %v17059_v29, %v2327_v51  ;;  %v14445_v12 = vpop.f32.mrb[160].mxu0  ;;  %14493 = vmatprep.subr.bf16.mxu1 %v15810_v54  ;;  %v20070_v26 = vmax.f32 %v16478_v23, %v20069_v45  ;;  %v20076_v23 = vld [vmem:[#allocation7_spill] sm:$0xff] }
 0x22a   : > { %v2429_v56 = vmax.f32 %v2381_v9, 0.0  ;;  %v13774_v16 = vpack.c.bf16 %v2431_v44, %v2431_v44  ;;  %v2284_v63 = vmax.f32 %v16942_v42, %v14445_v12  ;;  %v2091_v61 = vpop.f32.mrb[161].mxu0  ;;  %14782 = vmatpush3.bf16.msra.mxu0 %v15810_v54  ;;  %v20071_v9 = vld [vmem:[#allocation72_spill] sm:$0xff]  ;;  %v20075_v12 = vld [vmem:[#allocation73_spill] sm:$0xff] }
 0x22b   : > { %v2432_v46 = vmax.f32 %v2384_v28, 0.0  ;;  %v2430_v32 = vmax.f32 %v2382_v47, 0.0  ;;  %v2282_v57 = vmax.f32 %v16944_v30, %v2091_v61  ;;  %v14446_v8 = vpop.f32.mrb[162].mxu0  ;;  %14795 = vmatprep.subr.bf16.mxu0 %v17168_v14  ;;  %v20063_v30 = vld [vmem:[#allocation41_spill] sm:$0xff]  ;;  %v20072_v28 = vld [vmem:[#allocation6_spill] sm:$0xff] }
 0x22c   : > { %v13772_v49 = vpack.c.bf16 %v2429_v56, %v2429_v56  ;;  %2853 = vst.msk [vmem:[#allocation2 + $0x170] sm:$0xf] %vm2633_vm1, %v13774_v16  ;;  %v2332_v0 = vmax.f32 %v20061_v1, %v2284_v63  ;;  %v2285_v34 = vmax.f32 %v16946_v53, %v14446_v8  ;;  %v2094_v55 = vpop.f32.mrb[163].mxu0  ;;  %v15799_v18 = vld [vmem:[#allocation2 + $0x158] ss:$8 sps:$4 sm:$0xff]   ;;  %v20064_v39 = vmax.f32 %v20062_v10, %v20063_v30  ;;  %v20073_v56 = vld [vmem:[#allocation45_spill] sm:$0xff] }
 0x22d   : > { %v13775_v19 = vpack.c.bf16 %v2432_v46, %v2432_v46  ;;  %v13773_v42 = vpack.c.bf16 %v2430_v32, %v2430_v32  ;;  %v2283_v58 = vmax.f32 %v16948_v41, %v2094_v55  ;;  %14494 = vmatpush3.bf16.msra.mxu1 %v15810_v54  ;;  %v20066_v53 = vmax.f32 %v16471_v20, %v20065_v27  ;;  %v20067_v41 = vld [vmem:[#allocation43_spill] sm:$0xff]  ;;  %v20077_v63 = vld [vmem:[#allocation46_spill] sm:$0xff]  ;;  %v20079_v8 = vld [vmem:[#allocation8_spill] sm:$0xff] }
 0x22e   : > { %2852 = vst.msk [vmem:[#allocation2 + $0x168] sm:$0xf] %vm2633_vm1, %v13772_v49  ;;  %v2330_v21 = vmax.f32 %v20064_v39, %v2282_v57  ;;  %v2387_v17 = vadd.f32 %v17059_v29, %v2332_v0  ;;  %14771 = vmatprep.mubr.msk.bf16.mxu0 %vm1128_vm0, %v15799_v18  ;;  %v15800_v2 = vld [vmem:[#allocation2 + $0xf0] ss:$8 sps:$4 sm:$0xff]   ;;  %14507 = vmatprep.subr.bf16.mxu1 %v17168_v14  ;;  %v3577_v39 = vld [vmem:[#allocation2 + $0x4] sm:$0x1] }
 0x22f   : > { %2866 = vst.msk [vmem:[#allocation2 + $0x110] sm:$0xf] %vm2633_vm1, %v13775_v19  ;;  %v2333_v25 = vmax.f32 %v20066_v53, %v2285_v34  ;;  %2865 = vst.msk [vmem:[#allocation2 + $0x108] sm:$0xf] %vm2633_vm1, %v13773_v42  ;;  %v20068_v35 = vmax.f32 %v16474_v22, %v20067_v41  ;;  %14483 = vmatprep.mubr.msk.bf16.mxu1 %vm1128_vm0, %v15800_v2  ;;  %v20074_v47 = vmax.f32 %v20072_v28, %v20073_v56  ;;  %v20080_v19 = vld [vmem:[#allocation47_spill] sm:$0xff]  ;;  %v20082_v53 = vld [vmem:[#allocation74_spill] sm:$0xff] }
 0x230   : > { %v2385_v48 = vadd.f32 %v17059_v29, %v2330_v21  ;;  %v2435_v60 = vmax.f32 %v2387_v17, 0.0  ;;  %v20078_v61 = vmax.f32 %v20076_v23, %v20077_v63  ;;  %v20081_v1 = vmax.f32 %v20079_v8, %v20080_v19  ;;  %v20095_v28 = vld [vmem:[#allocation12_spill] sm:$0xff]  ;;  %v20096_v56 = vld [vmem:[#allocation51_spill] sm:$0xff] }
 0x231   : > { %v2331_v50 = vmax.f32 %v20068_v35, %v2283_v58  ;;  %v2388_v4 = vadd.f32 %v17059_v29, %v2333_v25  ;;  %v14449_v59 = vpop.f32.mrb[164].mxu0  ;;  %v2755_v34 = vsel %vm16922_vm4, 0, %v2754_v36  ;;  %v3606_v21 = vrot.slane %v3604_v38, 4  ;;  %v20083_v35 = vld [vmem:[#allocation75_spill] sm:$0xff] }
 0x232   : > { %v2433_v20 = vmax.f32 %v2385_v48, 0.0  ;;  %v13778_v40 = vpack.c.bf16 %v2435_v60, %v2435_v60  ;;  %v2288_v62 = vmax.f32 %v16954_v13, %v14449_v59  ;;  %v2107_v52 = vpop.f32.mrb[165].mxu0  ;;  %v3607_v13 = vshll.u32 %v3576_v31, 16  ;;  %2756 = vst [vmem:[#allocation2 + $0xec] sm:$0x1] %v2755_v34 }
 0x233   : > { %v2386_v33 = vadd.f32 %v17059_v29, %v2331_v50  ;;  %v2436_v54 = vmax.f32 %v2388_v4, 0.0  ;;  %v2286_v6 = vmax.f32 %v16956_v3, %v2107_v52  ;;  %v14450_v11 = vpop.f32.mrb[166].mxu0  ;;  %v20084_v4 = vld [vmem:[#allocation9_spill] sm:$0xff]  ;;  %v3613_v38 = vshll.u32 %v3577_v39, 16 }
 0x234   : > { %v13776_v43 = vpack.c.bf16 %v2433_v20, %v2433_v20  ;;  %2855 = vst.msk [vmem:[#allocation2 + $0x180] sm:$0xf] %vm2633_vm1, %v13778_v40  ;;  %v2336_v37 = vmax.f32 %v20070_v26, %v2288_v62  ;;  %v2289_v24 = vmax.f32 %v20071_v9, %v14450_v11  ;;  %v2110_v5 = vpop.f32.mrb[167].mxu0  ;;  %v3609_v58 = vrot.slane %v3607_v13, 5  ;;  %v20085_v20 = vld [vmem:[#allocation48_spill] sm:$0xff]  ;;  %v20092_v9 = vld [vmem:[#allocation11_spill] sm:$0xff] }
 0x235   : > { %v2434_v22 = vmax.f32 %v2386_v33, 0.0  ;;  %v13779_v7 = vpack.c.bf16 %v2436_v54, %v2436_v54  ;;  %v15801_v51 = vld [vmem:[#allocation2 + $0x168] ss:$8 sps:$4 sm:$0xff]   ;;  %v2334_v3 = vmax.f32 %v20074_v47, %v2286_v6  ;;  %v2287_v16 = vmax.f32 %v20075_v12, %v2110_v5 }
 0x236   : > { %2854 = vst.msk [vmem:[#allocation2 + $0x178] sm:$0xf] %vm2633_vm1, %v13776_v43  ;;  %v2391_v46 = vadd.f32 %v17059_v29, %v2336_v37  ;;  %v2337_v49 = vmax.f32 %v20078_v61, %v2289_v24  ;;  %14772 = vmatmul.mubr.msk.bf16.gmra.mrb[196].mxu0 %vm1128_vm0, %v15801_v51  ;;  %v15802_v32 = vld [vmem:[#allocation2 + $0x100] ss:$8 sps:$4 sm:$0xff]   ;;  %v20086_v33 = vmax.f32 %v20084_v4, %v20085_v20  ;;  %v20088_v43 = vld [vmem:[#allocation10_spill] sm:$0xff] }
 0x237   : > { %v13777_v44 = vpack.c.bf16 %v2434_v22, %v2434_v22  ;;  %2868 = vst.msk [vmem:[#allocation2 + $0x120] sm:$0xf] %vm2633_vm1, %v13779_v7  ;;  %v2389_v57 = vadd.f32 %v17059_v29, %v2334_v3  ;;  %v2335_v0 = vmax.f32 %v20081_v1, %v2287_v16  ;;  %14484 = vmatmul.mubr.msk.bf16.gmra.mrb[4].mxu1 %vm1128_vm0, %v15802_v32  ;;  %v20087_v40 = vld [vmem:[#allocation76_spill] sm:$0xff]  ;;  %v20089_v22 = vld [vmem:[#allocation49_spill] sm:$0xff]  ;;  %v20093_v24 = vld [vmem:[#allocation50_spill] sm:$0xff]  ;;  %v17257_v1 = vrot.slane %v3613_v38, 5 }
 0x238   : > { %v2439_v55 = vmax.f32 %v2391_v46, 0.0  ;;  %v2392_v18 = vadd.f32 %v17059_v29, %v2337_v49  ;;  %v20090_v6 = vmax.f32 %v20088_v43, %v20089_v22  ;;  %v20091_v7 = vld [vmem:[#allocation77_spill] sm:$0xff]  ;;  %v3610_v26 = vor.u32 %v3609_v58, %v3606_v21  ;;  %v20101_v58 = vld [vmem:[#allocation52_spill] sm:$0xff] }
 0x239   : > { %2867 = vst.msk [vmem:[#allocation2 + $0x118] sm:$0xf] %vm2633_vm1, %v13777_v44  ;;  %v2437_v42 = vmax.f32 %v2389_v57, 0.0  ;;  %v2390_v10 = vadd.f32 %v17059_v29, %v2335_v0  ;;  %v14453_v30 = vpop.f32.mrb[168].mxu0  ;;  %v20094_v5 = vmax.f32 %v20092_v9, %v20093_v24  ;;  %v20097_v47 = vmax.f32 %v20095_v28, %v20096_v56  ;;  %v20098_v57 = vld [vmem:[#allocation78_spill] sm:$0xff]  ;;  %v20100_v21 = vld [vmem:[#allocation13_spill] sm:$0xff] }
 0x23a   : > { %v13782_v17 = vpack.c.bf16 %v2439_v55, %v2439_v55  ;;  %v2440_v27 = vmax.f32 %v2392_v18, 0.0  ;;  %v2292_v25 = vmax.f32 %v20082_v53, %v14453_v30  ;;  %v2123_v2 = vpop.f32.mrb[169].mxu0  ;;  %v17254_v61 = vrot.slane %v3610_v26, 4  ;;  %v20099_v55 = vld [vmem:[#allocation79_spill] sm:$0xff]  ;;  %v3194_v43 = vld [vmem:[#allocation2 + $0x10] sm:$0xf] }
 0x23b   : > { %v13780_v48 = vpack.c.bf16 %v2437_v42, %v2437_v42  ;;  %v2438_v41 = vmax.f32 %v2390_v10, 0.0  ;;  %v2290_v50 = vmax.f32 %v20083_v35, %v2123_v2  ;;  %v14454_v31 = vpop.f32.mrb[170].mxu0  ;;  %v3004_v2 = vld [vmem:[#allocation2 + $0x74] sm:$0x1] }
 0x23c   : > { %2857 = vst.msk [vmem:[#allocation2 + $0x190] sm:$0xf] %vm2633_vm1, %v13782_v17  ;;  %v13783_v60 = vpack.c.bf16 %v2440_v27, %v2440_v27  ;;  %v2340_v59 = vmax.f32 %v20086_v33, %v2292_v25  ;;  %v2293_v54 = vmax.f32 %v20087_v40, %v14454_v31  ;;  %v2126_v62 = vpop.f32.mrb[171].mxu0  ;;  %v20102_v17 = vmax.f32 %v20100_v21, %v20101_v58  ;;  %v3001_v25 = vld [vmem:[#allocation2 + $0x70] sm:$0xf] }
 0x23d   : > { %v15803_v52 = vld [vmem:[#allocation2 + $0x178] ss:$8 sps:$4 sm:$0xff]   ;;  %2856 = vst.msk [vmem:[#allocation2 + $0x188] sm:$0xf] %vm2633_vm1, %v13780_v48  ;;  %v13781_v36 = vpack.c.bf16 %v2438_v41, %v2438_v41  ;;  %v2338_v11 = vmax.f32 %v20090_v6, %v2290_v50  ;;  %v2291_v45 = vmax.f32 %v20091_v7, %v2126_v62  ;;  %v20104_v31 = vld [vmem:[#allocation53_spill] sm:$0xff] }
 0x23e   : > { %2870 = vst.msk [vmem:[#allocation2 + $0x130] sm:$0xf] %vm2633_vm1, %v13783_v60  ;;  %v2395_v37 = vadd.f32 %v17059_v29, %v2340_v59  ;;  %v2341_v51 = vmax.f32 %v20094_v5, %v2293_v54  ;;  %14775 = vmatprep.mubr.msk.bf16.mxu0 %vm1128_vm0, %v15803_v52  ;;  %v20103_v50 = vld [vmem:[#allocation14_spill] sm:$0xff]  ;;  %v2995_v59 = vld [vmem:[#allocation2 + $0x68] sm:$0xf]  ;;  %v20109_v58 = vld [vmem:[#allocation81_spill] sm:$0xff] }
 0x23f   : > { %2869 = vst.msk [vmem:[#allocation2 + $0x128] sm:$0xf] %vm2633_vm1, %v13781_v36  ;;  %v2393_v44 = vadd.f32 %v17059_v29, %v2338_v11  ;;  %v2339_v3 = vmax.f32 %v20097_v47, %v2291_v45  ;;  %v20105_v60 = vmax.f32 %v20103_v50, %v20104_v31  ;;  %v2998_v40 = vld [vmem:[#allocation2 + $0x6c] sm:$0x1]  ;;  %v3197_v22 = vld [vmem:[#allocation2 + $0x14] sm:$0x1] }
 0x240   : > { %v15804_v13 = vld [vmem:[#allocation2 + $0x110] ss:$8 sps:$4 sm:$0xff]   ;;  %v2443_v12 = vmax.f32 %v2395_v37, 0.0  ;;  %v2396_v16 = vadd.f32 %v17059_v29, %v2341_v51  ;;  %vm11355_vm1 = vcmask 1044480  }
 0x241   : > { %14487 = vmatprep.mubr.msk.bf16.mxu1 %vm1128_vm0, %v15804_v13  ;;  %v2441_v46 = vmax.f32 %v2393_v44, 0.0  ;;  %v2394_v23 = vadd.f32 %v17059_v29, %v2339_v3  ;;  %v14457_v63 = vpop.f32.mrb[172].mxu0  ;;  %v3188_v44 = vld [vmem:[#allocation2 + $0x8] sm:$0xf] }
 0x242   : > { %v13786_v49 = vpack.c.bf16 %v2443_v12, %v2443_v12  ;;  %v2444_v32 = vmax.f32 %v2396_v16, 0.0  ;;  %v2296_v8 = vmax.f32 %v20098_v57, %v14457_v63  ;;  %v2139_v19 = vpop.f32.mrb[173].mxu0 }
 0x243   : > { %v13784_v0 = vpack.c.bf16 %v2441_v46, %v2441_v46  ;;  %v2442_v34 = vmax.f32 %v2394_v23, 0.0  ;;  %v2294_v18 = vmax.f32 %v20099_v55, %v2139_v19  ;;  %v17260_v42 = vpop.f32.mrb[174].mxu0  ;;  %v3191_v46 = vld [vmem:[#allocation2 + $0xc] sm:$0x1] }
 0x244   : > { %v2880_v10 = vshrl.u32 %v13786_v49, 16  ;;  %v2883_v30 = vshll.u32 %v13786_v49, 16  ;;  %v13787_v39 = vpack.c.bf16 %v2444_v32, %v2444_v32  ;;  %v2344_v27 = vmax.f32 %v20102_v17, %v2296_v8  ;;  %v17265_v53 = vpop.f32.mrb[175].mxu0  ;;  %v15805_v20 = vld [vmem:[#allocation2 + $0x188] ss:$8 sps:$4 sm:$0xff]  }
 0x245   : > { %v2872_v48 = vshrl.u32 %v13784_v0, 16  ;;  %v2875_v41 = vshll.u32 %v13784_v0, 16  ;;  %v13785_v35 = vpack.c.bf16 %v2442_v34, %v2442_v34  ;;  %v2342_v4 = vmax.f32 %v20105_v60, %v2294_v18  ;;  %14776 = vmatmul.mubr.msk.bf16.gmra.mrb[200].mxu0 %vm1128_vm0, %v15805_v20  ;;  %v20113_v60 = vld [vmem:[#allocation16_spill] sm:$0xff] }
 0x246   : > { %v2882_v33 = vrot.slane %v2880_v10, 7  ;;  %v3076_v54 = vshrl.u32 %v13787_v39, 16  ;;  %v3079_v62 = vshll.u32 %v13787_v39, 16  ;;  %v2399_v52 = vadd.f32 %v17059_v29, %v2344_v27  ;;  %v15806_v45 = vld [vmem:[#allocation2 + $0x120] ss:$8 sps:$4 sm:$0xff]  }
 0x247   : > { %v2874_v36 = vrot.slane %v2872_v48, 7  ;;  %v3068_v6 = vshrl.u32 %v13785_v35, 16  ;;  %v3071_v11 = vshll.u32 %v13785_v35, 16  ;;  %v2397_v7 = vadd.f32 %v17059_v29, %v2342_v4  ;;  %14488 = vmatmul.mubr.msk.bf16.gmra.mrb[8].mxu1 %vm1128_vm0, %v15806_v45  ;;  %v20108_v39 = vld [vmem:[#allocation80_spill] sm:$0xff]  ;;  %v20111_v35 = vld [vmem:[#allocation54_spill] sm:$0xff]  ;;  %v20114_v4 = vld [vmem:[#allocation55_spill] sm:$0xff] }
 0x248   : > { %v2885_v26 = vor.u32 %v2883_v30, %v2882_v33  ;;  %v2886_v37 = vrot.slane %v2882_v33, 4  ;;  %v3078_v9 = vrot.slane %v3076_v54, 7  ;;  %v2447_v24 = vmax.f32 %v2399_v52, 0.0  ;;  %v3010_v45 = vld [vmem:[#allocation2 + $0x7c] sm:$0x1] }
 0x249   : > { %v2877_v5 = vor.u32 %v2875_v41, %v2874_v36  ;;  %v2878_v51 = vrot.slane %v2874_v36, 4  ;;  %v3070_v13 = vrot.slane %v3068_v6, 7  ;;  %v2445_v28 = vmax.f32 %v2397_v7, 0.0  ;;  %v14461_v56 = vpop.f32.mrb[176].mxu0  ;;  %v20110_v41 = vld [vmem:[#allocation15_spill] sm:$0xff]  ;;  %v20119_v6 = vld [vmem:[#allocation85_spill] sm:$0xff] }
 0x24a   : > { %v3002_v47 = vsel %vm17273_vm6, %v2885_v26, %v3001_v25  ;;  %v3005_v3 = vsel %vm16922_vm4, %v2886_v37, %v3004_v2  ;;  %v3081_v12 = vor.u32 %v3079_v62, %v3078_v9  ;;  %v3082_v16 = vrot.slane %v3078_v9, 4  ;;  %v2155_v23 = vpop.f32.mrb[177].mxu0  ;;  %v3007_v36 = vld [vmem:[#allocation2 + $0x78] sm:$0xf]  ;;  %v3016_v7 = vld [vmem:[#allocation2 + $0x84] sm:$0x1] }
 0x24b   : > { %3003 = vst [vmem:[#allocation2 + $0x70] sm:$0xf] %v3002_v47  ;;  %3006 = vst [vmem:[#allocation2 + $0x74] sm:$0x1] %v3005_v3  ;;  %v2996_v63 = vsel %vm17273_vm6, %v2877_v5, %v2995_v59  ;;  %v2999_v49 = vsel %vm16922_vm4, %v2878_v51, %v2998_v40  ;;  %v3073_v32 = vor.u32 %v3071_v11, %v3070_v13  ;;  %v3074_v57 = vrot.slane %v3070_v13, 4  ;;  %v17288_v8 = vpop.f32.mrb[178].mxu0 }
 0x24c   : > { %2997 = vst [vmem:[#allocation2 + $0x68] sm:$0xf] %v2996_v63  ;;  %3000 = vst [vmem:[#allocation2 + $0x6c] sm:$0x1] %v2999_v49  ;;  %v3195_v19 = vsel %vm17273_vm6, %v3081_v12, %v3194_v43  ;;  %v3198_v0 = vsel %vm16922_vm4, %v3082_v16, %v3197_v22  ;;  %v13790_v34 = vpack.c.bf16 %v2447_v24, %v2447_v24  ;;  %v2158_v18 = vpop.f32.mrb[179].mxu0  ;;  %v20116_v59 = vld [vmem:[#allocation82_spill] sm:$0xff] }
 0x24d   : > { %v13788_v55 = vpack.c.bf16 %v2445_v28, %v2445_v28  ;;  %3196 = vst [vmem:[#allocation2 + $0x10] sm:$0xf] %v3195_v19  ;;  %3199 = vst [vmem:[#allocation2 + $0x14] sm:$0x1] %v3198_v0  ;;  %v3189_v10 = vsel %vm17273_vm6, %v3073_v32, %v3188_v44  ;;  %v3192_v30 = vsel %vm16922_vm4, %v3074_v57, %v3191_v46  ;;  %v20118_v43 = vld [vmem:[#allocation84_spill] sm:$0xff]  ;;  %v20120_v9 = vld [vmem:[#allocation17_spill] sm:$0xff] }
 0x24e   : > { %v2297_v21 = vmax.f32 %v20108_v39, %v17260_v42  ;;  %v2295_v17 = vmax.f32 %v20109_v58, %v17265_v53  ;;  %3190 = vst [vmem:[#allocation2 + $0x8] sm:$0xf] %v3189_v10  ;;  %3193 = vst [vmem:[#allocation2 + $0xc] sm:$0x1] %v3192_v30  ;;  %v2896_v27 = vshrl.u32 %v13790_v34, 16  ;;  %v2899_v25 = vshll.u32 %v13790_v34, 16 }
 0x24f   : > { %v2888_v2 = vshrl.u32 %v13788_v55, 16  ;;  %v2891_v48 = vshll.u32 %v13788_v55, 16  ;;  %v20112_v50 = vmax.f32 %v20110_v41, %v20111_v35  ;;  %v20115_v20 = vmax.f32 %v20113_v60, %v20114_v4  ;;  %v20117_v42 = vld [vmem:[#allocation83_spill] sm:$0xff]  ;;  %v20121_v24 = vld [vmem:[#allocation56_spill] sm:$0xff]  ;;  %v20123_v13 = vld [vmem:[#allocation18_spill] sm:$0xff] }
 0x250   : > { %v2300_v40 = vmax.f32 %v20116_v59, %v14461_v56  ;;  %v2298_v54 = vmax.f32 %v20117_v42, %v2155_v23  ;;  %v2898_v62 = vrot.slane %v2896_v27, 7  ;;  %v3013_v53 = vld [vmem:[#allocation2 + $0x80] sm:$0xf]  ;;  %v2301_v22 = vmax.f32 %v20118_v43, %v17288_v8  ;;  %v20124_v44 = vld [vmem:[#allocation57_spill] sm:$0xff]  ;;  %v20129_v41 = vld [vmem:[#allocation20_spill] sm:$0xff] }
 0x251   : > { %v2345_v31 = vmax.f32 %v20112_v50, %v2297_v21  ;;  %v2343_v33 = vmax.f32 %v20115_v20, %v2295_v17  ;;  %v2890_v52 = vrot.slane %v2888_v2, 7  ;;  %v2299_v11 = vmax.f32 %v20119_v6, %v2158_v18  ;;  %v14465_v47 = vpop.f32.mrb[180].mxu0  ;;  %v20126_v27 = vld [vmem:[#allocation19_spill] sm:$0xff]  ;;  %v20132_v60 = vld [vmem:[#allocation86_spill] sm:$0xff] }
 0x252   : > { %v20122_v5 = vmax.f32 %v20120_v9, %v20121_v24  ;;  %v20125_v28 = vmax.f32 %v20123_v13, %v20124_v44  ;;  %v2901_v3 = vor.u32 %v2899_v25, %v2898_v62  ;;  %v2902_v12 = vrot.slane %v2898_v62, 4  ;;  %v2171_v23 = vpop.f32.mrb[181].mxu0  ;;  %v20127_v25 = vld [vmem:[#allocation58_spill] sm:$0xff]  ;;  %v20130_v35 = vld [vmem:[#allocation59_spill] sm:$0xff] }
 0x253   : > { %v2400_v26 = vadd.f32 %v17059_v29, %v2345_v31  ;;  %v2398_v37 = vadd.f32 %v17059_v29, %v2343_v33  ;;  %v2893_v16 = vor.u32 %v2891_v48, %v2890_v52  ;;  %v2894_v46 = vrot.slane %v2890_v52, 4  ;;  %v17323_v8 = vpop.f32.mrb[182].mxu0  ;;  %v15808_v10 = vld [vmem:[#allocation2 + $0x68] ss:$8 sps:$4 sm:$0xff]   ;;  %v20133_v20 = vld [vmem:[#allocation87_spill] sm:$0xff] }
 0x254   : > { %v2348_v51 = vmax.f32 %v20122_v5, %v2300_v40  ;;  %v2346_v56 = vmax.f32 %v20125_v28, %v2298_v54  ;;  %v3014_v19 = vsel %vm17273_vm6, %v2901_v3, %v3013_v53  ;;  %v3017_v0 = vsel %vm16922_vm4, %v2902_v12, %v3016_v7  ;;  %v17333_v18 = vpop.f32.mrb[183].mxu0  ;;  %14783 = vmatprep.mubr.msk.bf16.mxu0 %vm1128_vm0, %v15808_v10  ;;  %v3206_v62 = vld [vmem:[#allocation2 + $0x20] sm:$0xf]  ;;  %v3209_v53 = vld [vmem:[#allocation2 + $0x24] sm:$0x1]  ;;  %v20137_v5 = vld [vmem:[#allocation22_spill] sm:$0xff] }
 0x255   : > { %v2448_v63 = vmax.f32 %v2400_v26, 0.0  ;;  %v2446_v49 = vmax.f32 %v2398_v37, 0.0  ;;  %v3008_v34 = vsel %vm17273_vm6, %v2893_v16, %v3007_v36  ;;  %v3011_v55 = vsel %vm16922_vm4, %v2894_v46, %v3010_v45  ;;  %3015 = vst [vmem:[#allocation2 + $0x80] sm:$0xf] %v3014_v19  ;;  %3018 = vst [vmem:[#allocation2 + $0x84] sm:$0x1] %v3017_v0 }
 0x256   : > { %v2403_v32 = vadd.f32 %v17059_v29, %v2348_v51  ;;  %v2401_v57 = vadd.f32 %v17059_v29, %v2346_v56  ;;  %3009 = vst [vmem:[#allocation2 + $0x78] sm:$0xf] %v3008_v34  ;;  %3012 = vst [vmem:[#allocation2 + $0x7c] sm:$0x1] %v3011_v55  ;;  %v15809_v17 = vld [vmem:[#allocation2] ss:$8 sps:$4 sm:$0xff]   ;;  %v20128_v2 = vmax.f32 %v20126_v27, %v20127_v25 }
 0x257   : > { %v13791_v30 = vpack.c.bf16 %v2448_v63, %v2448_v63  ;;  %v13789_v39 = vpack.c.bf16 %v2446_v49, %v2446_v49  ;;  %v20131_v50 = vmax.f32 %v20129_v41, %v20130_v35  ;;  %v2304_v4 = vmax.f32 %v20132_v60, %v14465_v47  ;;  %14495 = vmatprep.mubr.msk.bf16.mxu1 %vm1128_vm0, %v15809_v17  ;;  %v3200_v52 = vld [vmem:[#allocation2 + $0x18] sm:$0xf]  ;;  %v3203_v45 = vld [vmem:[#allocation2 + $0x1c] sm:$0x1]  ;;  %v20134_v26 = vld [vmem:[#allocation21_spill] sm:$0xff] }
 0x258   : > { %v2451_v21 = vmax.f32 %v2403_v32, 0.0  ;;  %v2449_v58 = vmax.f32 %v2401_v57, 0.0  ;;  %v2349_v48 = vmax.f32 %v20128_v2, %v2301_v22  ;;  %v2302_v33 = vmax.f32 %v20133_v20, %v2171_v23  ;;  %v20135_v37 = vld [vmem:[#allocation60_spill] sm:$0xff]  ;;  %v20138_v51 = vld [vmem:[#allocation61_spill] sm:$0xff] }
 0x259   : > { %v2347_v31 = vmax.f32 %v20131_v50, %v2299_v11  ;;  %v3092_v59 = vshrl.u32 %v13791_v30, 16  ;;  %v3095_v40 = vshll.u32 %v13791_v30, 16  ;;  %v3084_v42 = vshrl.u32 %v13789_v39, 16  ;;  %v17353_v28 = vpop.f32.mrb[184].mxu0  ;;  %v3025_v32 = vld [vmem:[#allocation2 + $0x90] sm:$0xf] }
 0x25a   : > { %v3087_v54 = vshll.u32 %v13789_v39, 16  ;;  %v13794_v36 = vpack.c.bf16 %v2451_v21, %v2451_v21  ;;  %v13792_v43 = vpack.c.bf16 %v2449_v58, %v2449_v58  ;;  %v2404_v22 = vadd.f32 %v17059_v29, %v2349_v48  ;;  %v17355_v16 = vpop.f32.mrb[185].mxu0  ;;  %v3028_v57 = vld [vmem:[#allocation2 + $0x94] sm:$0x1]  ;;  %v3019_v19 = vld [vmem:[#allocation2 + $0x88] sm:$0xf] }
 0x25b   : > { %v2402_v6 = vadd.f32 %v17059_v29, %v2347_v31  ;;  %v3094_v11 = vrot.slane %v3092_v59, 7  ;;  %v3086_v7 = vrot.slane %v3084_v42, 7  ;;  %v20136_v9 = vmax.f32 %v20134_v26, %v20135_v37  ;;  %v3022_v0 = vld [vmem:[#allocation2 + $0x8c] sm:$0x1]  ;;  %v17357_v34 = vpop.f32.mrb[186].mxu0 }
 0x25c   : > { %v20139_v13 = vmax.f32 %v20137_v5, %v20138_v51  ;;  %v2912_v56 = vshrl.u32 %v13794_v36, 16  ;;  %v2915_v47 = vshll.u32 %v13794_v36, 16  ;;  %v2904_v3 = vshrl.u32 %v13792_v43, 16  ;;  %v17359_v21 = vpop.f32.mrb[187].mxu0  ;;  %v17364_v58 = vld [vmem:[%s19828_s3 + $0x28] sm:$0xff]  }
 0x25d   : > { %v2352_v24 = vmax.f32 %v20136_v9, %v2304_v4  ;;  %v2907_v12 = vshll.u32 %v13792_v43, 16  ;;  %v3097_v46 = vor.u32 %v3095_v40, %v3094_v11  ;;  %v3098_v23 = vrot.slane %v3094_v11, 4  ;;  %v15811_v48 = vld [vmem:[#allocation2 + $0x78] ss:$8 sps:$4 sm:$0xff]   ;;  %v17392_v43 = vld [vmem:[%s19828_s3 + $0x30] sm:$0xff]   ;;  %v20140_v26 = vld [vmem:[#allocation88_spill] sm:$0xff] }
 0x25e   : > { %v2350_v44 = vmax.f32 %v20139_v13, %v2302_v33  ;;  %v3089_v63 = vor.u32 %v3087_v54, %v3086_v7  ;;  %v3090_v49 = vrot.slane %v3086_v7, 4  ;;  %v2914_v55 = vrot.slane %v2912_v56, 7  ;;  %14784 = vmatmul.mubr.msk.bf16.vlgmr.msra.gmra.mrb[192].mxu0 %vm1128_vm0, %v15811_v48  ;;  %v3212_v11 = vld [vmem:[#allocation2 + $0x28] sm:$0xf]  ;;  %v20141_v9 = vld [vmem:[#allocation89_spill] sm:$0xff]  ;;  %v20142_v56 = vld [vmem:[#allocation90_spill] sm:$0xff] }
 0x25f   : > { %v2906_v10 = vrot.slane %v2904_v3, 7  ;;  %v2452_v30 = vmax.f32 %v2404_v22, 0.0  ;;  %v2450_v39 = vmax.f32 %v2402_v6, 0.0  ;;  %v3207_v17 = vsel %vm17273_vm6, %v3097_v46, %v3206_v62  ;;  %14796 = vmatpush3.bf16.msra.mxu0 %v17168_v14  ;;  %v3218_v22 = vld [vmem:[#allocation2 + $0x30] sm:$0xf]  ;;  %v20143_v3 = vld [vmem:[#allocation91_spill] sm:$0xff] }
 0x260   : > { %v3210_v27 = vsel %vm16922_vm4, %v3098_v23, %v3209_v53  ;;  %v3201_v25 = vsel %vm17273_vm6, %v3089_v63, %v3200_v52  ;;  %v3204_v2 = vsel %vm16922_vm4, %v3090_v49, %v3203_v45  ;;  %3208 = vst [vmem:[#allocation2 + $0x20] sm:$0xf] %v3207_v17  ;;  %v2917_v41 = vor.u32 %v2915_v47, %v2914_v55  ;;  %v3221_v6 = vld [vmem:[#allocation2 + $0x34] sm:$0x1]  ;;  %v20144_v49 = vld [vmem:[#allocation23_spill] sm:$0xff] }
 0x261   : > { %3211 = vst [vmem:[#allocation2 + $0x24] sm:$0x1] %v3210_v27  ;;  %3202 = vst [vmem:[#allocation2 + $0x18] sm:$0xf] %v3201_v25  ;;  %v2918_v35 = vrot.slane %v2914_v55, 4  ;;  %v2909_v50 = vor.u32 %v2907_v12, %v2906_v10  ;;  %v2910_v31 = vrot.slane %v2906_v10, 4  ;;  %v13795_v60 = vpack.c.bf16 %v2452_v30, %v2452_v30  ;;  %14797 = vmatprep.subr.bf16.mxu0 %v17364_v58 }
 0x262   : > { %3205 = vst [vmem:[#allocation2 + $0x1c] sm:$0x1] %v3204_v2  ;;  %v13793_v4 = vpack.c.bf16 %v2450_v39, %v2450_v39  ;;  %v2407_v20 = vadd.f32 %v17059_v29, %v2352_v24  ;;  %v2405_v33 = vadd.f32 %v17059_v29, %v2350_v44  ;;  %v3026_v59 = vsel %vm17273_vm6, %v2917_v41, %v3025_v32  ;;  %v17386_v36 = vpop.f32.mrb[188].mxu0  ;;  %v3215_v44 = vld [vmem:[#allocation2 + $0x2c] sm:$0x1] }
 0x263   : > { %v3029_v40 = vsel %vm16922_vm4, %v2918_v35, %v3028_v57  ;;  %v3020_v42 = vsel %vm17273_vm6, %v2909_v50, %v3019_v19  ;;  %v3023_v54 = vsel %vm16922_vm4, %v2910_v31, %v3022_v0  ;;  %3027 = vst [vmem:[#allocation2 + $0x90] sm:$0xf] %v3026_v59  ;;  %v3108_v29 = vshrl.u32 %v13795_v60, 16  ;;  %v17398_v5 = vpop.f32.mrb[189].mxu0  ;;  %v20148_v19 = vld [vmem:[#allocation63_spill] sm:$0xff]  ;;  %14798 = vmatpush3.bf16.msra.mxu0 %v17364_v58 }
 0x264   : > { %3030 = vst [vmem:[#allocation2 + $0x94] sm:$0x1] %v3029_v40  ;;  %3021 = vst [vmem:[#allocation2 + $0x88] sm:$0xf] %v3020_v42  ;;  %v3111_v62 = vshll.u32 %v13795_v60, 16  ;;  %v3100_v53 = vshrl.u32 %v13793_v4, 16  ;;  %v2305_v37 = vmax.f32 %v20140_v26, %v17323_v8  ;;  %v2303_v24 = vmax.f32 %v20141_v9, %v17333_v18  ;;  %14811 = vmatprep.subr.bf16.mxu0 %v17392_v43 }
 0x265   : > { %3024 = vst [vmem:[#allocation2 + $0x8c] sm:$0x1] %v3023_v54  ;;  %v3103_v52 = vshll.u32 %v13793_v4, 16  ;;  %v2455_v7 = vmax.f32 %v2407_v20, 0.0  ;;  %v2453_v45 = vmax.f32 %v2405_v33, 0.0  ;;  %v3110_v51 = vrot.slane %v3108_v29, 7 }
 0x266   : > { %v3102_v13 = vrot.slane %v3100_v53, 7  ;;  %v2308_v47 = vmax.f32 %v20142_v56, %v17353_v28  ;;  %v2306_v12 = vmax.f32 %v20143_v3, %v17355_v16  ;;  %v17404_v46 = vpop.f32.mrb[190].mxu0  ;;  %v20145_v8 = vld [vmem:[#allocation62_spill] sm:$0xff]  ;;  %v20147_v18 = vld [vmem:[#allocation24_spill] sm:$0xff]  ;;  %v3037_v60 = vld [vmem:[#allocation2 + $0xa0] sm:$0xf] }
 0x267   : > { %v13798_v23 = vpack.c.bf16 %v2455_v7, %v2455_v7  ;;  %v13796_v63 = vpack.c.bf16 %v2453_v45, %v2453_v45  ;;  %v20146_v32 = vmax.f32 %v20144_v49, %v20145_v8  ;;  %v20149_v0 = vmax.f32 %v20147_v18, %v20148_v19  ;;  %v17412_v10 = vpop.f32.mrb[191].mxu0  ;;  %v3040_v4 = vld [vmem:[#allocation2 + $0xa4] sm:$0x1]  ;;  %v17428_v59 = vld [vmem:[%s19827_s2] ss:$0 sm:$0xff]  ;;  %v20151_v53 = vld [vmem:[#allocation64_spill] sm:$0xff] }
 0x268   : > { %v3113_v28 = vor.u32 %v3111_v62, %v3110_v51  ;;  %v3114_v30 = vrot.slane %v3110_v51, 4  ;;  %v3105_v39 = vor.u32 %v3103_v52, %v3102_v13  ;;  %v3106_v16 = vrot.slane %v3102_v13, 4  ;;  %v15812_v17 = vld [vmem:[#allocation2 + $0x10] ss:$8 sps:$4 sm:$0xff]   ;;  %v3034_v29 = vld [vmem:[#allocation2 + $0x9c] sm:$0x1] }
 0x269   : > { %v2353_v57 = vmax.f32 %v20146_v32, %v2305_v37  ;;  %v2351_v55 = vmax.f32 %v20149_v0, %v2303_v24  ;;  %v2928_v27 = vshrl.u32 %v13798_v23, 16  ;;  %v2931_v25 = vshll.u32 %v13798_v23, 16  ;;  %14496 = vmatmul.mubr.msk.bf16.vlgmr.msra.gmra.mrb[0].mxu1 %vm1128_vm0, %v15812_v17  ;;  %v3031_v54 = vld [vmem:[#allocation2 + $0x98] sm:$0xf]  ;;  %v20150_v62 = vld [vmem:[#allocation25_spill] sm:$0xff]  ;;  %v20156_v26 = vld [vmem:[#allocation92_spill] sm:$0xff] }
 0x26a   : > { %v2920_v2 = vshrl.u32 %v13796_v63, 16  ;;  %v2923_v48 = vshll.u32 %v13796_v63, 16  ;;  %v3219_v41 = vsel %vm17273_vm6, %v3113_v28, %v3218_v22  ;;  %v3222_v35 = vsel %vm16922_vm4, %v3114_v30, %v3221_v6  ;;  %14508 = vmatpush3.bf16.msra.mxu1 %v17168_v14  ;;  %v20153_v6 = vld [vmem:[#allocation26_spill] sm:$0xff]  ;;  %v20157_v9 = vld [vmem:[#allocation93_spill] sm:$0xff]  ;;  %v20158_v19 = vld [vmem:[#allocation27_spill] sm:$0xff] }
 0x26b   : > { %v3213_v50 = vsel %vm17273_vm6, %v3105_v39, %v3212_v11  ;;  %v3216_v31 = vsel %vm16922_vm4, %v3106_v16, %v3215_v44  ;;  %3220 = vst [vmem:[#allocation2 + $0x30] sm:$0xf] %v3219_v41  ;;  %3223 = vst [vmem:[#allocation2 + $0x34] sm:$0x1] %v3222_v35  ;;  %v2930_v20 = vrot.slane %v2928_v27, 7  ;;  %v2408_v40 = vadd.f32 %v17428_v59, %v2353_v57  ;;  %v20154_v11 = vld [vmem:[#allocation65_spill] sm:$0xff] }
 0x26c   : > { %3214 = vst [vmem:[#allocation2 + $0x28] sm:$0xf] %v3213_v50  ;;  %3217 = vst [vmem:[#allocation2 + $0x2c] sm:$0x1] %v3216_v31  ;;  %v2922_v33 = vrot.slane %v2920_v2, 7  ;;  %v2406_v42 = vadd.f32 %v17428_v59, %v2351_v55  ;;  %v20152_v52 = vmax.f32 %v20150_v62, %v20151_v53  ;;  %v20155_v7 = vmax.f32 %v20153_v6, %v20154_v11  ;;  %v20159_v0 = vld [vmem:[#allocation66_spill] sm:$0xff] }
 0x26d   : > { %v2309_v37 = vmax.f32 %v20156_v26, %v17357_v34  ;;  %v2307_v24 = vmax.f32 %v20157_v9, %v17359_v21  ;;  %v15813_v51 = vld [vmem:[#allocation2 + $0x88] ss:$8 sps:$4 sm:$0xff]   ;;  %14509 = vmatprep.subr.bf16.mxu1 %v17364_v58  ;;  %v2933_v14 = vor.u32 %v2931_v25, %v2930_v20  ;;  %v2934_v13 = vrot.slane %v2930_v20, 4  ;;  %v20162_v39 = vld [vmem:[#allocation67_spill] sm:$0xff]  ;;  %v3224_v62 = vld [vmem:[#allocation2 + $0x38] sm:$0xf] }
 0x26e   : > { %v2356_v22 = vmax.f32 %v20152_v52, %v2308_v47  ;;  %v2354_v45 = vmax.f32 %v20155_v7, %v2306_v12  ;;  %v2925_v44 = vor.u32 %v2923_v48, %v2922_v33  ;;  %v2926_v56 = vrot.slane %v2922_v33, 4  ;;  %14787 = vmatprep.mubr.msk.bf16.mxu0 %vm1128_vm0, %v15813_v51  ;;  %14510 = vmatpush3.bf16.msra.mxu1 %v17364_v58  ;;  %v20161_v30 = vld [vmem:[#allocation28_spill] sm:$0xff]  ;;  %v20164_v58 = vld [vmem:[#allocation94_spill] sm:$0xff]  ;;  %v20165_v25 = vld [vmem:[#allocation95_spill] sm:$0xff] }
 0x26f   : > { %v2456_v3 = vmax.f32 %v2408_v40, 0.0  ;;  %v2454_v23 = vmax.f32 %v2406_v42, 0.0  ;;  %v3038_v34 = vsel %vm17273_vm6, %v2933_v14, %v3037_v60  ;;  %v3041_v21 = vsel %vm16922_vm4, %v2934_v13, %v3040_v4  ;;  %14523 = vmatprep.subr.bf16.mxu1 %v17392_v43  ;;  %v3230_v31 = vld [vmem:[#allocation2 + $0x40] sm:$0xf]  ;;  %v20167_v53 = vld [vmem:[#allocation68_spill] sm:$0xff]  ;;  %v20170_v6 = vld [vmem:[#allocation69_spill] sm:$0xff] }
 0x270   : > { %v2411_v47 = vadd.f32 %v17428_v59, %v2356_v22  ;;  %v2409_v63 = vadd.f32 %v17428_v59, %v2354_v45  ;;  %v3032_v12 = vsel %vm17273_vm6, %v2925_v44, %v3031_v54  ;;  %v3035_v49 = vsel %vm16922_vm4, %v2926_v56, %v3034_v29  ;;  %3039 = vst [vmem:[#allocation2 + $0xa0] sm:$0xf] %v3038_v34  ;;  %v3233_v54 = vld [vmem:[#allocation2 + $0x44] sm:$0x1]  ;;  %v20169_v22 = vld [vmem:[#allocation30_spill] sm:$0xff] }
 0x271   : > { %3042 = vst [vmem:[#allocation2 + $0xa4] sm:$0x1] %v3041_v21  ;;  %3033 = vst [vmem:[#allocation2 + $0x98] sm:$0xf] %v3032_v12  ;;  %v13799_v8 = vpack.c.bf16 %v2456_v3, %v2456_v3  ;;  %v13797_v32 = vpack.c.bf16 %v2454_v23, %v2454_v23  ;;  %v20160_v55 = vmax.f32 %v20158_v19, %v20159_v0  ;;  %v3227_v45 = vld [vmem:[#allocation2 + $0x3c] sm:$0x1] }
 0x272   : > { %3036 = vst [vmem:[#allocation2 + $0x9c] sm:$0x1] %v3035_v49  ;;  %v2459_v57 = vmax.f32 %v2411_v47, 0.0  ;;  %v2457_v18 = vmax.f32 %v2409_v63, 0.0  ;;  %v20163_v16 = vmax.f32 %v20161_v30, %v20162_v39  ;;  %v2312_v27 = vmax.f32 %v20164_v58, %v17386_v36  ;;  %v20166_v36 = vld [vmem:[#allocation29_spill] sm:$0xff] }
 0x273   : > { %v2357_v28 = vmax.f32 %v20160_v55, %v2309_v37  ;;  %v2310_v2 = vmax.f32 %v20165_v25, %v17398_v5  ;;  %v3124_v48 = vshrl.u32 %v13799_v8, 16  ;;  %v3127_v41 = vshll.u32 %v13799_v8, 16  ;;  %v15814_v40 = vld [vmem:[#allocation2 + $0x20] ss:$8 sps:$4 sm:$0xff]   ;;  %v3049_v56 = vld [vmem:[#allocation2 + $0xb0] sm:$0xf] }
 0x274   : > { %v2355_v17 = vmax.f32 %v20163_v16, %v2307_v24  ;;  %v3116_v35 = vshrl.u32 %v13797_v32, 16  ;;  %v3119_v50 = vshll.u32 %v13797_v32, 16  ;;  %v13802_v60 = vpack.c.bf16 %v2459_v57, %v2459_v57  ;;  %14499 = vmatprep.mubr.msk.bf16.mxu1 %vm1128_vm0, %v15814_v40  ;;  %v3052_v3 = vld [vmem:[#allocation2 + $0xb4] sm:$0x1]  ;;  %v3043_v23 = vld [vmem:[#allocation2 + $0xa8] sm:$0xf] }
 0x275   : > { %v13800_v4 = vpack.c.bf16 %v2457_v18, %v2457_v18  ;;  %v2412_v20 = vadd.f32 %v17428_v59, %v2357_v28  ;;  %v3126_v42 = vrot.slane %v3124_v48, 7  ;;  %v20168_v52 = vmax.f32 %v20166_v36, %v20167_v53  ;;  %v3046_v57 = vld [vmem:[#allocation2 + $0xac] sm:$0x1]  ;;  %v4257_v48 = vld [vmem:[#allocation2 + $0x68] sm:$0xf] }
 0x276   : > { %v2410_v33 = vadd.f32 %v17428_v59, %v2355_v17  ;;  %v3118_v29 = vrot.slane %v3116_v35, 7  ;;  %v20171_v11 = vmax.f32 %v20169_v22, %v20170_v6  ;;  %v2944_v26 = vshrl.u32 %v13802_v60, 16 }
 0x277   : > { %v2360_v5 = vmax.f32 %v20168_v52, %v2312_v27  ;;  %v2947_v37 = vshll.u32 %v13802_v60, 16  ;;  %v2936_v9 = vshrl.u32 %v13800_v4, 16  ;;  %v2939_v24 = vshll.u32 %v13800_v4, 16  ;;  %v3242_v60 = vld [vmem:[#allocation2 + $0x50] sm:$0xf] }
 0x278   : > { %v2358_v7 = vmax.f32 %v20171_v11, %v2310_v2  ;;  %v3129_v51 = vor.u32 %v3127_v41, %v3126_v42  ;;  %v3130_v14 = vrot.slane %v3126_v42, 4  ;;  %v3121_v13 = vor.u32 %v3119_v50, %v3118_v29  ;;  %v17484_v18 = vld [vmem:[#allocation2 + $0x98] ss:$8 sps:$4 sm:$0xff]   ;;  %v3245_v4 = vld [vmem:[#allocation2 + $0x54] sm:$0x1]  ;;  %v20172_v42 = vld [vmem:[#allocation96_spill] sm:$0xff] }
 0x279   : > { %v3122_v44 = vrot.slane %v3118_v29, 4  ;;  %v2946_v47 = vrot.slane %v2944_v26, 7  ;;  %v2938_v63 = vrot.slane %v2936_v9, 7  ;;  %v2460_v34 = vmax.f32 %v2412_v20, 0.0  ;;  %14788 = vmatmul.mubr.msk.bf16.gmra.mrb[196].mxu0 %vm1128_vm0, %v17484_v18  ;;  %v3236_v20 = vld [vmem:[#allocation2 + $0x48] sm:$0xf] }
 0x27a   : > { %v2458_v21 = vmax.f32 %v2410_v33, 0.0  ;;  %v3231_v12 = vsel %vm17273_vm6, %v3129_v51, %v3230_v31  ;;  %v3234_v49 = vsel %vm16922_vm4, %v3130_v14, %v3233_v54  ;;  %v3225_v8 = vsel %vm17273_vm6, %v3121_v13, %v3224_v62  ;;  %v20173_v29 = vld [vmem:[#allocation97_spill] sm:$0xff]  ;;  %v3239_v52 = vld [vmem:[#allocation2 + $0x4c] sm:$0x1] }
 0x27b   : > { %v3228_v32 = vsel %vm16922_vm4, %v3122_v44, %v3227_v45  ;;  %3232 = vst [vmem:[#allocation2 + $0x40] sm:$0xf] %v3231_v12  ;;  %3235 = vst [vmem:[#allocation2 + $0x44] sm:$0x1] %v3234_v49  ;;  %v2949_v19 = vor.u32 %v2947_v37, %v2946_v47  ;;  %v2950_v0 = vrot.slane %v2946_v47, 4  ;;  %v2941_v55 = vor.u32 %v2939_v24, %v2938_v63  ;;  %v20175_v45 = vld [vmem:[#allocation70_spill] sm:$0xff] }
 0x27c   : > { %3226 = vst [vmem:[#allocation2 + $0x38] sm:$0xf] %v3225_v8  ;;  %3229 = vst [vmem:[#allocation2 + $0x3c] sm:$0x1] %v3228_v32  ;;  %v2942_v28 = vrot.slane %v2938_v63, 4  ;;  %v13803_v30 = vpack.c.bf16 %v2460_v34, %v2460_v34  ;;  %v13801_v39 = vpack.c.bf16 %v2458_v21, %v2458_v21  ;;  %v2415_v16 = vadd.f32 %v17428_v59, %v2360_v5  ;;  %v20177_v9 = vld [vmem:[#allocation32_spill] sm:$0xff] }
 0x27d   : > { %v2413_v17 = vadd.f32 %v17428_v59, %v2358_v7  ;;  %v3050_v58 = vsel %vm17273_vm6, %v2949_v19, %v3049_v56  ;;  %v3053_v27 = vsel %vm16922_vm4, %v2950_v0, %v3052_v3  ;;  %v3044_v25 = vsel %vm17273_vm6, %v2941_v55, %v3043_v23  ;;  %v20174_v7 = vld [vmem:[#allocation31_spill] sm:$0xff]  ;;  %v4258_v13 = vld [vmem:[#allocation2 + $0x6c] sm:$0x1]  ;;  %v3055_v0 = vld [vmem:[#allocation2 + $0xb8] sm:$0xf] }
 0x27e   : > { %v3047_v2 = vsel %vm16922_vm4, %v2942_v28, %v3046_v57  ;;  %3051 = vst [vmem:[#allocation2 + $0xb0] sm:$0xf] %v3050_v58  ;;  %3054 = vst [vmem:[#allocation2 + $0xb4] sm:$0x1] %v3053_v27  ;;  %v3140_v41 = vshrl.u32 %v13803_v30, 16  ;;  %v3143_v35 = vshll.u32 %v13803_v30, 16  ;;  %v2313_v54 = vmax.f32 %v20172_v42, %v17404_v46 }
 0x27f   : > { %3045 = vst [vmem:[#allocation2 + $0xa8] sm:$0xf] %v3044_v25  ;;  %3048 = vst [vmem:[#allocation2 + $0xac] sm:$0x1] %v3047_v2  ;;  %v3132_v50 = vshrl.u32 %v13801_v39, 16  ;;  %v3135_v31 = vshll.u32 %v13801_v39, 16  ;;  %v2311_v62 = vmax.f32 %v20173_v29, %v17412_v10  ;;  %v20176_v26 = vmax.f32 %v20174_v7, %v20175_v45 }
 0x280   : > { %v2463_v33 = vmax.f32 %v2415_v16, 0.0  ;;  %v2461_v40 = vmax.f32 %v2413_v17, 0.0  ;;  %v3142_v36 = vrot.slane %v3140_v41, 7  ;;  %v4282_v5 = vshrl.u32 %v4257_v48, 16  ;;  %v20178_v24 = vld [vmem:[#allocation71_spill] sm:$0xff] }
 0x281   : > { %v3134_v53 = vrot.slane %v3132_v50, 7  ;;  %v4285_v22 = vshll.u32 %v4257_v48, 16  ;;  %v2361_v37 = vmax.f32 %v20176_v26, %v2313_v54  ;;  %v20179_v51 = vmax.f32 %v20177_v9, %v20178_v24  ;;  %v17508_v46 = vld [vmem:[#allocation2 + $0x70] sm:$0xf]  ;;  %v3061_v57 = vld [vmem:[#allocation2 + $0xc0] sm:$0xf] }
 0x282   : > { %v13806_v6 = vpack.c.bf16 %v2463_v33, %v2463_v33  ;;  %v13804_v11 = vpack.c.bf16 %v2461_v40, %v2461_v40  ;;  %v3145_v44 = vor.u32 %v3143_v35, %v3142_v36  ;;  %v3146_v10 = vrot.slane %v3142_v36, 4  ;;  %v3064_v19 = vld [vmem:[#allocation2 + $0xc4] sm:$0x1]  ;;  %v3058_v55 = vld [vmem:[#allocation2 + $0xbc] sm:$0x1] }
 0x283   : > { %v2359_v14 = vmax.f32 %v20179_v51, %v2311_v62  ;;  %v3137_v56 = vor.u32 %v3135_v31, %v3134_v53  ;;  %v3138_v3 = vrot.slane %v3134_v53, 4  ;;  %v15817_v23 = vld [vmem:[#allocation2 + $0x30] ss:$8 sps:$4 sm:$0xff]   ;;  %v2416_v39 = vadd.f32 %v17428_v59, %v2361_v37  ;;  %v4260_v31 = vld [vmem:[#allocation2 + $0x74] sm:$0x1] }
 0x284   : > { %v2960_v47 = vshrl.u32 %v13806_v6, 16  ;;  %v2963_v63 = vshll.u32 %v13806_v6, 16  ;;  %v2952_v34 = vshrl.u32 %v13804_v11, 16  ;;  %v2955_v21 = vshll.u32 %v13804_v11, 16  ;;  %14500 = vmatmul.mubr.msk.bf16.gmra.mrb[4].mxu1 %vm1128_vm0, %v15817_v23  ;;  %v3578_v33 = vld [vmem:[#allocation2 + $0x8] sm:$0xf] }
 0x285   : > { %v3243_v12 = vsel %vm17273_vm6, %v3145_v44, %v3242_v60  ;;  %v3246_v49 = vsel %vm16922_vm4, %v3146_v10, %v3245_v4  ;;  %v3237_v8 = vsel %vm17273_vm6, %v3137_v56, %v3236_v20  ;;  %v3240_v32 = vsel %vm16922_vm4, %v3138_v3, %v3239_v52  ;;  %v4261_v45 = vld [vmem:[#allocation2 + $0x78] sm:$0xf]  ;;  %v3254_v51 = vld [vmem:[#allocation2 + $0x60] sm:$0xf] }
 0x286   : > { %3244 = vst [vmem:[#allocation2 + $0x50] sm:$0xf] %v3243_v12  ;;  %3247 = vst [vmem:[#allocation2 + $0x54] sm:$0x1] %v3246_v49  ;;  %v2962_v28 = vrot.slane %v2960_v47, 7  ;;  %v2954_v30 = vrot.slane %v2952_v34, 7  ;;  %v2414_v16 = vadd.f32 %v17428_v59, %v2359_v14 }
 0x287   : > { %3238 = vst [vmem:[#allocation2 + $0x48] sm:$0xf] %v3237_v8  ;;  %3241 = vst [vmem:[#allocation2 + $0x4c] sm:$0x1] %v3240_v32  ;;  %v17521_v17 = vld [vmem:[#allocation2 + $0xa8] ss:$8 sps:$4 sm:$0xff]  }
 0x288   : > { %v4284_v58 = vrot.slane %v4282_v5, 4  ;;  %v4287_v27 = vrot.slane %v4285_v22, 5  ;;  %v4291_v25 = vshll.u32 %v4258_v13, 16  ;;  %v4296_v2 = vshrl.u32 %v17508_v46, 16  ;;  %14791 = vmatprep.mubr.msk.bf16.mxu0 %vm1128_vm0, %v17521_v17  ;;  %v3579_v5 = vld [vmem:[#allocation2 + $0xc] sm:$0x1] }
 0x289   : > { %v2965_v48 = vor.u32 %v2963_v63, %v2962_v28  ;;  %v2966_v41 = vrot.slane %v2962_v28, 4  ;;  %v2957_v35 = vor.u32 %v2955_v21, %v2954_v30  ;;  %v2958_v50 = vrot.slane %v2954_v30, 4  ;;  %v3257_v14 = vld [vmem:[#allocation2 + $0x64] sm:$0x1]  ;;  %v3248_v23 = vld [vmem:[#allocation2 + $0x58] sm:$0xf] }
 0x28a   : > { %v2464_v60 = vmax.f32 %v2416_v39, 0.0  ;;  %v2462_v4 = vmax.f32 %v2414_v16, 0.0  ;;  %v4288_v59 = vor.u32 %v4287_v27, %v4284_v58  ;;  %v17526_v20 = vrot.slane %v4291_v25, 5  ;;  %v3251_v34 = vld [vmem:[#allocation2 + $0x5c] sm:$0x1] }
 0x28b   : > { %v3062_v40 = vsel %vm17273_vm6, %v2965_v48, %v3061_v57  ;;  %v3065_v42 = vsel %vm16922_vm4, %v2966_v41, %v3064_v19  ;;  %v3056_v54 = vsel %vm17273_vm6, %v2957_v35, %v3055_v0  ;;  %v3059_v29 = vsel %vm16922_vm4, %v2958_v50, %v3058_v55  ;;  %v4262_v55 = vld [vmem:[#allocation2 + $0x7c] sm:$0x1]  ;;  %v4263_v28 = vld [vmem:[#allocation2 + $0x80] sm:$0xf]  ;;  %v4264_v48 = vld [vmem:[#allocation2 + $0x84] sm:$0x1] }
 0x28c   : > { %3063 = vst [vmem:[#allocation2 + $0xc0] sm:$0xf] %v3062_v40  ;;  %3066 = vst [vmem:[#allocation2 + $0xc4] sm:$0x1] %v3065_v42  ;;  %v13807_v62 = vpack.c.bf16 %v2464_v60, %v2464_v60  ;;  %v13805_v36 = vpack.c.bf16 %v2462_v4, %v2462_v4  ;;  %v17536_v53 = vrot.slane %v4288_v59, 4  ;;  %v4298_v52 = vrot.slane %v4296_v2, 4 }
 0x28d   : > { %3057 = vst [vmem:[#allocation2 + $0xb8] sm:$0xf] %v3056_v54  ;;  %3060 = vst [vmem:[#allocation2 + $0xbc] sm:$0x1] %v3059_v29  ;;  %v4299_v22 = vshll.u32 %v17508_v46, 16  ;;  %v4305_v6 = vshll.u32 %v4260_v31, 16 }
 0x28e   : > { %v3618_v11 = vshrl.u32 %v3578_v33, 16  ;;  %v3621_v7 = vshll.u32 %v3578_v33, 16  ;;  %v3156_v26 = vshrl.u32 %v13807_v62, 16  ;;  %v3159_v37 = vshll.u32 %v13807_v62, 16  ;;  %v15819_v13 = vld [vmem:[#allocation2 + $0x40] ss:$8 sps:$4 sm:$0xff]  }
 0x28f   : > { %v3148_v9 = vshrl.u32 %v13805_v36, 16  ;;  %v3151_v24 = vshll.u32 %v13805_v36, 16  ;;  %v4301_v44 = vrot.slane %v4299_v22, 5  ;;  %v4307_v10 = vrot.slane %v4305_v6, 5  ;;  %14503 = vmatprep.mubr.msk.bf16.mxu1 %vm1128_vm0, %v15819_v13  ;;  %v4265_v41 = vld [vmem:[#allocation2 + $0x88] sm:$0xf] }
 0x290   : > { %v3158_v56 = vrot.slane %v3156_v26, 7  ;;  %v3620_v47 = vrot.slane %v3618_v11, 4  ;;  %v3623_v63 = vrot.slane %v3621_v7, 5  ;;  %v3627_v21 = vshll.u32 %v3579_v5, 16  ;;  %v4266_v4 = vld [vmem:[#allocation2 + $0x8c] sm:$0x1] }
 0x291   : > { %v3150_v3 = vrot.slane %v3148_v9, 7  ;;  %v4302_v46 = vor.u32 %v4301_v44, %v4298_v52  ;;  %v4310_v12 = vshrl.u32 %v4261_v45, 16  ;;  %v4313_v49 = vshll.u32 %v4261_v45, 16  ;;  %v4267_v54 = vld [vmem:[#allocation2 + $0x90] sm:$0xf] }
 0x292   : > { %v3161_v8 = vor.u32 %v3159_v37, %v3158_v56  ;;  %v3162_v32 = vrot.slane %v3158_v56, 4  ;;  %v4294_v39 = vsel %vm17542_vm9, %v17536_v53, %v17526_v20  ;;  %v3624_v16 = vor.u32 %v3623_v63, %v3620_v47  ;;  %v3580_v5 = vld [vmem:[#allocation2 + $0x10] sm:$0xf]  ;;  %v4268_v7 = vld [vmem:[#allocation2 + $0x94] sm:$0x1] }
 0x293   : > { %v3153_v57 = vor.u32 %v3151_v24, %v3150_v3  ;;  %v3154_v19 = vrot.slane %v3150_v3, 4  ;;  %v4303_v35 = vrot.slane %v4302_v46, 4  ;;  %v3629_v31 = vrot.slane %v3627_v21, 5  ;;  %v3582_v13 = vld [vmem:[#allocation2 + $0x18] sm:$0xf] }
 0x294   : > { %v17546_v30 = vld [vmem:[#allocation2 + $0xb8] ss:$8 sps:$4 sm:$0xff]   ;;  %v3255_v58 = vsel %vm17273_vm6, %v3161_v8, %v3254_v51  ;;  %v3258_v27 = vsel %vm16922_vm4, %v3162_v32, %v3257_v14  ;;  %v3625_v50 = vrot.slane %v3624_v16, 4  ;;  %v4312_v60 = vrot.slane %v4310_v12, 4  ;;  %v3581_v51 = vld [vmem:[#allocation2 + $0x14] sm:$0x1] }
 0x295   : > { %v3249_v25 = vsel %vm17273_vm6, %v3153_v57, %v3248_v23  ;;  %v3252_v2 = vsel %vm16922_vm4, %v3154_v19, %v3251_v34  ;;  %3256 = vst [vmem:[#allocation2 + $0x60] sm:$0xf] %v3255_v58  ;;  %3259 = vst [vmem:[#allocation2 + $0x64] sm:$0x1] %v3258_v27  ;;  %14792 = vmatmul.mubr.msk.bf16.gmra.mrb[200].mxu0 %vm1128_vm0, %v17546_v30  ;;  %v4315_v59 = vrot.slane %v4313_v49, 5  ;;  %v4319_v38 = vshll.u32 %v4262_v55, 16 }
 0x296   : > { %3250 = vst [vmem:[#allocation2 + $0x58] sm:$0xf] %v3249_v25  ;;  %3253 = vst [vmem:[#allocation2 + $0x5c] sm:$0x1] %v3252_v2  ;;  %v4324_v20 = vshrl.u32 %v4263_v28, 16  ;;  %v4327_v33 = vshll.u32 %v4263_v28, 16  ;;  %v4308_v40 = vsel %vm17542_vm9, %v4303_v35, %v4307_v10  ;;  %v3616_v36 = vsel %vm17542_vm9, %v17254_v61, %v17257_v1 }
 0x297   : > { %v4333_v42 = vshll.u32 %v4264_v48, 16  ;;  %v4338_v29 = vshrl.u32 %v4265_v41, 16  ;;  %v17564_v62 = vcombine.low %v4294_v39, %v4308_v40  ;;  %v3630_v53 = vsel %vm17542_vm9, %v3625_v50, %v3629_v31  ;;  %v3583_v12 = vld [vmem:[#allocation2 + $0x1c] sm:$0x1]  ;;  %v3584_v19 = vld [vmem:[#allocation2 + $0x20] sm:$0xf] }
 0x298   : > { %v4316_v52 = vor.u32 %v4315_v59, %v4312_v60  ;;  %v4321_v22 = vrot.slane %v4319_v38, 5  ;;  %v4326_v6 = vrot.slane %v4324_v20, 4  ;;  %v4329_v11 = vrot.slane %v4327_v33, 5  ;;  %v3585_v48 = vld [vmem:[#allocation2 + $0x24] sm:$0x1] }
 0x299   : > { %v4340_v45 = vrot.slane %v4338_v29, 4  ;;  %14799 = vmatprep.mubr.msk.bf16.mxu0 %vm1128_vm0, %v17564_v62  ;;  %v4341_v37 = vshll.u32 %v4265_v41, 16  ;;  %v4347_v9 = vshll.u32 %v4266_v4, 16  ;;  %v4352_v24 = vshrl.u32 %v4267_v54, 16  ;;  %v17588_v41 = vld [vmem:[%s19828_s3 + $0x38] sm:$0xff]  }
 0x29a   : > { %v4317_v26 = vrot.slane %v4316_v52, 4  ;;  %v4330_v14 = vor.u32 %v4329_v11, %v4326_v6  ;;  %v4335_v61 = vrot.slane %v4333_v42, 5  ;;  %v4355_v1 = vshll.u32 %v4267_v54, 16  ;;  %v3586_v38 = vld [vmem:[#allocation2 + $0x28] sm:$0xf] }
 0x29b   : > { %v3632_v44 = vshrl.u32 %v3580_v5, 16  ;;  %v17574_v56 = vcombine.low %v3616_v36, %v3630_v53  ;;  %v4343_v23 = vrot.slane %v4341_v37, 5  ;;  %v4361_v47 = vshll.u32 %v4268_v7, 16  ;;  %v3587_v29 = vld [vmem:[#allocation2 + $0x2c] sm:$0x1] }
 0x29c   : > { %v4322_v3 = vsel %vm17542_vm9, %v4317_v26, %v4321_v22  ;;  %v4331_v63 = vrot.slane %v4330_v14, 4  ;;  %v4349_v34 = vrot.slane %v4347_v9, 5  ;;  %v4354_v46 = vrot.slane %v4352_v24, 4  ;;  %v4269_v53 = vld [vmem:[#allocation2 + $0x98] sm:$0xf] }
 0x29d   : > { %v15822_v10 = vld [vmem:[#allocation2 + $0x50] ss:$8 sps:$4 sm:$0xff]   ;;  %v4357_v21 = vrot.slane %v4355_v1, 5  ;;  %v4344_v49 = vor.u32 %v4343_v23, %v4340_v45  ;;  %v3634_v8 = vrot.slane %v3632_v44, 4  ;;  %v3635_v32 = vshll.u32 %v3580_v5, 16  ;;  %v17603_v45 = vld [vmem:[%s19828_s3 + $0x40] sm:$0xff]  }
 0x29e   : > { %14504 = vmatmul.mubr.msk.bf16.gmra.mrb[8].mxu1 %vm1128_vm0, %v15822_v10  ;;  %v3641_v57 = vshll.u32 %v3581_v51, 16  ;;  %v4336_v55 = vsel %vm17542_vm9, %v4331_v63, %v4335_v61  ;;  %v3646_v39 = vshrl.u32 %v3582_v13, 16  ;;  %v3649_v16 = vshll.u32 %v3582_v13, 16  ;;  %v4270_v11 = vld [vmem:[#allocation2 + $0x9c] sm:$0x1] }
 0x29f   : > { %14511 = vmatprep.mubr.msk.bf16.mxu1 %vm1128_vm0, %v17574_v56  ;;  %v4358_v28 = vor.u32 %v4357_v21, %v4354_v46  ;;  %v17583_v58 = vcombine.low %v4322_v3, %v4336_v55  ;;  %v4345_v27 = vrot.slane %v4344_v49, 4  ;;  %v4363_v25 = vrot.slane %v4361_v47, 5  ;;  %v4271_v7 = vld [vmem:[#allocation2 + $0xa0] sm:$0xf]  ;;  %v4272_v1 = vld [vmem:[#allocation2 + $0xa4] sm:$0x1] }
 0x2a0   : > { %v3637_v2 = vrot.slane %v3635_v32, 5  ;;  %v3648_v50 = vrot.slane %v3646_v39, 4  ;;  %v3651_v31 = vrot.slane %v3649_v16, 5  ;;  %v3655_v60 = vshll.u32 %v3583_v12, 16  ;;  %v4273_v44 = vld [vmem:[#allocation2 + $0xa8] sm:$0xf] }
 0x2a1   : > { %v4359_v35 = vrot.slane %v4358_v28, 4  ;;  %14800 = vmatmul.mubr.msk.bf16.vlgmr.msra.gmra.mrb[192].mxu0 %vm1128_vm0, %v17583_v58  ;;  %v4350_v4 = vsel %vm17542_vm9, %v4345_v27, %v4349_v34  ;;  %v3660_v20 = vshrl.u32 %v3584_v19, 16  ;;  %v3663_v33 = vshll.u32 %v3584_v19, 16  ;;  %v4274_v12 = vld [vmem:[#allocation2 + $0xac] sm:$0x1] }
 0x2a2   : > { %v3638_v59 = vor.u32 %v3637_v2, %v3634_v8  ;;  %v3643_v42 = vrot.slane %v3641_v57, 5  ;;  %v3652_v54 = vor.u32 %v3651_v31, %v3648_v50  ;;  %v3669_v36 = vshll.u32 %v3585_v48, 16  ;;  %14812 = vmatpush3.bf16.msra.mxu0 %v17392_v43  ;;  %v4275_v19 = vld [vmem:[#allocation2 + $0xb0] sm:$0xf]  ;;  %v4276_v31 = vld [vmem:[#allocation2 + $0xb4] sm:$0x1] }
 0x2a3   : > { %v4364_v40 = vsel %vm17542_vm9, %v4359_v35, %v4363_v25  ;;  %v3662_v22 = vrot.slane %v3660_v20, 4  ;;  %v3665_v6 = vrot.slane %v3663_v33, 5  ;;  %14813 = vmatprep.subr.bf16.mxu0 %v17588_v41  ;;  %v3657_v37 = vrot.slane %v3655_v60, 5 }
 0x2a4   : > { %v17597_v52 = vcombine.low %v4350_v4, %v4364_v40  ;;  %v3639_v5 = vrot.slane %v3638_v59, 4  ;;  %v3653_v26 = vrot.slane %v3652_v54, 4  ;;  %v3674_v9 = vshrl.u32 %v3586_v38, 16  ;;  %v3588_v40 = vld [vmem:[#allocation2 + $0x30] sm:$0xf] }
 0x2a5   : > { %v3677_v24 = vshll.u32 %v3586_v38, 16  ;;  %v3666_v14 = vor.u32 %v3665_v6, %v3662_v22  ;;  %v3683_v61 = vshll.u32 %v3587_v29, 16  ;;  %v4366_v13 = vshrl.u32 %v4269_v53, 16 }
 0x2a6   : > { %14803 = vmatprep.mubr.msk.bf16.mxu0 %vm1128_vm0, %v17597_v52  ;;  %v3644_v51 = vsel %vm17542_vm9, %v3639_v5, %v3643_v42  ;;  %v3658_v10 = vsel %vm17542_vm9, %v3653_v26, %v3657_v37  ;;  %v3676_v3 = vrot.slane %v3674_v9, 4  ;;  %v4369_v47 = vshll.u32 %v4269_v53, 16  ;;  %14814 = vmatpush3.bf16.msra.mxu0 %v17588_v41  ;;  %v3589_v37 = vld [vmem:[#allocation2 + $0x34] sm:$0x1] }
 0x2a7   : > { %v3679_v23 = vrot.slane %v3677_v24, 5  ;;  %v17612_v63 = vcombine.low %v3644_v51, %v3658_v10  ;;  %v3667_v34 = vrot.slane %v3666_v14, 4  ;;  %v3671_v46 = vrot.slane %v3669_v36, 5  ;;  %14827 = vmatprep.subr.bf16.mxu0 %v17603_v45  ;;  %v3590_v36 = vld [vmem:[#allocation2 + $0x38] sm:$0xf] }
 0x2a8   : > { %v4368_v21 = vrot.slane %v4366_v13, 4  ;;  %v4371_v8 = vrot.slane %v4369_v47, 5  ;;  %v4375_v32 = vshll.u32 %v4270_v11, 16  ;;  %v4380_v57 = vshrl.u32 %v4271_v7, 16  ;;  %v3591_v51 = vld [vmem:[#allocation2 + $0x3c] sm:$0x1] }
 0x2a9   : > { %v3680_v49 = vor.u32 %v3679_v23, %v3676_v3  ;;  %14512 = vmatmul.mubr.msk.bf16.vlgmr.msra.gmra.mrb[0].mxu1 %vm1128_vm0, %v17612_v63  ;;  %v3672_v55 = vsel %vm17542_vm9, %v3667_v34, %v3671_v46  ;;  %v3685_v28 = vrot.slane %v3683_v61, 5  ;;  %v4383_v39 = vshll.u32 %v4271_v7, 16  ;;  %v3592_v10 = vld [vmem:[#allocation2 + $0x40] sm:$0xf]  ;;  %v3593_v3 = vld [vmem:[#allocation2 + $0x44] sm:$0x1] }
 0x2aa   : > { %v4394_v16 = vshrl.u32 %v4273_v44, 16  ;;  %14524 = vmatpush3.bf16.msra.mxu1 %v17392_v43  ;;  %v4372_v25 = vor.u32 %v4371_v8, %v4368_v21  ;;  %v4382_v2 = vrot.slane %v4380_v57, 4  ;;  %v4389_v48 = vshll.u32 %v4272_v1, 16  ;;  %v3594_v21 = vld [vmem:[#allocation2 + $0x48] sm:$0xf] }
 0x2ab   : > { %v3681_v27 = vrot.slane %v3680_v49, 4  ;;  %v4377_v35 = vrot.slane %v4375_v32, 5  ;;  %v4385_v50 = vrot.slane %v4383_v39, 5  ;;  %v4397_v4 = vshll.u32 %v4273_v44, 16  ;;  %14525 = vmatprep.subr.bf16.mxu1 %v17588_v41 }
 0x2ac   : > { %v4396_v60 = vrot.slane %v4394_v16, 4  ;;  %v4373_v38 = vrot.slane %v4372_v25, 4  ;;  %v4403_v20 = vshll.u32 %v4274_v12, 16  ;;  %v4408_v33 = vshrl.u32 %v4275_v19, 16 }
 0x2ad   : > { %v3686_v59 = vsel %vm17542_vm9, %v3681_v27, %v3685_v28  ;;  %v4386_v43 = vor.u32 %v4385_v50, %v4382_v2  ;;  %v4399_v54 = vrot.slane %v4397_v4, 5  ;;  %v4411_v29 = vshll.u32 %v4275_v19, 16  ;;  %v4277_v2 = vld [vmem:[#allocation2 + $0xb8] sm:$0xf]  ;;  %v3595_v50 = vld [vmem:[#allocation2 + $0x4c] sm:$0x1] }
 0x2ae   : > { %v17623_v42 = vcombine.low %v3672_v55, %v3686_v59  ;;  %v4378_v53 = vsel %vm17542_vm9, %v4373_v38, %v4377_v35  ;;  %v4391_v5 = vrot.slane %v4389_v48, 5  ;;  %v4410_v22 = vrot.slane %v4408_v33, 4  ;;  %14526 = vmatpush3.bf16.msra.mxu1 %v17588_v41 }
 0x2af   : > { %v4417_v6 = vshll.u32 %v4276_v31, 16  ;;  %v4387_v11 = vrot.slane %v4386_v43, 4  ;;  %v4400_v7 = vor.u32 %v4399_v54, %v4396_v60  ;;  %v4413_v26 = vrot.slane %v4411_v29, 5  ;;  %14539 = vmatprep.subr.bf16.mxu1 %v17603_v45 }
 0x2b0   : > { %14515 = vmatprep.mubr.msk.bf16.mxu1 %vm1128_vm0, %v17623_v42  ;;  %v3688_v9 = vshrl.u32 %v3588_v40, 16  ;;  %v4405_v24 = vrot.slane %v4403_v20, 5  ;;  %v3691_v14 = vshll.u32 %v3588_v40, 16  ;;  %v3702_v61 = vshrl.u32 %v3590_v36, 16  ;;  %v4279_v20 = vld [vmem:[#allocation2 + $0xc0] sm:$0xf] }
 0x2b1   : > { %v4392_v1 = vsel %vm17542_vm9, %v4387_v11, %v4391_v5  ;;  %v4401_v13 = vrot.slane %v4400_v7, 4  ;;  %v4414_v44 = vor.u32 %v4413_v26, %v4410_v22  ;;  %v4419_v47 = vrot.slane %v4417_v6, 5  ;;  %v4278_v5 = vld [vmem:[#allocation2 + $0xbc] sm:$0x1] }
 0x2b2   : > { %v3690_v41 = vrot.slane %v3688_v9, 4  ;;  %v17633_v23 = vcombine.low %v4378_v53, %v4392_v1  ;;  %v3693_v34 = vrot.slane %v3691_v14, 5  ;;  %v3697_v46 = vshll.u32 %v3589_v37, 16  ;;  %v3596_v37 = vld [vmem:[#allocation2 + $0x50] sm:$0xf] }
 0x2b3   : > { %v4406_v12 = vsel %vm17542_vm9, %v4401_v13, %v4405_v24  ;;  %v4415_v49 = vrot.slane %v4414_v44, 4  ;;  %v3704_v8 = vrot.slane %v3702_v61, 4  ;;  %v3705_v32 = vshll.u32 %v3590_v36, 16  ;;  %v4280_v14 = vld [vmem:[#allocation2 + $0xc4] sm:$0x1] }
 0x2b4   : > { %14804 = vmatmul.mubr.msk.bf16.gmra.mrb[196].mxu0 %vm1128_vm0, %v17633_v23  ;;  %v3694_v57 = vor.u32 %v3693_v34, %v3690_v41  ;;  %v3711_v19 = vshll.u32 %v3591_v51, 16  ;;  %v3716_v55 = vshrl.u32 %v3592_v10, 16  ;;  %v3719_v28 = vshll.u32 %v3592_v10, 16  ;;  %v3598_v1 = vld [vmem:[#allocation2 + $0x58] sm:$0xf] }
 0x2b5   : > { %v4420_v39 = vsel %vm17542_vm9, %v4415_v49, %v4419_v47  ;;  %v3707_v16 = vrot.slane %v3705_v32, 5  ;;  %v3725_v27 = vshll.u32 %v3593_v3, 16  ;;  %v3730_v25 = vshrl.u32 %v3594_v21, 16 }
 0x2b6   : > { %v17641_v48 = vcombine.low %v4406_v12, %v4420_v39  ;;  %v3695_v35 = vrot.slane %v3694_v57, 4  ;;  %v3718_v31 = vrot.slane %v3716_v55, 4  ;;  %v3721_v60 = vrot.slane %v3719_v28, 5 }
 0x2b7   : > { %v3708_v4 = vor.u32 %v3707_v16, %v3704_v8  ;;  %v3732_v59 = vrot.slane %v3730_v25, 4  ;;  %v3733_v38 = vshll.u32 %v3594_v21, 16  ;;  %v3699_v33 = vrot.slane %v3697_v46, 5  ;;  %v3599_v25 = vld [vmem:[#allocation2 + $0x5c] sm:$0x1] }
 0x2b8   : > { %14807 = vmatprep.mubr.msk.bf16.mxu0 %vm1128_vm0, %v17641_v48  ;;  %v3713_v40 = vrot.slane %v3711_v19, 5  ;;  %v3722_v43 = vor.u32 %v3721_v60, %v3718_v31  ;;  %v4422_v54 = vshrl.u32 %v4277_v2, 16  ;;  %v3739_v53 = vshll.u32 %v3595_v50, 16 }
 0x2b9   : > { %v3709_v29 = vrot.slane %v3708_v4, 4  ;;  %v3735_v36 = vrot.slane %v3733_v38, 5  ;;  %v4425_v22 = vshll.u32 %v4277_v2, 16  ;;  %v3700_v6 = vsel %vm17542_vm9, %v3695_v35, %v3699_v33 }
 0x2ba   : > { %v3727_v11 = vrot.slane %v3725_v27, 5  ;;  %v4424_v7 = vrot.slane %v4422_v54, 4  ;;  %v4436_v26 = vshrl.u32 %v4279_v20, 16  ;;  %v3723_v24 = vrot.slane %v3722_v43, 4  ;;  %v3597_v27 = vld [vmem:[#allocation2 + $0x54] sm:$0x1] }
 0x2bb   : > { %v3714_v9 = vsel %vm17542_vm9, %v3709_v29, %v3713_v40  ;;  %v3736_v51 = vor.u32 %v3735_v36, %v3732_v59  ;;  %v4427_v61 = vrot.slane %v4425_v22, 5  ;;  %v4431_v44 = vshll.u32 %v4278_v5, 16  ;;  %v17667_v36 = vld [vmem:[#allocation2 + $0x8] ss:$8 sps:$4 sm:$0xff]  }
 0x2bc   : > { %v17649_v13 = vcombine.low %v3700_v6, %v3714_v9  ;;  %v4438_v41 = vrot.slane %v4436_v26, 4  ;;  %v4439_v10 = vshll.u32 %v4279_v20, 16  ;;  %v3741_v47 = vrot.slane %v3739_v53, 5  ;;  %v16144_v26 = vld [vmem:[#allocation2 + $0x68] ss:$8 sps:$4 sm:$0xff]  }
 0x2bd   : > { %v3737_v3 = vrot.slane %v3736_v51, 4  ;;  %v4428_v34 = vor.u32 %v4427_v61, %v4424_v7  ;;  %v3744_v46 = vshrl.u32 %v3596_v37, 16  ;;  %v4445_v12 = vshll.u32 %v4280_v14, 16  ;;  %v15831_v9 = vld [vmem:[%s19828_s3 + $0x48] sm:$0xff]   ;;  %v17697_v51 = vld [vmem:[%s19828_s3 + $0x50] sm:$0xff]  }
 0x2be   : > { %14516 = vmatmul.mubr.msk.bf16.gmra.mrb[4].mxu1 %vm1128_vm0, %v17649_v13  ;;  %v4441_v21 = vrot.slane %v4439_v10, 5  ;;  %v3747_v49 = vshll.u32 %v3596_v37, 16  ;;  %v3758_v8 = vshrl.u32 %v3598_v1, 16  ;;  %v3728_v32 = vsel %vm17542_vm9, %v3723_v24, %v3727_v11  ;;  %v17682_v37 = vld [vmem:[#allocation2 + $0x18] ss:$8 sps:$4 sm:$0xff]  }
 0x2bf   : > { %v3742_v57 = vsel %vm17542_vm9, %v3737_v3, %v3741_v47  ;;  %v4429_v19 = vrot.slane %v4428_v34, 4  ;;  %v3746_v55 = vrot.slane %v3744_v46, 4  ;;  %v4433_v39 = vrot.slane %v4431_v44, 5  ;;  %v17687_v24 = vld [vmem:[#allocation2 + $0x28] ss:$8 sps:$4 sm:$0xff]  }
 0x2c0   : > { %v17657_v28 = vcombine.low %v3728_v32, %v3742_v57  ;;  %v4442_v16 = vor.u32 %v4441_v21, %v4438_v41  ;;  %v3749_v2 = vrot.slane %v3747_v49, 5  ;;  %v3760_v35 = vrot.slane %v3758_v8, 4  ;;  %v16145_v14 = vld [vmem:[#allocation2 + $0x78] ss:$8 sps:$4 sm:$0xff]   ;;  %v16146_v61 = vld [vmem:[#allocation2 + $0x88] ss:$8 sps:$4 sm:$0xff]  }
 0x2c1   : > { %v3761_v50 = vshll.u32 %v3598_v1, 16  ;;  %v4434_v31 = vsel %vm17542_vm9, %v4429_v19, %v4433_v39  ;;  %v4447_v4 = vrot.slane %v4445_v12, 5  ;;  %v3753_v38 = vshll.u32 %v3597_v27, 16  ;;  %v17702_v1 = vld [vmem:[#allocation2 + $0x38] ss:$8 sps:$4 sm:$0xff]  }
 0x2c2   : > { %14519 = vmatprep.mubr.msk.bf16.mxu1 %vm1128_vm0, %v17657_v28  ;;  %v4443_v60 = vrot.slane %v4442_v16, 4  ;;  %v3750_v59 = vor.u32 %v3749_v2, %v3746_v55  ;;  %v3767_v33 = vshll.u32 %v3599_v25, 16  ;;  %v17704_v44 = vld [vmem:[#allocation2 + $0x48] ss:$8 sps:$4 sm:$0xff]   ;;  %v17716_v41 = vld [vmem:[#allocation2 + $0x58] ss:$8 sps:$4 sm:$0xff]  }
 0x2c3   : > { %v3763_v20 = vrot.slane %v3761_v50, 5  ;;  %v3755_v53 = vrot.slane %v3753_v38, 5  ;;  %v17718_v10 = vld [vmem:[#allocation2 + $0xd8] ss:$8 sps:$4 sm:$0xff]   ;;  %v4937_v3 = vld [vmem:[#allocation2 + $0x10] sm:$0xf] }
 0x2c4   : > { %v4448_v40 = vsel %vm17542_vm9, %v4443_v60, %v4447_v4  ;;  %v3751_v54 = vrot.slane %v3750_v59, 4  ;;  %v3769_v22 = vrot.slane %v3767_v33, 5  ;;  %v4974_v46 = vshrl.u32 %v4937_v3, 16  ;;  %v4939_v49 = vld [vmem:[#allocation2 + $0x18] sm:$0xf] }
 0x2c5   : > { %v17665_v43 = vcombine.low %v4434_v31, %v4448_v40  ;;  %v3764_v29 = vor.u32 %v3763_v20, %v3760_v35  ;;  %v4977_v21 = vshll.u32 %v4937_v3, 16  ;;  %v17728_v8 = vld [vmem:[#allocation2 + $0xf8] ss:$8 sps:$4 sm:$0xff]   ;;  %v4936_v32 = vld [vmem:[#allocation2 + $0xc] sm:$0x1]  ;;  %v4988_v25 = vshrl.u32 %v4939_v49, 16 }
 0x2c6   : > { %v3756_v6 = vsel %vm17542_vm9, %v3751_v54, %v3755_v53  ;;  %v16147_v57 = vld [vmem:[#allocation2 + $0x138] ss:$8 sps:$4 sm:$0xff]   ;;  %v4943_v39 = vld [vmem:[#allocation2 + $0x28] sm:$0xf]  ;;  %v4976_v16 = vrot.slane %v4974_v46, 4  ;;  %v4991_v2 = vshll.u32 %v4939_v49, 16 }
 0x2c7   : > { %14808 = vmatmul.mubr.msk.bf16.gmra.mrb[200].mxu0 %vm1128_vm0, %v17665_v43  ;;  %v3765_v5 = vrot.slane %v3764_v29, 4  ;;  %v17734_v19 = vld [vmem:[%s19828_s3 + $0x58] sm:$0xff]   ;;  %v4941_v55 = vld [vmem:[#allocation2 + $0x20] sm:$0xf]  ;;  %v4979_v27 = vrot.slane %v4977_v21, 5  ;;  %v4969_v31 = vshll.u32 %v4936_v32, 16 }
 0x2c8   : > { %14815 = vmatprep.mubr.msk.bf16.mxu0 %vm1128_vm0, %v17667_v36  ;;  %v4938_v35 = vld [vmem:[#allocation2 + $0x14] sm:$0x1]  ;;  %v4940_v60 = vld [vmem:[#allocation2 + $0x1c] sm:$0x1]  ;;  %v5002_v4 = vshrl.u32 %v4941_v55, 16  ;;  %v5005_v59 = vshll.u32 %v4941_v55, 16 }
 0x2c9   : > { %v3770_v11 = vsel %vm17542_vm9, %v3765_v5, %v3769_v22  ;;  %v5016_v38 = vshrl.u32 %v4943_v39, 16  ;;  %v5019_v20 = vshll.u32 %v4943_v39, 16  ;;  %v4980_v54 = vor.u32 %v4979_v27, %v4976_v16  ;;  %v17745_v5 = vld [vmem:[%s19828_s3 + $0x60] sm:$0xff]   ;;  %v17747_v22 = vld [vmem:[#allocation2 + $0x108] ss:$8 sps:$4 sm:$0xff]  }
 0x2ca   : > { %v17677_v7 = vcombine.low %v3756_v6, %v3770_v11  ;;  %v4990_v29 = vrot.slane %v4988_v25, 4  ;;  %v4993_v53 = vrot.slane %v4991_v2, 5  ;;  %v4983_v11 = vshll.u32 %v4938_v35, 16  ;;  %v4947_v49 = vld [vmem:[#allocation2 + $0x38] sm:$0xf] }
 0x2cb   : > { %v5004_v3 = vrot.slane %v5002_v4, 4  ;;  %v5018_v46 = vrot.slane %v5016_v38, 4  ;;  %v5021_v21 = vrot.slane %v5019_v20, 5  ;;  %v4981_v32 = vrot.slane %v4980_v54, 4  ;;  %v4944_v55 = vld [vmem:[#allocation2 + $0x2c] sm:$0x1] }
 0x2cc   : > { %14520 = vmatmul.mubr.msk.bf16.gmra.mrb[8].mxu1 %vm1128_vm0, %v17677_v7  ;;  %v4949_v39 = vld [vmem:[#allocation2 + $0x40] sm:$0xf]  ;;  %v4985_v16 = vrot.slane %v4983_v11, 5  ;;  %v4946_v25 = vld [vmem:[#allocation2 + $0x34] sm:$0x1]  ;;  %v5025_v54 = vshll.u32 %v4944_v55, 16 }
 0x2cd   : > { %14527 = vmatprep.mubr.msk.bf16.mxu1 %vm1128_vm0, %v16144_v26  ;;  %v4997_v26 = vshll.u32 %v4940_v60, 16  ;;  %v4951_v2 = vld [vmem:[#allocation2 + $0x48] sm:$0xf]  ;;  %v4953_v60 = vld [vmem:[#allocation2 + $0x50] sm:$0xf]  ;;  %v5022_v4 = vor.u32 %v5021_v21, %v5018_v46  ;;  %v5058_v38 = vshrl.u32 %v4949_v39, 16 }
 0x2ce   : > { %v5061_v20 = vshll.u32 %v4949_v39, 16  ;;  %v5086_v11 = vshrl.u32 %v4953_v60, 16  ;;  %v17774_v46 = vld [vmem:[#allocation2 + $0x128] ss:$8 sps:$4 sm:$0xff]   ;;  %v4955_v39 = vld [vmem:[#allocation2 + $0x58] sm:$0xf] }
 0x2cf   : > { %14816 = vmatmul.mubr.msk.bf16.vlgmr.msra.gmra.mrb[192].mxu0 %vm1128_vm0, %v17682_v37  ;;  %v17764_v27 = vrot.slane %v4997_v26, 5  ;;  %v5089_v26 = vshll.u32 %v4953_v60, 16  ;;  %v5023_v21 = vrot.slane %v5022_v4, 4  ;;  %v4950_v60 = vld [vmem:[#allocation2 + $0x44] sm:$0x1] }
 0x2d0   : > { %14819 = vmatprep.mubr.msk.bf16.mxu0 %vm1128_vm0, %v17687_v24  ;;  %14828 = vmatpush3.bf16.msra.mxu0 %v17603_v45 }
 0x2d1   : > { %14829 = vmatprep.subr.bf16.mxu0 %v15831_v9 }
 0x2d4   : > { %14528 = vmatmul.mubr.msk.bf16.vlgmr.msra.gmra.mrb[0].mxu1 %vm1128_vm0, %v16145_v14  ;;  %14830 = vmatpush3.bf16.msra.mxu0 %v15831_v9  ;;  %v17752_v14 = vld [vmem:[#allocation2 + $0x118] ss:$8 sps:$4 sm:$0xff]  }
 0x2d5   : > { %14540 = vmatpush3.bf16.msra.mxu1 %v17603_v45  ;;  %14531 = vmatprep.mubr.msk.bf16.mxu1 %vm1128_vm0, %v16146_v61  ;;  %v4935_v45 = vld [vmem:[#allocation2 + $0x8] sm:$0xf]  ;;  %v4971_v61 = vrot.slane %v4969_v31, 5  ;;  %v5047_v31 = vshll.u32 %v4947_v49, 16 }
 0x2d6   : > { %14541 = vmatprep.subr.bf16.mxu1 %v15831_v9  ;;  %14843 = vmatprep.subr.bf16.mxu0 %v17697_v51  ;;  %v4960_v47 = vshrl.u32 %v4935_v45, 16  ;;  %v4963_v34 = vshll.u32 %v4935_v45, 16  ;;  %v4942_v45 = vld [vmem:[#allocation2 + $0x24] sm:$0x1] }
 0x2d7   : > { %14820 = vmatmul.mubr.msk.bf16.gmra.mrb[196].mxu0 %vm1128_vm0, %v17702_v1  ;;  %v5011_v35 = vshll.u32 %v4942_v45, 16 }
 0x2d8   : > { %14823 = vmatprep.mubr.msk.bf16.mxu0 %vm1128_vm0, %v17704_v44  ;;  %v4965_v12 = vrot.slane %v4963_v34, 5  ;;  %v16149_v34 = vld [vmem:[#allocation2 + $0x158] ss:$8 sps:$4 sm:$0xff]  }
 0x2d9   : > { %14542 = vmatpush3.bf16.msra.mxu1 %v15831_v9  ;;  %v16148_v9 = vld [vmem:[#allocation2 + $0x148] ss:$8 sps:$4 sm:$0xff]   ;;  %v5013_v45 = vrot.slane %v5011_v35, 5  ;;  %v5091_v35 = vrot.slane %v5089_v26, 5 }
 0x2da   : > { %14555 = vmatprep.subr.bf16.mxu1 %v17697_v51 }
 0x2dc   : > { %14532 = vmatmul.mubr.msk.bf16.gmra.mrb[4].mxu1 %vm1128_vm0, %v17484_v18  ;;  %v4962_v18 = vrot.slane %v4960_v47, 4  ;;  %v5007_v47 = vrot.slane %v5005_v59, 5 }
 0x2dd   : > { %14535 = vmatprep.mubr.msk.bf16.mxu1 %vm1128_vm0, %v17521_v17  ;;  %v17726_v17 = vld [vmem:[#allocation2 + $0xe8] ss:$8 sps:$4 sm:$0xff]  }
 0x2de   : > { %v4966_v50 = vor.u32 %v4965_v12, %v4962_v18 }
 0x2df   : > { %14824 = vmatmul.mubr.msk.bf16.gmra.mrb[200].mxu0 %vm1128_vm0, %v17716_v41 }
 0x2e0   : > { %14831 = vmatprep.mubr.msk.bf16.mxu0 %vm1128_vm0, %v17718_v10  ;;  %v17749_v6 = vrot.slane %v4966_v50, 4  ;;  %v5044_v50 = vshrl.u32 %v4947_v49, 16  ;;  %v5063_v49 = vrot.slane %v5061_v20, 5 }
 0x2e4   : > { %14536 = vmatmul.mubr.msk.bf16.gmra.mrb[8].mxu1 %vm1128_vm0, %v17546_v30  ;;  %v4945_v30 = vld [vmem:[#allocation2 + $0x30] sm:$0xf] }
 0x2e5   : > { %14543 = vmatprep.mubr.msk.bf16.mxu1 %vm1128_vm0, %v16147_v57  ;;  %v5030_v33 = vshrl.u32 %v4945_v30, 16  ;;  %v5033_v40 = vshll.u32 %v4945_v30, 16  ;;  %v4994_v57 = vor.u32 %v4993_v53, %v4990_v29  ;;  %v5008_v30 = vor.u32 %v5007_v47, %v5004_v3 }
 0x2e6   : > { %v5039_v29 = vshll.u32 %v4946_v25, 16  ;;  %v5072_v53 = vshrl.u32 %v4951_v2, 16  ;;  %v5046_v3 = vrot.slane %v5044_v50, 4  ;;  %v5049_v47 = vrot.slane %v5047_v31, 5  ;;  %v4957_v50 = vld [vmem:[#allocation2 + $0x60] sm:$0xf] }
 0x2e7   : > { %14832 = vmatmul.mubr.msk.bf16.vlgmr.msra.gmra.mrb[192].mxu0 %vm1128_vm0, %v17726_v17  ;;  %v5032_v18 = vrot.slane %v5030_v33, 4  ;;  %v5035_v12 = vrot.slane %v5033_v40, 5  ;;  %v4986_v33 = vsel %vm17542_vm9, %v4981_v32, %v4985_v16  ;;  %v4995_v40 = vrot.slane %v4994_v57, 4  ;;  %v4948_v31 = vld [vmem:[#allocation2 + $0x3c] sm:$0x1] }
 0x2e8   : > { %14835 = vmatprep.mubr.msk.bf16.mxu0 %vm1128_vm0, %v17728_v8  ;;  %14844 = vmatpush3.bf16.msra.mxu0 %v17697_v51  ;;  %v5027_v57 = vrot.slane %v5025_v54, 5  ;;  %v5041_v55 = vrot.slane %v5039_v29, 5  ;;  %v5074_v25 = vrot.slane %v5072_v53, 4  ;;  %v5050_v4 = vor.u32 %v5049_v47, %v5046_v3  ;;  %v4952_v54 = vld [vmem:[#allocation2 + $0x4c] sm:$0x1] }
 0x2e9   : > { %14845 = vmatprep.subr.bf16.mxu0 %v17734_v19  ;;  %v5036_v59 = vor.u32 %v5035_v12, %v5032_v18  ;;  %v5060_v12 = vrot.slane %v5058_v38, 4  ;;  %v4954_v29 = vld [vmem:[#allocation2 + $0x54] sm:$0x1]  ;;  %v5100_v53 = vshrl.u32 %v4955_v39, 16  ;;  %v5117_v26 = vshll.u32 %v4957_v50, 16 }
 0x2ea   : > { %v5028_v38 = vsel %vm17542_vm9, %v5023_v21, %v5027_v57  ;;  %v17793_v47 = vld [vmem:[#allocation2 + $0x188] ss:$8 sps:$4 sm:$0xff]  }
 0x2eb   : > { %v5037_v18 = vrot.slane %v5036_v59, 4 }
 0x2ec   : > { %14544 = vmatmul.mubr.msk.bf16.vlgmr.msra.gmra.mrb[0].mxu1 %vm1128_vm0, %v16148_v9  ;;  %14846 = vmatpush3.bf16.msra.mxu0 %v17734_v19  ;;  %v2738_v9 = vld [vmem:[#allocation2 + $0xcc] sm:$0x1] }
 0x2ed   : > { %14556 = vmatpush3.bf16.msra.mxu1 %v17697_v51  ;;  %14547 = vmatprep.mubr.msk.bf16.mxu1 %vm1128_vm0, %v16149_v34  ;;  %v4972_v51 = vsel %vm17542_vm9, %v17749_v6, %v4971_v61  ;;  %v5075_v6 = vshll.u32 %v4951_v2, 16  ;;  %v16150_v61 = vld [vmem:[#allocation2 + $0x168] ss:$8 sps:$4 sm:$0xff]   ;;  %v16151_v34 = vld [vmem:[#allocation2 + $0x178] ss:$8 sps:$4 sm:$0xff]   ;;  %v2739_v16 = vsel %vm16922_vm4, 0, %v2738_v9  ;;  %v5042_v20 = vsel %vm17542_vm9, %v5037_v18, %v5041_v55 }
 0x2ee   : > { %14557 = vmatprep.subr.bf16.mxu1 %v17734_v19  ;;  %14859 = vmatprep.subr.bf16.mxu0 %v17745_v5  ;;  %v17776_v32 = vcombine.low %v4972_v51, %v4986_v33  ;;  %2740 = vst [vmem:[#allocation2 + $0xcc] sm:$0x1] %v2739_v16  ;;  %v5000_v51 = vsel %vm17542_vm9, %v4995_v40, %v17764_v27  ;;  %v2758_v27 = vld [vmem:[#allocation2 + $0xf4] sm:$0x1]  ;;  %v5053_v40 = vshll.u32 %v4948_v31, 16  ;;  %v5067_v9 = vshll.u32 %v4950_v60, 16 }
 0x2ef   : > { %14836 = vmatmul.mubr.msk.bf16.gmra.mrb[196].mxu0 %vm1128_vm0, %v17747_v22  ;;  %v5077_v2 = vrot.slane %v5075_v6, 5  ;;  %v5064_v33 = vor.u32 %v5063_v49, %v5060_v12  ;;  %v5103_v6 = vshll.u32 %v4955_v39, 16  ;;  %v17801_v21 = vcombine.low %v5028_v38, %v5042_v20  ;;  %v15842_v49 = vld [vmem:[%s19828_s3 + $0x68] sm:$0xff]   ;;  %v2762_v55 = vld [vmem:[#allocation2 + $0xfc] sm:$0x1] }
 0x2f0   : > { %14839 = vmatprep.mubr.msk.bf16.mxu0 %vm1128_vm0, %v17752_v14  ;;  %20182 = vst [vmem:[#allocation33_spill] sm:$0xff] %v17776_v32  ;;  %v5095_v12 = vshll.u32 %v4954_v29, 16  ;;  %v2759_v57 = vsel %vm16922_vm4, 0, %v2758_v27  ;;  %v5102_v39 = vrot.slane %v5100_v53, 4  ;;  %v2770_v60 = vld [vmem:[#allocation2 + $0x10c] sm:$0x1] }
 0x2f1   : > { %14558 = vmatpush3.bf16.msra.mxu1 %v17734_v19  ;;  %v5009_v19 = vrot.slane %v5008_v30, 4  ;;  %v5088_v30 = vrot.slane %v5086_v11, 4  ;;  %v5114_v11 = vshrl.u32 %v4957_v50, 16  ;;  %20184 = vst [vmem:[#allocation3_spill] sm:$0xff] %v17801_v21  ;;  %v5065_v18 = vrot.slane %v5064_v33, 4 }
 0x2f2   : > { %14571 = vmatprep.subr.bf16.mxu1 %v17745_v5  ;;  %v5105_v16 = vrot.slane %v5103_v6, 5  ;;  %2760 = vst [vmem:[#allocation2 + $0xf4] sm:$0x1] %v2759_v57  ;;  %v5069_v50 = vrot.slane %v5067_v9, 5  ;;  %v5097_v33 = vrot.slane %v5095_v12, 5  ;;  %v2771_v27 = vsel %vm16922_vm4, 0, %v2770_v60 }
 0x2f3   : > { %v5014_v59 = vsel %vm17542_vm9, %v5009_v19, %v5013_v45  ;;  %v5092_v3 = vor.u32 %v5091_v35, %v5088_v30  ;;  %v5051_v45 = vrot.slane %v5050_v4, 4  ;;  %v2766_v30 = vld [vmem:[#allocation2 + $0x104] sm:$0x1]  ;;  %v5055_v35 = vrot.slane %v5053_v40, 5  ;;  %2772 = vst [vmem:[#allocation2 + $0x10c] sm:$0x1] %v2771_v27 }
 0x2f4   : > { %14548 = vmatmul.mubr.msk.bf16.gmra.mrb[4].mxu1 %vm1128_vm0, %v16150_v61  ;;  %v5078_v61 = vor.u32 %v5077_v2, %v5074_v25  ;;  %v17797_v19 = vcombine.low %v5000_v51, %v5014_v59  ;;  %v5116_v25 = vrot.slane %v5114_v11, 4  ;;  %v5119_v2 = vrot.slane %v5117_v26, 5  ;;  %v4958_v29 = vld [vmem:[#allocation2 + $0x64] sm:$0x1]  ;;  %v17822_v11 = vld [vmem:[%s19828_s3 + $0x70] sm:$0xff]  }
 0x2f5   : > { %14551 = vmatprep.mubr.msk.bf16.mxu1 %vm1128_vm0, %v16151_v34  ;;  %v5081_v34 = vshll.u32 %v4952_v54, 16  ;;  %v5093_v31 = vrot.slane %v5092_v3, 4  ;;  %v2763_v4 = vsel %vm16922_vm4, 0, %v2762_v55  ;;  %v5056_v59 = vsel %vm17542_vm9, %v5051_v45, %v5055_v35  ;;  %v4956_v54 = vld [vmem:[#allocation2 + $0x5c] sm:$0x1]  ;;  %v17889_v27 = vld [vmem:[%s19828_s3 + $0x80] sm:$0xff]  }
 0x2f6   : > { %20183 = vst [vmem:[#allocation34_spill] sm:$0xff] %v17797_v19  ;;  %v5079_v51 = vrot.slane %v5078_v61, 4  ;;  %v5070_v38 = vsel %vm17542_vm9, %v5065_v18, %v5069_v50  ;;  %2764 = vst [vmem:[#allocation2 + $0xfc] sm:$0x1] %v2763_v4  ;;  %v5106_v53 = vor.u32 %v5105_v16, %v5102_v39  ;;  %v5120_v6 = vor.u32 %v5119_v2, %v5116_v25  ;;  %v2774_v45 = vld [vmem:[#allocation2 + $0x114] sm:$0x1] }
 0x2f7   : > { %14840 = vmatmul.mubr.msk.bf16.gmra.mrb[200].mxu0 %vm1128_vm0, %v17774_v46  ;;  %v5083_v20 = vrot.slane %v5081_v34, 5  ;;  %v2767_v26 = vsel %vm16922_vm4, 0, %v2766_v30  ;;  %v5098_v9 = vsel %vm17542_vm9, %v5093_v31, %v5097_v33  ;;  %v5109_v61 = vshll.u32 %v4956_v54, 16  ;;  %v2778_v18 = vld [vmem:[#allocation2 + $0x11c] sm:$0x1] }
 0x2f8   : > { %14847 = vmatprep.mubr.msk.bf16.mxu0 %vm1128_vm0, %v17776_v32  ;;  %2768 = vst [vmem:[#allocation2 + $0x104] sm:$0x1] %v2767_v26  ;;  %v5123_v3 = vshll.u32 %v4958_v29, 16  ;;  %v17837_v34 = vcombine.low %v5056_v59, %v5070_v38  ;;  %v5107_v57 = vrot.slane %v5106_v53, 4  ;;  %v5121_v55 = vrot.slane %v5120_v6, 4  ;;  %v15849_v29 = vld [vmem:[%s19828_s3 + $0x78] sm:$0xff]  }
 0x2f9   : > { %v5084_v40 = vsel %vm17542_vm9, %v5079_v51, %v5083_v20  ;;  %v2775_v39 = vsel %vm16922_vm4, 0, %v2774_v45  ;;  %v2779_v25 = vsel %vm16922_vm4, 0, %v2778_v18  ;;  %v2782_v35 = vld [vmem:[#allocation2 + $0x124] sm:$0x1]  ;;  %v2786_v50 = vld [vmem:[#allocation2 + $0x12c] sm:$0x1] }
 0x2fa   : > { %20185 = vst [vmem:[#allocation35_spill] sm:$0xff] %v17837_v34  ;;  %v17839_v12 = vcombine.low %v5084_v40, %v5098_v9  ;;  %v5125_v16 = vrot.slane %v5123_v3, 5  ;;  %2776 = vst [vmem:[#allocation2 + $0x114] sm:$0x1] %v2775_v39  ;;  %v15843_v31 = vld [vmem:[#allocation2 + $0x70] ss:$8 sps:$4 sm:$0xff]  }
 0x2fb   : > { %2780 = vst [vmem:[#allocation2 + $0x11c] sm:$0x1] %v2779_v25  ;;  %v2787_v60 = vsel %vm16922_vm4, 0, %v2786_v50  ;;  %v2794_v4 = vld [vmem:[#allocation2 + $0x13c] sm:$0x1] }
 0x2fc   : > { %14552 = vmatmul.mubr.msk.bf16.gmra.mrb[8].mxu1 %vm1128_vm0, %v17793_v47  ;;  %20186 = vst [vmem:[#allocation36_spill] sm:$0xff] %v17839_v12  ;;  %v5126_v30 = vsel %vm17542_vm9, %v5121_v55, %v5125_v16  ;;  %2788 = vst [vmem:[#allocation2 + $0x12c] sm:$0x1] %v2787_v60  ;;  %v2798_v59 = vld [vmem:[#allocation2 + $0x144] sm:$0x1]  ;;  %v2795_v38 = vsel %vm16922_vm4, 0, %v2794_v4 }
 0x2fd   : > { %14559 = vmatprep.mubr.msk.bf16.mxu1 %vm1128_vm0, %v17564_v62  ;;  %v2799_v20 = vsel %vm16922_vm4, 0, %v2798_v59  ;;  %2796 = vst [vmem:[#allocation2 + $0x13c] sm:$0x1] %v2795_v38  ;;  %v2802_v33 = vld [vmem:[#allocation2 + $0x14c] sm:$0x1] }
 0x2fe   : > { %2800 = vst [vmem:[#allocation2 + $0x144] sm:$0x1] %v2799_v20  ;;  %v15844_v54 = vld [vmem:[#allocation2 + $0x80] ss:$8 sps:$4 sm:$0xff]   ;;  %v2806_v53 = vld [vmem:[#allocation2 + $0x154] sm:$0x1] }
 0x2ff   : > { %14848 = vmatmul.mubr.msk.bf16.vlgmr.msra.gmra.mrb[192].mxu0 %vm1128_vm0, %v17797_v19  ;;  %v15846_v6 = vld [vmem:[#allocation2 + $0x90] ss:$8 sps:$4 sm:$0xff]   ;;  %v2803_v26 = vsel %vm16922_vm4, 0, %v2802_v33  ;;  %v2810_v40 = vld [vmem:[#allocation2 + $0x15c] sm:$0x1]  ;;  %v15857_v38 = vld [vmem:[%s19828_s3 + $0x88] sm:$0xff]  }
 0x300   : > { %14851 = vmatprep.mubr.msk.bf16.mxu0 %vm1128_vm0, %v17801_v21  ;;  %14860 = vmatpush3.bf16.msra.mxu0 %v17745_v5  ;;  %2804 = vst [vmem:[#allocation2 + $0x14c] sm:$0x1] %v2803_v26  ;;  %v2814_v9 = vld [vmem:[#allocation2 + $0x164] sm:$0x1]  ;;  %v2811_v3 = vsel %vm16922_vm4, 0, %v2810_v40 }
 0x301   : > { %14861 = vmatprep.subr.bf16.mxu0 %v15842_v49  ;;  %v15848_v45 = vld [vmem:[#allocation2 + $0xb0] ss:$8 sps:$4 sm:$0xff]   ;;  %2812 = vst [vmem:[#allocation2 + $0x15c] sm:$0x1] %v2811_v3  ;;  %v2815_v18 = vsel %vm16922_vm4, 0, %v2814_v9 }
 0x302   : > { %2816 = vst [vmem:[#allocation2 + $0x164] sm:$0x1] %v2815_v18  ;;  %v2826_v55 = vld [vmem:[#allocation2 + $0x17c] sm:$0x1]  ;;  %v15850_v39 = vld [vmem:[#allocation2 + $0xc0] ss:$8 sps:$4 sm:$0xff]  }
 0x303   : > { %v15851_v16 = vld [vmem:[#allocation2 + $0x140] ss:$8 sps:$4 sm:$0xff]   ;;  %v7612_v25 = vld [vmem:[#allocation2 + $0x70] sm:$0xf]  ;;  %v2838_v60 = vld [vmem:[#allocation2 + $0x194] sm:$0x1] }
 0x304   : > { %14560 = vmatmul.mubr.msk.bf16.vlgmr.msra.gmra.mrb[0].mxu1 %vm1128_vm0, %v17583_v58  ;;  %14862 = vmatpush3.bf16.msra.mxu0 %v15842_v49  ;;  %v7640_v50 = vshll.u32 %v7612_v25, 16  ;;  %v15852_v4 = vld [vmem:[#allocation2 + $0x150] ss:$8 sps:$4 sm:$0xff]   ;;  %v15854_v59 = vld [vmem:[#allocation2 + $0x160] ss:$8 sps:$4 sm:$0xff]  }
 0x305   : > { %14572 = vmatpush3.bf16.msra.mxu1 %v17745_v5  ;;  %14563 = vmatprep.mubr.msk.bf16.mxu1 %vm1128_vm0, %v17597_v52  ;;  %v5111_v5 = vrot.slane %v5109_v61, 5  ;;  %v15847_v61 = vld [vmem:[#allocation2 + $0xa0] ss:$8 sps:$4 sm:$0xff]   ;;  %v7622_v26 = vld [vmem:[#allocation2 + $0x98] sm:$0xf] }
 0x306   : > { %14573 = vmatprep.subr.bf16.mxu1 %v15842_v49  ;;  %14875 = vmatprep.subr.bf16.mxu0 %v17822_v11  ;;  %v7642_v33 = vrot.slane %v7640_v50, 5  ;;  %v7615_v3 = vld [vmem:[#allocation2 + $0x7c] sm:$0x1]  ;;  %v7707_v18 = vshrl.u32 %v7622_v26, 16 }
 0x307   : > { %14852 = vmatmul.mubr.msk.bf16.gmra.mrb[196].mxu0 %vm1128_vm0, %v17837_v34  ;;  %v5112_v2 = vsel %vm17542_vm9, %v5107_v57, %v5111_v5  ;;  %v2830_v5 = vld [vmem:[#allocation2 + $0x184] sm:$0x1] }
 0x308   : > { %14855 = vmatprep.mubr.msk.bf16.mxu0 %vm1128_vm0, %v17839_v12  ;;  %v17859_v51 = vcombine.low %v5112_v2, %v5126_v30  ;;  %v7614_v2 = vld [vmem:[#allocation2 + $0x78] sm:$0xf]  ;;  %v2827_v30 = vsel %vm16922_vm4, 0, %v2826_v55 }
 0x309   : > { %14574 = vmatpush3.bf16.msra.mxu1 %v15842_v49  ;;  %v2783_v49 = vsel %vm16922_vm4, 0, %v2782_v35  ;;  %2828 = vst [vmem:[#allocation2 + $0x17c] sm:$0x1] %v2827_v30  ;;  %v7637_v35 = vshrl.u32 %v7612_v25, 16  ;;  %v15855_v55 = vld [vmem:[#allocation2 + $0x170] ss:$8 sps:$4 sm:$0xff]  }
 0x30a   : > { %14587 = vmatprep.subr.bf16.mxu1 %v17822_v11  ;;  %2784 = vst [vmem:[#allocation2 + $0x124] sm:$0x1] %v2783_v49  ;;  %v7654_v49 = vshll.u32 %v7614_v2, 16  ;;  %v15856_v25 = vld [vmem:[#allocation2 + $0x180] ss:$8 sps:$4 sm:$0xff]  }
 0x30b   : > { %v7639_v20 = vrot.slane %v7637_v35, 4  ;;  %v7617_v30 = vld [vmem:[#allocation2 + $0x84] sm:$0x1] }
 0x30c   : > { %14564 = vmatmul.mubr.msk.bf16.gmra.mrb[4].mxu1 %vm1128_vm0, %v17633_v23 }
 0x30d   : > { %14567 = vmatprep.mubr.msk.bf16.mxu1 %vm1128_vm0, %v17641_v48 }
 0x30f   : > { %14856 = vmatmul.mubr.msk.bf16.gmra.mrb[200].mxu0 %vm1128_vm0, %v17859_v51 }
 0x310   : > { %14863 = vmatprep.mubr.msk.bf16.mxu0 %vm1128_vm0, %v15843_v31  ;;  %v2834_v31 = vld [vmem:[#allocation2 + $0x18c] sm:$0x1] }
 0x314   : > { %14568 = vmatmul.mubr.msk.bf16.gmra.mrb[8].mxu1 %vm1128_vm0, %v17665_v43 }
 0x315   : > { %14575 = vmatprep.mubr.msk.bf16.mxu1 %vm1128_vm0, %v17667_v36  ;;  %v2807_v36 = vsel %vm16922_vm4, 0, %v2806_v53 }
 0x316   : > { %2808 = vst [vmem:[#allocation2 + $0x154] sm:$0x1] %v2807_v36  ;;  %v7613_v36 = vld [vmem:[#allocation2 + $0x74] sm:$0x1] }
 0x317   : > { %14864 = vmatmul.mubr.msk.bf16.vlgmr.msra.gmra.mrb[192].mxu0 %vm1128_vm0, %v15844_v54  ;;  %v7618_v54 = vld [vmem:[#allocation2 + $0x88] sm:$0xf] }
 0x318   : > { %14867 = vmatprep.mubr.msk.bf16.mxu0 %vm1128_vm0, %v15846_v6  ;;  %14876 = vmatpush3.bf16.msra.mxu0 %v17822_v11  ;;  %v7656_v6 = vrot.slane %v7654_v49, 5  ;;  %v7679_v40 = vshrl.u32 %v7618_v54, 16  ;;  %v7682_v9 = vshll.u32 %v7618_v54, 16 }
 0x319   : > { %14877 = vmatprep.subr.bf16.mxu0 %v15849_v29 }
 0x31a   : > { %v7684_v35 = vrot.slane %v7682_v9, 5 }
 0x31c   : > { %14576 = vmatmul.mubr.msk.bf16.vlgmr.msra.gmra.mrb[0].mxu1 %vm1128_vm0, %v17682_v37  ;;  %14878 = vmatpush3.bf16.msra.mxu0 %v15849_v29  ;;  %v2818_v37 = vld [vmem:[#allocation2 + $0x16c] sm:$0x1] }
 0x31d   : > { %14588 = vmatpush3.bf16.msra.mxu1 %v17822_v11  ;;  %14579 = vmatprep.mubr.msk.bf16.mxu1 %vm1128_vm0, %v17687_v24  ;;  %v2822_v11 = vld [vmem:[#allocation2 + $0x174] sm:$0x1]  ;;  %v2819_v24 = vsel %vm16922_vm4, 0, %v2818_v37  ;;  %v7710_v37 = vshll.u32 %v7622_v26, 16  ;;  %v7630_v26 = vld [vmem:[#allocation2 + $0xb8] sm:$0xf] }
 0x31e   : > { %14589 = vmatprep.subr.bf16.mxu1 %v15849_v29  ;;  %14891 = vmatprep.subr.bf16.mxu0 %v17889_v27  ;;  %v2823_v57 = vsel %vm16922_vm4, 0, %v2822_v11  ;;  %2820 = vst [vmem:[#allocation2 + $0x16c] sm:$0x1] %v2819_v24 }
 0x31f   : > { %14868 = vmatmul.mubr.msk.bf16.gmra.mrb[196].mxu0 %vm1128_vm0, %v15847_v61  ;;  %2824 = vst [vmem:[#allocation2 + $0x174] sm:$0x1] %v2823_v57  ;;  %v7620_v61 = vld [vmem:[#allocation2 + $0x90] sm:$0xf]  ;;  %v7712_v49 = vrot.slane %v7710_v37, 5 }
 0x320   : > { %14871 = vmatprep.mubr.msk.bf16.mxu0 %vm1128_vm0, %v15848_v45  ;;  %v7643_v45 = vor.u32 %v7642_v33, %v7639_v20  ;;  %v7621_v33 = vld [vmem:[#allocation2 + $0x94] sm:$0x1]  ;;  %v7628_v37 = vld [vmem:[#allocation2 + $0xb0] sm:$0xf] }
 0x321   : > { %14590 = vmatpush3.bf16.msra.mxu1 %v15849_v29  ;;  %v2835_v29 = vsel %vm16922_vm4, 0, %v2834_v31  ;;  %v7626_v31 = vld [vmem:[#allocation2 + $0xa8] sm:$0xf] }
 0x322   : > { %14603 = vmatprep.subr.bf16.mxu1 %v17889_v27  ;;  %2836 = vst [vmem:[#allocation2 + $0x18c] sm:$0x1] %v2835_v29  ;;  %v7644_v50 = vrot.slane %v7643_v45, 4  ;;  %v7738_v9 = vshll.u32 %v7626_v31, 16 }
 0x324   : > { %14580 = vmatmul.mubr.msk.bf16.gmra.mrb[4].mxu1 %vm1128_vm0, %v17702_v1  ;;  %v2831_v1 = vsel %vm16922_vm4, 0, %v2830_v5  ;;  %v7693_v5 = vshrl.u32 %v7620_v61, 16 }
 0x325   : > { %14583 = vmatprep.mubr.msk.bf16.mxu1 %vm1128_vm0, %v17704_v44  ;;  %2832 = vst [vmem:[#allocation2 + $0x184] sm:$0x1] %v2831_v1  ;;  %v7651_v44 = vshrl.u32 %v7614_v2, 16  ;;  %v7660_v2 = vshll.u32 %v7615_v3, 16  ;;  %v7681_v1 = vrot.slane %v7679_v40, 4 }
 0x326   : > { %v7695_v54 = vrot.slane %v7693_v5, 4  ;;  %v7624_v40 = vld [vmem:[#allocation2 + $0xa0] sm:$0xf] }
 0x327   : > { %14872 = vmatmul.mubr.msk.bf16.gmra.mrb[200].mxu0 %vm1128_vm0, %v15850_v39  ;;  %v7653_v53 = vrot.slane %v7651_v44, 4  ;;  %v7646_v39 = vshll.u32 %v7613_v36, 16  ;;  %v7709_v44 = vrot.slane %v7707_v18, 4  ;;  %v17946_v18 = vld [vmem:[%s19828_s3 + $0x10] sm:$0xff]   ;;  %v7721_v5 = vshrl.u32 %v7624_v40, 16 }
 0x328   : > { %14879 = vmatprep.mubr.msk.bf16.mxu0 %vm1128_vm0, %v15851_v16  ;;  %v7696_v16 = vshll.u32 %v7620_v61, 16 }
 0x329   : > { %v7657_v11 = vor.u32 %v7656_v6, %v7653_v53  ;;  %v7648_v20 = vrot.slane %v7646_v39, 5  ;;  %v7685_v53 = vor.u32 %v7684_v35, %v7681_v1  ;;  %v7735_v6 = vshrl.u32 %v7626_v31, 16 }
 0x32a   : > { %v7698_v29 = vrot.slane %v7696_v16, 5  ;;  %v7713_v36 = vor.u32 %v7712_v49, %v7709_v44  ;;  %v7724_v16 = vshll.u32 %v7624_v40, 16  ;;  %v7740_v1 = vrot.slane %v7738_v9, 5 }
 0x32b   : > { %v7686_v39 = vrot.slane %v7685_v53, 4  ;;  %v7749_v35 = vshrl.u32 %v7628_v37, 16 }
 0x32c   : > { %14584 = vmatmul.mubr.msk.bf16.gmra.mrb[8].mxu1 %vm1128_vm0, %v17716_v41  ;;  %v2839_v41 = vsel %vm16922_vm4, 0, %v2838_v60  ;;  %v7658_v60 = vrot.slane %v7657_v11, 4  ;;  %v7699_v11 = vor.u32 %v7698_v29, %v7695_v54  ;;  %v7625_v29 = vld [vmem:[#allocation2 + $0xa4] sm:$0x1]  ;;  %v7726_v53 = vrot.slane %v7724_v16, 5 }
 0x32d   : > { %14591 = vmatprep.mubr.msk.bf16.mxu1 %vm1128_vm0, %v17718_v10  ;;  %v7616_v10 = vld [vmem:[#allocation2 + $0x80] sm:$0xf]  ;;  %2840 = vst [vmem:[#allocation2 + $0x194] sm:$0x1] %v2839_v41  ;;  %v7649_v41 = vsel %vm17542_vm9, %v7644_v50, %v7648_v20  ;;  %v7752_v50 = vshll.u32 %v7628_v37, 16 }
 0x32e   : > { %v7665_v24 = vshrl.u32 %v7616_v10, 16  ;;  %v7668_v57 = vshll.u32 %v7616_v10, 16  ;;  %v7674_v10 = vshll.u32 %v7617_v30, 16  ;;  %v7714_v30 = vrot.slane %v7713_v36, 4  ;;  %v7631_v36 = vld [vmem:[#allocation2 + $0xbc] sm:$0x1] }
 0x32f   : > { %14880 = vmatmul.mubr.msk.bf16.vlgmr.msra.gmra.mrb[192].mxu0 %vm1128_vm0, %v15852_v4  ;;  %v7619_v4 = vld [vmem:[#allocation2 + $0x8c] sm:$0x1]  ;;  %v7700_v54 = vrot.slane %v7699_v11, 4 }
 0x330   : > { %14883 = vmatprep.mubr.msk.bf16.mxu0 %vm1128_vm0, %v15854_v59  ;;  %14892 = vmatpush3.bf16.msra.mxu0 %v17889_v27  ;;  %v7667_v59 = vrot.slane %v7665_v24, 4  ;;  %v7688_v45 = vshll.u32 %v7619_v4, 16  ;;  %v7676_v31 = vrot.slane %v7674_v10, 5  ;;  %v7632_v4 = vld [vmem:[#allocation2 + $0xc0] sm:$0xf]  ;;  %v7754_v10 = vrot.slane %v7752_v50, 5 }
 0x331   : > { %14893 = vmatprep.subr.bf16.mxu0 %v15857_v38  ;;  %v7777_v40 = vshrl.u32 %v7632_v4, 16  ;;  %v7780_v9 = vshll.u32 %v7632_v4, 16 }
 0x334   : > { %14592 = vmatmul.mubr.msk.bf16.vlgmr.msra.gmra.mrb[0].mxu1 %vm1128_vm0, %v17726_v17  ;;  %14894 = vmatpush3.bf16.msra.mxu0 %v15857_v38  ;;  %v7670_v17 = vrot.slane %v7668_v57, 5  ;;  %v7763_v57 = vshrl.u32 %v7630_v26, 16 }
 0x335   : > { %14604 = vmatpush3.bf16.msra.mxu1 %v17889_v27  ;;  %14595 = vmatprep.mubr.msk.bf16.mxu1 %vm1128_vm0, %v17728_v8  ;;  %v7662_v27 = vrot.slane %v7660_v2, 5  ;;  %v7623_v8 = vld [vmem:[#allocation2 + $0x9c] sm:$0x1]  ;;  %v15858_v2 = vld [vmem:[#allocation2 + $0x190] ss:$8 sps:$4 sm:$0xff]  }
 0x336   : > { %14605 = vmatprep.subr.bf16.mxu1 %v15857_v38  ;;  %v7671_v3 = vor.u32 %v7670_v17, %v7667_v59  ;;  %v7716_v24 = vshll.u32 %v7623_v8, 16  ;;  %v7765_v17 = vrot.slane %v7763_v57, 4 }
 0x337   : > { %14884 = vmatmul.mubr.msk.bf16.gmra.mrb[196].mxu0 %vm1128_vm0, %v15855_v55  ;;  %v7663_v61 = vsel %vm17542_vm9, %v7658_v60, %v7662_v27  ;;  %v7766_v55 = vshll.u32 %v7630_v26, 16  ;;  %v7690_v60 = vrot.slane %v7688_v45, 5  ;;  %v7723_v27 = vrot.slane %v7721_v5, 4 }
 0x338   : > { %14887 = vmatprep.mubr.msk.bf16.mxu0 %vm1128_vm0, %v15856_v25  ;;  %v7737_v25 = vrot.slane %v7735_v6, 4  ;;  %v17953_v44 = vcombine.low %v7649_v41, %v7663_v61  ;;  %v7672_v49 = vrot.slane %v7671_v3, 4  ;;  %v7718_v59 = vrot.slane %v7716_v24, 5  ;;  %v7627_v6 = vld [vmem:[#allocation2 + $0xac] sm:$0x1] }
 0x339   : > { %14606 = vmatpush3.bf16.msra.mxu1 %v15857_v38  ;;  %v7702_v38 = vshll.u32 %v7621_v33, 16  ;;  %v7768_v20 = vrot.slane %v7766_v55, 5  ;;  %v7634_v33 = vld [vmem:[#allocation2 + $0xc8] sm:$0xf]  ;;  %v7751_v41 = vrot.slane %v7749_v35, 4  ;;  %v7727_v57 = vor.u32 %v7726_v53, %v7723_v27 }
 0x33a   : > { %14619 = vmatprep.subr.bf16.mxu1 %v17946_v18  ;;  %20187 = vst [vmem:[#allocation37_spill] sm:$0xff] %v17953_v44  ;;  %v7719_v8 = vsel %vm17542_vm9, %v7714_v30, %v7718_v59  ;;  %v7741_v26 = vor.u32 %v7740_v1, %v7737_v25  ;;  %v7791_v61 = vshrl.u32 %v7634_v33, 16  ;;  %v7794_v3 = vshll.u32 %v7634_v33, 16  ;;  %v7633_v33 = vld [vmem:[#allocation2 + $0xc4] sm:$0x1] }
 0x33b   : > { %v7677_v45 = vsel %vm17542_vm9, %v7672_v49, %v7676_v31  ;;  %v7769_v37 = vor.u32 %v7768_v20, %v7765_v17  ;;  %v7744_v55 = vshll.u32 %v7627_v6, 16  ;;  %v7755_v25 = vor.u32 %v7754_v10, %v7751_v41  ;;  %v7635_v31 = vld [vmem:[#allocation2 + $0xcc] sm:$0x1] }
 0x33c   : > { %14596 = vmatmul.mubr.msk.bf16.gmra.mrb[4].mxu1 %vm1128_vm0, %v17747_v22  ;;  %v7704_v22 = vrot.slane %v7702_v38, 5  ;;  %v7730_v38 = vshll.u32 %v7625_v29, 16  ;;  %v7742_v16 = vrot.slane %v7741_v26, 4  ;;  %v7779_v30 = vrot.slane %v7777_v40, 4 }
 0x33d   : > { %14599 = vmatprep.mubr.msk.bf16.mxu1 %vm1128_vm0, %v17752_v14  ;;  %v7691_v14 = vsel %vm17542_vm9, %v7686_v39, %v7690_v60  ;;  %v7629_v39 = vld [vmem:[#allocation2 + $0xb4] sm:$0x1]  ;;  %v7782_v1 = vrot.slane %v7780_v9, 5  ;;  %v7793_v35 = vrot.slane %v7791_v61, 4  ;;  %v7770_v49 = vrot.slane %v7769_v37, 4  ;;  %v16154_v9 = vld [vmem:[%s19828_s3 + $0x18] sm:$0xff]  }
 0x33e   : > { %v17966_v11 = vcombine.low %v7677_v45, %v7691_v14  ;;  %v7705_v24 = vsel %vm17542_vm9, %v7700_v54, %v7704_v22  ;;  %v7758_v50 = vshll.u32 %v7629_v39, 16  ;;  %v7728_v60 = vrot.slane %v7727_v57, 4  ;;  %v2790_v22 = vld [vmem:[#allocation2 + $0x134] sm:$0x1]  ;;  %v16155_v57 = vld [vmem:[%s19828_s3] sm:$0xff]  }
 0x33f   : > { %14888 = vmatmul.mubr.msk.bf16.gmra.mrb[200].mxu0 %vm1128_vm0, %v15858_v2  ;;  %v17972_v5 = vcombine.low %v7705_v24, %v7719_v8  ;;  %v7772_v2 = vshll.u32 %v7631_v36, 16  ;;  %v7746_v4 = vrot.slane %v7744_v55, 5  ;;  %v7732_v59 = vrot.slane %v7730_v38, 5  ;;  %v2842_v39 = vld [vmem:[#allocation2 + $0x19c] sm:$0x1] }
 0x340   : > { %14895 = vmatprep.mubr.msk.bf16.mxu0 %vm1128_vm0, %v17953_v44  ;;  %20188 = vst [vmem:[#allocation4_spill] sm:$0xff] %v17966_v11  ;;  %v7756_v17 = vrot.slane %v7755_v25, 4  ;;  %v7783_v54 = vor.u32 %v7782_v1, %v7779_v30  ;;  %v7800_v27 = vshll.u32 %v7635_v31, 16  ;;  %v7760_v53 = vrot.slane %v7758_v50, 5 }
 0x341   : > { %20189 = vst [vmem:[#allocation38_spill] sm:$0xff] %v17972_v5  ;;  %v7774_v20 = vrot.slane %v7772_v2, 5  ;;  %v7747_v14 = vsel %vm17542_vm9, %v7742_v16, %v7746_v4  ;;  %v2791_v6 = vsel %vm16922_vm4, 0, %v2790_v22  ;;  %v7733_v26 = vsel %vm17542_vm9, %v7728_v60, %v7732_v59  ;;  %v16156_v16 = vld [vmem:[%s19828_s3 + $0x8] sm:$0xff]   ;;  %v5436_v60 = vld [vmem:[#allocation2 + $0xd4] sm:$0x1] }
 0x342   : > { %v7786_v41 = vshll.u32 %v7633_v33, 16  ;;  %2792 = vst [vmem:[#allocation2 + $0x134] sm:$0x1] %v2791_v6  ;;  %v17991_v10 = vcombine.low %v7733_v26, %v7747_v14  ;;  %v7761_v36 = vsel %vm17542_vm9, %v7756_v17, %v7760_v53  ;;  %v7784_v61 = vrot.slane %v7783_v54, 4  ;;  %v5438_v4 = vld [vmem:[#allocation2 + $0xdc] sm:$0x1] }
 0x343   : > { %v7775_v8 = vsel %vm17542_vm9, %v7770_v49, %v7774_v20  ;;  %v7802_v45 = vrot.slane %v7800_v27, 5  ;;  %v2843_v25 = vsel %vm16922_vm4, 0, %v2842_v39  ;;  %v16159_v59 = vld [vmem:[#allocation2 + $0xe0] ss:$8 sps:$4 sm:$0xff]   ;;  %v16160_v17 = vld [vmem:[#allocation2 + $0xf0] ss:$8 sps:$4 sm:$0xff]  }
 0x344   : > { %14600 = vmatmul.mubr.msk.bf16.gmra.mrb[8].mxu1 %vm1128_vm0, %v17774_v46  ;;  %v7796_v46 = vrot.slane %v7794_v3, 5  ;;  %20190 = vst [vmem:[#allocation39_spill] sm:$0xff] %v17991_v10  ;;  %v17995_v40 = vcombine.low %v7761_v36, %v7775_v8  ;;  %v7788_v38 = vrot.slane %v7786_v41, 5  ;;  %2844 = vst [vmem:[#allocation2 + $0x19c] sm:$0x1] %v2843_v25  ;;  %v18047_v33 = vld [vmem:[%s19828_s3 + $0x28] sm:$0xff]  }
 0x345   : > { %14607 = vmatprep.mubr.msk.bf16.mxu1 %vm1128_vm0, %v17776_v32  ;;  %v5445_v20 = vld [vmem:[#allocation2 + $0xf8] sm:$0xf]  ;;  %v5469_v54 = vshll.u32 %v5436_v60, 16  ;;  %v5483_v27 = vshll.u32 %v5438_v4, 16  ;;  %v5443_v53 = vld [vmem:[#allocation2 + $0xf0] sm:$0xf] }
 0x346   : > { %v7797_v29 = vor.u32 %v7796_v46, %v7793_v35  ;;  %20191 = vst [vmem:[#allocation40_spill] sm:$0xff] %v17995_v40  ;;  %v7789_v37 = vsel %vm17542_vm9, %v7784_v61, %v7788_v38  ;;  %v5441_v46 = vld [vmem:[#allocation2 + $0xe8] sm:$0xf]  ;;  %v5442_v36 = vld [vmem:[#allocation2 + $0xec] sm:$0x1]  ;;  %v5533_v61 = vshll.u32 %v5445_v20, 16 }
 0x347   : > { %14896 = vmatmul.mubr.msk.bf16.vlgmr.msra.gmra.mrb[192].mxu0 %vm1128_vm0, %v17966_v11  ;;  %v5505_v22 = vshll.u32 %v5441_v46, 16  ;;  %v18054_v39 = vld [vmem:[%s19828_s3 + $0x30] sm:$0xff]  }
 0x348   : > { %14899 = vmatprep.mubr.msk.bf16.mxu0 %vm1128_vm0, %v17972_v5  ;;  %v7798_v3 = vrot.slane %v7797_v29, 4  ;;  %v5444_v4 = vld [vmem:[#allocation2 + $0xf4] sm:$0x1] }
 0x349   : > { %v5507_v41 = vrot.slane %v5505_v22, 5 }
 0x34a   : > { %v7803_v24 = vsel %vm17542_vm9, %v7798_v3, %v7802_v45  ;;  %v5516_v3 = vshrl.u32 %v5443_v53, 16  ;;  %v5519_v45 = vshll.u32 %v5443_v53, 16 }
 0x34b   : > { %v18015_v55 = vcombine.low %v7789_v37, %v7803_v24  ;;  %v5471_v37 = vrot.slane %v5469_v54, 5  ;;  %v5451_v54 = vld [vmem:[#allocation2 + $0x110] sm:$0xf] }
 0x34c   : > { %14608 = vmatmul.mubr.msk.bf16.vlgmr.msra.gmra.mrb[0].mxu1 %vm1128_vm0, %v17797_v19 }
 0x34d   : > { %14620 = vmatpush3.bf16.msra.mxu1 %v17946_v18  ;;  %14611 = vmatprep.mubr.msk.bf16.mxu1 %vm1128_vm0, %v17801_v21  ;;  %20192 = vst [vmem:[#allocation5_spill] sm:$0xff] %v18015_v55 }
 0x34e   : > { %14621 = vmatprep.subr.bf16.mxu1 %v16154_v9 }
 0x34f   : > { %14900 = vmatmul.mubr.msk.bf16.gmra.mrb[196].mxu0 %vm1128_vm0, %v17991_v10 }
 0x350   : > { %14903 = vmatprep.mubr.msk.bf16.mxu0 %vm1128_vm0, %v17995_v40 }
 0x351   : > { %14622 = vmatpush3.bf16.msra.mxu1 %v16154_v9  ;;  %v5530_v9 = vshrl.u32 %v5445_v20, 16 }
 0x352   : > { %14635 = vmatprep.subr.bf16.mxu1 %v16155_v57 }
 0x354   : > { %14612 = vmatmul.mubr.msk.bf16.gmra.mrb[4].mxu1 %vm1128_vm0, %v17837_v34 }
 0x355   : > { %14615 = vmatprep.mubr.msk.bf16.mxu1 %vm1128_vm0, %v17839_v12 }
 0x357   : > { %14904 = vmatmul.mubr.msk.bf16.gmra.mrb[200].mxu0 %vm1128_vm0, %v18015_v55 }
 0x35c   : > { %14616 = vmatmul.mubr.msk.bf16.gmra.mrb[8].mxu1 %vm1128_vm0, %v17859_v51 }
 0x35d   : > { %14623 = vmatprep.mubr.msk.bf16.mxu1 %vm1128_vm0, %v17574_v56  ;;  %v16157_v56 = vld [vmem:[%s19828_s3 + $0x20] sm:$0xff]  }
 0x364   : > { %14624 = vmatmul.mubr.msk.bf16.vlgmr.msra.gmra.mrb[12].mxu1 %vm1128_vm0, %v17612_v63  ;;  %v5435_v63 = vld [vmem:[#allocation2 + $0xd0] sm:$0xf] }
 0x365   : > { %14636 = vmatpush3.bf16.msra.mxu1 %v16155_v57  ;;  %14627 = vmatprep.mubr.msk.bf16.mxu1 %vm1128_vm0, %v17623_v42  ;;  %v5437_v42 = vld [vmem:[#allocation2 + $0xd8] sm:$0xf]  ;;  %v5460_v2 = vshrl.u32 %v5435_v63, 16  ;;  %v5463_v30 = vshll.u32 %v5435_v63, 16  ;;  %v5485_v57 = vrot.slane %v5483_v27, 5  ;;  %v5511_v63 = vshll.u32 %v5442_v36, 16 }
 0x366   : > { %14637 = vmatprep.subr.bf16.mxu1 %v16156_v16  ;;  %v5474_v1 = vshrl.u32 %v5437_v42, 16  ;;  %v5477_v35 = vshll.u32 %v5437_v42, 16  ;;  %v5449_v42 = vld [vmem:[#allocation2 + $0x108] sm:$0xf] }
 0x367   : > { %v5462_v50 = vrot.slane %v5460_v2, 4  ;;  %v5465_v49 = vrot.slane %v5463_v30, 5  ;;  %v5440_v2 = vld [vmem:[#allocation2 + $0xe4] sm:$0x1]  ;;  %v5532_v30 = vrot.slane %v5530_v9, 4  ;;  %v5558_v22 = vshrl.u32 %v5449_v42, 16 }
 0x368   : > { %v5476_v31 = vrot.slane %v5474_v1, 4  ;;  %v5535_v1 = vrot.slane %v5533_v61, 5 }
 0x369   : > { %14638 = vmatpush3.bf16.msra.mxu1 %v16156_v16  ;;  %v5466_v14 = vor.u32 %v5465_v49, %v5462_v50  ;;  %v5518_v50 = vrot.slane %v5516_v3, 4  ;;  %v5521_v49 = vrot.slane %v5519_v45, 5  ;;  %v5560_v9 = vrot.slane %v5558_v22, 4 }
 0x36a   : > { %14651 = vmatprep.subr.bf16.mxu1 %v16157_v56  ;;  %v5572_v3 = vshrl.u32 %v5451_v54, 16  ;;  %v5575_v45 = vshll.u32 %v5451_v54, 16 }
 0x36b   : > { %v5467_v38 = vrot.slane %v5466_v14, 4  ;;  %v5513_v14 = vrot.slane %v5511_v63, 5  ;;  %v5450_v63 = vld [vmem:[#allocation2 + $0x10c] sm:$0x1] }
 0x36c   : > { %14628 = vmatmul.mubr.msk.bf16.gmra.mrb[16].mxu1 %vm1128_vm0, %v17649_v13  ;;  %v5479_v13 = vrot.slane %v5477_v35, 5  ;;  %v16164_v35 = vld [vmem:[#allocation2 + $0x110] ss:$8 sps:$4 sm:$0xff]   ;;  %v5567_v22 = vshll.u32 %v5450_v63, 16 }
 0x36d   : > { %14631 = vmatprep.mubr.msk.bf16.mxu1 %vm1128_vm0, %v17657_v28  ;;  %v5502_v28 = vshrl.u32 %v5441_v46, 16  ;;  %v5446_v46 = vld [vmem:[#allocation2 + $0xfc] sm:$0x1] }
 0x36e   : > { %v5480_v29 = vor.u32 %v5479_v13, %v5476_v31  ;;  %v5453_v31 = vld [vmem:[#allocation2 + $0x118] sm:$0xf]  ;;  %v5472_v13 = vsel %vm17542_vm9, %v5467_v38, %v5471_v37  ;;  %v5539_v27 = vshll.u32 %v5446_v46, 16 }
 0x36f   : > { %v5504_v26 = vrot.slane %v5502_v28, 4  ;;  %v5447_v28 = vld [vmem:[#allocation2 + $0x100] sm:$0xf]  ;;  %v5586_v53 = vshrl.u32 %v5453_v31, 16 }
 0x370   : > { %v5481_v24 = vrot.slane %v5480_v29, 4  ;;  %v5536_v29 = vor.u32 %v5535_v1, %v5532_v30  ;;  %v5547_v36 = vshll.u32 %v5447_v28, 16 }
 0x372   : > { %v5486_v60 = vsel %vm17542_vm9, %v5481_v24, %v5485_v57  ;;  %v5457_v57 = vld [vmem:[#allocation2 + $0x128] sm:$0xf]  ;;  %v5549_v46 = vrot.slane %v5547_v36, 5 }
 0x373   : > { %v13282_v38 = vcombine.low %v5472_v13, %v5486_v60  ;;  %v5574_v60 = vrot.slane %v5572_v3, 4  ;;  %v5569_v3 = vrot.slane %v5567_v22, 5 }
 0x374   : > { %14632 = vmatmul.mubr.msk.bf16.gmra.mrb[20].mxu1 %vm1128_vm0, %v17677_v7  ;;  %v5439_v7 = vld [vmem:[#allocation2 + $0xe0] sm:$0xf] }
 0x375   : > { %14639 = vmatprep.mubr.msk.bf16.mxu1 %vm1128_vm0, %v16158_v15  ;;  %v5488_v8 = vshrl.u32 %v5439_v7, 16  ;;  %v5491_v6 = vshll.u32 %v5439_v7, 16  ;;  %v16163_v15 = vld [vmem:[#allocation2 + $0x100] ss:$8 sps:$4 sm:$0xff]  }
 0x377   : > { %v5490_v16 = vrot.slane %v5488_v8, 4  ;;  %v5493_v25 = vrot.slane %v5491_v6, 5  ;;  %v5589_v8 = vshll.u32 %v5453_v31, 16  ;;  %v5522_v6 = vor.u32 %v5521_v49, %v5518_v50  ;;  %v5454_v50 = vld [vmem:[#allocation2 + $0x11c] sm:$0x1] }
 0x378   : > { %v5448_v31 = vld [vmem:[#allocation2 + $0x104] sm:$0x1] }
 0x379   : > { %v5494_v7 = vor.u32 %v5493_v25, %v5490_v16  ;;  %v16165_v16 = vld [vmem:[#allocation2 + $0x120] ss:$8 sps:$4 sm:$0xff]   ;;  %v5537_v25 = vrot.slane %v5536_v29, 4  ;;  %v5523_v1 = vrot.slane %v5522_v6, 4  ;;  %v5595_v29 = vshll.u32 %v5454_v50, 16 }
 0x37b   : > { %v5495_v37 = vrot.slane %v5494_v7, 4  ;;  %v5614_v7 = vshrl.u32 %v5457_v57, 16 }
 0x37c   : > { %14640 = vmatmul.mubr.msk.bf16.vlgmr.msra.gmra.mrb[12].mxu1 %vm1128_vm0, %v16159_v59  ;;  %v5561_v59 = vshll.u32 %v5449_v42, 16  ;;  %v5588_v42 = vrot.slane %v5586_v53, 4  ;;  %v5553_v53 = vshll.u32 %v5448_v31, 16 }
 0x37d   : > { %14652 = vmatpush3.bf16.msra.mxu1 %v16157_v56  ;;  %14643 = vmatprep.mubr.msk.bf16.mxu1 %vm1128_vm0, %v16160_v17  ;;  %v5508_v56 = vor.u32 %v5507_v41, %v5504_v26  ;;  %v5497_v17 = vshll.u32 %v5440_v2, 16  ;;  %v5525_v26 = vshll.u32 %v5444_v4, 16  ;;  %v5544_v41 = vshrl.u32 %v5447_v28, 16  ;;  %v5455_v2 = vld [vmem:[#allocation2 + $0x120] sm:$0xf] }
 0x37e   : > { %14653 = vmatprep.subr.bf16.mxu1 %v18047_v33  ;;  %v5563_v61 = vrot.slane %v5561_v59, 5  ;;  %v5577_v4 = vrot.slane %v5575_v45, 5  ;;  %v5452_v59 = vld [vmem:[#allocation2 + $0x114] sm:$0x1]  ;;  %v5603_v6 = vshll.u32 %v5455_v2, 16  ;;  %v5616_v45 = vrot.slane %v5614_v7, 4 }
 0x37f   : > { %v5509_v20 = vrot.slane %v5508_v56, 4  ;;  %v5499_v24 = vrot.slane %v5497_v17, 5  ;;  %v5541_v56 = vrot.slane %v5539_v27, 5  ;;  %v5527_v49 = vrot.slane %v5525_v26, 5 }
 0x380   : > { %v5564_v13 = vor.u32 %v5563_v61, %v5560_v9  ;;  %v5617_v17 = vshll.u32 %v5457_v57, 16  ;;  %v5578_v36 = vor.u32 %v5577_v4, %v5574_v60  ;;  %v5581_v9 = vshll.u32 %v5452_v59, 16  ;;  %v5458_v57 = vld [vmem:[#allocation2 + $0x12c] sm:$0x1] }
 0x381   : > { %14654 = vmatpush3.bf16.msra.mxu1 %v18047_v33  ;;  %v5514_v30 = vsel %vm17542_vm9, %v5509_v20, %v5513_v14  ;;  %v5500_v28 = vsel %vm17542_vm9, %v5495_v37, %v5499_v24  ;;  %v5542_v20 = vsel %vm17542_vm9, %v5537_v25, %v5541_v56  ;;  %v5528_v26 = vsel %vm17542_vm9, %v5523_v1, %v5527_v49 }
 0x382   : > { %14667 = vmatprep.subr.bf16.mxu1 %v18054_v39  ;;  %v13283_v54 = vcombine.low %v5500_v28, %v5514_v30  ;;  %v13284_v61 = vcombine.low %v5528_v26, %v5542_v20  ;;  %v5597_v24 = vrot.slane %v5595_v29, 5  ;;  %v5555_v25 = vrot.slane %v5553_v53, 5  ;;  %v5456_v30 = vld [vmem:[#allocation2 + $0x124] sm:$0x1]  ;;  %v18108_v53 = vld [vmem:[#allocation2 + $0x148] ss:$8 sps:$4 sm:$0xff]  }
 0x383   : > { %v5605_v63 = vrot.slane %v5603_v6, 5  ;;  %v18094_v28 = vld [vmem:[%s19828_s3 + $0x40] sm:$0xff]   ;;  %v18120_v6 = vld [vmem:[%s19828_s3 + $0x48] sm:$0xff]   ;;  %v18127_v26 = vld [vmem:[%s19828_s3 + $0x50] sm:$0xff]  }
 0x384   : > { %14644 = vmatmul.mubr.msk.bf16.gmra.mrb[16].mxu1 %vm1128_vm0, %v16163_v15  ;;  %v5591_v15 = vrot.slane %v5589_v8, 5  ;;  %v5600_v8 = vshrl.u32 %v5455_v2, 16  ;;  %v18079_v2 = vld [vmem:[%s19828_s3 + $0x38] sm:$0xff]  }
 0x385   : > { %14647 = vmatprep.mubr.msk.bf16.mxu1 %vm1128_vm0, %v16164_v35  ;;  %v5546_v35 = vrot.slane %v5544_v41, 4  ;;  %v5565_v41 = vrot.slane %v5564_v13, 4  ;;  %v5609_v13 = vshll.u32 %v5456_v30, 16  ;;  %v5945_v30 = vld [vmem:[#allocation2 + $0x144] sm:$0x1] }
 0x386   : > { %v5592_v14 = vor.u32 %v5591_v15, %v5588_v42  ;;  %v5602_v56 = vrot.slane %v5600_v8, 4  ;;  %v5579_v42 = vrot.slane %v5578_v36, 4  ;;  %v5583_v15 = vrot.slane %v5581_v9, 5  ;;  %v18113_v8 = vld [vmem:[#allocation2 + $0x158] ss:$8 sps:$4 sm:$0xff]  }
 0x387   : > { %v5550_v27 = vor.u32 %v5549_v46, %v5546_v35  ;;  %v5570_v1 = vsel %vm17542_vm9, %v5565_v41, %v5569_v3  ;;  %v5623_v46 = vshll.u32 %v5458_v57, 16  ;;  %v18130_v41 = vld [vmem:[#allocation2 + $0x168] ss:$8 sps:$4 sm:$0xff]   ;;  %v18134_v36 = vld [vmem:[#allocation2 + $0x178] ss:$8 sps:$4 sm:$0xff]  }
 0x388   : > { %v5593_v37 = vrot.slane %v5592_v14, 4  ;;  %v5606_v31 = vor.u32 %v5605_v63, %v5602_v56  ;;  %v5584_v4 = vsel %vm17542_vm9, %v5579_v42, %v5583_v15  ;;  %v5942_v9 = vld [vmem:[#allocation2 + $0x138] sm:$0xf]  ;;  %v5948_v57 = vld [vmem:[#allocation2 + $0x150] sm:$0xf] }
 0x389   : > { %v5625_v7 = vrot.slane %v5623_v46, 5  ;;  %v5967_v3 = vshrl.u32 %v5942_v9, 16  ;;  %v5950_v42 = vld [vmem:[#allocation2 + $0x158] sm:$0xf]  ;;  %v5943_v15 = vld [vmem:[#allocation2 + $0x13c] sm:$0x1] }
 0x38a   : > { %v5598_v50 = vsel %vm17542_vm9, %v5593_v37, %v5597_v24  ;;  %v5946_v24 = vld [vmem:[#allocation2 + $0x148] sm:$0xf]  ;;  %v6009_v46 = vshrl.u32 %v5948_v57, 16 }
 0x38b   : > { %v13286_v22 = vcombine.low %v5584_v4, %v5598_v50  ;;  %v5952_v50 = vld [vmem:[#allocation2 + $0x160] sm:$0xf] }
 0x38c   : > { %14648 = vmatmul.mubr.msk.bf16.gmra.mrb[20].mxu1 %vm1128_vm0, %v16165_v16  ;;  %v5551_v16 = vrot.slane %v5550_v27, 4  ;;  %v18104_v27 = vld [vmem:[#allocation2 + $0x138] ss:$8 sps:$4 sm:$0xff]  }
 0x38d   : > { %14655 = vmatprep.mubr.msk.bf16.mxu1 %vm1128_vm0, %v13282_v38  ;;  %v5619_v38 = vrot.slane %v5617_v17, 5  ;;  %v5607_v17 = vrot.slane %v5606_v31, 4  ;;  %v6026_v31 = vshll.u32 %v5950_v42, 16 }
 0x38e   : > { %v5556_v49 = vsel %vm17542_vm9, %v5551_v16, %v5555_v25  ;;  %v5969_v16 = vrot.slane %v5967_v3, 4 }
 0x38f   : > { %v5620_v35 = vor.u32 %v5619_v38, %v5616_v45  ;;  %v13285_v60 = vcombine.low %v5556_v49, %v5570_v1  ;;  %v5970_v45 = vshll.u32 %v5942_v9, 16  ;;  %v5995_v1 = vshrl.u32 %v5946_v24, 16  ;;  %v5947_v9 = vld [vmem:[#allocation2 + $0x14c] sm:$0x1] }
 0x390   : > { %v6023_v49 = vshrl.u32 %v5950_v42, 16  ;;  %v18157_v42 = vld [vmem:[%s19828_s3 + $0x60] sm:$0xff]  }
 0x391   : > { %v5621_v59 = vrot.slane %v5620_v35, 4  ;;  %v5972_v25 = vrot.slane %v5970_v45, 5  ;;  %v5998_v35 = vshll.u32 %v5946_v24, 16  ;;  %v6028_v45 = vrot.slane %v6026_v31, 5  ;;  %20194 = vst [vmem:[#allocation42_spill] sm:$0xff] %v18157_v42 }
 0x392   : > { %v6025_v3 = vrot.slane %v6023_v49, 4 }
 0x393   : > { %v5626_v20 = vsel %vm17542_vm9, %v5621_v59, %v5625_v7  ;;  %v6037_v59 = vshrl.u32 %v5952_v50, 16  ;;  %v6040_v7 = vshll.u32 %v5952_v50, 16 }
 0x394   : > { %14656 = vmatmul.mubr.msk.bf16.vlgmr.msra.gmra.mrb[12].mxu1 %vm1128_vm0, %v13283_v54  ;;  %v5611_v54 = vrot.slane %v5609_v13, 5  ;;  %v5973_v13 = vor.u32 %v5972_v25, %v5969_v16  ;;  %v5954_v16 = vld [vmem:[#allocation2 + $0x168] sm:$0xf]  ;;  %v6029_v50 = vor.u32 %v6028_v45, %v6025_v3 }
 0x395   : > { %14668 = vmatpush3.bf16.msra.mxu1 %v18054_v39  ;;  %14659 = vmatprep.mubr.msk.bf16.mxu1 %vm1128_vm0, %v13284_v61  ;;  %v5944_v61 = vld [vmem:[#allocation2 + $0x140] sm:$0xf]  ;;  %v6039_v25 = vrot.slane %v6037_v59, 4  ;;  %v6051_v49 = vshrl.u32 %v5954_v16, 16 }
 0x396   : > { %14669 = vmatprep.subr.bf16.mxu1 %v18079_v2  ;;  %v5612_v14 = vsel %vm17542_vm9, %v5607_v17, %v5611_v54  ;;  %v5981_v38 = vshrl.u32 %v5944_v61, 16  ;;  %v5984_v37 = vshll.u32 %v5944_v61, 16  ;;  %v18150_v17 = vld [vmem:[%s19828_s3 + $0x58] sm:$0xff]   ;;  %v5997_v54 = vrot.slane %v5995_v1, 4  ;;  %v5949_v61 = vld [vmem:[#allocation2 + $0x154] sm:$0x1] }
 0x397   : > { %v13287_v29 = vcombine.low %v5612_v14, %v5626_v20  ;;  %20193 = vst [vmem:[#allocation41_spill] sm:$0xff] %v18150_v17  ;;  %v6000_v20 = vrot.slane %v5998_v35, 5  ;;  %v6011_v14 = vrot.slane %v6009_v46, 4  ;;  %v6018_v35 = vshll.u32 %v5949_v61, 16  ;;  %v5951_v46 = vld [vmem:[#allocation2 + $0x15c] sm:$0x1] }
 0x398   : > { %v5983_v56 = vrot.slane %v5981_v38, 4  ;;  %v5986_v63 = vrot.slane %v5984_v37, 5  ;;  %v5974_v38 = vrot.slane %v5973_v13, 4  ;;  %v6032_v59 = vshll.u32 %v5951_v46, 16 }
 0x399   : > { %14670 = vmatpush3.bf16.msra.mxu1 %v18079_v2  ;;  %v6020_v3 = vrot.slane %v6018_v35, 5  ;;  %v6030_v45 = vrot.slane %v6029_v50, 4  ;;  %v5959_v50 = vld [vmem:[#allocation2 + $0x17c] sm:$0x1] }
 0x39a   : > { %14683 = vmatprep.subr.bf16.mxu1 %v18094_v28  ;;  %v5987_v4 = vor.u32 %v5986_v63, %v5983_v56  ;;  %v6042_v56 = vrot.slane %v6040_v7, 5  ;;  %v5956_v63 = vld [vmem:[#allocation2 + $0x170] sm:$0xf]  ;;  %v6034_v10 = vrot.slane %v6032_v59, 5  ;;  %v5961_v59 = vld [vmem:[#allocation2 + $0x184] sm:$0x1] }
 0x39c   : > { %14660 = vmatmul.mubr.msk.bf16.gmra.mrb[16].mxu1 %vm1128_vm0, %v13285_v60  ;;  %v5976_v60 = vshll.u32 %v5943_v15, 16  ;;  %v5988_v24 = vrot.slane %v5987_v4, 4  ;;  %v6001_v15 = vor.u32 %v6000_v20, %v5997_v54  ;;  %v6065_v4 = vshrl.u32 %v5956_v63, 16 }
 0x39d   : > { %14663 = vmatprep.mubr.msk.bf16.mxu1 %vm1128_vm0, %v13286_v22  ;;  %v5990_v22 = vshll.u32 %v5945_v30, 16  ;;  %v6004_v30 = vshll.u32 %v5947_v9, 16  ;;  %v6043_v7 = vor.u32 %v6042_v56, %v6039_v25  ;;  %v6068_v20 = vshll.u32 %v5956_v63, 16  ;;  %v5962_v25 = vld [vmem:[#allocation2 + $0x188] sm:$0xf] }
 0x39e   : > { %v5978_v37 = vrot.slane %v5976_v60, 5  ;;  %v6054_v60 = vshll.u32 %v5954_v16, 16  ;;  %v5955_v63 = vld [vmem:[#allocation2 + $0x16c] sm:$0x1] }
 0x39f   : > { %v6006_v9 = vrot.slane %v6004_v30, 5  ;;  %v6044_v5 = vrot.slane %v6043_v7, 4  ;;  %v6070_v46 = vrot.slane %v6068_v20, 5  ;;  %v6060_v7 = vshll.u32 %v5955_v63, 16 }
 0x3a0   : > { %v5979_v31 = vsel %vm17542_vm9, %v5974_v38, %v5978_v37  ;;  %v6053_v38 = vrot.slane %v6051_v49, 4  ;;  %v6107_v20 = vshrl.u32 %v5962_v25, 16 }
 0x3a4   : > { %14664 = vmatmul.mubr.msk.bf16.gmra.mrb[20].mxu1 %vm1128_vm0, %v13287_v29 }
 0x3a5   : > { %14671 = vmatprep.mubr.msk.bf16.mxu1 %vm1128_vm0, %v18104_v27 }
 0x3ac   : > { %14672 = vmatmul.mubr.msk.bf16.vlgmr.msra.gmra.mrb[12].mxu1 %vm1128_vm0, %v18108_v53 }
 0x3ad   : > { %14684 = vmatpush3.bf16.msra.mxu1 %v18094_v28  ;;  %14675 = vmatprep.mubr.msk.bf16.mxu1 %vm1128_vm0, %v18113_v8 }
 0x3ae   : > { %14685 = vmatprep.subr.bf16.mxu1 %v18120_v6 }
 0x3b1   : > { %14686 = vmatpush3.bf16.msra.mxu1 %v18120_v6 }
 0x3b2   : > { %14699 = vmatprep.subr.bf16.mxu1 %v18127_v26 }
 0x3b4   : > { %14676 = vmatmul.mubr.msk.bf16.gmra.mrb[16].mxu1 %vm1128_vm0, %v18130_v41 }
 0x3b5   : > { %14679 = vmatprep.mubr.msk.bf16.mxu1 %vm1128_vm0, %v18134_v36 }
 0x3bc   : > { %14680 = vmatmul.mubr.msk.bf16.gmra.mrb[20].mxu1 %vm1128_vm0, %v17793_v47  ;;  %v6012_v47 = vshll.u32 %v5948_v57, 16  ;;  %v5992_v57 = vrot.slane %v5990_v22, 5  ;;  %v5958_v22 = vld [vmem:[#allocation2 + $0x178] sm:$0xf] }
 0x3bd   : > { %14687 = vmatprep.mubr.msk.bf16.mxu1 %vm1128_vm0, %v17564_v62  ;;  %v6079_v37 = vshrl.u32 %v5958_v22, 16  ;;  %v6082_v55 = vshll.u32 %v5958_v22, 16 }
 0x3be   : > { %v6014_v29 = vrot.slane %v6012_v47, 5  ;;  %v5953_v47 = vld [vmem:[#allocation2 + $0x164] sm:$0x1]  ;;  %v5993_v13 = vsel %vm17542_vm9, %v5988_v24, %v5992_v57  ;;  %v6056_v24 = vrot.slane %v6054_v60, 5  ;;  %v6067_v57 = vrot.slane %v6065_v4, 4 }
 0x3bf   : > { %v6046_v54 = vshll.u32 %v5953_v47, 16  ;;  %v18168_v56 = vcombine.low %v5979_v31, %v5993_v13  ;;  %v6081_v30 = vrot.slane %v6079_v37, 4  ;;  %v5964_v4 = vld [vmem:[#allocation2 + $0x190] sm:$0xf]  ;;  %v6035_v31 = vsel %vm17542_vm9, %v6030_v45, %v6034_v10 }
 0x3c0   : > { %v6015_v1 = vor.u32 %v6014_v29, %v6011_v14  ;;  %v5960_v14 = vld [vmem:[#allocation2 + $0x180] sm:$0xf]  ;;  %v6002_v29 = vrot.slane %v6001_v15, 4  ;;  %v5957_v15 = vld [vmem:[#allocation2 + $0x174] sm:$0x1]  ;;  %v6057_v13 = vor.u32 %v6056_v24, %v6053_v38  ;;  %v6071_v22 = vor.u32 %v6070_v46, %v6067_v57 }
 0x3c1   : > { %v6093_v16 = vshrl.u32 %v5960_v14, 16  ;;  %v6096_v40 = vshll.u32 %v5960_v14, 16  ;;  %v6048_v11 = vrot.slane %v6046_v54, 5  ;;  %v6074_v54 = vshll.u32 %v5957_v15, 16 }
 0x3c2   : > { %v6016_v61 = vrot.slane %v6015_v1, 4  ;;  %v6084_v1 = vrot.slane %v6082_v55, 5  ;;  %v6007_v35 = vsel %vm17542_vm9, %v6002_v29, %v6006_v9  ;;  %v6110_v14 = vshll.u32 %v5962_v25, 16 }
 0x3c3   : > { %v6095_v49 = vrot.slane %v6093_v16, 4  ;;  %v6098_v60 = vrot.slane %v6096_v40, 5  ;;  %v6049_v55 = vsel %vm17542_vm9, %v6044_v5, %v6048_v11  ;;  %v6088_v9 = vshll.u32 %v5959_v50, 16  ;;  %v18196_v50 = vld [vmem:[%s19828_s3 + $0x68] sm:$0xff]  }
 0x3c4   : > { %14688 = vmatmul.mubr.msk.bf16.vlgmr.msra.gmra.mrb[12].mxu1 %vm1128_vm0, %v17583_v58  ;;  %v6021_v47 = vsel %vm17542_vm9, %v6016_v61, %v6020_v3  ;;  %v6085_v29 = vor.u32 %v6084_v1, %v6081_v30  ;;  %v6121_v40 = vshrl.u32 %v5964_v4, 16  ;;  %v6124_v61 = vshll.u32 %v5964_v4, 16  ;;  %v5963_v1 = vld [vmem:[#allocation2 + $0x18c] sm:$0x1]  ;;  %20195 = vst [vmem:[#allocation43_spill] sm:$0xff] %v18196_v50 }
 0x3c5   : > { %14700 = vmatpush3.bf16.msra.mxu1 %v18127_v26  ;;  %14691 = vmatprep.mubr.msk.bf16.mxu1 %vm1128_vm0, %v17597_v52  ;;  %v6099_v3 = vor.u32 %v6098_v60, %v6095_v49  ;;  %v6102_v37 = vshll.u32 %v5961_v59, 16  ;;  %v18182_v16 = vcombine.low %v6007_v35, %v6021_v47  ;;  %v18184_v44 = vcombine.low %v6035_v31, %v6049_v55  ;;  %v5965_v35 = vld [vmem:[#allocation2 + $0x194] sm:$0x1] }
 0x3c6   : > { %14701 = vmatprep.subr.bf16.mxu1 %v18150_v17  ;;  %v6058_v10 = vrot.slane %v6057_v13, 4  ;;  %v6072_v45 = vrot.slane %v6071_v22, 4  ;;  %v6062_v11 = vrot.slane %v6060_v7, 5  ;;  %v6076_v5 = vrot.slane %v6074_v54, 5  ;;  %v18211_v54 = vld [vmem:[%s19828_s3 + $0x70] sm:$0xff]  }
 0x3c7   : > { %v6109_v38 = vrot.slane %v6107_v20, 4  ;;  %v6112_v24 = vrot.slane %v6110_v14, 5  ;;  %v6086_v57 = vrot.slane %v6085_v29, 4  ;;  %v6090_v46 = vrot.slane %v6088_v9, 5  ;;  %20196 = vst [vmem:[#allocation44_spill] sm:$0xff] %v18211_v54 }
 0x3c8   : > { %v6123_v63 = vrot.slane %v6121_v40, 4  ;;  %v6126_v25 = vrot.slane %v6124_v61, 5  ;;  %v6100_v15 = vrot.slane %v6099_v3, 4  ;;  %v6104_v30 = vrot.slane %v6102_v37, 5  ;;  %v18228_v37 = vld [vmem:[#allocation2 + $0xd8] ss:$8 sps:$4 sm:$0xff]  }
 0x3c9   : > { %14702 = vmatpush3.bf16.msra.mxu1 %v18150_v17  ;;  %v6063_v47 = vsel %vm17542_vm9, %v6058_v10, %v6062_v11  ;;  %v6113_v49 = vor.u32 %v6112_v24, %v6109_v38  ;;  %v6077_v60 = vsel %vm17542_vm9, %v6072_v45, %v6076_v5  ;;  %v6116_v4 = vshll.u32 %v5963_v1, 16  ;;  %v18232_v10 = vld [vmem:[#allocation2 + $0xe8] ss:$8 sps:$4 sm:$0xff]   ;;  %v18237_v45 = vld [vmem:[#allocation2 + $0xf8] ss:$8 sps:$4 sm:$0xff]  }
 0x3ca   : > { %14715 = vmatprep.subr.bf16.mxu1 %v18157_v42  ;;  %v6127_v31 = vor.u32 %v6126_v25, %v6123_v63  ;;  %v6130_v55 = vshll.u32 %v5965_v35, 16  ;;  %v6091_v13 = vsel %vm17542_vm9, %v6086_v57, %v6090_v46  ;;  %v6105_v22 = vsel %vm17542_vm9, %v6100_v15, %v6104_v30  ;;  %v18244_v11 = vld [vmem:[%s19828_s3 + $0x78] sm:$0xff]   ;;  %v18251_v5 = vld [vmem:[%s19828_s3 + $0x80] sm:$0xff]   ;;  %v18254_v38 = vld [vmem:[#allocation2 + $0x108] ss:$8 sps:$4 sm:$0xff]  }
 0x3cb   : > { %v18206_v59 = vcombine.low %v6063_v47, %v6077_v60  ;;  %v6114_v7 = vrot.slane %v6113_v49, 4  ;;  %v18214_v20 = vcombine.low %v6091_v13, %v6105_v22  ;;  %v6118_v14 = vrot.slane %v6116_v4, 5  ;;  %20197 = vst [vmem:[#allocation72_spill] sm:$0xff] %v18244_v11  ;;  %20198 = vst [vmem:[#allocation6_spill] sm:$0xff] %v18251_v5  ;;  %v18258_v24 = vld [vmem:[#allocation2 + $0x118] ss:$8 sps:$4 sm:$0xff]  }
 0x3cc   : > { %14692 = vmatmul.mubr.msk.bf16.gmra.mrb[16].mxu1 %vm1128_vm0, %v17633_v23  ;;  %v6128_v29 = vrot.slane %v6127_v31, 4  ;;  %v6132_v9 = vrot.slane %v6130_v55, 5  ;;  %20199 = vst [vmem:[#allocation45_spill] sm:$0xff] %v18254_v38  ;;  %20200 = vst [vmem:[#allocation73_spill] sm:$0xff] %v18258_v24  ;;  %v6449_v57 = vld [vmem:[#allocation2 + $0xd8] sm:$0xf] }
 0x3cd   : > { %14695 = vmatprep.mubr.msk.bf16.mxu1 %vm1128_vm0, %v17641_v48  ;;  %v6119_v40 = vsel %vm17542_vm9, %v6114_v7, %v6118_v14  ;;  %v18262_v46 = vld [vmem:[#allocation2 + $0x128] ss:$8 sps:$4 sm:$0xff]   ;;  %v6451_v63 = vld [vmem:[#allocation2 + $0xe0] sm:$0xf]  ;;  %v6474_v25 = vshrl.u32 %v6449_v57, 16  ;;  %v6477_v15 = vshll.u32 %v6449_v57, 16 }
 0x3ce   : > { %v6133_v61 = vsel %vm17542_vm9, %v6128_v29, %v6132_v9  ;;  %20201 = vst [vmem:[#allocation7_spill] sm:$0xff] %v18262_v46  ;;  %v6488_v30 = vshrl.u32 %v6451_v63, 16  ;;  %v6491_v1 = vshll.u32 %v6451_v63, 16  ;;  %v6453_v49 = vld [vmem:[#allocation2 + $0xe8] sm:$0xf] }
 0x3cf   : > { %v18224_v3 = vcombine.low %v6119_v40, %v6133_v61  ;;  %v6476_v35 = vrot.slane %v6474_v25, 4  ;;  %v6479_v47 = vrot.slane %v6477_v15, 5  ;;  %v6450_v60 = vld [vmem:[#allocation2 + $0xdc] sm:$0x1]  ;;  %v6452_v4 = vld [vmem:[#allocation2 + $0xe4] sm:$0x1] }
 0x3d0   : > { %v6455_v31 = vld [vmem:[#allocation2 + $0xf0] sm:$0xf]  ;;  %v6457_v55 = vld [vmem:[#allocation2 + $0xf8] sm:$0xf]  ;;  %v6490_v13 = vrot.slane %v6488_v30, 4  ;;  %v6493_v22 = vrot.slane %v6491_v1, 5 }
 0x3d1   : > { %v6502_v7 = vshrl.u32 %v6453_v49, 16  ;;  %v6505_v14 = vshll.u32 %v6453_v49, 16  ;;  %v6459_v29 = vld [vmem:[#allocation2 + $0x100] sm:$0xf]  ;;  %v6480_v9 = vor.u32 %v6479_v47, %v6476_v35  ;;  %v6483_v40 = vshll.u32 %v6450_v60, 16  ;;  %v18276_v30 = vld [vmem:[%s19828_s3 + $0x88] sm:$0xff]  }
 0x3d2   : > { %v6454_v61 = vld [vmem:[#allocation2 + $0xec] sm:$0x1]  ;;  %v6516_v57 = vshrl.u32 %v6455_v31, 16  ;;  %v6519_v63 = vshll.u32 %v6455_v31, 16  ;;  %v6530_v25 = vshrl.u32 %v6457_v55, 16  ;;  %v6533_v15 = vshll.u32 %v6457_v55, 16 }
 0x3d3   : > { %20202 = vst [vmem:[#allocation46_spill] sm:$0xff] %v18276_v30  ;;  %v6497_v1 = vshll.u32 %v6452_v4, 16  ;;  %v6544_v35 = vshrl.u32 %v6459_v29, 16  ;;  %v6547_v47 = vshll.u32 %v6459_v29, 16  ;;  %v6494_v49 = vor.u32 %v6493_v22, %v6490_v13  ;;  %v6456_v60 = vld [vmem:[#allocation2 + $0xf4] sm:$0x1] }
 0x3d4   : > { %14696 = vmatmul.mubr.msk.bf16.gmra.mrb[20].mxu1 %vm1128_vm0, %v17665_v43  ;;  %v6458_v31 = vld [vmem:[#allocation2 + $0xfc] sm:$0x1]  ;;  %v6518_v55 = vrot.slane %v6516_v57, 4  ;;  %v6521_v17 = vrot.slane %v6519_v63, 5  ;;  %v6463_v13 = vld [vmem:[#allocation2 + $0x110] sm:$0xf] }
 0x3d5   : > { %14703 = vmatprep.mubr.msk.bf16.mxu1 %vm1128_vm0, %v18168_v56  ;;  %v6546_v4 = vrot.slane %v6544_v35, 4  ;;  %v6549_v29 = vrot.slane %v6547_v47, 5  ;;  %v6495_v22 = vrot.slane %v6494_v49, 4  ;;  %v6572_v47 = vshrl.u32 %v6463_v13, 16 }
 0x3d6   : > { %v6575_v49 = vshll.u32 %v6463_v13, 16 }
 0x3d7   : > { %v6574_v13 = vrot.slane %v6572_v47, 4 }
 0x3dc   : > { %14704 = vmatmul.mubr.msk.bf16.vlgmr.msra.gmra.mrb[12].mxu1 %vm1128_vm0, %v18182_v16 }
 0x3dd   : > { %14716 = vmatpush3.bf16.msra.mxu1 %v18157_v42  ;;  %14707 = vmatprep.mubr.msk.bf16.mxu1 %vm1128_vm0, %v18184_v44  ;;  %v6511_v42 = vshll.u32 %v6454_v61, 16 }
 0x3de   : > { %14717 = vmatprep.subr.bf16.mxu1 %v18196_v50 }
 0x3df   : > { %v18285_v57 = vrot.slane %v6511_v42, 5 }
 0x3e1   : > { %14718 = vmatpush3.bf16.msra.mxu1 %v18196_v50  ;;  %v6485_v50 = vrot.slane %v6483_v40, 5  ;;  %v6539_v40 = vshll.u32 %v6458_v31, 16 }
 0x3e2   : > { %14731 = vmatprep.subr.bf16.mxu1 %v18211_v54 }
 0x3e3   : > { %v6541_v42 = vrot.slane %v6539_v40, 5  ;;  %v6464_v40 = vld [vmem:[#allocation2 + $0x114] sm:$0x1] }
 0x3e4   : > { %14708 = vmatmul.mubr.msk.bf16.gmra.mrb[16].mxu1 %vm1128_vm0, %v18206_v59 }
 0x3e5   : > { %14711 = vmatprep.mubr.msk.bf16.mxu1 %vm1128_vm0, %v18214_v20 }
 0x3ec   : > { %14712 = vmatmul.mubr.msk.bf16.gmra.mrb[20].mxu1 %vm1128_vm0, %v18224_v3 }
 0x3ed   : > { %14719 = vmatprep.mubr.msk.bf16.mxu1 %vm1128_vm0, %v18228_v37 }
 0x3f4   : > { %14720 = vmatmul.mubr.msk.bf16.vlgmr.msra.gmra.mrb[12].mxu1 %vm1128_vm0, %v18232_v10 }
 0x3f5   : > { %14732 = vmatpush3.bf16.msra.mxu1 %v18211_v54  ;;  %14723 = vmatprep.mubr.msk.bf16.mxu1 %vm1128_vm0, %v18237_v45  ;;  %v6481_v54 = vrot.slane %v6480_v9, 4  ;;  %v6460_v9 = vld [vmem:[#allocation2 + $0x104] sm:$0x1] }
 0x3f6   : > { %14733 = vmatprep.subr.bf16.mxu1 %v18244_v11  ;;  %v6553_v35 = vshll.u32 %v6460_v9, 16  ;;  %v6577_v9 = vrot.slane %v6575_v49, 5  ;;  %v6468_v49 = vld [vmem:[#allocation2 + $0x124] sm:$0x1] }
 0x3f7   : > { %v6486_v61 = vsel %vm17542_vm9, %v6481_v54, %v6485_v50 }
 0x3f9   : > { %14734 = vmatpush3.bf16.msra.mxu1 %v18244_v11  ;;  %v6507_v11 = vrot.slane %v6505_v14, 5  ;;  %v6525_v14 = vshll.u32 %v6456_v60, 16 }
 0x3fa   : > { %14747 = vmatprep.subr.bf16.mxu1 %v18251_v5 }
 0x3fb   : > { %v6527_v50 = vrot.slane %v6525_v14, 5 }
 0x3fc   : > { %14724 = vmatmul.mubr.msk.bf16.gmra.mrb[16].mxu1 %vm1128_vm0, %v18254_v38  ;;  %v6469_v38 = vld [vmem:[#allocation2 + $0x128] sm:$0xf] }
 0x3fd   : > { %14727 = vmatprep.mubr.msk.bf16.mxu1 %vm1128_vm0, %v18258_v24 }
 0x404   : > { %14728 = vmatmul.mubr.msk.bf16.gmra.mrb[20].mxu1 %vm1128_vm0, %v18262_v46  ;;  %v6499_v46 = vrot.slane %v6497_v1, 5  ;;  %v6465_v1 = vld [vmem:[#allocation2 + $0x118] sm:$0xf] }
 0x405   : > { %14735 = vmatprep.mubr.msk.bf16.mxu1 %vm1128_vm0, %v17776_v32  ;;  %v6461_v32 = vld [vmem:[#allocation2 + $0x108] sm:$0xf]  ;;  %v6586_v54 = vshrl.u32 %v6465_v1, 16 }
 0x406   : > { %v6500_v60 = vsel %vm17542_vm9, %v6495_v22, %v6499_v46  ;;  %v6471_v46 = vld [vmem:[#allocation2 + $0x130] sm:$0xf] }
 0x407   : > { %v18293_v22 = vcombine.low %v6486_v61, %v6500_v60 }
 0x40c   : > { %14736 = vmatmul.mubr.msk.bf16.vlgmr.msra.gmra.mrb[12].mxu1 %vm1128_vm0, %v17797_v19  ;;  %v6535_v19 = vrot.slane %v6533_v15, 5  ;;  %v6561_v15 = vshll.u32 %v6461_v32, 16 }
 0x40d   : > { %14748 = vmatpush3.bf16.msra.mxu1 %v18251_v5  ;;  %14739 = vmatprep.mubr.msk.bf16.mxu1 %vm1128_vm0, %v17801_v21  ;;  %v6504_v5 = vrot.slane %v6502_v7, 4  ;;  %v6532_v21 = vrot.slane %v6530_v25, 4  ;;  %v6558_v25 = vshrl.u32 %v6461_v32, 16 }
 0x40e   : > { %14749 = vmatprep.subr.bf16.mxu1 %v18276_v30 }
 0x40f   : > { %v6508_v7 = vor.u32 %v6507_v11, %v6504_v5  ;;  %v6536_v63 = vor.u32 %v6535_v19, %v6532_v21  ;;  %v6467_v11 = vld [vmem:[#allocation2 + $0x120] sm:$0xf]  ;;  %v6550_v5 = vor.u32 %v6549_v29, %v6546_v4  ;;  %v6462_v21 = vld [vmem:[#allocation2 + $0x10c] sm:$0x1]  ;;  %v6560_v32 = vrot.slane %v6558_v25, 4 }
 0x410   : > { %v6555_v29 = vrot.slane %v6553_v35, 5  ;;  %v6588_v25 = vrot.slane %v6586_v54, 4  ;;  %v6567_v47 = vshll.u32 %v6462_v21, 16  ;;  %v6614_v54 = vshrl.u32 %v6469_v38, 16 }
 0x411   : > { %14750 = vmatpush3.bf16.msra.mxu1 %v18276_v30  ;;  %v6509_v31 = vrot.slane %v6508_v7, 4  ;;  %v6589_v30 = vshll.u32 %v6465_v1, 16  ;;  %v6537_v19 = vrot.slane %v6536_v63, 4  ;;  %v6551_v4 = vrot.slane %v6550_v5, 4 }
 0x412   : > { %14907 = vmatprep.subr.bf16.mxu1 %v17946_v18  ;;  %v6522_v18 = vor.u32 %v6521_v17, %v6518_v55  ;;  %v6563_v55 = vrot.slane %v6561_v15, 5 }
 0x413   : > { %v6514_v14 = vsel %vm17542_vm9, %v6509_v31, %v18285_v57  ;;  %v6591_v15 = vrot.slane %v6589_v30, 5  ;;  %v6542_v57 = vsel %vm17542_vm9, %v6537_v19, %v6541_v42  ;;  %v6556_v60 = vsel %vm17542_vm9, %v6551_v4, %v6555_v29  ;;  %v6470_v4 = vld [vmem:[#allocation2 + $0x12c] sm:$0x1] }
 0x414   : > { %14740 = vmatmul.mubr.msk.bf16.gmra.mrb[16].mxu1 %vm1128_vm0, %v17837_v34  ;;  %v6600_v34 = vshrl.u32 %v6467_v11, 16  ;;  %v6523_v17 = vrot.slane %v6522_v18, 4  ;;  %v6466_v18 = vld [vmem:[#allocation2 + $0x11c] sm:$0x1]  ;;  %v6564_v35 = vor.u32 %v6563_v55, %v6560_v32  ;;  %v6578_v30 = vor.u32 %v6577_v9, %v6574_v13 }
 0x415   : > { %14743 = vmatprep.mubr.msk.bf16.mxu1 %vm1128_vm0, %v17839_v12  ;;  %v6603_v12 = vshll.u32 %v6467_v11, 16  ;;  %v6609_v42 = vshll.u32 %v6468_v49, 16  ;;  %v6569_v55 = vrot.slane %v6567_v47, 5  ;;  %v18324_v13 = vcombine.low %v6542_v57, %v6556_v60  ;;  %v6472_v47 = vld [vmem:[#allocation2 + $0x134] sm:$0x1] }
 0x416   : > { %v6602_v1 = vrot.slane %v6600_v34, 4  ;;  %v6528_v5 = vsel %vm17542_vm9, %v6523_v17, %v6527_v50  ;;  %v6581_v34 = vshll.u32 %v6464_v40, 16  ;;  %v6592_v50 = vor.u32 %v6591_v15, %v6588_v25  ;;  %v16188_v49 = vld [vmem:[%s19828_s3 + $0x10] sm:$0xff]  }
 0x417   : > { %v6605_v11 = vrot.slane %v6603_v12, 5  ;;  %v6595_v12 = vshll.u32 %v6466_v18, 16  ;;  %v18320_v21 = vcombine.low %v6514_v14, %v6528_v5  ;;  %v6565_v32 = vrot.slane %v6564_v35, 4 }
 0x418   : > { %v6616_v25 = vrot.slane %v6614_v54, 4  ;;  %v6593_v5 = vrot.slane %v6592_v50, 4  ;;  %v6611_v57 = vrot.slane %v6609_v42, 5  ;;  %v6623_v60 = vshll.u32 %v6470_v4, 16 }
 0x419   : > { %v6606_v17 = vor.u32 %v6605_v11, %v6602_v1  ;;  %v6597_v40 = vrot.slane %v6595_v12, 5  ;;  %v6637_v50 = vshll.u32 %v6472_v47, 16 }
 0x41a   : > { %v18291_v24 = vpop.f32.mrb[192].mxu0 }
 0x41b   : > { %20203 = vst [vmem:[#allocation8_spill] sm:$0xff] %v18291_v24  ;;  %v18295_v7 = vpop.f32.mrb[193].mxu0  ;;  %v6607_v35 = vrot.slane %v6606_v17, 4  ;;  %v6598_v42 = vsel %vm17542_vm9, %v6593_v5, %v6597_v40 }
 0x41c   : > { %20204 = vst [vmem:[#allocation47_spill] sm:$0xff] %v18295_v7  ;;  %14744 = vmatmul.mubr.msk.bf16.gmra.mrb[20].mxu1 %vm1128_vm0, %v17859_v51  ;;  %v18302_v63 = vpop.f32.mrb[194].mxu0  ;;  %v6631_v7 = vshll.u32 %v6471_v46, 16 }
 0x41d   : > { %20205 = vst [vmem:[#allocation74_spill] sm:$0xff] %v18302_v63  ;;  %14751 = vmatprep.mubr.msk.bf16.mxu1 %vm1128_vm0, %v18293_v22  ;;  %v18306_v61 = vpop.f32.mrb[195].mxu0  ;;  %v6617_v63 = vshll.u32 %v6469_v38, 16  ;;  %v6579_v38 = vrot.slane %v6578_v30, 4 }
 0x41e   : > { %20206 = vst [vmem:[#allocation75_spill] sm:$0xff] %v18306_v61  ;;  %v6628_v61 = vshrl.u32 %v6471_v46, 16  ;;  %v6583_v46 = vrot.slane %v6581_v34, 5  ;;  %v6633_v11 = vrot.slane %v6631_v7, 5  ;;  %v6570_v7 = vsel %vm17542_vm9, %v6565_v32, %v6569_v55 }
 0x41f   : > { %v18314_v31 = vpop.f32.mrb[0].mxu1  ;;  %v6619_v15 = vrot.slane %v6617_v63, 5  ;;  %v6612_v32 = vsel %vm17542_vm9, %v6607_v35, %v6611_v57 }
 0x420   : > { %v18316_v24 = vpop.f32.mrb[1].mxu1  ;;  %v6630_v1 = vrot.slane %v6628_v61, 4  ;;  %v16189_v61 = vld [vmem:[%s19828_s3 + $0x18] sm:$0xff]   ;;  %v6584_v34 = vsel %vm17542_vm9, %v6579_v38, %v6583_v46  ;;  %v6625_v38 = vrot.slane %v6623_v60, 5  ;;  %v16190_v46 = vld [vmem:[%s19828_s3] sm:$0xff]  }
 0x421   : > { %v18318_v19 = vpop.f32.mrb[2].mxu1  ;;  %v6620_v12 = vor.u32 %v6619_v15, %v6616_v25  ;;  %v18367_v25 = vcombine.low %v6598_v42, %v6612_v32 }
 0x422   : > { %v18322_v29 = vpop.f32.mrb[3].mxu1  ;;  %v18326_v9 = vpop.f32.mrb[196].mxu0  ;;  %v6634_v54 = vor.u32 %v6633_v11, %v6630_v1  ;;  %v6639_v11 = vrot.slane %v6637_v50, 5  ;;  %v16192_v50 = vld [vmem:[%s19828_s3 + $0x20] sm:$0xff]  }
 0x423   : > { %v18328_v18 = vpop.f32.mrb[197].mxu0  ;;  %v6621_v15 = vrot.slane %v6620_v12, 4 }
 0x424   : > { %14752 = vmatmul.mubr.msk.bf16.vlgmr.msra.gmra.mrb[12].mxu1 %vm1128_vm0, %v18320_v21  ;;  %v18332_v14 = vpop.f32.mrb[198].mxu0  ;;  %v6635_v1 = vrot.slane %v6634_v54, 4  ;;  %v16191_v54 = vld [vmem:[%s19828_s3 + $0x8] sm:$0xff]  }
 0x425   : > { %14908 = vmatpush3.bf16.msra.mxu1 %v16188_v49  ;;  %14755 = vmatprep.mubr.msk.bf16.mxu1 %vm1128_vm0, %v18324_v13  ;;  %v18339_v63 = vpop.f32.mrb[199].mxu0  ;;  %v18360_v49 = vcombine.low %v6570_v7, %v6584_v34  ;;  %v6626_v47 = vsel %vm17542_vm9, %v6621_v15, %v6625_v38  ;;  %v8659_v38 = vld [vmem:[#allocation2 + $0x158] sm:$0xf] }
 0x426   : > { %20207 = vst [vmem:[#allocation9_spill] sm:$0xff] %v18339_v63  ;;  %14909 = vmatprep.subr.bf16.mxu1 %v16189_v61  ;;  %v6640_v7 = vsel %vm17542_vm9, %v6635_v1, %v6639_v11 }
 0x427   : > { %v18346_v30 = vpop.f32.mrb[4].mxu1  ;;  %v18391_v12 = vcombine.low %v6626_v47, %v6640_v7  ;;  %v8656_v47 = vld [vmem:[#allocation2 + $0x14c] sm:$0x1] }
 0x428   : > { %v18350_v17 = vpop.f32.mrb[5].mxu1 }
 0x429   : > { %v18356_v55 = vpop.f32.mrb[6].mxu1  ;;  %14910 = vmatpush3.bf16.msra.mxu1 %v16189_v61 }
 0x42a   : > { %v18358_v4 = vpop.f32.mrb[7].mxu1  ;;  %v18362_v63 = vpop.f32.mrb[200].mxu0  ;;  %14923 = vmatprep.subr.bf16.mxu1 %v16190_v46 }
 0x42b   : > { %v18369_v40 = vpop.f32.mrb[201].mxu0 }
 0x42c   : > { %14756 = vmatmul.mubr.msk.bf16.gmra.mrb[16].mxu1 %vm1128_vm0, %v18360_v49  ;;  %v18373_v5 = vpop.f32.mrb[202].mxu0 }
 0x42d   : > { %14759 = vmatprep.mubr.msk.bf16.mxu1 %vm1128_vm0, %v18367_v25  ;;  %v18377_v35 = vpop.f32.mrb[203].mxu0 }
 0x42f   : > { %v18379_v57 = vpop.f32.mrb[8].mxu1 }
 0x430   : > { %v18385_v61 = vpop.f32.mrb[9].mxu1 }
 0x431   : > { %v18387_v60 = vpop.f32.mrb[10].mxu1 }
 0x432   : > { %v18389_v34 = vpop.f32.mrb[11].mxu1 }
 0x434   : > { %14760 = vmatmul.mubr.msk.bf16.gmra.mrb[20].mxu1 %vm1128_vm0, %v18391_v12 }
 0x435   : > { %14911 = vmatprep.mubr.msk.bf16.mxu1 %vm1128_vm0, %v17564_v62  ;;  %v16193_v62 = vld [vmem:[%s19828_s3 + $0x28] sm:$0xff]  }
 0x43c   : > { %14912 = vmatmul.mubr.msk.bf16.vlgmr.msra.gmra.mrb[24].mxu1 %vm1128_vm0, %v17583_v58  ;;  %v16194_v58 = vld [vmem:[#allocation2 + $0x188] ss:$8 sps:$4 sm:$0xff]  }
 0x43d   : > { %14924 = vmatpush3.bf16.msra.mxu1 %v16190_v46  ;;  %14915 = vmatprep.mubr.msk.bf16.mxu1 %vm1128_vm0, %v17597_v52  ;;  %v20208_v52 = vld [vmem:[#allocation45_spill] sm:$0xff]  ;;  %v8654_v46 = vld [vmem:[#allocation2 + $0x144] sm:$0x1] }
 0x43e   : > { %14925 = vmatprep.subr.bf16.mxu1 %v16191_v54 }
 0x441   : > { %14926 = vmatpush3.bf16.msra.mxu1 %v16191_v54  ;;  %v8720_v54 = vshrl.u32 %v8659_v38, 16 }
 0x442   : > { %14939 = vmatprep.subr.bf16.mxu1 %v16192_v50 }
 0x444   : > { %14916 = vmatmul.mubr.msk.bf16.gmra.mrb[28].mxu1 %vm1128_vm0, %v17633_v23  ;;  %v15859_v23 = vld [vmem:[%s19830_s5 + $0x20] sm:$0xff]  }
 0x445   : > { %14919 = vmatprep.mubr.msk.bf16.mxu1 %vm1128_vm0, %v17641_v48  ;;  %v20209_v48 = vld [vmem:[#allocation73_spill] sm:$0xff] }
 0x44c   : > { %14920 = vmatmul.mubr.msk.bf16.gmra.mrb[32].mxu1 %vm1128_vm0, %v17665_v43  ;;  %v16210_v43 = vmov 0.0  }
 0x44d   : > { %14927 = vmatprep.mubr.msk.bf16.mxu1 %vm1128_vm0, %v18104_v27  ;;  %15051 = vmatprep.subr.bf16.mxu0 %v16210_v43  ;;  %v20214_v27 = vld [vmem:[#allocation41_spill] sm:$0xff] }
 0x44e   : > { %15052 = vmatpush3.bf16.msra.mxu0 %v15859_v23  ;;  %v20224_v23 = vld [vmem:[#allocation38_spill] sm:$0xff]  ;;  %15059 = vmatprep.mubr.msk.bf16.mxu0 %vm16211_vm10, %v16210_v43 }
 0x44f   : > { %15053 = vmatprep.subr.bf16.mxu0 %v16210_v43 }
 0x454   : > { %14928 = vmatmul.mubr.msk.bf16.vlgmr.msra.gmra.mrb[24].mxu1 %vm1128_vm0, %v18108_v53  ;;  %v20215_v53 = vld [vmem:[#allocation42_spill] sm:$0xff] }
 0x455   : > { %14940 = vmatpush3.bf16.msra.mxu1 %v16192_v50  ;;  %14931 = vmatprep.mubr.msk.bf16.mxu1 %vm1128_vm0, %v18113_v8  ;;  %v20216_v8 = vld [vmem:[#allocation35_spill] sm:$0xff]  ;;  %v8723_v50 = vshll.u32 %v8659_v38, 16 }
 0x456   : > { %14941 = vmatprep.subr.bf16.mxu1 %v18047_v33  ;;  %v20210_v33 = vld [vmem:[#allocation7_spill] sm:$0xff] }
 0x459   : > { %14942 = vmatpush3.bf16.msra.mxu1 %v16193_v62  ;;  %v20223_v62 = vld [vmem:[#allocation4_spill] sm:$0xff] }
 0x45a   : > { %14955 = vmatprep.subr.bf16.mxu1 %v18054_v39 }
 0x45c   : > { %14932 = vmatmul.mubr.msk.bf16.gmra.mrb[28].mxu1 %vm1128_vm0, %v18130_v41  ;;  %v20219_v41 = vld [vmem:[#allocation44_spill] sm:$0xff] }
 0x45d   : > { %14935 = vmatprep.mubr.msk.bf16.mxu1 %vm1128_vm0, %v18134_v36  ;;  %v16196_v36 = vld [vmem:[#allocation2 + $0x150] ss:$8 sps:$4 sm:$0xff]  }
 0x464   : > { %14936 = vmatmul.mubr.msk.bf16.gmra.mrb[32].mxu1 %vm1128_vm0, %v16194_v58  ;;  %v8687_v58 = vshll.u32 %v8654_v46, 16 }
 0x465   : > { %14943 = vmatprep.mubr.msk.bf16.mxu1 %vm1128_vm0, %v18168_v56  ;;  %v16197_v56 = vld [vmem:[#allocation2 + $0x160] ss:$8 sps:$4 sm:$0xff]  }
 0x46c   : > { %14944 = vmatmul.mubr.msk.bf16.vlgmr.msra.gmra.mrb[24].mxu1 %vm1128_vm0, %v18182_v16  ;;  %v20220_v16 = vld [vmem:[#allocation72_spill] sm:$0xff] }
 0x46d   : > { %14956 = vmatpush3.bf16.msra.mxu1 %v18054_v39  ;;  %14947 = vmatprep.mubr.msk.bf16.mxu1 %vm1128_vm0, %v18184_v44  ;;  %v15860_v44 = vld [vmem:[%s19830_s5 + $0x28] sm:$0xff]   ;;  %v20211_v39 = vld [vmem:[#allocation33_spill] sm:$0xff] }
 0x46e   : > { %14957 = vmatprep.subr.bf16.mxu1 %v18079_v2  ;;  %15054 = vmatpush3.bf16.msra.mxu0 %v15860_v44 }
 0x46f   : > { %15055 = vmatprep.subr.bf16.mxu0 %v16210_v43 }
 0x471   : > { %14958 = vmatpush3.bf16.msra.mxu1 %v18079_v2  ;;  %v20212_v2 = vld [vmem:[#allocation34_spill] sm:$0xff] }
 0x472   : > { %14971 = vmatprep.subr.bf16.mxu1 %v18094_v28 }
 0x474   : > { %14948 = vmatmul.mubr.msk.bf16.gmra.mrb[28].mxu1 %vm1128_vm0, %v18206_v59  ;;  %v20221_v59 = vld [vmem:[#allocation6_spill] sm:$0xff] }
 0x475   : > { %14951 = vmatprep.mubr.msk.bf16.mxu1 %vm1128_vm0, %v18214_v20  ;;  %v16198_v20 = vld [vmem:[#allocation2 + $0x170] ss:$8 sps:$4 sm:$0xff]  }
 0x47c   : > { %14952 = vmatmul.mubr.msk.bf16.gmra.mrb[32].mxu1 %vm1128_vm0, %v18224_v3  ;;  %v16199_v3 = vld [vmem:[#allocation2 + $0x180] ss:$8 sps:$4 sm:$0xff]  }
 0x47d   : > { %14959 = vmatprep.mubr.msk.bf16.mxu1 %vm1128_vm0, %v18228_v37  ;;  %v8653_v37 = vld [vmem:[#allocation2 + $0x140] sm:$0xf] }
 0x484   : > { %14960 = vmatmul.mubr.msk.bf16.vlgmr.msra.gmra.mrb[24].mxu1 %vm1128_vm0, %v18232_v10  ;;  %v8655_v10 = vld [vmem:[#allocation2 + $0x148] sm:$0xf] }
 0x485   : > { %14972 = vmatpush3.bf16.msra.mxu1 %v18094_v28  ;;  %14963 = vmatprep.mubr.msk.bf16.mxu1 %vm1128_vm0, %v18237_v45  ;;  %v20213_v28 = vld [vmem:[#allocation3_spill] sm:$0xff]  ;;  %v16200_v45 = vld [vmem:[#allocation2 + $0x190] ss:$8 sps:$4 sm:$0xff]   ;;  %v8692_v42 = vshrl.u32 %v8655_v10, 16  ;;  %v8695_v32 = vshll.u32 %v8655_v10, 16 }
 0x486   : > { %14973 = vmatprep.subr.bf16.mxu1 %v18120_v6 }
 0x487   : > { %v8694_v1 = vrot.slane %v8692_v42, 4  ;;  %v8697_v11 = vrot.slane %v8695_v32, 5  ;;  %v8667_v32 = vld [vmem:[#allocation2 + $0x178] sm:$0xf] }
 0x489   : > { %14974 = vmatpush3.bf16.msra.mxu1 %v18120_v6  ;;  %v20217_v6 = vld [vmem:[#allocation36_spill] sm:$0xff]  ;;  %v8698_v44 = vor.u32 %v8697_v11, %v8694_v1 }
 0x48a   : > { %14987 = vmatprep.subr.bf16.mxu1 %v18127_v26 }
 0x48c   : > { %14964 = vmatmul.mubr.msk.bf16.gmra.mrb[28].mxu1 %vm1128_vm0, %v20208_v52  ;;  %v8661_v52 = vld [vmem:[#allocation2 + $0x160] sm:$0xf] }
 0x48d   : > { %14967 = vmatprep.mubr.msk.bf16.mxu1 %vm1128_vm0, %v20209_v48 }
 0x494   : > { %14968 = vmatmul.mubr.msk.bf16.gmra.mrb[32].mxu1 %vm1128_vm0, %v20210_v33  ;;  %v8701_v33 = vshll.u32 %v8656_v47, 16 }
 0x495   : > { %14975 = vmatprep.mubr.msk.bf16.mxu1 %vm1128_vm0, %v20211_v39  ;;  %v8663_v39 = vld [vmem:[#allocation2 + $0x168] sm:$0xf] }
 0x49c   : > { %14976 = vmatmul.mubr.msk.bf16.vlgmr.msra.gmra.mrb[24].mxu1 %vm1128_vm0, %v20212_v2  ;;  %v20225_v2 = vld [vmem:[#allocation46_spill] sm:$0xff] }
 0x49d   : > { %14988 = vmatpush3.bf16.msra.mxu1 %v18127_v26  ;;  %14979 = vmatprep.mubr.msk.bf16.mxu1 %vm1128_vm0, %v20213_v28  ;;  %v20218_v26 = vld [vmem:[#allocation43_spill] sm:$0xff]  ;;  %v8658_v28 = vld [vmem:[#allocation2 + $0x154] sm:$0x1] }
 0x49e   : > { %14989 = vmatprep.subr.bf16.mxu1 %v20214_v27 }
 0x4a1   : > { %14990 = vmatpush3.bf16.msra.mxu1 %v20214_v27 }
 0x4a2   : > { %15003 = vmatprep.subr.bf16.mxu1 %v20215_v53 }
 0x4a4   : > { %14980 = vmatmul.mubr.msk.bf16.gmra.mrb[28].mxu1 %vm1128_vm0, %v20216_v8  ;;  %v8660_v8 = vld [vmem:[#allocation2 + $0x15c] sm:$0x1] }
 0x4a5   : > { %14983 = vmatprep.mubr.msk.bf16.mxu1 %vm1128_vm0, %v20217_v6  ;;  %v8722_v6 = vrot.slane %v8720_v54, 4  ;;  %v8671_v54 = vld [vmem:[#allocation2 + $0x188] sm:$0xf] }
 0x4ac   : > { %14984 = vmatmul.mubr.msk.bf16.gmra.mrb[32].mxu1 %vm1128_vm0, %v17859_v51  ;;  %v16195_v51 = vld [vmem:[#allocation2 + $0x140] ss:$8 sps:$4 sm:$0xff]  }
 0x4ad   : > { %14991 = vmatprep.mubr.msk.bf16.mxu1 %vm1128_vm0, %v18293_v22  ;;  %v20222_v22 = vld [vmem:[#allocation37_spill] sm:$0xff] }
 0x4b4   : > { %14992 = vmatmul.mubr.msk.bf16.vlgmr.msra.gmra.mrb[24].mxu1 %vm1128_vm0, %v18320_v21  ;;  %v8678_v21 = vshrl.u32 %v8653_v37, 16 }
 0x4b5   : > { %15004 = vmatpush3.bf16.msra.mxu1 %v20215_v53  ;;  %14995 = vmatprep.mubr.msk.bf16.mxu1 %vm1128_vm0, %v18324_v13  ;;  %v8681_v13 = vshll.u32 %v8653_v37, 16  ;;  %v8715_v37 = vshll.u32 %v8658_v28, 16 }
 0x4b6   : > { %15005 = vmatprep.subr.bf16.mxu1 %v20218_v26 }
 0x4b7   : > { %v8683_v15 = vrot.slane %v8681_v13, 5  ;;  %v8717_v47 = vrot.slane %v8715_v37, 5 }
 0x4b9   : > { %15006 = vmatpush3.bf16.msra.mxu1 %v20218_v26  ;;  %v8725_v26 = vrot.slane %v8723_v50, 5 }
 0x4ba   : > { %15019 = vmatprep.subr.bf16.mxu1 %v20219_v41 }
 0x4bc   : > { %14996 = vmatmul.mubr.msk.bf16.gmra.mrb[28].mxu1 %vm1128_vm0, %v18360_v49  ;;  %v8657_v49 = vld [vmem:[#allocation2 + $0x150] sm:$0xf] }
 0x4bd   : > { %14999 = vmatprep.mubr.msk.bf16.mxu1 %vm1128_vm0, %v18367_v25  ;;  %v8680_v25 = vrot.slane %v8678_v21, 4  ;;  %v8706_v7 = vshrl.u32 %v8657_v49, 16  ;;  %v8726_v21 = vor.u32 %v8725_v26, %v8722_v6  ;;  %v8666_v6 = vld [vmem:[#allocation2 + $0x174] sm:$0x1] }
 0x4bf   : > { %v8684_v48 = vor.u32 %v8683_v15, %v8680_v25  ;;  %v8708_v27 = vrot.slane %v8706_v7, 4  ;;  %v8665_v25 = vld [vmem:[#allocation2 + $0x170] sm:$0xf]  ;;  %v20227_v15 = vld [vmem:[#allocation40_spill] sm:$0xff] }
 0x4c0   : > { %v8664_v7 = vld [vmem:[#allocation2 + $0x16c] sm:$0x1] }
 0x4c1   : > { %v8757_v28 = vshll.u32 %v8664_v7, 16  ;;  %v8670_v7 = vld [vmem:[#allocation2 + $0x184] sm:$0x1] }
 0x4c4   : > { %15000 = vmatmul.mubr.msk.bf16.gmra.mrb[32].mxu1 %vm1128_vm0, %v18391_v12  ;;  %v8709_v12 = vshll.u32 %v8657_v49, 16  ;;  %v20226_v49 = vld [vmem:[#allocation39_spill] sm:$0xff] }
 0x4c5   : > { %15007 = vmatprep.mubr.msk.bf16.mxu1 %vm1128_vm0, %v16195_v51  ;;  %v8737_v51 = vshll.u32 %v8661_v52, 16 }
 0x4c6   : > { %v8711_v53 = vrot.slane %v8709_v12, 5 }
 0x4c7   : > { %v8739_v42 = vrot.slane %v8737_v51, 5 }
 0x4c8   : > { %v8712_v10 = vor.u32 %v8711_v53, %v8708_v27  ;;  %v8804_v27 = vshrl.u32 %v8671_v54, 16  ;;  %v8807_v53 = vshll.u32 %v8671_v54, 16 }
 0x4ca   : > { %v8713_v50 = vrot.slane %v8712_v10, 4 }
 0x4cc   : > { %15008 = vmatmul.mubr.msk.bf16.vlgmr.msra.gmra.mrb[24].mxu1 %vm1128_vm0, %v16196_v36  ;;  %v8689_v36 = vrot.slane %v8687_v58, 5  ;;  %v8776_v58 = vshrl.u32 %v8667_v32, 16  ;;  %v8718_v51 = vsel %vm17542_vm9, %v8713_v50, %v8717_v47 }
 0x4cd   : > { %15020 = vmatpush3.bf16.msra.mxu1 %v20219_v41  ;;  %15011 = vmatprep.mubr.msk.bf16.mxu1 %vm1128_vm0, %v16197_v56  ;;  %v8734_v41 = vshrl.u32 %v8661_v52, 16  ;;  %v8748_v56 = vshrl.u32 %v8663_v39, 16  ;;  %v8779_v52 = vshll.u32 %v8667_v32, 16  ;;  %v8809_v32 = vrot.slane %v8807_v53, 5 }
 0x4ce   : > { %15021 = vmatprep.subr.bf16.mxu1 %v20220_v16 }
 0x4cf   : > { %v8736_v13 = vrot.slane %v8734_v41, 4  ;;  %v8750_v38 = vrot.slane %v8748_v56, 4  ;;  %v8668_v56 = vld [vmem:[#allocation2 + $0x17c] sm:$0x1] }
 0x4d1   : > { %15022 = vmatpush3.bf16.msra.mxu1 %v20220_v16  ;;  %v8751_v16 = vshll.u32 %v8663_v39, 16  ;;  %v8765_v39 = vshll.u32 %v8665_v25, 16 }
 0x4d2   : > { %15035 = vmatprep.subr.bf16.mxu1 %v20221_v59 }
 0x4d3   : > { %v8753_v46 = vrot.slane %v8751_v16, 5  ;;  %v8778_v16 = vrot.slane %v8776_v58, 4  ;;  %v8767_v10 = vrot.slane %v8765_v39, 5 }
 0x4d4   : > { %15012 = vmatmul.mubr.msk.bf16.gmra.mrb[28].mxu1 %vm1128_vm0, %v16198_v20  ;;  %v8699_v20 = vrot.slane %v8698_v44, 4  ;;  %v8740_v44 = vor.u32 %v8739_v42, %v8736_v13  ;;  %v8759_v13 = vrot.slane %v8757_v28, 5  ;;  %v8806_v42 = vrot.slane %v8804_v27, 4 }
 0x4d5   : > { %15015 = vmatprep.mubr.msk.bf16.mxu1 %vm1128_vm0, %v16199_v3  ;;  %v8703_v3 = vrot.slane %v8701_v33, 5  ;;  %v8762_v33 = vshrl.u32 %v8665_v25, 16  ;;  %v8672_v25 = vld [vmem:[#allocation2 + $0x18c] sm:$0x1] }
 0x4d6   : > { %v8810_v39 = vor.u32 %v8809_v32, %v8806_v42 }
 0x4d7   : > { %v8704_v11 = vsel %vm17542_vm9, %v8699_v20, %v8703_v3  ;;  %v8741_v3 = vrot.slane %v8740_v44, 4  ;;  %v8764_v37 = vrot.slane %v8762_v33, 4 }
 0x4d9   : > { %v8768_v58 = vor.u32 %v8767_v10, %v8764_v37 }
 0x4db   : > { %v8769_v10 = vrot.slane %v8768_v58, 4 }
 0x4dc   : > { %15016 = vmatmul.mubr.msk.bf16.gmra.mrb[32].mxu1 %vm1128_vm0, %v16200_v45  ;;  %v8729_v45 = vshll.u32 %v8660_v8, 16 }
 0x4dd   : > { %15023 = vmatprep.mubr.msk.bf16.mxu1 %vm1128_vm0, %v20222_v22  ;;  %v8662_v22 = vld [vmem:[#allocation2 + $0x164] sm:$0x1] }
 0x4de   : > { %v8743_v12 = vshll.u32 %v8662_v22, 16  ;;  %v20228_v22 = vld [vmem:[#allocation5_spill] sm:$0xff] }
 0x4e4   : > { %15024 = vmatmul.mubr.msk.bf16.vlgmr.msra.gmra.mrb[24].mxu1 %vm1128_vm0, %v20223_v62  ;;  %v8731_v62 = vrot.slane %v8729_v45, 5  ;;  %v8673_v45 = vld [vmem:[#allocation2 + $0x190] sm:$0xf] }
 0x4e5   : > { %15036 = vmatpush3.bf16.msra.mxu1 %v20221_v59  ;;  %15027 = vmatprep.mubr.msk.bf16.mxu1 %vm1128_vm0, %v20224_v23  ;;  %v8685_v59 = vrot.slane %v8684_v48, 4  ;;  %v8669_v23 = vld [vmem:[#allocation2 + $0x180] sm:$0xf]  ;;  %v8727_v48 = vrot.slane %v8726_v21, 4  ;;  %v8821_v54 = vshll.u32 %v8673_v45, 16 }
 0x4e6   : > { %15037 = vmatprep.subr.bf16.mxu1 %v20225_v2  ;;  %v8790_v26 = vshrl.u32 %v8669_v23, 16  ;;  %v8793_v41 = vshll.u32 %v8669_v23, 16 }
 0x4e7   : > { %v8690_v1 = vsel %vm17542_vm9, %v8685_v59, %v8689_v36  ;;  %v8745_v36 = vrot.slane %v8743_v12, 5  ;;  %v8781_v59 = vrot.slane %v8779_v52, 5  ;;  %v8732_v20 = vsel %vm17542_vm9, %v8727_v48, %v8731_v62 }
 0x4e8   : > { %v13462_v8 = vcombine.low %v8690_v1, %v8704_v11  ;;  %v8795_v1 = vrot.slane %v8793_v41, 5  ;;  %v13463_v11 = vcombine.low %v8718_v51, %v8732_v20  ;;  %v8818_v12 = vshrl.u32 %v8673_v45, 16  ;;  %v8674_v20 = vld [vmem:[#allocation2 + $0x194] sm:$0x1] }
 0x4e9   : > { %15038 = vmatpush3.bf16.msra.mxu1 %v20225_v2  ;;  %v8754_v2 = vor.u32 %v8753_v46, %v8750_v38  ;;  %v8771_v38 = vshll.u32 %v8666_v6, 16  ;;  %v8785_v46 = vshll.u32 %v8668_v56, 16  ;;  %v8782_v47 = vor.u32 %v8781_v59, %v8778_v16 }
 0x4ea   : > { %15099 = vmatprep.subr.bf16.mxu1 %v16210_v43  ;;  %v8746_v62 = vsel %vm17542_vm9, %v8741_v3, %v8745_v36  ;;  %v8799_v6 = vshll.u32 %v8670_v7, 16  ;;  %v8820_v36 = vrot.slane %v8818_v12, 4  ;;  %v8823_v56 = vrot.slane %v8821_v54, 5 }
 0x4eb   : > { %v8755_v21 = vrot.slane %v8754_v2, 4  ;;  %v8813_v2 = vshll.u32 %v8672_v25, 16  ;;  %v8787_v53 = vrot.slane %v8785_v46, 5  ;;  %v8783_v51 = vrot.slane %v8782_v47, 4 }
 0x4ec   : > { %15028 = vmatmul.mubr.msk.bf16.gmra.mrb[28].mxu1 %vm1128_vm0, %v20226_v49  ;;  %v8675_v49 = vld [vmem:[#allocation2 + $0x198] sm:$0xf]  ;;  %v8773_v45 = vrot.slane %v8771_v38, 5  ;;  %v8801_v42 = vrot.slane %v8799_v6, 5  ;;  %v8824_v46 = vor.u32 %v8823_v56, %v8820_v36  ;;  %v8827_v25 = vshll.u32 %v8674_v20, 16 }
 0x4ed   : > { %15031 = vmatprep.mubr.msk.bf16.mxu1 %vm1128_vm0, %v20227_v15  ;;  %v8792_v15 = vrot.slane %v8790_v26, 4  ;;  %v8832_v52 = vshrl.u32 %v8675_v49, 16  ;;  %v8835_v23 = vshll.u32 %v8675_v49, 16  ;;  %v8760_v33 = vsel %vm17542_vm9, %v8755_v21, %v8759_v13  ;;  %v8676_v13 = vld [vmem:[#allocation2 + $0x19c] sm:$0x1] }
 0x4ee   : > { %v13464_v59 = vcombine.low %v8746_v62, %v8760_v33  ;;  %v8815_v21 = vrot.slane %v8813_v2, 5  ;;  %v8788_v32 = vsel %vm17542_vm9, %v8783_v51, %v8787_v53  ;;  %v8841_v47 = vshll.u32 %v8676_v13, 16  ;;  %v15861_v13 = vld [vmem:[%s19830_s5 + $0x30] sm:$0xff]  }
 0x4ef   : > { %v8834_v3 = vrot.slane %v8832_v52, 4  ;;  %v8837_v37 = vrot.slane %v8835_v23, 5  ;;  %v8774_v7 = vsel %vm17542_vm9, %v8769_v10, %v8773_v45  ;;  %v8829_v2 = vrot.slane %v8827_v25, 5  ;;  %15056 = vmatpush3.bf16.msra.mxu0 %v15861_v13  ;;  %v15867_v25 = vld [vmem:[%s19830_s5 + $0x98] sm:$0xff]  }
 0x4f0   : > { %v13465_v58 = vcombine.low %v8774_v7, %v8788_v32  ;;  %v8843_v51 = vrot.slane %v8841_v47, 5  ;;  %15057 = vmatprep.subr.bf16.mxu0 %v16210_v43  ;;  %v15863_v32 = vld [vmem:[%s19830_s5 + $0x38] sm:$0xff]   ;;  %v20229_v47 = vld [vmem:[#allocation8_spill] sm:$0xff] }
 0x4f3   : > { %15058 = vmatpush3.bf16.msra.mxu0 %v15863_v32 }
 0x4f4   : > { %15032 = vmatmul.mubr.msk.bf16.gmra.mrb[32].mxu1 %vm1128_vm0, %v20228_v22  ;;  %v8811_v22 = vrot.slane %v8810_v39, 4  ;;  %v8825_v39 = vrot.slane %v8824_v46, 4  ;;  %v15865_v46 = vld [vmem:[%s19830_s5 + $0x90] sm:$0xff]   ;;  %15063 = vmatprep.subr.bf16.mxu0 %v16210_v43 }
 0x4f5   : > { %15039 = vmatprep.mubr.msk.bf16.mxu1 %vm1128_vm0, %v13462_v8  ;;  %v8796_v8 = vor.u32 %v8795_v1, %v8792_v15  ;;  %v8838_v1 = vor.u32 %v8837_v37, %v8834_v3 }
 0x4f6   : > { %v8816_v12 = vsel %vm17542_vm9, %v8811_v22, %v8815_v21  ;;  %v8830_v56 = vsel %vm17542_vm9, %v8825_v39, %v8829_v2 }
 0x4f7   : > { %v18537_v50 = vpop.f32.mrb[12].mxu1  ;;  %v8797_v49 = vrot.slane %v8796_v8, 4  ;;  %v8839_v6 = vrot.slane %v8838_v1, 4 }
 0x4f8   : > { %v8976_v48 = vmax.f32 %v18314_v31, %v18537_v50  ;;  %v18543_v44 = vpop.f32.mrb[13].mxu1 }
 0x4f9   : > { %v8974_v28 = vmax.f32 %v18316_v24, %v18543_v44  ;;  %v18549_v27 = vpop.f32.mrb[14].mxu1  ;;  %v8802_v33 = vsel %vm17542_vm9, %v8797_v49, %v8801_v42  ;;  %v15862_v42 = vld [vmem:[%s19830_s5 + $0x80] sm:$0xff]   ;;  %v15864_v49 = vld [vmem:[%s19830_s5 + $0x88] sm:$0xff]  }
 0x4fa   : > { %v8977_v26 = vmax.f32 %v18318_v19, %v18549_v27  ;;  %v18553_v41 = vpop.f32.mrb[15].mxu1  ;;  %v13466_v8 = vcombine.low %v8802_v33, %v8816_v12  ;;  %v20230_v33 = vld [vmem:[#allocation47_spill] sm:$0xff] }
 0x4fb   : > { %v8975_v16 = vmax.f32 %v18322_v29, %v18553_v41 }
 0x4fc   : > { %15040 = vmatmul.mubr.msk.bf16.vlgmr.msra.gmra.mrb[24].mxu1 %vm1128_vm0, %v13463_v11 }
 0x4fd   : > { %15043 = vmatprep.mubr.msk.bf16.mxu1 %vm1128_vm0, %v13464_v59  ;;  %v8844_v59 = vsel %vm17542_vm9, %v8839_v6, %v8843_v51  ;;  %15100 = vmatpush3.bf16.msra.mxu1 %v15862_v42  ;;  %v20231_v6 = vld [vmem:[#allocation74_spill] sm:$0xff] }
 0x4fe   : > { %v13467_v21 = vcombine.low %v8830_v56, %v8844_v59  ;;  %15101 = vmatprep.subr.bf16.mxu1 %v16210_v43 }
 0x4ff   : > { %v18561_v15 = vpop.f32.mrb[16].mxu1 }
 0x500   : > { %v8980_v11 = vmax.f32 %v18346_v30, %v18561_v15  ;;  %v18565_v38 = vpop.f32.mrb[17].mxu1 }
 0x501   : > { %v8978_v54 = vmax.f32 %v18350_v17, %v18565_v38  ;;  %v18573_v62 = vpop.f32.mrb[18].mxu1  ;;  %15102 = vmatpush3.bf16.msra.mxu1 %v15864_v49 }
 0x502   : > { %v8981_v52 = vmax.f32 %v18356_v55, %v18573_v62  ;;  %v18577_v23 = vpop.f32.mrb[19].mxu1  ;;  %15103 = vmatprep.subr.bf16.mxu1 %v16210_v43 }
 0x503   : > { %v8979_v53 = vmax.f32 %v18358_v4, %v18577_v23 }
 0x504   : > { %15044 = vmatmul.mubr.msk.bf16.gmra.mrb[28].mxu1 %vm1128_vm0, %v13465_v58  ;;  %v18638_v58 = vld [vmem:[%s19829_s4] ss:$0 sm:$0xff] }
 0x505   : > { %15047 = vmatprep.mubr.msk.bf16.mxu1 %vm1128_vm0, %v13466_v8  ;;  %15104 = vmatpush3.bf16.msra.mxu1 %v15865_v46 }
 0x506   : > { %15105 = vmatprep.subr.bf16.mxu1 %v16210_v43 }
 0x507   : > { %v18585_v36 = vpop.f32.mrb[20].mxu1 }
 0x508   : > { %v8984_v20 = vmax.f32 %v18379_v57, %v18585_v36  ;;  %v18593_v3 = vpop.f32.mrb[21].mxu1 }
 0x509   : > { %v8982_v37 = vmax.f32 %v18385_v61, %v18593_v3  ;;  %v18597_v10 = vpop.f32.mrb[22].mxu1  ;;  %15106 = vmatpush3.bf16.msra.mxu1 %v15867_v25 }
 0x50a   : > { %v8985_v45 = vmax.f32 %v18387_v60, %v18597_v10  ;;  %v18601_v22 = vpop.f32.mrb[23].mxu1  ;;  %15123 = vmatprep.subr.bf16.mxu1 %v16210_v43  ;;  %v15871_v60 = vld [vmem:[%s19830_s5 + $0xc8] sm:$0xff]  }
 0x50b   : > { %v8983_v0 = vmax.f32 %v18389_v34, %v18601_v22 }
 0x50c   : > { %15048 = vmatmul.mubr.msk.bf16.gmra.mrb[32].mxu1 %vm1128_vm0, %v13467_v21  ;;  %v20232_v21 = vld [vmem:[#allocation75_spill] sm:$0xff] }
 0x50d   : > { %15107 = vmatprep.mubr.msk.bf16.mxu1 %vm16211_vm10, %v16210_v43 }
 0x5cf   : > { %v15041_v1 = vpop.f32.mrb[24].mxu1 }
 0x5d0   : > { %v8988_v7 = vmax.f32 %v20229_v47, %v15041_v1  ;;  %v8915_v12 = vpop.f32.mrb[25].mxu1 }
 0x5d1   : > { %v8986_v39 = vmax.f32 %v20230_v33, %v8915_v12  ;;  %v15042_v2 = vpop.f32.mrb[26].mxu1  ;;  %v20233_v12 = vld [vmem:[#allocation9_spill] sm:$0xff] }
 0x5d2   : > { %v9000_v8 = vmax.f32 %v8976_v48, %v8988_v7  ;;  %v8989_v51 = vmax.f32 %v20231_v6, %v15042_v2  ;;  %v8918_v56 = vpop.f32.mrb[27].mxu1 }
 0x5d3   : > { %v8998_v59 = vmax.f32 %v8974_v28, %v8986_v39  ;;  %v8987_v13 = vmax.f32 %v20232_v21, %v8918_v56  ;;  %v15869_v21 = vld [vmem:[%s19830_s5 + $0xc0] sm:$0xff]  }
 0x5d4   : > { %v9019_v42 = vadd.f32 %v18638_v58, %v9000_v8  ;;  %v9001_v32 = vmax.f32 %v8977_v26, %v8989_v51  ;;  %v15868_v8 = vld [vmem:[%s19830_s5 + $0x8] sm:$0xff]  }
 0x5d5   : > { %v9017_v49 = vadd.f32 %v18638_v58, %v8998_v59  ;;  %v8999_v31 = vmax.f32 %v8975_v16, %v8987_v13 }
 0x5d6   : > { %v9020_v50 = vadd.f32 %v18638_v58, %v9001_v32  ;;  %v9031_v44 = vmax.f32 %v9019_v42, 0.0 }
 0x5d7   : > { %v9018_v48 = vadd.f32 %v18638_v58, %v8999_v31  ;;  %v15045_v24 = vpop.f32.mrb[28].mxu1  ;;  %v9029_v1 = vmax.f32 %v9017_v49, 0.0  ;;  %v15874_v49 = vld [vmem:[%s19830_s5 + $0x40] sm:$0xff]   ;;  %v15875_v31 = vld [vmem:[%s19830_s5 + $0xd8] sm:$0xff]  }
 0x5d8   : > { %v9032_v28 = vmax.f32 %v9020_v50, 0.0  ;;  %v8992_v46 = vmax.f32 %v18326_v9, %v15045_v24  ;;  %v8931_v25 = vpop.f32.mrb[29].mxu1  ;;  %v15876_v50 = vld [vmem:[%s19830_s5 + $0x48] sm:$0xff]   ;;  %v15878_v24 = vld [vmem:[%s19830_s5 + $0x50] sm:$0xff]  }
 0x5d9   : > { %v9030_v47 = vmax.f32 %v9018_v48, 0.0  ;;  %v8990_v19 = vmax.f32 %v18328_v18, %v8931_v25  ;;  %v15046_v27 = vpop.f32.mrb[30].mxu1  ;;  %v15877_v48 = vld [vmem:[%s19830_s5 + $0x100] sm:$0xff]  }
 0x5da   : > { %v18661_v26 = vpack.c.bf16 %v9032_v28, %v9031_v44  ;;  %v9004_v29 = vmax.f32 %v8980_v11, %v8992_v46  ;;  %v8993_v41 = vmax.f32 %v18332_v14, %v15046_v27  ;;  %v8934_v16 = vpop.f32.mrb[31].mxu1  ;;  %v15866_v14 = vld [vmem:[%s19830_s5] sm:$0xff]   ;;  %v15879_v44 = vld [vmem:[%s19830_s5 + $0x108] sm:$0xff]   ;;  %v15880_v28 = vld [vmem:[%s19830_s5 + $0x58] sm:$0xff]  }
 0x5db   : > { %v18667_v7 = vpack.c.bf16 %v9030_v47, %v9029_v1  ;;  %v9002_v9 = vmax.f32 %v8978_v54, %v8990_v19  ;;  %v8991_v33 = vmax.f32 %v20233_v12, %v8934_v16  ;;  %v15881_v46 = vld [vmem:[%s19830_s5 + $0x110] sm:$0xff]   ;;  %v15882_v25 = vld [vmem:[%s19830_s5 + $0x60] sm:$0xff]   ;;  %v15883_v1 = vld [vmem:[%s19830_s5 + $0x118] sm:$0xff]  }
 0x5dc   : > { %v9023_v18 = vadd.f32 %v18638_v58, %v9004_v29  ;;  %v9005_v39 = vmax.f32 %v8981_v52, %v8993_v41  ;;  %v15884_v47 = vld [vmem:[%s19830_s5 + $0x68] sm:$0xff]   ;;  %v15885_v19 = vld [vmem:[%s19830_s5 + $0x140] sm:$0xff]   ;;  %v15886_v27 = vld [vmem:[%s19830_s5 + $0x70] sm:$0xff]  }
 0x5dd   : > { %v9065_v30 = vrot.slane %v18667_v7, 4  ;;  %v9021_v15 = vadd.f32 %v18638_v58, %v9002_v9  ;;  %v9003_v17 = vmax.f32 %v8979_v53, %v8991_v33  ;;  %v15887_v29 = vld [vmem:[%s19830_s5 + $0x148] sm:$0xff]   ;;  %v15888_v41 = vld [vmem:[%s19830_s5 + $0x78] sm:$0xff]   ;;  %v15889_v16 = vld [vmem:[%s19830_s5 + $0x150] sm:$0xff]   ;;  %v9288_v9 = vrot.slane %v18661_v26, 4 }
 0x5de   : > { %v9024_v11 = vadd.f32 %v18638_v58, %v9005_v39  ;;  %v9035_v55 = vmax.f32 %v9023_v18, 0.0  ;;  %v15891_v12 = vld [vmem:[%s19830_s5 + $0x158] sm:$0xff]   ;;  %v15892_v33 = vld [vmem:[%s19830_s5 + $0xa8] sm:$0xff]   ;;  %v15895_v39 = vld [vmem:[%s19830_s5 + $0xe0] sm:$0xff]  }
 0x5df   : > { %v9022_v38 = vadd.f32 %v18638_v58, %v9003_v17  ;;  %v15049_v54 = vpop.f32.mrb[32].mxu1  ;;  %15060 = vmatmul.mubr.msk.bf16.vlgmr.msra.gmra.mrb[204].mxu0 %vm9090_vm11, %v9065_v30  ;;  %v9033_v4 = vmax.f32 %v9021_v15, 0.0  ;;  %v15894_v18 = vld [vmem:[%s19830_s5 + $0xb8] sm:$0xff]   ;;  %v15896_v30 = vld [vmem:[%s19830_s5 + $0xe8] sm:$0xff]   ;;  %v15897_v15 = vld [vmem:[%s19830_s5 + $0xf0] sm:$0xff]  }
 0x5e0   : > { %v9036_v62 = vmax.f32 %v9024_v11, 0.0  ;;  %v8996_v52 = vmax.f32 %v18362_v63, %v15049_v54  ;;  %15064 = vmatpush3.bf16.msra.mxu0 %v15866_v14  ;;  %v8947_v2 = vpop.f32.mrb[33].mxu1  ;;  %15071 = vmatprep.mubr.msk.bf16.mxu0 %vm16211_vm10, %v16210_v43  ;;  %v15898_v17 = vld [vmem:[%s19830_s5 + $0xf8] sm:$0xff]   ;;  %v15899_v11 = vld [vmem:[%s19830_s5 + $0x120] sm:$0xff]   ;;  %v15900_v54 = vld [vmem:[%s19830_s5 + $0x128] sm:$0xff]  }
 0x5e1   : > { %v9034_v23 = vmax.f32 %v9022_v38, 0.0  ;;  %v8994_v53 = vmax.f32 %v18369_v40, %v8947_v2  ;;  %v15050_v6 = vpop.f32.mrb[34].mxu1  ;;  %15065 = vmatprep.subr.bf16.mxu0 %v16210_v43 }
 0x5e2   : > { %v18696_v51 = vpack.c.bf16 %v9036_v62, %v9035_v55  ;;  %v9008_v63 = vmax.f32 %v8984_v20, %v8996_v52  ;;  %v8997_v56 = vmax.f32 %v18373_v5, %v15050_v6  ;;  %v8950_v59 = vpop.f32.mrb[35].mxu1  ;;  %v15870_v5 = vld [vmem:[%s19830_s5 + $0x10] sm:$0xff]   ;;  %v15902_v62 = vld [vmem:[%s19830_s5 + $0x138] sm:$0xff]   ;;  %v15903_v52 = vld [vmem:[%s19830_s5 + $0x160] sm:$0xff]  }
 0x5e3   : > { %v18705_v13 = vpack.c.bf16 %v9034_v23, %v9033_v4  ;;  %v9006_v40 = vmax.f32 %v8982_v37, %v8994_v53  ;;  %v8995_v42 = vmax.f32 %v18377_v35, %v8950_v59  ;;  %v15872_v37 = vld [vmem:[%s19830_s5 + $0x18] sm:$0xff]   ;;  %v15901_v55 = vld [vmem:[%s19830_s5 + $0x130] sm:$0xff]   ;;  %v15907_v6 = vld [vmem:[%s19832_s7] sm:$0xff]  }
 0x5e4   : > { %v9027_v32 = vadd.f32 %v18638_v58, %v9008_v63  ;;  %v9009_v57 = vmax.f32 %v8985_v45, %v8997_v56  ;;  %15066 = vmatpush3.bf16.msra.mxu0 %v15868_v8  ;;  %v9600_v38 = vrot.slane %v18696_v51, 4  ;;  %v15904_v8 = vld [vmem:[%s19830_s5 + $0x168] sm:$0xff]   ;;  %v15905_v4 = vld [vmem:[%s19830_s5 + $0x170] sm:$0xff]   ;;  %v15906_v23 = vld [vmem:[%s19830_s5 + $0x178] sm:$0xff]  }
 0x5e5   : > { %v9025_v36 = vadd.f32 %v18638_v58, %v9006_v40  ;;  %v9007_v61 = vmax.f32 %v8983_v0, %v8995_v42  ;;  %15108 = vmatmul.mubr.msk.bf16.vlgmr.msra.gmra.mrb[36].mxu1 %vm9090_vm11, %v18705_v13  ;;  %15067 = vmatprep.subr.bf16.mxu0 %v16210_v43  ;;  %v15873_v0 = vld [vmem:[%s19830_s5 + $0xd0] sm:$0xff]   ;;  %v9444_v14 = vrot.slane %v18705_v13, 4  ;;  %v15909_v63 = vld [vmem:[%s19832_s7 + $0x8] sm:$0xff]   ;;  %v15913_v13 = vld [vmem:[%s19832_s7 + $0x18] sm:$0xff]  }
 0x5e6   : > { %v9028_v35 = vadd.f32 %v18638_v58, %v9009_v57  ;;  %15124 = vmatpush3.bf16.msra.mxu1 %v15869_v21  ;;  %15131 = vmatprep.mubr.msk.bf16.mxu1 %vm16211_vm10, %v16210_v43  ;;  %v9039_v34 = vmax.f32 %v9027_v32, 0.0  ;;  %v15910_v56 = vld [vmem:[%s19832_s7 + $0x28] sm:$0xff]   ;;  %v15911_v59 = vld [vmem:[%s19832_s7 + $0x10] sm:$0xff]   ;;  %v15914_v40 = vld [vmem:[%s19832_s7 + $0x38] sm:$0xff]  }
 0x5e7   : > { %v9026_v20 = vadd.f32 %v18638_v58, %v9007_v61  ;;  %15125 = vmatprep.subr.bf16.mxu1 %v16210_v43  ;;  %v9037_v10 = vmax.f32 %v9025_v36, 0.0  ;;  %v15912_v21 = vld [vmem:[%s19832_s7 + $0x30] sm:$0xff]   ;;  %v18952_v42 = vld [vmem:[%s19833_s8 + $0x4] ss:$8 sps:$4 sm:$0xff]  }
 0x5e8   : > { %v9040_v3 = vmax.f32 %v9028_v35, 0.0  ;;  %15068 = vmatpush3.bf16.msra.mxu0 %v15870_v5 }
 0x5e9   : > { %v9038_v45 = vmax.f32 %v9026_v20, 0.0  ;;  %15069 = vmatprep.subr.bf16.mxu0 %v16210_v43 }
 0x5ea   : > { %v18737_v22 = vpack.c.bf16 %v9040_v3, %v9039_v34  ;;  %15126 = vmatpush3.bf16.msra.mxu1 %v15871_v60  ;;  %v13657_v34 = vld [vmem:[%s19835_s10 + $0x1] ss:$0 sm:$0xff]  ;;  %v13655_v3 = vld [vmem:[%s19835_s10] ss:$0 sm:$0xff] }
 0x5eb   : > { %v18742_v58 = vpack.c.bf16 %v9038_v45, %v9037_v10  ;;  %15127 = vmatprep.subr.bf16.mxu1 %v16210_v43  ;;  %10310 = vrot.lane.b32.xlu0 %v13657_v34, %s16212_s14  ;;  %v18999_v34 = vld [vmem:[%s19833_s8 + $0x20] ss:$8 sps:$4 sm:$0xff]  }
 0x5ec   : > { %15070 = vmatpush3.bf16.msra.mxu0 %v15872_v37  ;;  %v9912_v53 = vrot.slane %v18737_v22, 4 }
 0x5ed   : > { %15075 = vmatprep.subr.bf16.mxu0 %v16210_v43  ;;  %v9756_v2 = vrot.slane %v18742_v58, 4 }
 0x5ee   : > { %15128 = vmatpush3.bf16.msra.mxu1 %v15873_v0 }
 0x5ef   : > { %15072 = vmatmul.mubr.msk.bf16.vlgmr.msra.gmra.mrb[208].mxu0 %vm9090_vm11, %v18667_v7  ;;  %15129 = vmatprep.subr.bf16.mxu1 %v16210_v43  ;;  %v15890_v7 = vld [vmem:[%s19830_s5 + $0xa0] sm:$0xff]  }
 0x5f0   : > { %15076 = vmatpush3.bf16.msra.mxu0 %v15874_v49  ;;  %15083 = vmatprep.mubr.msk.bf16.mxu0 %vm16211_vm10, %v16210_v43 }
 0x5f1   : > { %15077 = vmatprep.subr.bf16.mxu0 %v16210_v43  ;;  %10262 = vrot.lane.b32.xlu0 %v13655_v3, %s16213_s17  ;;  %v19005_v3 = vld [vmem:[%s19833_s8 + $0x34] ss:$8 sps:$4 sm:$0xff]  }
 0x5f2   : > { %15130 = vmatpush3.bf16.msra.mxu1 %v15875_v31 }
 0x5f3   : > { %15147 = vmatprep.subr.bf16.mxu1 %v16210_v43 }
 0x5f4   : > { %15078 = vmatpush3.bf16.msra.mxu0 %v15876_v50 }
 0x5f5   : > { %15132 = vmatmul.mubr.msk.bf16.vlgmr.msra.gmra.mrb[40].mxu1 %vm9090_vm11, %v18696_v51  ;;  %15079 = vmatprep.subr.bf16.mxu0 %v16210_v43  ;;  %v15908_v51 = vld [vmem:[%s19832_s7 + $0x20] sm:$0xff]  }
 0x5f6   : > { %15148 = vmatpush3.bf16.msra.mxu1 %v15877_v48  ;;  %15155 = vmatprep.mubr.msk.bf16.mxu1 %vm16211_vm10, %v16210_v43 }
 0x5f7   : > { %15149 = vmatprep.subr.bf16.mxu1 %v16210_v43 }
 0x5f8   : > { %15080 = vmatpush3.bf16.msra.mxu0 %v15878_v24 }
 0x5f9   : > { %15081 = vmatprep.subr.bf16.mxu0 %v16210_v43 }
 0x5fa   : > { %15150 = vmatpush3.bf16.msra.mxu1 %v15879_v44 }
 0x5fb   : > { %15151 = vmatprep.subr.bf16.mxu1 %v16210_v43 }
 0x5fc   : > { %15082 = vmatpush3.bf16.msra.mxu0 %v15880_v28 }
 0x5fd   : > { %15087 = vmatprep.subr.bf16.mxu0 %v16210_v43 }
 0x5fe   : > { %15152 = vmatpush3.bf16.msra.mxu1 %v15881_v46 }
 0x5ff   : > { %15084 = vmatmul.mubr.msk.bf16.vlgmr.msra.gmra.mrb[212].mxu0 %vm9090_vm11, %v18661_v26  ;;  %15153 = vmatprep.subr.bf16.mxu1 %v16210_v43  ;;  %v15893_v26 = vld [vmem:[%s19830_s5 + $0xb0] sm:$0xff]  }
 0x600   : > { %15088 = vmatpush3.bf16.msra.mxu0 %v15882_v25  ;;  %15095 = vmatprep.mubr.msk.bf16.mxu0 %vm16211_vm10, %v16210_v43 }
 0x601   : > { %15089 = vmatprep.subr.bf16.mxu0 %v16210_v43 }
 0x602   : > { %15154 = vmatpush3.bf16.msra.mxu1 %v15883_v1 }
 0x603   : > { %15171 = vmatprep.subr.bf16.mxu1 %v16210_v43 }
 0x604   : > { %15090 = vmatpush3.bf16.msra.mxu0 %v15884_v47 }
 0x605   : > { %15156 = vmatmul.mubr.msk.bf16.vlgmr.msra.gmra.mrb[44].mxu1 %vm9090_vm11, %v18742_v58  ;;  %15091 = vmatprep.subr.bf16.mxu0 %v16210_v43 }
 0x606   : > { %15172 = vmatpush3.bf16.msra.mxu1 %v15885_v19  ;;  %15179 = vmatprep.mubr.msk.bf16.mxu1 %vm16211_vm10, %v16210_v43 }
 0x607   : > { %15173 = vmatprep.subr.bf16.mxu1 %v16210_v43 }
 0x608   : > { %15092 = vmatpush3.bf16.msra.mxu0 %v15886_v27 }
 0x609   : > { %15093 = vmatprep.subr.bf16.mxu0 %v16210_v43 }
 0x60a   : > { %15174 = vmatpush3.bf16.msra.mxu1 %v15887_v29 }
 0x60b   : > { %15175 = vmatprep.subr.bf16.mxu1 %v16210_v43 }
 0x60c   : > { %15094 = vmatpush3.bf16.msra.mxu0 %v15888_v41 }
 0x60d   : > { %15111 = vmatprep.subr.bf16.mxu0 %v16210_v43 }
 0x60e   : > { %15176 = vmatpush3.bf16.msra.mxu1 %v15889_v16 }
 0x60f   : > { %15096 = vmatmul.mubr.msk.bf16.vlgmr.msra.gmra.mrb[216].mxu0 %vm9090_vm11, %v9288_v9  ;;  %15177 = vmatprep.subr.bf16.mxu1 %v16210_v43 }
 0x610   : > { %15112 = vmatpush3.bf16.msra.mxu0 %v15890_v7  ;;  %15119 = vmatprep.mubr.msk.bf16.mxu0 %vm16211_vm10, %v16210_v43 }
 0x611   : > { %15113 = vmatprep.subr.bf16.mxu0 %v16210_v43 }
 0x612   : > { %15178 = vmatpush3.bf16.msra.mxu1 %v15891_v12 }
 0x613   : > { %15195 = vmatprep.subr.bf16.mxu1 %v16210_v43 }
 0x614   : > { %15114 = vmatpush3.bf16.msra.mxu0 %v15892_v33 }
 0x615   : > { %15180 = vmatmul.mubr.msk.bf16.vlgmr.msra.gmra.mrb[48].mxu1 %vm9090_vm11, %v18737_v22  ;;  %15115 = vmatprep.subr.bf16.mxu0 %v16210_v43 }
 0x616   : > { %15203 = vmatprep.mubr.msk.bf16.mxu1 %vm16211_vm10, %v16210_v43  ;;  %15196 = vmatpush3.bf16.msra.mxu1 %v15907_v6 }
 0x617   : > { %15197 = vmatprep.subr.bf16.mxu1 %v16210_v43 }
 0x618   : > { %15116 = vmatpush3.bf16.msra.mxu0 %v15893_v26 }
 0x619   : > { %15117 = vmatprep.subr.bf16.mxu0 %v16210_v43 }
 0x61a   : > { %15198 = vmatpush3.bf16.msra.mxu1 %v15909_v63 }
 0x61b   : > { %15199 = vmatprep.subr.bf16.mxu1 %v16210_v43 }
 0x61c   : > { %15118 = vmatpush3.bf16.msra.mxu0 %v15894_v18 }
 0x61d   : > { %15135 = vmatprep.subr.bf16.mxu0 %v16210_v43 }
 0x61e   : > { %15200 = vmatpush3.bf16.msra.mxu1 %v15911_v59 }
 0x61f   : > { %15120 = vmatmul.mubr.msk.bf16.vlgmr.msra.gmra.mrb[220].mxu0 %vm9090_vm11, %v9444_v14  ;;  %15201 = vmatprep.subr.bf16.mxu1 %v16210_v43 }
 0x620   : > { %15136 = vmatpush3.bf16.msra.mxu0 %v15895_v39  ;;  %15143 = vmatprep.mubr.msk.bf16.mxu0 %vm16211_vm10, %v16210_v43 }
 0x621   : > { %15137 = vmatprep.subr.bf16.mxu0 %v16210_v43 }
 0x622   : > { %15202 = vmatpush3.bf16.msra.mxu1 %v15913_v13 }
 0x623   : > { %10209 = vmatprep.subr.bf16.mxu1 %v18952_v42 }
 0x624   : > { %15138 = vmatpush3.bf16.msra.mxu0 %v15896_v30 }
 0x625   : > { %15139 = vmatprep.subr.bf16.mxu0 %v16210_v43 }
 0x628   : > { %15140 = vmatpush3.bf16.msra.mxu0 %v15897_v15 }
 0x629   : > { %15141 = vmatprep.subr.bf16.mxu0 %v16210_v43 }
 0x62c   : > { %15142 = vmatpush3.bf16.msra.mxu0 %v15898_v17 }
 0x62d   : > { %15159 = vmatprep.subr.bf16.mxu0 %v16210_v43 }
 0x62f   : > { %15144 = vmatmul.mubr.msk.bf16.vlgmr.msra.gmra.mrb[224].mxu0 %vm9090_vm11, %v9600_v38 }
 0x630   : > { %15160 = vmatpush3.bf16.msra.mxu0 %v15899_v11  ;;  %15167 = vmatprep.mubr.msk.bf16.mxu0 %vm16211_vm10, %v16210_v43 }
 0x631   : > { %15161 = vmatprep.subr.bf16.mxu0 %v16210_v43 }
 0x634   : > { %15162 = vmatpush3.bf16.msra.mxu0 %v15900_v54 }
 0x635   : > { %15163 = vmatprep.subr.bf16.mxu0 %v16210_v43 }
 0x638   : > { %15164 = vmatpush3.bf16.msra.mxu0 %v15901_v55 }
 0x639   : > { %15165 = vmatprep.subr.bf16.mxu0 %v16210_v43 }
 0x63c   : > { %15166 = vmatpush3.bf16.msra.mxu0 %v15902_v62 }
 0x63d   : > { %15183 = vmatprep.subr.bf16.mxu0 %v16210_v43 }
 0x63f   : > { %15168 = vmatmul.mubr.msk.bf16.vlgmr.msra.gmra.mrb[228].mxu0 %vm9090_vm11, %v9756_v2 }
 0x640   : > { %15184 = vmatpush3.bf16.msra.mxu0 %v15903_v52  ;;  %15191 = vmatprep.mubr.msk.bf16.mxu0 %vm16211_vm10, %v16210_v43 }
 0x641   : > { %15185 = vmatprep.subr.bf16.mxu0 %v16210_v43 }
 0x644   : > { %15186 = vmatpush3.bf16.msra.mxu0 %v15904_v8 }
 0x645   : > { %15187 = vmatprep.subr.bf16.mxu0 %v16210_v43 }
 0x648   : > { %15188 = vmatpush3.bf16.msra.mxu0 %v15905_v4 }
 0x649   : > { %15189 = vmatprep.subr.bf16.mxu0 %v16210_v43 }
 0x64c   : > { %15190 = vmatpush3.bf16.msra.mxu0 %v15906_v23 }
 0x64d   : > { %15207 = vmatprep.subr.bf16.mxu0 %v16210_v43 }
 0x64f   : > { %15192 = vmatmul.mubr.msk.bf16.vlgmr.msra.gmra.mrb[232].mxu0 %vm9090_vm11, %v9912_v53 }
 0x650   : > { %15215 = vmatprep.mubr.msk.bf16.mxu0 %vm16211_vm10, %v16210_v43  ;;  %15208 = vmatpush3.bf16.msra.mxu0 %v15908_v51 }
 0x651   : > { %15209 = vmatprep.subr.bf16.mxu0 %v16210_v43 }
 0x654   : > { %15210 = vmatpush3.bf16.msra.mxu0 %v15910_v56  ;;  %v13623_v56 = vld [vmem:[%s19831_s6] ss:$0 sm:$0xff] }
 0x655   : > { %15211 = vmatprep.subr.bf16.mxu0 %v16210_v43 }
 0x658   : > { %15212 = vmatpush3.bf16.msra.mxu0 %v15912_v21 }
 0x659   : > { %15213 = vmatprep.subr.bf16.mxu0 %v16210_v43 }
 0x65c   : > { %15214 = vmatpush3.bf16.msra.mxu0 %v15914_v40 }
 0x65d   : > { %10351 = vmatprep.subr.bf16.mxu0 %v18952_v42 }
 0x6b2   : > { %v9128_v32 = vpop.f32.mrb[204].mxu0 }
 0x6b3   : > { %v15061_v57 = vpop.f32.mrb[205].mxu0 }
 0x6b4   : > { %v9131_v5 = vpop.f32.mrb[206].mxu0 }
 0x6b5   : > { %v15062_v36 = vpop.f32.mrb[207].mxu0  ;;  %v18970_v5 = vld [vmem:[%s19833_s8] ss:$8 sps:$4 sm:$0xff]  }
 0x6b8   : > { %v9427_v61 = vpop.f32.mrb[36].mxu1 }
 0x6b9   : > { %v15109_v35 = vpop.f32.mrb[37].mxu1 }
 0x6ba   : > { %v9430_v60 = vpop.f32.mrb[38].mxu1  ;;  %v18983_v35 = vld [vmem:[%s19833_s8 + $0x10] ss:$8 sps:$4 sm:$0xff]  }
 0x6bb   : > { %v15110_v20 = vpop.f32.mrb[39].mxu1  ;;  %v20234_v60 = vmov 0  }
 0x6bc   : > { %v18990_v20 = vld [vmem:[%s19833_s8 + $0x24] ss:$8 sps:$4 sm:$0xff]  }
 0x6c2   : > { %v9195_v37 = vpop.f32.mrb[208].mxu0 }
 0x6c3   : > { %v9196_v10 = vadd.f32 %v9195_v37, %v9128_v32  ;;  %v15073_v45 = vpop.f32.mrb[209].mxu0  ;;  %v19013_v37 = vld [vmem:[%s19833_s8 + $0x30] ss:$8 sps:$4 sm:$0xff]  }
 0x6c4   : > { %v9198_v22 = vpop.f32.mrb[210].mxu0 }
 0x6c5   : > { %v15074_v0 = vpop.f32.mrb[211].mxu0 }
 0x6c8   : > { %v9583_v58 = vpop.f32.mrb[40].mxu1 }
 0x6c9   : > { %v15133_v49 = vpop.f32.mrb[41].mxu1 }
 0x6ca   : > { %v9586_v31 = vpop.f32.mrb[42].mxu1 }
 0x6cb   : > { %v15134_v50 = vpop.f32.mrb[43].mxu1 }
 0x6d2   : > { %v9271_v48 = vpop.f32.mrb[212].mxu0 }
 0x6d3   : > { %v9277_v24 = vadd.f32 %v9271_v48, %v9196_v10  ;;  %v15085_v44 = vpop.f32.mrb[213].mxu0  ;;  %v16214_v10 = vmov 0.0|0.0  }
 0x6d4   : > { %v9274_v28 = vpop.f32.mrb[214].mxu0 }
 0x6d5   : > { %v15086_v46 = vpop.f32.mrb[215].mxu0 }
 0x6d8   : > { %v9739_v25 = vpop.f32.mrb[44].mxu1 }
 0x6d9   : > { %v15157_v1 = vpop.f32.mrb[45].mxu1 }
 0x6da   : > { %v9742_v47 = vpop.f32.mrb[46].mxu1 }
 0x6db   : > { %v15158_v19 = vpop.f32.mrb[47].mxu1 }
 0x6e2   : > { %v9350_v27 = vpop.f32.mrb[216].mxu0 }
 0x6e3   : > { %v9356_v29 = vadd.f32 %v9350_v27, %v9277_v24  ;;  %v15097_v41 = vpop.f32.mrb[217].mxu0  ;;  %v19032_v24 = vpop.permute.xlu0 %10310 }
 0x6e4   : > { %v9353_v16 = vpop.f32.mrb[218].mxu0 }
 0x6e5   : > { %v15098_v7 = vpop.f32.mrb[219].mxu0  ;;  %v9433_v9 = vadd.f32 %v9427_v61, %v9356_v29  ;;  %v18975_v61 = vld [vmem:[%s19833_s8 + $0x14] ss:$8 sps:$4 sm:$0xff]   ;;  %v13624_v16 = vld [vmem:[%s19834_s9] ss:$0 sm:$0xff] }
 0x6e7   : > { %v19036_v29 = vpop.permute.xlu0 %10262 }
 0x6e8   : > { %v9895_v12 = vpop.f32.mrb[48].mxu1 }
 0x6e9   : > { %v15181_v33 = vpop.f32.mrb[49].mxu1 }
 0x6ea   : > { %v9898_v26 = vpop.f32.mrb[50].mxu1 }
 0x6eb   : > { %v15182_v18 = vpop.f32.mrb[51].mxu1 }
 0x6f2   : > { %v9506_v39 = vpop.f32.mrb[220].mxu0 }
 0x6f3   : > { %v9512_v14 = vadd.f32 %v9506_v39, %v9433_v9  ;;  %v15121_v30 = vpop.f32.mrb[221].mxu0  ;;  %v13639_v39 = vld [vmem:[%s19834_s9 + $0x1] ss:$0 sm:$0xff] }
 0x6f4   : > { %v9509_v15 = vpop.f32.mrb[222].mxu0 }
 0x6f5   : > { %v15122_v17 = vpop.f32.mrb[223].mxu0  ;;  %v9589_v11 = vadd.f32 %v9583_v58, %v9512_v14 }
 0x702   : > { %v9662_v38 = vpop.f32.mrb[224].mxu0 }
 0x703   : > { %v9668_v54 = vadd.f32 %v9662_v38, %v9589_v11  ;;  %v15145_v55 = vpop.f32.mrb[225].mxu0 }
 0x704   : > { %v9665_v62 = vpop.f32.mrb[226].mxu0 }
 0x705   : > { %v15146_v52 = vpop.f32.mrb[227].mxu0  ;;  %v9745_v2 = vadd.f32 %v9739_v25, %v9668_v54 }
 0x712   : > { %v9818_v8 = vpop.f32.mrb[228].mxu0 }
 0x713   : > { %v9824_v4 = vadd.f32 %v9818_v8, %v9745_v2  ;;  %v15169_v23 = vpop.f32.mrb[229].mxu0 }
 0x714   : > { %v9821_v53 = vpop.f32.mrb[230].mxu0 }
 0x715   : > { %v15170_v6 = vpop.f32.mrb[231].mxu0  ;;  %v9901_v51 = vadd.f32 %v9895_v12, %v9824_v4 }
 0x722   : > { %v9974_v63 = vpop.f32.mrb[232].mxu0 }
 0x723   : > { %v9980_v59 = vadd.f32 %v9974_v63, %v9901_v51  ;;  %v15193_v21 = vpop.f32.mrb[233].mxu0 }
 0x724   : > { %v9977_v13 = vpop.f32.mrb[234].mxu0 }
 0x725   : > { %v9988_v40 = vadd.f32 %v13623_v56, %v9980_v59  ;;  %v15194_v32 = vpop.f32.mrb[235].mxu0 }
 0x727   : > { %v9989_v57 = vmax.f32 %v9988_v40, 0.0 }
 0x729   : > { %v9990_v36 = vpack.c.bf16 %v9989_v57, %v9989_v57 }
 0x72b   : > { %15204 = vmatmul.mubr.msk.bf16.vlgmr.msra.gmra.mrb[52].mxu1 %vm9090_vm11, %v9990_v36  ;;  %15216 = vmatmul.mubr.msk.bf16.vlgmr.msra.gmra.mrb[236].mxu0 %vm9090_vm11, %v9990_v36 }
 0x72c   : > { %10210 = vmatpush1.bf16.msra.mxu1 %v18970_v5  ;;  %10241 = vmatprep.mubr.bf16.mxu1 %v20234_v60 }
 0x72d   : > { %10211 = vmatprep.subr.bf16.mxu1 %v18975_v61  ;;  %10352 = vmatpush1.bf16.msra.mxu0 %v18970_v5 }
 0x72e   : > { %10353 = vmatprep.subr.bf16.mxu0 %v18975_v61  ;;  %10383 = vmatprep.mubr.bf16.mxu0 %v20234_v60 }
 0x730   : > { %10212 = vmatpush1.bf16.msra.mxu1 %v18983_v35 }
 0x731   : > { %10213 = vmatprep.subr.bf16.mxu1 %v18990_v20  ;;  %10354 = vmatpush1.bf16.msra.mxu0 %v18983_v35 }
 0x732   : > { %10355 = vmatprep.subr.bf16.mxu0 %v18990_v20 }
 0x734   : > { %10214 = vmatpush1.bf16.msra.mxu1 %v18999_v34 }
 0x735   : > { %10215 = vmatprep.subr.bf16.mxu1 %v19005_v3  ;;  %10356 = vmatpush1.bf16.msra.mxu0 %v18999_v34 }
 0x736   : > { %10357 = vmatprep.subr.bf16.mxu0 %v19005_v3 }
 0x738   : > { %10216 = vmatpush1.bf16.msra.mxu1 %v19013_v37 }
 0x739   : > { %10358 = vmatpush1.bf16.msra.mxu0 %v19013_v37  ;;  %10491 = vmatprep.subr.bf16.mxu1 %v18952_v42 }
 0x73a   : > { %10630 = vmatprep.subr.bf16.mxu0 %v18952_v42 }
 0x73b   : > { %10242 = vmatmul.mubr.bf16.vlgmr.msra.gmra.mrb[56].mxu1 %v16214_v10 }
 0x73c   : > { %10492 = vmatpush1.bf16.msra.mxu1 %v18970_v5  ;;  %10523 = vmatprep.mubr.bf16.mxu1 %v20234_v60 }
 0x73d   : > { %10493 = vmatprep.subr.bf16.mxu1 %v18975_v61 }
 0x740   : > { %10494 = vmatpush1.bf16.msra.mxu1 %v18983_v35 }
 0x741   : > { %10495 = vmatprep.subr.bf16.mxu1 %v18990_v20 }
 0x744   : > { %10496 = vmatpush1.bf16.msra.mxu1 %v18999_v34 }
 0x745   : > { %10497 = vmatprep.subr.bf16.mxu1 %v19005_v3 }
 0x748   : > { %10498 = vmatpush1.bf16.msra.mxu1 %v19013_v37 }
 0x749   : > { %10771 = vmatprep.subr.bf16.mxu1 %v18952_v42 }
 0x7fe   : > { %v10067_v45 = vpop.f32.mrb[52].mxu1  ;;  %v10148_v22 = vpop.f32.mrb[236].mxu0 }
 0x7ff   : > { %v15205_v0 = vpop.f32.mrb[53].mxu1  ;;  %v15217_v58 = vpop.f32.mrb[237].mxu0  ;;  %v19045_v7 = vadd.f32 %v13624_v16, %v10067_v45  ;;  %v19051_v14 = vadd.f32 %v13639_v39, %v10148_v22 }
 0x800   : > { %v10070_v49 = vpop.f32.mrb[54].mxu1  ;;  %v10151_v31 = vpop.f32.mrb[238].mxu0 }
 0x801   : > { %v15206_v50 = vpop.f32.mrb[55].mxu1  ;;  %v15218_v48 = vpop.f32.mrb[239].mxu0 }
 0x80e   : > { %v10243_v44 = vpop.f32.mrb[56].mxu1 }
 0x80f   : > { %v10245_v28 = vpop.f32.mrb[57].mxu1  ;;  %v10290_v46 = vrot.slane %v10243_v44, 1  ;;  %v10265_v41 = vadd.f32 %v19036_v29, %v10243_v44  ;;  %v10250_v9 = vadd.f32 %v10243_v44, %v19045_v7 }
 0x810   : > { %v10313_v25 = vadd.f32 %v19032_v24, %v10245_v28  ;;  %v10247_v1 = vpop.f32.mrb[58].mxu1  ;;  %v10291_v27 = vrot.slane %v10245_v28, 1 }
 0x811   : > { %10292 = vrot.lane.b32.xlu1 %v10290_v46, %s16212_s14  ;;  %v10248_v47 = vpop.f32.mrb[59].mxu1  ;;  %v13654_v12 = vmul.f32 -1.442695, %v10250_v9 }
 0x812   : > { %v10315_v19 = vrot.slane %v10313_v25, 1 }
 0x813   : > { %15951 = vpow2.f32 %v13654_v12 }
 0x814   : > { %10316 = vrot.lane.b32.xlu0 %v10315_v19, %s16215_s21 }
 0x815   : > { %10294 = vrot.lane.b32.xlu1 %v10291_v27, %s16212_s14 }
 0x819   : > { %10267 = vrot.lane.b32.xlu1 %v10265_v41, %s16213_s17 }
 0x81d   : > { %v15952_v33 = vpop.eup %15951 }
 0x81e   : > { %v10254_v26 = vadd.f32 1.0, %v15952_v33 }
 0x820   : > { %15953 = vrcp.f32 %v10254_v26 }
 0x82a   : > { %v15954_v11 = vpop.eup %15953 }
 0x883   : > { %v10293_v18 = vpop.permute.xlu1 %10292 }
 0x886   : > { %v10317_v8 = vpop.permute.xlu0 %10316 }
 0x887   : > { %v10295_v30 = vpop.permute.xlu1 %10294 }
 0x888   : > { %v10296_v15 = vsel %vm1128_vm0, %v10293_v18, %v10295_v30 }
 0x889   : > { %v10298_v17 = vadd.f32 %v10296_v15, %v19051_v14 }
 0x88b   : > { %v13656_v38 = vmul.f32 -1.442695, %v10298_v17  ;;  %v10268_v54 = vpop.permute.xlu1 %10267 }
 0x88c   : > { %v10270_v55 = vmul.f32 %v15954_v11, %v10268_v54 }
 0x88d   : > { %15955 = vpow2.f32 %v13656_v38 }
 0x88e   : > { %10272 = vrot.lane.b32.xlu1 %v10270_v55, %s16213_s17 }
 0x897   : > { %v15956_v62 = vpop.eup %15955 }
 0x898   : > { %v10302_v52 = vadd.f32 1.0, %v15956_v62 }
 0x89a   : > { %15957 = vrcp.f32 %v10302_v52 }
 0x8a4   : > { %v15958_v2 = vpop.eup %15957 }
 0x8a5   : > { %v10319_v4 = vmul.f32 %v15958_v2, %v10317_v8 }
 0x8a7   : > { %10321 = vrot.lane.b32.xlu0 %v10319_v4, %s16213_s17 }
 0x900   : > { %v10273_v23 = vpop.permute.xlu1 %10272 }
 0x901   : > { %v10275_v53 = vadd.f32 %v10273_v23, %v19045_v7 }
 0x903   : > { %15959 = vtanh.f32 %v10275_v53 }
 0x90d   : > { %v15960_v6 = vpop.eup %15959 }
 0x90e   : > { %v10277_v51 = vsub.f32 0.0, %v15960_v6 }
 0x910   : > { %10279 = vrot.lane.b32.xlu1 %v10277_v51, %s16215_s21 }
 0x919   : > { %v10322_v63 = vpop.permute.xlu0 %10321 }
 0x91a   : > { %v10324_v56 = vadd.f32 %v10322_v63, %v19051_v14 }
 0x91c   : > { %15961 = vtanh.f32 %v10324_v56 }
 0x926   : > { %v15962_v59 = vpop.eup %15961 }
 0x927   : > { %v10326_v21 = vsub.f32 0.0, %v15962_v59 }
 0x929   : > { %10328 = vrot.lane.b32.xlu0 %v10326_v21, %s16215_s21 }
 0x982   : > { %v10280_v13 = vpop.permute.xlu1 %10279 }
 0x983   : > { %v10282_v40 = vmul.f32 %v15954_v11, %v10280_v13 }
 0x985   : > { %10284 = vrot.lane.b32.xlu1 %v10282_v40, %s16212_s14 }
 0x99b   : > { %v10329_v32 = vpop.permute.xlu0 %10328 }
 0x99c   : > { %v10331_v57 = vmul.f32 %v15958_v2, %v10329_v32 }
 0x99e   : > { %10333 = vrot.lane.b32.xlu0 %v10331_v57, %s16212_s14 }
 0x9f7   : > { %v10285_v36 = vpop.permute.xlu1 %10284 }
 0x9f8   : > { %v19063_v45 = vadd.f32 %v15960_v6, %v10285_v36 }
 0x9fa   : > { %10338 = vrot.lane.b32.xlu0 %v19063_v45, %s16213_s17 }
 0xa10   : > { %v10334_v22 = vpop.permute.xlu0 %10333 }
 0xa11   : > { %v19067_v0 = vadd.f32 %v15962_v59, %v10334_v22 }
 0xa13   : > { %v10342_v58 = vrot.slane %v19067_v0, 7 }
 0xa15   : > { %10343 = vrot.lane.b32.xlu1 %v10342_v58, %s16215_s21 }
 0xa6c   : > { %v19071_v49 = vpop.permute.xlu0 %10338 }
 0xa87   : > { %v10344_v31 = vpop.permute.xlu1 %10343 }
 0xa88   : > { %v10346_v50 = vsel %vm1128_vm0, %v19071_v49, %v10344_v31 }
 0xa89   : > { %v10347_v48 = vpack.c.bf16 %v10346_v50, %v10346_v50 }
 0xa8b   : > { %13658 = vmatmul.mubr.msk.bf16.vlgmr.msra.gmra.mrb[240].mxu0 %vm9090_vm11, %v10347_v48 }
 0xa8c   : > { %10631 = vmatpush1.bf16.msra.mxu0 %v18970_v5  ;;  %10662 = vmatprep.mubr.bf16.mxu0 %v20234_v60 }
 0xa8d   : > { %10632 = vmatprep.subr.bf16.mxu0 %v18975_v61 }
 0xa90   : > { %10633 = vmatpush1.bf16.msra.mxu0 %v18983_v35 }
 0xa91   : > { %10634 = vmatprep.subr.bf16.mxu0 %v18990_v20 }
 0xa94   : > { %10635 = vmatpush1.bf16.msra.mxu0 %v18999_v34 }
 0xa95   : > { %10636 = vmatprep.subr.bf16.mxu0 %v19005_v3 }
 0xa98   : > { %10637 = vmatpush1.bf16.msra.mxu0 %v19013_v37 }
 0xa99   : > { %10910 = vmatprep.subr.bf16.mxu0 %v18952_v42 }
 0xb5e   : > { %v10385_v44 = vpop.f32.mrb[240].mxu0 }
 0xb5f   : > { %v10431_v28 = vrot.slane %v10385_v44, 2  ;;  %v10387_v46 = vpop.f32.mrb[241].mxu0  ;;  %v10402_v25 = vadd.f32 %v10385_v44, %v19036_v29  ;;  %v10393_v9 = vrot.slane %v10385_v44, 7 }
 0xb60   : > { %v10432_v1 = vrot.slane %v10387_v46, 2  ;;  %v10446_v47 = vadd.f32 %v10387_v46, %v19032_v24  ;;  %v10389_v19 = vpop.f32.mrb[242].mxu0 }
 0xb61   : > { %10433 = vrot.lane.b32.xlu0 %v10431_v28, %s16212_s14  ;;  %v10390_v27 = vpop.f32.mrb[243].mxu0  ;;  %v10404_v16 = vrot.slane %v10402_v25, 7  ;;  %v10395_v12 = vadd.f32 %v10393_v9, %v19045_v7 }
 0xb62   : > { %v10448_v41 = vrot.slane %v10446_v47, 2  ;;  %10435 = vrot.lane.b32.xlu1 %v10432_v1, %s16212_s14 }
 0xb63   : > { %v13659_v33 = vmul.f32 -1.442695, %v10395_v12 }
 0xb65   : > { %10449 = vrot.lane.b32.xlu0 %v10448_v41, %s16215_s21  ;;  %15963 = vpow2.f32 %v13659_v33 }
 0xb66   : > { %10405 = vrot.lane.b32.xlu1 %v10404_v16, %s16213_s17 }
 0xb6f   : > { %v15964_v26 = vpop.eup %15963 }
 0xb70   : > { %v10399_v18 = vadd.f32 1.0, %v15964_v26 }
 0xb72   : > { %15965 = vrcp.f32 %v10399_v18 }
 0xb7c   : > { %v15966_v11 = vpop.eup %15965 }
 0xbd3   : > { %v10434_v39 = vpop.permute.xlu0 %10433 }
 0xbd4   : > { %v10436_v30 = vpop.permute.xlu1 %10435 }
 0xbd5   : > { %v10437_v15 = vsel %vm1128_vm0, %v10434_v39, %v10436_v30 }
 0xbd6   : > { %v10439_v17 = vadd.f32 %v10437_v15, %v19051_v14 }
 0xbd7   : > { %v10450_v8 = vpop.permute.xlu0 %10449 }
 0xbd8   : > { %v13660_v38 = vmul.f32 -1.442695, %v10439_v17  ;;  %v10406_v54 = vpop.permute.xlu1 %10405 }
 0xbd9   : > { %v10408_v55 = vmul.f32 %v15966_v11, %v10406_v54 }
 0xbda   : > { %15967 = vpow2.f32 %v13660_v38 }
 0xbdb   : > { %10410 = vrot.lane.b32.xlu1 %v10408_v55, %s16213_s17 }
 0xbe4   : > { %v15968_v62 = vpop.eup %15967 }
 0xbe5   : > { %v10443_v52 = vadd.f32 1.0, %v15968_v62 }
 0xbe7   : > { %15969 = vrcp.f32 %v10443_v52 }
 0xbf1   : > { %v15970_v2 = vpop.eup %15969 }
 0xbf2   : > { %v10452_v4 = vmul.f32 %v15970_v2, %v10450_v8 }
 0xbf4   : > { %10454 = vrot.lane.b32.xlu0 %v10452_v4, %s16213_s17 }
 0xc4d   : > { %v10411_v23 = vpop.permute.xlu1 %10410 }
 0xc4e   : > { %v10413_v53 = vadd.f32 %v10411_v23, %v19045_v7 }
 0xc50   : > { %15971 = vtanh.f32 %v10413_v53 }
 0xc5a   : > { %v15972_v6 = vpop.eup %15971 }
 0xc5b   : > { %v10416_v51 = vrot.slane %v15972_v6, 1 }
 0xc5d   : > { %v10418_v63 = vsub.f32 %v19063_v45, %v10416_v51 }
 0xc5f   : > { %v10420_v56 = vrot.slane %v10418_v63, 7 }
 0xc61   : > { %10421 = vrot.lane.b32.xlu1 %v10420_v56, %s16215_s21 }
 0xc66   : > { %v10455_v59 = vpop.permute.xlu0 %10454 }
 0xc67   : > { %v10457_v21 = vadd.f32 %v10455_v59, %v19051_v14 }
 0xc69   : > { %15973 = vtanh.f32 %v10457_v21 }
 0xc73   : > { %v15974_v13 = vpop.eup %15973 }
 0xc74   : > { %v10460_v40 = vrot.slane %v15974_v13, 7 }
 0xc76   : > { %v10462_v32 = vsub.f32 %v19067_v0, %v10460_v40 }
 0xc78   : > { %v10464_v57 = vrot.slane %v10462_v32, 1 }
 0xc7a   : > { %10465 = vrot.lane.b32.xlu0 %v10464_v57, %s16215_s21 }
 0xcd3   : > { %v10422_v36 = vpop.permute.xlu1 %10421 }
 0xcd4   : > { %v10424_v22 = vmul.f32 %v15966_v11, %v10422_v36 }
 0xcd6   : > { %10426 = vrot.lane.b32.xlu1 %v10424_v22, %s16212_s14 }
 0xcec   : > { %v10466_v58 = vpop.permute.xlu0 %10465 }
 0xced   : > { %v10468_v45 = vmul.f32 %v15970_v2, %v10466_v58 }
 0xcef   : > { %10470 = vrot.lane.b32.xlu0 %v10468_v45, %s16212_s14 }
 0xd48   : > { %v10427_v31 = vpop.permute.xlu1 %10426 }
 0xd49   : > { %v19104_v50 = vadd.f32 %v15972_v6, %v10427_v31 }
 0xd4b   : > { %10475 = vrot.lane.b32.xlu0 %v19104_v50, %s16213_s17 }
 0xd61   : > { %v10471_v48 = vpop.permute.xlu0 %10470 }
 0xd62   : > { %v19108_v44 = vadd.f32 %v15974_v13, %v10471_v48 }
 0xd64   : > { %v10479_v28 = vrot.slane %v19108_v44, 5 }
 0xd66   : > { %10480 = vrot.lane.b32.xlu1 %v10479_v28, %s16215_s21 }
 0xdbd   : > { %v19112_v46 = vpop.permute.xlu0 %10475 }
 0xdd8   : > { %v10481_v25 = vpop.permute.xlu1 %10480 }
 0xdd9   : > { %v10483_v1 = vsel %vm1128_vm0, %v19112_v46, %v10481_v25 }
 0xdda   : > { %v10484_v47 = vpack.c.bf16 %v10483_v1, %v10483_v1 }
 0xddc   : > { %v10486_v19 = vshrl.u32 %v10484_v47, 16 }
 0xdde   : > { %13661 = vmatmul.mubr.msk.bf16.vlgmr.msra.gmra.mrb[60].mxu1 %vm9090_vm11, %v10486_v19 }
 0xddf   : > { %10772 = vmatpush1.bf16.msra.mxu1 %v18970_v5  ;;  %10803 = vmatprep.mubr.bf16.mxu1 %v20234_v60 }
 0xde0   : > { %10773 = vmatprep.subr.bf16.mxu1 %v18975_v61 }
 0xde3   : > { %10774 = vmatpush1.bf16.msra.mxu1 %v18983_v35 }
 0xde4   : > { %10775 = vmatprep.subr.bf16.mxu1 %v18990_v20 }
 0xde7   : > { %10776 = vmatpush1.bf16.msra.mxu1 %v18999_v34 }
 0xde8   : > { %10777 = vmatprep.subr.bf16.mxu1 %v19005_v3 }
 0xdeb   : > { %10778 = vmatpush1.bf16.msra.mxu1 %v19013_v37 }
 0xdec   : > { %11051 = vmatprep.subr.bf16.mxu1 %v18952_v42 }
 0xeb1   : > { %v10525_v27 = vpop.f32.mrb[60].mxu1 }
 0xeb2   : > { %v10571_v41 = vrot.slane %v10525_v27, 3  ;;  %v10527_v16 = vpop.f32.mrb[61].mxu1  ;;  %v10542_v9 = vadd.f32 %v10525_v27, %v19036_v29  ;;  %v10533_v15 = vrot.slane %v10525_v27, 6 }
 0xeb3   : > { %v10572_v12 = vrot.slane %v10527_v16, 3  ;;  %v10586_v33 = vadd.f32 %v10527_v16, %v19032_v24  ;;  %v10529_v26 = vpop.f32.mrb[62].mxu1 }
 0xeb4   : > { %10573 = vrot.lane.b32.xlu0 %v10571_v41, %s16212_s14  ;;  %v10530_v18 = vpop.f32.mrb[63].mxu1  ;;  %v10544_v30 = vrot.slane %v10542_v9, 6  ;;  %v10535_v17 = vadd.f32 %v10533_v15, %v19045_v7 }
 0xeb5   : > { %v10588_v39 = vrot.slane %v10586_v33, 3  ;;  %10575 = vrot.lane.b32.xlu1 %v10572_v12, %s16212_s14 }
 0xeb6   : > { %v13662_v11 = vmul.f32 -1.442695, %v10535_v17 }
 0xeb8   : > { %10589 = vrot.lane.b32.xlu0 %v10588_v39, %s16215_s21  ;;  %15975 = vpow2.f32 %v13662_v11 }
 0xeb9   : > { %10545 = vrot.lane.b32.xlu1 %v10544_v30, %s16213_s17 }
 0xec2   : > { %v15976_v38 = vpop.eup %15975 }
 0xec3   : > { %v10539_v54 = vadd.f32 1.0, %v15976_v38 }
 0xec5   : > { %15977 = vrcp.f32 %v10539_v54 }
 0xecf   : > { %v15978_v8 = vpop.eup %15977 }
 0xf26   : > { %v10574_v55 = vpop.permute.xlu0 %10573 }
 0xf27   : > { %v10576_v62 = vpop.permute.xlu1 %10575 }
 0xf28   : > { %v10577_v52 = vsel %vm1128_vm0, %v10574_v55, %v10576_v62 }
 0xf29   : > { %v10579_v2 = vadd.f32 %v10577_v52, %v19051_v14 }
 0xf2a   : > { %v10590_v56 = vpop.permute.xlu0 %10589 }
 0xf2b   : > { %v13663_v4 = vmul.f32 -1.442695, %v10579_v2  ;;  %v10546_v23 = vpop.permute.xlu1 %10545 }
 0xf2c   : > { %v10548_v53 = vmul.f32 %v15978_v8, %v10546_v23 }
 0xf2d   : > { %15979 = vpow2.f32 %v13663_v4 }
 0xf2e   : > { %10550 = vrot.lane.b32.xlu1 %v10548_v53, %s16213_s17 }
 0xf37   : > { %v15980_v6 = vpop.eup %15979 }
 0xf38   : > { %v10583_v51 = vadd.f32 1.0, %v15980_v6 }
 0xf3a   : > { %15981 = vrcp.f32 %v10583_v51 }
 0xf44   : > { %v15982_v63 = vpop.eup %15981 }
 0xf45   : > { %v10592_v59 = vmul.f32 %v15982_v63, %v10590_v56 }
 0xf47   : > { %10594 = vrot.lane.b32.xlu0 %v10592_v59, %s16213_s17 }
 0xfa0   : > { %v10551_v21 = vpop.permute.xlu1 %10550 }
 0xfa1   : > { %v10553_v13 = vadd.f32 %v10551_v21, %v19045_v7 }
 0xfa3   : > { %15983 = vtanh.f32 %v10553_v13 }
 0xfad   : > { %v15984_v40 = vpop.eup %15983 }
 0xfae   : > { %v10556_v32 = vrot.slane %v15984_v40, 1 }
 0xfb0   : > { %v10558_v57 = vsub.f32 %v19104_v50, %v10556_v32 }
 0xfb2   : > { %v10560_v36 = vrot.slane %v10558_v57, 7 }
 0xfb4   : > { %10561 = vrot.lane.b32.xlu1 %v10560_v36, %s16215_s21 }
 0xfb9   : > { %v10595_v22 = vpop.permute.xlu0 %10594 }
 0xfba   : > { %v10597_v58 = vadd.f32 %v10595_v22, %v19051_v14 }
 0xfbc   : > { %15985 = vtanh.f32 %v10597_v58 }
 0xfc6   : > { %v15986_v45 = vpop.eup %15985 }
 0xfc7   : > { %v10600_v31 = vrot.slane %v15986_v45, 7 }
 0xfc9   : > { %v10602_v48 = vsub.f32 %v19108_v44, %v10600_v31 }
 0xfcb   : > { %v10604_v28 = vrot.slane %v10602_v48, 1 }
 0xfcd   : > { %10605 = vrot.lane.b32.xlu0 %v10604_v28, %s16215_s21 }
0x1026   : > { %v10562_v25 = vpop.permute.xlu1 %10561 }
0x1027   : > { %v10564_v1 = vmul.f32 %v15978_v8, %v10562_v25 }
0x1029   : > { %10566 = vrot.lane.b32.xlu1 %v10564_v1, %s16212_s14 }
0x103f   : > { %v10606_v47 = vpop.permute.xlu0 %10605 }
0x1040   : > { %v10608_v50 = vmul.f32 %v15982_v63, %v10606_v47 }
0x1042   : > { %10610 = vrot.lane.b32.xlu0 %v10608_v50, %s16212_s14 }
0x109b   : > { %v10567_v19 = vpop.permute.xlu1 %10566 }
0x109c   : > { %v19145_v27 = vadd.f32 %v15984_v40, %v10567_v19 }
0x109e   : > { %10615 = vrot.lane.b32.xlu0 %v19145_v27, %s16213_s17 }
0x10b4   : > { %v10611_v41 = vpop.permute.xlu0 %10610 }
0x10b5   : > { %v19149_v16 = vadd.f32 %v15986_v45, %v10611_v41 }
0x10b7   : > { %v10619_v9 = vrot.slane %v19149_v16, 3 }
0x10b9   : > { %10620 = vrot.lane.b32.xlu1 %v10619_v9, %s16215_s21 }
0x1110   : > { %v19153_v12 = vpop.permute.xlu0 %10615 }
0x112b   : > { %v10621_v33 = vpop.permute.xlu1 %10620 }
0x112c   : > { %v10623_v26 = vsel %vm1128_vm0, %v19153_v12, %v10621_v33 }
0x112d   : > { %v10624_v18 = vpack.c.bf16 %v10623_v26, %v10623_v26 }
0x112f   : > { %v10626_v39 = vrot.slane %v10624_v18, 1 }
0x1131   : > { %13664 = vmatmul.mubr.msk.bf16.vlgmr.msra.gmra.mrb[244].mxu0 %vm9090_vm11, %v10626_v39 }
0x1132   : > { %10911 = vmatpush1.bf16.msra.mxu0 %v18970_v5  ;;  %10942 = vmatprep.mubr.bf16.mxu0 %v20234_v60 }
0x1133   : > { %10912 = vmatprep.subr.bf16.mxu0 %v18975_v61 }
0x1136   : > { %10913 = vmatpush1.bf16.msra.mxu0 %v18983_v35 }
0x1137   : > { %10914 = vmatprep.subr.bf16.mxu0 %v18990_v20 }
0x113a   : > { %10915 = vmatpush1.bf16.msra.mxu0 %v18999_v34 }
0x113b   : > { %10916 = vmatprep.subr.bf16.mxu0 %v19005_v3 }
0x113e   : > { %10917 = vmatpush1.bf16.msra.mxu0 %v19013_v37 }
0x113f   : > { %11190 = vmatprep.subr.bf16.mxu0 %v18952_v42 }
0x1204   : > { %v10664_v30 = vpop.f32.mrb[244].mxu0 }
0x1205   : > { %v10710_v15 = vrot.slane %v10664_v30, 4  ;;  %v10666_v17 = vpop.f32.mrb[245].mxu0  ;;  %v10681_v11 = vadd.f32 %v10664_v30, %v19036_v29  ;;  %v10672_v42 = vrot.slane %v10664_v30, 5 }
0x1206   : > { %v10711_v38 = vrot.slane %v10666_v17, 4  ;;  %v10725_v54 = vadd.f32 %v10666_v17, %v19032_v24  ;;  %v10668_v55 = vpop.f32.mrb[246].mxu0 }
0x1207   : > { %10712 = vrot.lane.b32.xlu0 %v10710_v15, %s16212_s14  ;;  %v10669_v62 = vpop.f32.mrb[247].mxu0  ;;  %v10683_v2 = vrot.slane %v10681_v11, 5  ;;  %v10674_v8 = vadd.f32 %v10672_v42, %v19045_v7 }
0x1208   : > { %v10727_v52 = vrot.slane %v10725_v54, 4  ;;  %10714 = vrot.lane.b32.xlu1 %v10711_v38, %s16212_s14 }
0x1209   : > { %v13665_v4 = vmul.f32 -1.442695, %v10674_v8 }
0x120b   : > { %10728 = vrot.lane.b32.xlu0 %v10727_v52, %s16215_s21  ;;  %15987 = vpow2.f32 %v13665_v4 }
0x120c   : > { %10684 = vrot.lane.b32.xlu1 %v10683_v2, %s16213_s17 }
0x1215   : > { %v15988_v23 = vpop.eup %15987 }
0x1216   : > { %v10678_v53 = vadd.f32 1.0, %v15988_v23 }
0x1218   : > { %15989 = vrcp.f32 %v10678_v53 }
0x1222   : > { %v15990_v59 = vpop.eup %15989 }
0x1279   : > { %v10713_v6 = vpop.permute.xlu0 %10712 }
0x127a   : > { %v10715_v51 = vpop.permute.xlu1 %10714 }
0x127b   : > { %v10716_v63 = vsel %vm1128_vm0, %v10713_v6, %v10715_v51 }
0x127c   : > { %v10718_v56 = vadd.f32 %v10716_v63, %v19051_v14 }
0x127d   : > { %v10729_v22 = vpop.permute.xlu0 %10728 }
0x127e   : > { %v13666_v21 = vmul.f32 -1.442695, %v10718_v56  ;;  %v10685_v13 = vpop.permute.xlu1 %10684 }
0x127f   : > { %v10687_v40 = vmul.f32 %v15990_v59, %v10685_v13 }
0x1280   : > { %15991 = vpow2.f32 %v13666_v21 }
0x1281   : > { %10689 = vrot.lane.b32.xlu1 %v10687_v40, %s16213_s17 }
0x128a   : > { %v15992_v32 = vpop.eup %15991 }
0x128b   : > { %v10722_v57 = vadd.f32 1.0, %v15992_v32 }
0x128d   : > { %15993 = vrcp.f32 %v10722_v57 }
0x1297   : > { %v15994_v36 = vpop.eup %15993 }
0x1298   : > { %v10731_v58 = vmul.f32 %v15994_v36, %v10729_v22 }
0x129a   : > { %10733 = vrot.lane.b32.xlu0 %v10731_v58, %s16213_s17 }
0x12f3   : > { %v10690_v45 = vpop.permute.xlu1 %10689 }
0x12f4   : > { %v10692_v31 = vadd.f32 %v10690_v45, %v19045_v7 }
0x12f6   : > { %15995 = vtanh.f32 %v10692_v31 }
0x1300   : > { %v15996_v48 = vpop.eup %15995 }
0x1301   : > { %v10695_v28 = vrot.slane %v15996_v48, 1 }
0x1303   : > { %v10697_v25 = vsub.f32 %v19145_v27, %v10695_v28 }
0x1305   : > { %v10699_v1 = vrot.slane %v10697_v25, 7 }
0x1307   : > { %10700 = vrot.lane.b32.xlu1 %v10699_v1, %s16215_s21 }
0x130c   : > { %v10734_v47 = vpop.permute.xlu0 %10733 }
0x130d   : > { %v10736_v50 = vadd.f32 %v10734_v47, %v19051_v14 }
0x130f   : > { %15997 = vtanh.f32 %v10736_v50 }
0x1319   : > { %v15998_v19 = vpop.eup %15997 }
0x131a   : > { %v10739_v41 = vrot.slane %v15998_v19, 7 }
0x131c   : > { %v10741_v9 = vsub.f32 %v19149_v16, %v10739_v41 }
0x131e   : > { %v10743_v33 = vrot.slane %v10741_v9, 1 }
0x1320   : > { %10744 = vrot.lane.b32.xlu0 %v10743_v33, %s16215_s21 }
0x1379   : > { %v10701_v26 = vpop.permute.xlu1 %10700 }
0x137a   : > { %v10703_v18 = vmul.f32 %v15990_v59, %v10701_v26 }
0x137c   : > { %10705 = vrot.lane.b32.xlu1 %v10703_v18, %s16212_s14 }
0x1392   : > { %v10745_v39 = vpop.permute.xlu0 %10744 }
0x1393   : > { %v10747_v27 = vmul.f32 %v15994_v36, %v10745_v39 }
0x1395   : > { %10749 = vrot.lane.b32.xlu0 %v10747_v27, %s16212_s14 }
0x13ee   : > { %v10706_v30 = vpop.permute.xlu1 %10705 }
0x13ef   : > { %v19186_v15 = vadd.f32 %v15996_v48, %v10706_v30 }
0x13f1   : > { %10754 = vrot.lane.b32.xlu0 %v19186_v15, %s16213_s17 }
0x1407   : > { %v10750_v17 = vpop.permute.xlu0 %10749 }
0x1408   : > { %v19190_v11 = vadd.f32 %v15998_v19, %v10750_v17 }
0x140a   : > { %v10758_v38 = vrot.slane %v19190_v11, 1 }
0x140c   : > { %10759 = vrot.lane.b32.xlu1 %v10758_v38, %s16215_s21 }
0x1463   : > { %v19194_v54 = vpop.permute.xlu0 %10754 }
0x147e   : > { %v10760_v55 = vpop.permute.xlu1 %10759 }
0x147f   : > { %v10762_v62 = vsel %vm1128_vm0, %v19194_v54, %v10760_v55 }
0x1480   : > { %v10763_v52 = vpack.c.bf16 %v10762_v62, %v10762_v62 }
0x1482   : > { %v10765_v2 = vshrl.u32 %v10763_v52, 16 }
0x1484   : > { %v10767_v42 = vrot.slane %v10765_v2, 1 }
0x1486   : > { %13667 = vmatmul.mubr.msk.bf16.vlgmr.msra.gmra.mrb[64].mxu1 %vm9090_vm11, %v10767_v42 }
0x1487   : > { %11052 = vmatpush1.bf16.msra.mxu1 %v18970_v5  ;;  %11083 = vmatprep.mubr.bf16.mxu1 %v20234_v60 }
0x1488   : > { %11053 = vmatprep.subr.bf16.mxu1 %v18975_v61 }
0x148b   : > { %11054 = vmatpush1.bf16.msra.mxu1 %v18983_v35 }
0x148c   : > { %11055 = vmatprep.subr.bf16.mxu1 %v18990_v20 }
0x148f   : > { %11056 = vmatpush1.bf16.msra.mxu1 %v18999_v34 }
0x1490   : > { %11057 = vmatprep.subr.bf16.mxu1 %v19005_v3 }
0x1493   : > { %11058 = vmatpush1.bf16.msra.mxu1 %v19013_v37 }
0x1494   : > { %15219 = vmatprep.subr.bf16.mxu1 %v16210_v43 }
0x1559   : > { %v10805_v8 = vpop.f32.mrb[64].mxu1 }
0x155a   : > { %v10851_v4 = vrot.slane %v10805_v8, 5  ;;  %v10807_v23 = vpop.f32.mrb[65].mxu1  ;;  %v10822_v53 = vadd.f32 %v10805_v8, %v19036_v29  ;;  %v10813_v13 = vrot.slane %v10805_v8, 4 }
0x155b   : > { %v10852_v6 = vrot.slane %v10807_v23, 5  ;;  %v10866_v51 = vadd.f32 %v10807_v23, %v19032_v24  ;;  %v10809_v63 = vpop.f32.mrb[66].mxu1 }
0x155c   : > { %10853 = vrot.lane.b32.xlu0 %v10851_v4, %s16212_s14  ;;  %v10810_v56 = vpop.f32.mrb[67].mxu1  ;;  %v10824_v21 = vrot.slane %v10822_v53, 4  ;;  %v10815_v40 = vadd.f32 %v10813_v13, %v19045_v7 }
0x155d   : > { %v10868_v59 = vrot.slane %v10866_v51, 5  ;;  %10855 = vrot.lane.b32.xlu1 %v10852_v6, %s16212_s14 }
0x155e   : > { %v13668_v32 = vmul.f32 -1.442695, %v10815_v40 }
0x1560   : > { %10869 = vrot.lane.b32.xlu0 %v10868_v59, %s16215_s21  ;;  %15999 = vpow2.f32 %v13668_v32 }
0x1561   : > { %10825 = vrot.lane.b32.xlu1 %v10824_v21, %s16213_s17 }
0x156a   : > { %v16000_v57 = vpop.eup %15999 }
0x156b   : > { %v10819_v36 = vadd.f32 1.0, %v16000_v57 }
0x156d   : > { %16001 = vrcp.f32 %v10819_v36 }
0x1577   : > { %v16002_v48 = vpop.eup %16001 }
0x15ce   : > { %v10854_v22 = vpop.permute.xlu0 %10853 }
0x15cf   : > { %v10856_v58 = vpop.permute.xlu1 %10855 }
0x15d0   : > { %v10857_v45 = vsel %vm1128_vm0, %v10854_v22, %v10856_v58 }
0x15d1   : > { %v10859_v31 = vadd.f32 %v10857_v45, %v19051_v14 }
0x15d2   : > { %v10870_v41 = vpop.permute.xlu0 %10869 }
0x15d3   : > { %v13669_v28 = vmul.f32 -1.442695, %v10859_v31  ;;  %v10826_v25 = vpop.permute.xlu1 %10825 }
0x15d4   : > { %v10828_v1 = vmul.f32 %v16002_v48, %v10826_v25 }
0x15d5   : > { %16003 = vpow2.f32 %v13669_v28 }
0x15d6   : > { %10830 = vrot.lane.b32.xlu1 %v10828_v1, %s16213_s17 }
0x15df   : > { %v16004_v47 = vpop.eup %16003 }
0x15e0   : > { %v10863_v50 = vadd.f32 1.0, %v16004_v47 }
0x15e2   : > { %16005 = vrcp.f32 %v10863_v50 }
0x15ec   : > { %v16006_v19 = vpop.eup %16005 }
0x15ed   : > { %v10872_v9 = vmul.f32 %v16006_v19, %v10870_v41 }
0x15ef   : > { %10874 = vrot.lane.b32.xlu0 %v10872_v9, %s16213_s17 }
0x1648   : > { %v10831_v33 = vpop.permute.xlu1 %10830 }
0x1649   : > { %v10833_v26 = vadd.f32 %v10831_v33, %v19045_v7 }
0x164b   : > { %16007 = vtanh.f32 %v10833_v26 }
0x1655   : > { %v16008_v18 = vpop.eup %16007 }
0x1656   : > { %v10836_v39 = vrot.slane %v16008_v18, 1 }
0x1658   : > { %v10838_v27 = vsub.f32 %v19186_v15, %v10836_v39 }
0x165a   : > { %v10840_v30 = vrot.slane %v10838_v27, 7 }
0x165c   : > { %10841 = vrot.lane.b32.xlu1 %v10840_v30, %s16215_s21 }
0x1661   : > { %v10875_v17 = vpop.permute.xlu0 %10874 }
0x1662   : > { %v10877_v38 = vadd.f32 %v10875_v17, %v19051_v14 }
0x1664   : > { %16009 = vtanh.f32 %v10877_v38 }
0x166e   : > { %v16010_v55 = vpop.eup %16009 }
0x166f   : > { %v10880_v62 = vrot.slane %v16010_v55, 7 }
0x1671   : > { %v10882_v52 = vsub.f32 %v19190_v11, %v10880_v62 }
0x1673   : > { %v10884_v2 = vrot.slane %v10882_v52, 1 }
0x1675   : > { %10885 = vrot.lane.b32.xlu0 %v10884_v2, %s16215_s21 }
0x16ce   : > { %v10842_v42 = vpop.permute.xlu1 %10841 }
0x16cf   : > { %v10844_v8 = vmul.f32 %v16002_v48, %v10842_v42 }
0x16d1   : > { %10846 = vrot.lane.b32.xlu1 %v10844_v8, %s16212_s14 }
0x16e7   : > { %v10886_v4 = vpop.permute.xlu0 %10885 }
0x16e8   : > { %v10888_v15 = vmul.f32 %v16006_v19, %v10886_v4 }
0x16ea   : > { %10890 = vrot.lane.b32.xlu0 %v10888_v15, %s16212_s14 }
0x1743   : > { %v10847_v23 = vpop.permute.xlu1 %10846 }
0x1744   : > { %v19227_v53 = vadd.f32 %v16008_v18, %v10847_v23 }
0x1746   : > { %10895 = vrot.lane.b32.xlu0 %v19227_v53, %s16213_s17 }
0x175c   : > { %v10891_v6 = vpop.permute.xlu0 %10890 }
0x175d   : > { %v19231_v51 = vadd.f32 %v16010_v55, %v10891_v6 }
0x175f   : > { %v10899_v63 = vrot.slane %v19231_v51, 7 }
0x1761   : > { %10900 = vrot.lane.b32.xlu1 %v10899_v63, %s16215_s21 }
0x17b8   : > { %v19235_v56 = vpop.permute.xlu0 %10895 }
0x17d3   : > { %v10901_v59 = vpop.permute.xlu1 %10900 }
0x17d4   : > { %v10903_v21 = vsel %vm1128_vm0, %v19235_v56, %v10901_v59 }
0x17d5   : > { %v10904_v13 = vpack.c.bf16 %v10903_v21, %v10903_v21 }
0x17d7   : > { %v10906_v40 = vrot.slane %v10904_v13, 2 }
0x17d9   : > { %13670 = vmatmul.mubr.msk.bf16.vlgmr.msra.gmra.mrb[248].mxu0 %vm9090_vm11, %v10906_v40 }
0x17da   : > { %11191 = vmatpush1.bf16.msra.mxu0 %v18970_v5  ;;  %11222 = vmatprep.mubr.bf16.mxu0 %v20234_v60 }
0x17db   : > { %11192 = vmatprep.subr.bf16.mxu0 %v18975_v61 }
0x17de   : > { %11193 = vmatpush1.bf16.msra.mxu0 %v18983_v35 }
0x17df   : > { %11194 = vmatprep.subr.bf16.mxu0 %v18990_v20 }
0x17e2   : > { %11195 = vmatpush1.bf16.msra.mxu0 %v18999_v34 }
0x17e3   : > { %11196 = vmatprep.subr.bf16.mxu0 %v19005_v3 }
0x17e6   : > { %11197 = vmatpush1.bf16.msra.mxu0 %v19013_v37 }
0x17e7   : > { %15231 = vmatprep.subr.bf16.mxu0 %v16210_v43 }
0x18ac   : > { %v10944_v32 = vpop.f32.mrb[248].mxu0 }
0x18ad   : > { %v10990_v57 = vrot.slane %v10944_v32, 6  ;;  %v10946_v36 = vpop.f32.mrb[249].mxu0  ;;  %v10961_v5 = vadd.f32 %v10944_v32, %v19036_v29  ;;  %v10952_v3 = vrot.slane %v10944_v32, 3 }
0x18ae   : > { %v10991_v22 = vrot.slane %v10946_v36, 6  ;;  %v11005_v61 = vadd.f32 %v10946_v36, %v19032_v24  ;;  %v10948_v58 = vpop.f32.mrb[250].mxu0 }
0x18af   : > { %10992 = vrot.lane.b32.xlu0 %v10990_v57, %s16212_s14  ;;  %v10949_v35 = vpop.f32.mrb[251].mxu0  ;;  %v10963_v34 = vrot.slane %v10961_v5, 3  ;;  %v10954_v37 = vadd.f32 %v10952_v3, %v19045_v7 }
0x18b0   : > { %v11007_v20 = vrot.slane %v11005_v61, 6  ;;  %10994 = vrot.lane.b32.xlu1 %v10991_v22, %s16212_s14 }
0x18b1   : > { %v13671_v45 = vmul.f32 -1.442695, %v10954_v37 }
0x18b3   : > { %11008 = vrot.lane.b32.xlu0 %v11007_v20, %s16215_s21  ;;  %16011 = vpow2.f32 %v13671_v45 }
0x18b4   : > { %10964 = vrot.lane.b32.xlu1 %v10963_v34, %s16213_s17 }
0x18bd   : > { %v16012_v31 = vpop.eup %16011 }
0x18be   : > { %v10958_v48 = vadd.f32 1.0, %v16012_v31 }
0x18c0   : > { %16013 = vrcp.f32 %v10958_v48 }
0x18ca   : > { %v16014_v50 = vpop.eup %16013 }
0x1921   : > { %v10993_v28 = vpop.permute.xlu0 %10992 }
0x1922   : > { %v10995_v25 = vpop.permute.xlu1 %10994 }
0x1923   : > { %v10996_v1 = vsel %vm1128_vm0, %v10993_v28, %v10995_v25 }
0x1924   : > { %v10998_v47 = vadd.f32 %v10996_v1, %v19051_v14 }
0x1925   : > { %v11009_v39 = vpop.permute.xlu0 %11008 }
0x1926   : > { %v13672_v19 = vmul.f32 -1.442695, %v10998_v47  ;;  %v10965_v41 = vpop.permute.xlu1 %10964 }
0x1927   : > { %v10967_v9 = vmul.f32 %v16014_v50, %v10965_v41 }
0x1928   : > { %16015 = vpow2.f32 %v13672_v19 }
0x1929   : > { %10969 = vrot.lane.b32.xlu1 %v10967_v9, %s16213_s17 }
0x1932   : > { %v16016_v33 = vpop.eup %16015 }
0x1933   : > { %v11002_v26 = vadd.f32 1.0, %v16016_v33 }
0x1935   : > { %16017 = vrcp.f32 %v11002_v26 }
0x193f   : > { %v16018_v18 = vpop.eup %16017 }
0x1940   : > { %v11011_v27 = vmul.f32 %v16018_v18, %v11009_v39 }
0x1942   : > { %11013 = vrot.lane.b32.xlu0 %v11011_v27, %s16213_s17 }
0x199b   : > { %v10970_v30 = vpop.permute.xlu1 %10969 }
0x199c   : > { %v10972_v17 = vadd.f32 %v10970_v30, %v19045_v7 }
0x199e   : > { %16019 = vtanh.f32 %v10972_v17 }
0x19a8   : > { %v16020_v38 = vpop.eup %16019 }
0x19a9   : > { %v10975_v55 = vrot.slane %v16020_v38, 1 }
0x19ab   : > { %v10977_v62 = vsub.f32 %v19227_v53, %v10975_v55 }
0x19ad   : > { %v10979_v52 = vrot.slane %v10977_v62, 7 }
0x19af   : > { %10980 = vrot.lane.b32.xlu1 %v10979_v52, %s16215_s21 }
0x19b4   : > { %v11014_v2 = vpop.permute.xlu0 %11013 }
0x19b5   : > { %v11016_v42 = vadd.f32 %v11014_v2, %v19051_v14 }
0x19b7   : > { %16021 = vtanh.f32 %v11016_v42 }
0x19c1   : > { %v16022_v8 = vpop.eup %16021 }
0x19c2   : > { %v11019_v4 = vrot.slane %v16022_v8, 7 }
0x19c4   : > { %v11021_v15 = vsub.f32 %v19231_v51, %v11019_v4 }
0x19c6   : > { %v11023_v23 = vrot.slane %v11021_v15, 1 }
0x19c8   : > { %11024 = vrot.lane.b32.xlu0 %v11023_v23, %s16215_s21 }
0x1a21   : > { %v10981_v6 = vpop.permute.xlu1 %10980 }
0x1a22   : > { %v10983_v63 = vmul.f32 %v16014_v50, %v10981_v6 }
0x1a24   : > { %10985 = vrot.lane.b32.xlu1 %v10983_v63, %s16212_s14 }
0x1a3a   : > { %v11025_v59 = vpop.permute.xlu0 %11024 }
0x1a3b   : > { %v11027_v53 = vmul.f32 %v16018_v18, %v11025_v59 }
0x1a3d   : > { %11029 = vrot.lane.b32.xlu0 %v11027_v53, %s16212_s14 }
0x1a96   : > { %v10986_v21 = vpop.permute.xlu1 %10985 }
0x1a97   : > { %v10988_v13 = vadd.f32 %v16020_v38, %v10986_v21 }
0x1a99   : > { %11034 = vrot.lane.b32.xlu0 %v10988_v13, %s16213_s17 }
0x1aaf   : > { %v11030_v40 = vpop.permute.xlu0 %11029 }
0x1ab0   : > { %v19269_v32 = vadd.f32 %v16022_v8, %v11030_v40 }
0x1ab2   : > { %v11038_v57 = vrot.slane %v19269_v32, 5 }
0x1ab4   : > { %11039 = vrot.lane.b32.xlu1 %v11038_v57, %s16215_s21 }
0x1b0b   : > { %v19273_v36 = vpop.permute.xlu0 %11034 }
0x1b26   : > { %v11040_v5 = vpop.permute.xlu1 %11039 }
0x1b27   : > { %v11042_v22 = vsel %vm1128_vm0, %v19273_v36, %v11040_v5 }
0x1b28   : > { %v11043_v61 = vpack.c.bf16 %v11042_v22, %v11042_v22 }
0x1b2a   : > { %v11045_v58 = vshrl.u32 %v11043_v61, 16 }
0x1b2c   : > { %v11047_v35 = vrot.slane %v11045_v58, 2 }
0x1b2e   : > { %13673 = vmatmul.mubr.msk.bf16.vlgmr.msra.gmra.mrb[68].mxu1 %vm9090_vm11, %v11047_v35 }
0x1b2f   : > { %15227 = vmatprep.mubr.msk.bf16.mxu1 %vm16211_vm10, %v16210_v43 }
0x1c01   : > { %v11085_v20 = vpop.f32.mrb[68].mxu1 }
0x1c02   : > { %v11131_v34 = vrot.slane %v11085_v20, 7  ;;  %v11087_v3 = vpop.f32.mrb[69].mxu1  ;;  %v11102_v37 = vadd.f32 %v11085_v20, %v19036_v29  ;;  %v11093_v47 = vrot.slane %v11085_v20, 2 }
0x1c03   : > { %v11132_v45 = vrot.slane %v11087_v3, 7  ;;  %v11146_v31 = vadd.f32 %v11087_v3, %v19032_v24  ;;  %v11089_v48 = vpop.f32.mrb[70].mxu1 }
0x1c04   : > { %11133 = vrot.lane.b32.xlu0 %v11131_v34, %s16212_s14  ;;  %v11090_v28 = vpop.f32.mrb[71].mxu1  ;;  %v11104_v1 = vrot.slane %v11102_v37, 2  ;;  %v11095_v50 = vadd.f32 %v11093_v47, %v19045_v7 }
0x1c05   : > { %v11148_v25 = vrot.slane %v11146_v31, 7  ;;  %11135 = vrot.lane.b32.xlu1 %v11132_v45, %s16212_s14 }
0x1c06   : > { %v13674_v19 = vmul.f32 -1.442695, %v11095_v50 }
0x1c08   : > { %11149 = vrot.lane.b32.xlu0 %v11148_v25, %s16215_s21  ;;  %16023 = vpow2.f32 %v13674_v19 }
0x1c09   : > { %11105 = vrot.lane.b32.xlu1 %v11104_v1, %s16213_s17 }
0x1c12   : > { %v16024_v41 = vpop.eup %16023 }
0x1c13   : > { %v11099_v9 = vadd.f32 1.0, %v16024_v41 }
0x1c15   : > { %16025 = vrcp.f32 %v11099_v9 }
0x1c1f   : > { %v16026_v27 = vpop.eup %16025 }
0x1c76   : > { %v11134_v33 = vpop.permute.xlu0 %11133 }
0x1c77   : > { %v11136_v26 = vpop.permute.xlu1 %11135 }
0x1c78   : > { %v11137_v18 = vsel %vm1128_vm0, %v11134_v33, %v11136_v26 }
0x1c79   : > { %v11139_v39 = vadd.f32 %v11137_v18, %v19051_v14 }
0x1c7a   : > { %v11150_v2 = vpop.permute.xlu0 %11149 }
0x1c7b   : > { %v13675_v30 = vmul.f32 -1.442695, %v11139_v39  ;;  %v11106_v17 = vpop.permute.xlu1 %11105 }
0x1c7c   : > { %v11108_v38 = vmul.f32 %v16026_v27, %v11106_v17 }
0x1c7d   : > { %16027 = vpow2.f32 %v13675_v30 }
0x1c7e   : > { %11110 = vrot.lane.b32.xlu1 %v11108_v38, %s16213_s17 }
0x1c87   : > { %v16028_v55 = vpop.eup %16027 }
0x1c88   : > { %v11143_v62 = vadd.f32 1.0, %v16028_v55 }
0x1c8a   : > { %16029 = vrcp.f32 %v11143_v62 }
0x1c94   : > { %v16030_v52 = vpop.eup %16029 }
0x1c95   : > { %v11152_v42 = vmul.f32 %v16030_v52, %v11150_v2 }
0x1c97   : > { %11154 = vrot.lane.b32.xlu0 %v11152_v42, %s16213_s17 }
0x1cf0   : > { %v11111_v8 = vpop.permute.xlu1 %11110 }
0x1cf1   : > { %v11113_v4 = vadd.f32 %v11111_v8, %v19045_v7 }
0x1cf3   : > { %16031 = vtanh.f32 %v11113_v4 }
0x1cfd   : > { %v16032_v15 = vpop.eup %16031 }
0x1cfe   : > { %v11116_v23 = vrot.slane %v16032_v15, 1 }
0x1d00   : > { %v11118_v6 = vsub.f32 %v10988_v13, %v11116_v23 }
0x1d02   : > { %v11120_v63 = vrot.slane %v11118_v6, 7 }
0x1d04   : > { %11121 = vrot.lane.b32.xlu1 %v11120_v63, %s16215_s21 }
0x1d09   : > { %v11155_v59 = vpop.permute.xlu0 %11154 }
0x1d0a   : > { %v11157_v53 = vadd.f32 %v11155_v59, %v19051_v14 }
0x1d0c   : > { %16033 = vtanh.f32 %v11157_v53 }
0x1d16   : > { %v16034_v21 = vpop.eup %16033 }
0x1d17   : > { %v11160_v40 = vrot.slane %v16034_v21, 7 }
0x1d19   : > { %v11162_v57 = vsub.f32 %v19269_v32, %v11160_v40 }
0x1d1b   : > { %v11164_v5 = vrot.slane %v11162_v57, 1 }
0x1d1d   : > { %11165 = vrot.lane.b32.xlu0 %v11164_v5, %s16215_s21 }
0x1d76   : > { %v11122_v22 = vpop.permute.xlu1 %11121 }
0x1d77   : > { %v11124_v61 = vmul.f32 %v16026_v27, %v11122_v22 }
0x1d79   : > { %11126 = vrot.lane.b32.xlu1 %v11124_v61, %s16212_s14 }
0x1d8f   : > { %v11166_v58 = vpop.permute.xlu0 %11165 }
0x1d90   : > { %v11168_v13 = vmul.f32 %v16030_v52, %v11166_v58 }
0x1d92   : > { %11170 = vrot.lane.b32.xlu0 %v11168_v13, %s16212_s14 }
0x1deb   : > { %v11127_v35 = vpop.permute.xlu1 %11126 }
0x1dec   : > { %v11129_v20 = vadd.f32 %v16032_v15, %v11127_v35 }
0x1dee   : > { %11175 = vrot.lane.b32.xlu0 %v11129_v20, %s16213_s17 }
0x1e04   : > { %v11171_v34 = vpop.permute.xlu0 %11170 }
0x1e05   : > { %v19299_v3 = vadd.f32 %v16034_v21, %v11171_v34 }
0x1e07   : > { %v11179_v37 = vrot.slane %v19299_v3, 3 }
0x1e09   : > { %11180 = vrot.lane.b32.xlu1 %v11179_v37, %s16215_s21 }
0x1e60   : > { %v19303_v45 = vpop.permute.xlu0 %11175 }
0x1e7b   : > { %v11181_v31 = vpop.permute.xlu1 %11180 }
0x1e7c   : > { %v11183_v48 = vsel %vm1128_vm0, %v19303_v45, %v11181_v31  ;;  %v15927_v31 = vld [vmem:[%s19832_s7 + $0x40] sm:$0xff]  }
0x1e7d   : > { %v11184_v28 = vpack.c.bf16 %v11183_v48, %v11183_v48  ;;  %v15928_v48 = vld [vmem:[%s19832_s7 + $0x60] sm:$0xff]   ;;  %15220 = vmatpush3.bf16.msra.mxu1 %v15927_v31 }
0x1e7e   : > { %15221 = vmatprep.subr.bf16.mxu1 %v16210_v43 }
0x1e7f   : > { %v11186_v25 = vrot.slane %v11184_v28, 3 }
0x1e81   : > { %13676 = vmatmul.mubr.msk.bf16.vlgmr.msra.gmra.mrb[252].mxu0 %vm9090_vm11, %v11186_v25 }
0x1e82   : > { %15239 = vmatprep.mubr.msk.bf16.mxu0 %vm16211_vm10, %v16210_v43  ;;  %15232 = vmatpush3.bf16.msra.mxu0 %v15928_v48 }
0x1e83   : > { %15233 = vmatprep.subr.bf16.mxu0 %v16210_v43 }
0x1f54   : > { %v11224_v1 = vpop.f32.mrb[252].mxu0 }
0x1f55   : > { %v11241_v47 = vadd.f32 %v11224_v1, %v19036_v29  ;;  %11270 = vrot.lane.b32.xlu0 %v11224_v1, %s16212_s14  ;;  %v11226_v50 = vpop.f32.mrb[253].mxu0  ;;  %v11232_v26 = vrot.slane %v11224_v1, 1 }
0x1f56   : > { %v11283_v19 = vadd.f32 %v11226_v50, %v19032_v24  ;;  %11272 = vrot.lane.b32.xlu1 %v11226_v50, %s16212_s14  ;;  %v11228_v41 = vpop.f32.mrb[254].mxu0  ;;  %v15934_v50 = vld [vmem:[%s19832_s7 + $0x78] sm:$0xff]  }
0x1f57   : > { %v11229_v9 = vpop.f32.mrb[255].mxu0  ;;  %v11243_v33 = vrot.slane %v11241_v47, 1  ;;  %v11234_v18 = vadd.f32 %v11232_v26, %v19045_v7  ;;  %v15933_v47 = vld [vmem:[%s19832_s7 + $0x58] sm:$0xff]   ;;  %v13730_v26 = vld [vmem:[%s19835_s10 + $0x3] ss:$0 sm:$0xff] }
0x1f59   : > { %11285 = vrot.lane.b32.xlu0 %v11283_v19, %s16215_s21  ;;  %v13677_v39 = vmul.f32 -1.442695, %v11234_v18  ;;  %v19368_v19 = vld [vmem:[%s19833_s8 + $0x44] ss:$8 sps:$4 sm:$0xff]  }
0x1f5a   : > { %11244 = vrot.lane.b32.xlu1 %v11243_v33, %s16213_s17  ;;  %v13728_v33 = vld [vmem:[%s19835_s10 + $0x2] ss:$0 sm:$0xff] }
0x1f5b   : > { %16035 = vpow2.f32 %v13677_v39 }
0x1f65   : > { %v16036_v29 = vpop.eup %16035 }
0x1f66   : > { %v11238_v27 = vadd.f32 1.0, %v16036_v29 }
0x1f68   : > { %16037 = vrcp.f32 %v11238_v27 }
0x1f72   : > { %v16038_v55 = vpop.eup %16037 }
0x1fc7   : > { %v11271_v30 = vpop.permute.xlu0 %11270 }
0x1fc8   : > { %v11273_v17 = vpop.permute.xlu1 %11272 }
0x1fc9   : > { %v11274_v24 = vsel %vm1128_vm0, %v11271_v30, %v11273_v17 }
0x1fca   : > { %v11276_v38 = vadd.f32 %v11274_v24, %v19051_v14 }
0x1fcb   : > { %v11286_v15 = vpop.permute.xlu0 %11285 }
0x1fcc   : > { %v13678_v62 = vmul.f32 -1.442695, %v11276_v38  ;;  %v11245_v52 = vpop.permute.xlu1 %11244 }
0x1fcd   : > { %v11247_v2 = vmul.f32 %v16038_v55, %v11245_v52 }
0x1fce   : > { %16039 = vpow2.f32 %v13678_v62 }
0x1fcf   : > { %11249 = vrot.lane.b32.xlu1 %v11247_v2, %s16213_s17 }
0x1fd8   : > { %v16040_v42 = vpop.eup %16039 }
0x1fd9   : > { %v11280_v8 = vadd.f32 1.0, %v16040_v42 }
0x1fdb   : > { %16041 = vrcp.f32 %v11280_v8 }
0x1fe5   : > { %v16042_v4 = vpop.eup %16041 }
0x1fe6   : > { %v11288_v23 = vmul.f32 %v16042_v4, %v11286_v15 }
0x1fe8   : > { %11290 = vrot.lane.b32.xlu0 %v11288_v23, %s16213_s17 }
0x2041   : > { %v11250_v6 = vpop.permute.xlu1 %11249 }
0x2042   : > { %v11252_v63 = vadd.f32 %v11250_v6, %v19045_v7 }
0x2044   : > { %16043 = vtanh.f32 %v11252_v63 }
0x204e   : > { %v16044_v59 = vpop.eup %16043 }
0x204f   : > { %v11255_v53 = vrot.slane %v16044_v59, 1 }
0x2051   : > { %v11257_v21 = vsub.f32 %v11129_v20, %v11255_v53  ;;  %v15655_v20 = vpack.i.bf16 %v19231_v51, %v19269_v32  ;;  %v15931_v51 = vld [vmem:[%s19832_s7 + $0x50] sm:$0xff]  }
0x2052   : > { %v15932_v32 = vld [vmem:[%s19832_s7 + $0x70] sm:$0xff]  }
0x2053   : > { %v11259_v40 = vrot.slane %v11257_v21, 7 }
0x2055   : > { %11260 = vrot.lane.b32.xlu1 %v11259_v40, %s16215_s21  ;;  %v19415_v40 = vld [vmem:[%s19833_s8 + $0x54] ss:$8 sps:$4 sm:$0xff]  }
0x205a   : > { %v11291_v57 = vpop.permute.xlu0 %11290 }
0x205b   : > { %v11293_v5 = vadd.f32 %v11291_v57, %v19051_v14  ;;  %v15670_v14 = vpack.i.bf16 %v19067_v0, %v19108_v44  ;;  %v15929_v0 = vld [vmem:[%s19832_s7 + $0x48] sm:$0xff]  }
0x205c   : > { %v15930_v44 = vld [vmem:[%s19832_s7 + $0x68] sm:$0xff]   ;;  %15222 = vmatpush3.bf16.msra.mxu1 %v15929_v0 }
0x205d   : > { %16045 = vtanh.f32 %v11293_v5  ;;  %15234 = vmatpush3.bf16.msra.mxu0 %v15930_v44  ;;  %15223 = vmatprep.subr.bf16.mxu1 %v16210_v43  ;;  %v19430_v57 = vld [vmem:[%s19833_s8 + $0x64] ss:$8 sps:$4 sm:$0xff]   ;;  %v19439_v5 = vld [vmem:[%s19833_s8 + $0x60] ss:$8 sps:$4 sm:$0xff]  }
0x205e   : > { %15235 = vmatprep.subr.bf16.mxu0 %v16210_v43 }
0x2060   : > { %15224 = vmatpush3.bf16.msra.mxu1 %v15931_v51 }
0x2061   : > { %15236 = vmatpush3.bf16.msra.mxu0 %v15932_v32  ;;  %15225 = vmatprep.subr.bf16.mxu1 %v16210_v43 }
0x2062   : > { %15237 = vmatprep.subr.bf16.mxu0 %v16210_v43 }
0x2064   : > { %15226 = vmatpush3.bf16.msra.mxu1 %v15933_v47 }
0x2065   : > { %15238 = vmatpush3.bf16.msra.mxu0 %v15934_v50  ;;  %11580 = vmatprep.subr.bf16.mxu1 %v19368_v19  ;;  %v13688_v50 = vld [vmem:[%s19834_s9 + $0x2] ss:$0 sm:$0xff] }
0x2066   : > { %11722 = vmatprep.subr.bf16.mxu0 %v19368_v19 }
0x2067   : > { %v16046_v22 = vpop.eup %16045 }
0x2068   : > { %v11296_v61 = vrot.slane %v16046_v22, 7 }
0x206a   : > { %v11298_v58 = vsub.f32 %v19299_v3, %v11296_v61  ;;  %v19453_v61 = vld [vmem:[%s19833_s8 + $0x70] ss:$8 sps:$4 sm:$0xff]  }
0x206c   : > { %v11300_v13 = vrot.slane %v11298_v58, 1 }
0x206e   : > { %11301 = vrot.lane.b32.xlu0 %v11300_v13, %s16215_s21 }
0x20c7   : > { %v11261_v35 = vpop.permute.xlu1 %11260 }
0x20c8   : > { %v11263_v7 = vmul.f32 %v16038_v55, %v11261_v35 }
0x20ca   : > { %11265 = vrot.lane.b32.xlu1 %v11263_v7, %s16212_s14 }
0x20ce   : > { %15656 = vrot.lane.b32.xlu1 %v15655_v20, %s16215_s21 }
0x20d2   : > { %15671 = vrot.lane.b32.xlu1 %v15670_v14, %s16215_s21 }
0x20d6   : > { %11681 = vrot.lane.b32.xlu1 %v13730_v26, %s16212_s14 }
0x20e0   : > { %v11302_v34 = vpop.permute.xlu0 %11301 }
0x20e1   : > { %v11304_v37 = vmul.f32 %v16042_v4, %v11302_v34 }
0x20e3   : > { %11306 = vrot.lane.b32.xlu0 %v11304_v37, %s16212_s14 }
0x213c   : > { %v11266_v41 = vpop.permute.xlu1 %11265 }
0x213d   : > { %v11268_v9 = vadd.f32 %v16044_v59, %v11266_v41 }
0x2155   : > { %v11307_v28 = vpop.permute.xlu0 %11306 }
0x2156   : > { %v11309_v25 = vadd.f32 %v16046_v22, %v11307_v28  ;;  %v19445_v22 = vld [vmem:[%s19833_s8 + $0x74] ss:$8 sps:$4 sm:$0xff]  }
0x2158   : > { %v15660_v1 = vpack.i.bf16 %v19299_v3, %v11309_v25  ;;  %v15665_v3 = vpack.i.bf16 %v19149_v16, %v19190_v11  ;;  %v15657_v16 = vpop.permute.xlu1 %15656 }
0x2159   : > { %v15659_v11 = vunpack.i.h.bf16 %v15657_v16  ;;  %v15658_v18 = vunpack.i.l.bf16 %v15657_v16  ;;  %v13703_v16 = vld [vmem:[%s19834_s9 + $0x3] ss:$0 sm:$0xff] }
0x215a   : > { %15661 = vrot.lane.b32.xlu0 %v15660_v1, %s16215_s21 }
0x215b   : > { %v11326_v38 = vsel %vm1128_vm0, %v19194_v54, %v15659_v11  ;;  %v11322_v55 = vsel %vm1128_vm0, %v19153_v12, %v15658_v18 }
0x215c   : > { %v15672_v29 = vpop.permute.xlu1 %15671 }
0x215d   : > { %v15673_v62 = vunpack.i.l.bf16 %v15672_v29 }
0x215e   : > { %15666 = vrot.lane.b32.xlu0 %v15665_v3, %s16215_s21 }
0x215f   : > { %v11338_v6 = vsel %vm1128_vm0, %v19303_v45, %v15673_v62  ;;  %v19423_v45 = vld [vmem:[%s19833_s8 + $0x50] ss:$8 sps:$4 sm:$0xff]  }
0x2160   : > { %v19472_v37 = vpop.permute.xlu1 %11681 }
0x2162   : > { %11340 = vrot.lane.b32.xlu0 %v11268_v9, %s16213_s17 }
0x2166   : > { %11633 = vrot.lane.b32.xlu0 %v13728_v33, %s16213_s17 }
0x21cc   : > { %v15662_v39 = vpop.permute.xlu0 %15661 }
0x21cd   : > { %v15664_v27 = vunpack.i.h.bf16 %v15662_v39  ;;  %v15663_v30 = vunpack.i.l.bf16 %v15662_v39 }
0x21cf   : > { %v11318_v17 = vsel %vm1128_vm0, %v19112_v46, %v15664_v27  ;;  %v11314_v24 = vsel %vm1128_vm0, %v19071_v49, %v15663_v30  ;;  %v15674_v49 = vunpack.i.h.bf16 %v15672_v29 }
0x21d0   : > { %v11348_v52 = vsel %vm11347_vm12, %v11314_v24, %v11318_v17  ;;  %v15667_v2 = vpop.permute.xlu0 %15666 }
0x21d1   : > { %v11350_v42 = vsel %vm11349_vm13, %v11348_v52, %v11322_v55  ;;  %v15669_v8 = vunpack.i.h.bf16 %v15667_v2  ;;  %v15668_v4 = vunpack.i.l.bf16 %v15667_v2 }
0x21d2   : > { %v11352_v46 = vsel %vm11351_vm14, %v11350_v42, %v11326_v38 }
0x21d3   : > { %v11334_v15 = vsel %vm1128_vm0, %v19273_v36, %v15669_v8  ;;  %v11330_v54 = vsel %vm1128_vm0, %v19235_v56, %v15668_v4  ;;  %v19410_v56 = vld [vmem:[%s19833_s8 + $0x40] ss:$8 sps:$4 sm:$0xff]  }
0x21d4   : > { %v11354_v12 = vsel %vm11353_vm15, %v11352_v46, %v11330_v54  ;;  %v11341_v23 = vpop.permute.xlu0 %11340 }
0x21d5   : > { %v11346_v63 = vsel %vm1128_vm0, %v11341_v23, %v15674_v49  ;;  %v11356_v59 = vsel %vm11355_vm1, %v11354_v12, %v11334_v15 }
0x21d6   : > { %v11358_v53 = vsel %vm11357_vm2, %v11356_v59, %v11338_v6 }
0x21d7   : > { %v11360_v21 = vsel %vm11359_vm3, %v11358_v53, %v11346_v63 }
0x21d8   : > { %v11361_v36 = vpack.c.bf16 %v11360_v21, %v11360_v21  ;;  %v19475_v28 = vpop.permute.xlu0 %11633 }
0x21da   : > { %15228 = vmatmul.mubr.msk.bf16.vlgmr.msra.gmra.mrb[72].mxu1 %vm9090_vm11, %v11361_v36  ;;  %15240 = vmatmul.mubr.msk.bf16.vlgmr.msra.gmra.mrb[0].mxu0 %vm9090_vm11, %v11361_v36 }
0x21db   : > { %11581 = vmatpush1.bf16.msra.mxu1 %v19410_v56  ;;  %11612 = vmatprep.mubr.bf16.mxu1 %v20234_v60 }
0x21dc   : > { %11582 = vmatprep.subr.bf16.mxu1 %v19415_v40  ;;  %11723 = vmatpush1.bf16.msra.mxu0 %v19410_v56 }
0x21dd   : > { %11724 = vmatprep.subr.bf16.mxu0 %v19415_v40  ;;  %11754 = vmatprep.mubr.bf16.mxu0 %v20234_v60 }
0x21df   : > { %11583 = vmatpush1.bf16.msra.mxu1 %v19423_v45 }
0x21e0   : > { %11584 = vmatprep.subr.bf16.mxu1 %v19430_v57  ;;  %11725 = vmatpush1.bf16.msra.mxu0 %v19423_v45 }
0x21e1   : > { %11726 = vmatprep.subr.bf16.mxu0 %v19430_v57 }
0x21e3   : > { %11585 = vmatpush1.bf16.msra.mxu1 %v19439_v5 }
0x21e4   : > { %11586 = vmatprep.subr.bf16.mxu1 %v19445_v22  ;;  %11727 = vmatpush1.bf16.msra.mxu0 %v19439_v5 }
0x21e5   : > { %11728 = vmatprep.subr.bf16.mxu0 %v19445_v22 }
0x21e7   : > { %11587 = vmatpush1.bf16.msra.mxu1 %v19453_v61 }
0x21e8   : > { %11729 = vmatpush1.bf16.msra.mxu0 %v19453_v61  ;;  %11862 = vmatprep.subr.bf16.mxu1 %v19368_v19 }
0x21e9   : > { %12001 = vmatprep.subr.bf16.mxu0 %v19368_v19 }
0x21ea   : > { %11613 = vmatmul.mubr.bf16.vlgmr.msra.gmra.mrb[76].mxu1 %v16214_v10 }
0x21eb   : > { %11863 = vmatpush1.bf16.msra.mxu1 %v19410_v56  ;;  %11894 = vmatprep.mubr.bf16.mxu1 %v20234_v60 }
0x21ec   : > { %11864 = vmatprep.subr.bf16.mxu1 %v19415_v40 }
0x21ef   : > { %11865 = vmatpush1.bf16.msra.mxu1 %v19423_v45 }
0x21f0   : > { %11866 = vmatprep.subr.bf16.mxu1 %v19430_v57 }
0x21f3   : > { %11867 = vmatpush1.bf16.msra.mxu1 %v19439_v5 }
0x21f4   : > { %11868 = vmatprep.subr.bf16.mxu1 %v19445_v22 }
0x21f7   : > { %11869 = vmatpush1.bf16.msra.mxu1 %v19453_v61 }
0x21f8   : > { %12142 = vmatprep.subr.bf16.mxu1 %v19368_v19 }
0x22ad   : > { %v11440_v58 = vpop.f32.mrb[72].mxu1  ;;  %v11521_v10 = vpop.f32.mrb[0].mxu0 }
0x22ae   : > { %v15229_v13 = vpop.f32.mrb[73].mxu1  ;;  %v15241_v35 = vpop.f32.mrb[1].mxu0  ;;  %v19485_v3 = vadd.f32 %v13688_v50, %v11440_v58  ;;  %v19491_v18 = vadd.f32 %v13703_v16, %v11521_v10 }
0x22af   : > { %v11443_v7 = vpop.f32.mrb[74].mxu1  ;;  %v11524_v20 = vpop.f32.mrb[2].mxu0 }
0x22b0   : > { %v15230_v14 = vpop.f32.mrb[75].mxu1  ;;  %v15242_v34 = vpop.f32.mrb[3].mxu0 }
0x22bd   : > { %v11614_v31 = vpop.f32.mrb[76].mxu1 }
0x22be   : > { %v11661_v48 = vrot.slane %v11614_v31, 1  ;;  %v11616_v0 = vpop.f32.mrb[77].mxu1  ;;  %v11636_v47 = vadd.f32 %v19475_v28, %v11614_v31  ;;  %v11621_v41 = vadd.f32 %v11614_v31, %v19485_v3 }
0x22bf   : > { %v11662_v44 = vrot.slane %v11616_v0, 1  ;;  %v11684_v51 = vadd.f32 %v19472_v37, %v11616_v0  ;;  %v11618_v32 = vpop.f32.mrb[78].mxu1 }
0x22c0   : > { %11663 = vrot.lane.b32.xlu1 %v11661_v48, %s16212_s14  ;;  %v11619_v25 = vpop.f32.mrb[79].mxu1  ;;  %v13727_v9 = vmul.f32 -1.442695, %v11621_v41 }
0x22c1   : > { %v11686_v1 = vrot.slane %v11684_v51, 1  ;;  %11665 = vrot.lane.b32.xlu0 %v11662_v44, %s16212_s14 }
0x22c2   : > { %16047 = vpow2.f32 %v13727_v9 }
0x22c4   : > { %11687 = vrot.lane.b32.xlu1 %v11686_v1, %s16215_s21 }
0x22c5   : > { %11638 = vrot.lane.b32.xlu0 %v11636_v47, %s16213_s17 }
0x22cc   : > { %v16048_v33 = vpop.eup %16047 }
0x22cd   : > { %v11625_v26 = vadd.f32 1.0, %v16048_v33 }
0x22cf   : > { %16049 = vrcp.f32 %v11625_v26 }
0x22d9   : > { %v16050_v30 = vpop.eup %16049 }
0x2332   : > { %v11664_v11 = vpop.permute.xlu1 %11663 }
0x2333   : > { %v11666_v39 = vpop.permute.xlu0 %11665 }
0x2334   : > { %v11667_v29 = vsel %vm1128_vm0, %v11664_v11, %v11666_v39 }
0x2335   : > { %v11669_v27 = vadd.f32 %v11667_v29, %v19491_v18 }
0x2336   : > { %v11688_v2 = vpop.permute.xlu1 %11687 }
0x2337   : > { %v13729_v17 = vmul.f32 -1.442695, %v11669_v27  ;;  %v11639_v24 = vpop.permute.xlu0 %11638 }
0x2338   : > { %v11641_v38 = vmul.f32 %v16050_v30, %v11639_v24 }
0x2339   : > { %16051 = vpow2.f32 %v13729_v17 }
0x233a   : > { %11643 = vrot.lane.b32.xlu0 %v11641_v38, %s16213_s17 }
0x2343   : > { %v16052_v55 = vpop.eup %16051 }
0x2344   : > { %v11673_v62 = vadd.f32 1.0, %v16052_v55 }
0x2346   : > { %16053 = vrcp.f32 %v11673_v62 }
0x2350   : > { %v16054_v52 = vpop.eup %16053 }
0x2351   : > { %v11690_v42 = vmul.f32 %v16054_v52, %v11688_v2 }
0x2353   : > { %11692 = vrot.lane.b32.xlu1 %v11690_v42, %s16213_s17 }
0x23ac   : > { %v11644_v8 = vpop.permute.xlu0 %11643 }
0x23ad   : > { %v11646_v4 = vadd.f32 %v11644_v8, %v19485_v3 }
0x23af   : > { %16055 = vtanh.f32 %v11646_v4 }
0x23b9   : > { %v16056_v46 = vpop.eup %16055 }
0x23ba   : > { %v11648_v49 = vsub.f32 0.0, %v16056_v46 }
0x23bc   : > { %11650 = vrot.lane.b32.xlu0 %v11648_v49, %s16215_s21 }
0x23c5   : > { %v11693_v15 = vpop.permute.xlu1 %11692 }
0x23c6   : > { %v11695_v54 = vadd.f32 %v11693_v15, %v19491_v18 }
0x23c8   : > { %16057 = vtanh.f32 %v11695_v54 }
0x23d2   : > { %v16058_v12 = vpop.eup %16057 }
0x23d3   : > { %v11697_v23 = vsub.f32 0.0, %v16058_v12 }
0x23d5   : > { %11699 = vrot.lane.b32.xlu1 %v11697_v23, %s16215_s21 }
0x242e   : > { %v11651_v6 = vpop.permute.xlu0 %11650 }
0x242f   : > { %v11653_v63 = vmul.f32 %v16050_v30, %v11651_v6 }
0x2431   : > { %11655 = vrot.lane.b32.xlu0 %v11653_v63, %s16212_s14 }
0x2447   : > { %v11700_v59 = vpop.permute.xlu1 %11699 }
0x2448   : > { %v11702_v53 = vmul.f32 %v16054_v52, %v11700_v59 }
0x244a   : > { %11704 = vrot.lane.b32.xlu1 %v11702_v53, %s16212_s14 }
0x24a3   : > { %v11656_v21 = vpop.permute.xlu0 %11655 }
0x24a4   : > { %v19503_v36 = vadd.f32 %v16056_v46, %v11656_v21 }
0x24a6   : > { %11709 = vrot.lane.b32.xlu1 %v19503_v36, %s16213_s17 }
0x24bc   : > { %v11705_v58 = vpop.permute.xlu1 %11704 }
0x24bd   : > { %v19507_v10 = vadd.f32 %v16058_v12, %v11705_v58 }
0x24bf   : > { %v11713_v13 = vrot.slane %v19507_v10, 7 }
0x24c1   : > { %11714 = vrot.lane.b32.xlu0 %v11713_v13, %s16215_s21 }
0x2518   : > { %v19511_v35 = vpop.permute.xlu1 %11709 }
0x2533   : > { %v11715_v7 = vpop.permute.xlu0 %11714 }
0x2534   : > { %v11717_v20 = vsel %vm1128_vm0, %v19511_v35, %v11715_v7 }
0x2535   : > { %v11718_v14 = vpack.c.bf16 %v11717_v20, %v11717_v20 }
0x2537   : > { %13731 = vmatmul.mubr.msk.bf16.vlgmr.msra.gmra.mrb[4].mxu0 %vm9090_vm11, %v11718_v14 }
0x2538   : > { %12002 = vmatpush1.bf16.msra.mxu0 %v19410_v56  ;;  %12033 = vmatprep.mubr.bf16.mxu0 %v20234_v60 }
0x2539   : > { %12003 = vmatprep.subr.bf16.mxu0 %v19415_v40 }
0x253c   : > { %12004 = vmatpush1.bf16.msra.mxu0 %v19423_v45 }
0x253d   : > { %12005 = vmatprep.subr.bf16.mxu0 %v19430_v57 }
0x2540   : > { %12006 = vmatpush1.bf16.msra.mxu0 %v19439_v5 }
0x2541   : > { %12007 = vmatprep.subr.bf16.mxu0 %v19445_v22 }
0x2544   : > { %12008 = vmatpush1.bf16.msra.mxu0 %v19453_v61 }
0x2545   : > { %12281 = vmatprep.subr.bf16.mxu0 %v19368_v19 }
0x260a   : > { %v11756_v34 = vpop.f32.mrb[4].mxu0 }
0x260b   : > { %v11802_v31 = vrot.slane %v11756_v34, 2  ;;  %v11758_v48 = vpop.f32.mrb[5].mxu0  ;;  %v11773_v0 = vadd.f32 %v11756_v34, %v19475_v28  ;;  %v11764_v50 = vrot.slane %v11756_v34, 7 }
0x260c   : > { %v11803_v44 = vrot.slane %v11758_v48, 2  ;;  %v11817_v51 = vadd.f32 %v11758_v48, %v19472_v37  ;;  %v11760_v32 = vpop.f32.mrb[6].mxu0 }
0x260d   : > { %11804 = vrot.lane.b32.xlu1 %v11802_v31, %s16212_s14  ;;  %v11761_v25 = vpop.f32.mrb[7].mxu0  ;;  %v11775_v47 = vrot.slane %v11773_v0, 7  ;;  %v11766_v41 = vadd.f32 %v11764_v50, %v19485_v3 }
0x260e   : > { %v11819_v1 = vrot.slane %v11817_v51, 2  ;;  %11806 = vrot.lane.b32.xlu0 %v11803_v44, %s16212_s14 }
0x260f   : > { %v13732_v9 = vmul.f32 -1.442695, %v11766_v41 }
0x2611   : > { %11820 = vrot.lane.b32.xlu1 %v11819_v1, %s16215_s21  ;;  %16059 = vpow2.f32 %v13732_v9 }
0x2612   : > { %11776 = vrot.lane.b32.xlu0 %v11775_v47, %s16213_s17 }
0x261b   : > { %v16060_v33 = vpop.eup %16059 }
0x261c   : > { %v11770_v26 = vadd.f32 1.0, %v16060_v33 }
0x261e   : > { %16061 = vrcp.f32 %v11770_v26 }
0x2628   : > { %v16062_v27 = vpop.eup %16061 }
0x267f   : > { %v11805_v16 = vpop.permute.xlu1 %11804 }
0x2680   : > { %v11807_v11 = vpop.permute.xlu0 %11806 }
0x2681   : > { %v11808_v39 = vsel %vm1128_vm0, %v11805_v16, %v11807_v11 }
0x2682   : > { %v11810_v29 = vadd.f32 %v11808_v39, %v19491_v18 }
0x2683   : > { %v11821_v52 = vpop.permute.xlu1 %11820 }
0x2684   : > { %v13733_v30 = vmul.f32 -1.442695, %v11810_v29  ;;  %v11777_v17 = vpop.permute.xlu0 %11776 }
0x2685   : > { %v11779_v24 = vmul.f32 %v16062_v27, %v11777_v17 }
0x2686   : > { %16063 = vpow2.f32 %v13733_v30 }
0x2687   : > { %11781 = vrot.lane.b32.xlu0 %v11779_v24, %s16213_s17 }
0x2690   : > { %v16064_v38 = vpop.eup %16063 }
0x2691   : > { %v11814_v55 = vadd.f32 1.0, %v16064_v38 }
0x2693   : > { %16065 = vrcp.f32 %v11814_v55 }
0x269d   : > { %v16066_v62 = vpop.eup %16065 }
0x269e   : > { %v11823_v2 = vmul.f32 %v16066_v62, %v11821_v52 }
0x26a0   : > { %11825 = vrot.lane.b32.xlu1 %v11823_v2, %s16213_s17 }
0x26f9   : > { %v11782_v42 = vpop.permute.xlu0 %11781 }
0x26fa   : > { %v11784_v8 = vadd.f32 %v11782_v42, %v19485_v3 }
0x26fc   : > { %16067 = vtanh.f32 %v11784_v8 }
0x2706   : > { %v16068_v4 = vpop.eup %16067 }
0x2707   : > { %v11787_v46 = vrot.slane %v16068_v4, 1 }
0x2709   : > { %v11789_v49 = vsub.f32 %v19503_v36, %v11787_v46 }
0x270b   : > { %v11791_v15 = vrot.slane %v11789_v49, 7 }
0x270d   : > { %11792 = vrot.lane.b32.xlu0 %v11791_v15, %s16215_s21 }
0x2712   : > { %v11826_v54 = vpop.permute.xlu1 %11825 }
0x2713   : > { %v11828_v12 = vadd.f32 %v11826_v54, %v19491_v18 }
0x2715   : > { %16069 = vtanh.f32 %v11828_v12 }
0x271f   : > { %v16070_v23 = vpop.eup %16069 }
0x2720   : > { %v11831_v6 = vrot.slane %v16070_v23, 7 }
0x2722   : > { %v11833_v63 = vsub.f32 %v19507_v10, %v11831_v6 }
0x2724   : > { %v11835_v59 = vrot.slane %v11833_v63, 1 }
0x2726   : > { %11836 = vrot.lane.b32.xlu1 %v11835_v59, %s16215_s21 }
0x277f   : > { %v11793_v53 = vpop.permute.xlu0 %11792 }
0x2780   : > { %v11795_v21 = vmul.f32 %v16062_v27, %v11793_v53 }
0x2782   : > { %11797 = vrot.lane.b32.xlu0 %v11795_v21, %s16212_s14 }
0x2798   : > { %v11837_v58 = vpop.permute.xlu1 %11836 }
0x2799   : > { %v11839_v36 = vmul.f32 %v16066_v62, %v11837_v58 }
0x279b   : > { %11841 = vrot.lane.b32.xlu1 %v11839_v36, %s16212_s14 }
0x27f4   : > { %v11798_v13 = vpop.permute.xlu0 %11797 }
0x27f5   : > { %v19544_v7 = vadd.f32 %v16068_v4, %v11798_v13 }
0x27f7   : > { %11846 = vrot.lane.b32.xlu1 %v19544_v7, %s16213_s17 }
0x280d   : > { %v11842_v20 = vpop.permute.xlu1 %11841 }
0x280e   : > { %v19548_v14 = vadd.f32 %v16070_v23, %v11842_v20 }
0x2810   : > { %v11850_v34 = vrot.slane %v19548_v14, 5 }
0x2812   : > { %11851 = vrot.lane.b32.xlu0 %v11850_v34, %s16215_s21 }
0x2869   : > { %v19552_v31 = vpop.permute.xlu1 %11846 }
0x2884   : > { %v11852_v48 = vpop.permute.xlu0 %11851 }
0x2885   : > { %v11854_v0 = vsel %vm1128_vm0, %v19552_v31, %v11852_v48 }
0x2886   : > { %v11855_v44 = vpack.c.bf16 %v11854_v0, %v11854_v0 }
0x2888   : > { %v11857_v51 = vshrl.u32 %v11855_v44, 16 }
0x288a   : > { %13734 = vmatmul.mubr.msk.bf16.vlgmr.msra.gmra.mrb[80].mxu1 %vm9090_vm11, %v11857_v51 }
0x288b   : > { %12143 = vmatpush1.bf16.msra.mxu1 %v19410_v56  ;;  %12174 = vmatprep.mubr.bf16.mxu1 %v20234_v60 }
0x288c   : > { %12144 = vmatprep.subr.bf16.mxu1 %v19415_v40 }
0x288f   : > { %12145 = vmatpush1.bf16.msra.mxu1 %v19423_v45 }
0x2890   : > { %12146 = vmatprep.subr.bf16.mxu1 %v19430_v57 }
0x2893   : > { %12147 = vmatpush1.bf16.msra.mxu1 %v19439_v5 }
0x2894   : > { %12148 = vmatprep.subr.bf16.mxu1 %v19445_v22 }
0x2897   : > { %12149 = vmatpush1.bf16.msra.mxu1 %v19453_v61 }
0x2898   : > { %12422 = vmatprep.subr.bf16.mxu1 %v19368_v19 }
0x295d   : > { %v11896_v32 = vpop.f32.mrb[80].mxu1 }
0x295e   : > { %v11942_v25 = vrot.slane %v11896_v32, 3  ;;  %v11898_v1 = vpop.f32.mrb[81].mxu1  ;;  %v11913_v47 = vadd.f32 %v11896_v32, %v19475_v28  ;;  %v11904_v11 = vrot.slane %v11896_v32, 6 }
0x295f   : > { %v11943_v50 = vrot.slane %v11898_v1, 3  ;;  %v11957_v41 = vadd.f32 %v11898_v1, %v19472_v37  ;;  %v11900_v9 = vpop.f32.mrb[82].mxu1 }
0x2960   : > { %11944 = vrot.lane.b32.xlu1 %v11942_v25, %s16212_s14  ;;  %v11901_v33 = vpop.f32.mrb[83].mxu1  ;;  %v11915_v16 = vrot.slane %v11913_v47, 6  ;;  %v11906_v39 = vadd.f32 %v11904_v11, %v19485_v3 }
0x2961   : > { %v11959_v26 = vrot.slane %v11957_v41, 3  ;;  %11946 = vrot.lane.b32.xlu0 %v11943_v50, %s16212_s14 }
0x2962   : > { %v13735_v29 = vmul.f32 -1.442695, %v11906_v39 }
0x2964   : > { %11960 = vrot.lane.b32.xlu1 %v11959_v26, %s16215_s21  ;;  %16071 = vpow2.f32 %v13735_v29 }
0x2965   : > { %11916 = vrot.lane.b32.xlu0 %v11915_v16, %s16213_s17 }
0x296e   : > { %v16072_v27 = vpop.eup %16071 }
0x296f   : > { %v11910_v30 = vadd.f32 1.0, %v16072_v27 }
0x2971   : > { %16073 = vrcp.f32 %v11910_v30 }
0x297b   : > { %v16074_v62 = vpop.eup %16073 }
0x29d2   : > { %v11945_v17 = vpop.permute.xlu1 %11944 }
0x29d3   : > { %v11947_v24 = vpop.permute.xlu0 %11946 }
0x29d4   : > { %v11948_v38 = vsel %vm1128_vm0, %v11945_v17, %v11947_v24 }
0x29d5   : > { %v11950_v55 = vadd.f32 %v11948_v38, %v19491_v18 }
0x29d6   : > { %v11961_v49 = vpop.permute.xlu1 %11960 }
0x29d7   : > { %v13736_v52 = vmul.f32 -1.442695, %v11950_v55  ;;  %v11917_v2 = vpop.permute.xlu0 %11916 }
0x29d8   : > { %v11919_v42 = vmul.f32 %v16074_v62, %v11917_v2 }
0x29d9   : > { %16075 = vpow2.f32 %v13736_v52 }
0x29da   : > { %11921 = vrot.lane.b32.xlu0 %v11919_v42, %s16213_s17 }
0x29e3   : > { %v16076_v8 = vpop.eup %16075 }
0x29e4   : > { %v11954_v4 = vadd.f32 1.0, %v16076_v8 }
0x29e6   : > { %16077 = vrcp.f32 %v11954_v4 }
0x29f0   : > { %v16078_v46 = vpop.eup %16077 }
0x29f1   : > { %v11963_v15 = vmul.f32 %v16078_v46, %v11961_v49 }
0x29f3   : > { %11965 = vrot.lane.b32.xlu1 %v11963_v15, %s16213_s17 }
0x2a4c   : > { %v11922_v54 = vpop.permute.xlu0 %11921 }
0x2a4d   : > { %v11924_v12 = vadd.f32 %v11922_v54, %v19485_v3 }
0x2a4f   : > { %16079 = vtanh.f32 %v11924_v12 }
0x2a59   : > { %v16080_v23 = vpop.eup %16079 }
0x2a5a   : > { %v11927_v6 = vrot.slane %v16080_v23, 1 }
0x2a5c   : > { %v11929_v63 = vsub.f32 %v19544_v7, %v11927_v6 }
0x2a5e   : > { %v11931_v59 = vrot.slane %v11929_v63, 7 }
0x2a60   : > { %11932 = vrot.lane.b32.xlu0 %v11931_v59, %s16215_s21 }
0x2a65   : > { %v11966_v53 = vpop.permute.xlu1 %11965 }
0x2a66   : > { %v11968_v21 = vadd.f32 %v11966_v53, %v19491_v18 }
0x2a68   : > { %16081 = vtanh.f32 %v11968_v21 }
0x2a72   : > { %v16082_v58 = vpop.eup %16081 }
0x2a73   : > { %v11971_v36 = vrot.slane %v16082_v58, 7 }
0x2a75   : > { %v11973_v13 = vsub.f32 %v19548_v14, %v11971_v36 }
0x2a77   : > { %v11975_v20 = vrot.slane %v11973_v13, 1 }
0x2a79   : > { %11976 = vrot.lane.b32.xlu1 %v11975_v20, %s16215_s21 }
0x2ad2   : > { %v11933_v34 = vpop.permute.xlu0 %11932 }
0x2ad3   : > { %v11935_v48 = vmul.f32 %v16074_v62, %v11933_v34 }
0x2ad5   : > { %11937 = vrot.lane.b32.xlu0 %v11935_v48, %s16212_s14 }
0x2aeb   : > { %v11977_v0 = vpop.permute.xlu1 %11976 }
0x2aec   : > { %v11979_v7 = vmul.f32 %v16078_v46, %v11977_v0 }
0x2aee   : > { %11981 = vrot.lane.b32.xlu1 %v11979_v7, %s16212_s14 }
0x2b47   : > { %v11938_v44 = vpop.permute.xlu0 %11937 }
0x2b48   : > { %v19585_v51 = vadd.f32 %v16080_v23, %v11938_v44 }
0x2b4a   : > { %11986 = vrot.lane.b32.xlu1 %v19585_v51, %s16213_s17 }
0x2b60   : > { %v11982_v32 = vpop.permute.xlu1 %11981 }
0x2b61   : > { %v19589_v25 = vadd.f32 %v16082_v58, %v11982_v32 }
0x2b63   : > { %v11990_v1 = vrot.slane %v19589_v25, 3 }
0x2b65   : > { %11991 = vrot.lane.b32.xlu0 %v11990_v1, %s16215_s21 }
0x2bbc   : > { %v19593_v47 = vpop.permute.xlu1 %11986 }
0x2bd7   : > { %v11992_v50 = vpop.permute.xlu0 %11991 }
0x2bd8   : > { %v11994_v41 = vsel %vm1128_vm0, %v19593_v47, %v11992_v50 }
0x2bd9   : > { %v11995_v9 = vpack.c.bf16 %v11994_v41, %v11994_v41 }
0x2bdb   : > { %v11997_v33 = vrot.slane %v11995_v9, 1 }
0x2bdd   : > { %13737 = vmatmul.mubr.msk.bf16.vlgmr.msra.gmra.mrb[8].mxu0 %vm9090_vm11, %v11997_v33 }
0x2bde   : > { %12282 = vmatpush1.bf16.msra.mxu0 %v19410_v56  ;;  %12313 = vmatprep.mubr.bf16.mxu0 %v20234_v60 }
0x2bdf   : > { %12283 = vmatprep.subr.bf16.mxu0 %v19415_v40 }
0x2be2   : > { %12284 = vmatpush1.bf16.msra.mxu0 %v19423_v45 }
0x2be3   : > { %12285 = vmatprep.subr.bf16.mxu0 %v19430_v57 }
0x2be6   : > { %12286 = vmatpush1.bf16.msra.mxu0 %v19439_v5 }
0x2be7   : > { %12287 = vmatprep.subr.bf16.mxu0 %v19445_v22 }
0x2bea   : > { %12288 = vmatpush1.bf16.msra.mxu0 %v19453_v61 }
0x2beb   : > { %12561 = vmatprep.subr.bf16.mxu0 %v19368_v19 }
0x2cb0   : > { %v12035_v26 = vpop.f32.mrb[8].mxu0 }
0x2cb1   : > { %v12081_v16 = vrot.slane %v12035_v26, 4  ;;  %v12037_v11 = vpop.f32.mrb[9].mxu0  ;;  %v12052_v39 = vadd.f32 %v12035_v26, %v19475_v28  ;;  %v12043_v19 = vrot.slane %v12035_v26, 5 }
0x2cb2   : > { %v12082_v29 = vrot.slane %v12037_v11, 4  ;;  %v12096_v27 = vadd.f32 %v12037_v11, %v19472_v37  ;;  %v12039_v30 = vpop.f32.mrb[10].mxu0 }
0x2cb3   : > { %12083 = vrot.lane.b32.xlu1 %v12081_v16, %s16212_s14  ;;  %v12040_v17 = vpop.f32.mrb[11].mxu0  ;;  %v12054_v38 = vrot.slane %v12052_v39, 5  ;;  %v12045_v55 = vadd.f32 %v12043_v19, %v19485_v3 }
0x2cb4   : > { %v12098_v24 = vrot.slane %v12096_v27, 4  ;;  %12085 = vrot.lane.b32.xlu0 %v12082_v29, %s16212_s14 }
0x2cb5   : > { %v13738_v62 = vmul.f32 -1.442695, %v12045_v55 }
0x2cb7   : > { %12099 = vrot.lane.b32.xlu1 %v12098_v24, %s16215_s21  ;;  %16083 = vpow2.f32 %v13738_v62 }
0x2cb8   : > { %12055 = vrot.lane.b32.xlu0 %v12054_v38, %s16213_s17 }
0x2cc1   : > { %v16084_v52 = vpop.eup %16083 }
0x2cc2   : > { %v12049_v2 = vadd.f32 1.0, %v16084_v52 }
0x2cc4   : > { %16085 = vrcp.f32 %v12049_v2 }
0x2cce   : > { %v16086_v49 = vpop.eup %16085 }
0x2d25   : > { %v12084_v42 = vpop.permute.xlu1 %12083 }
0x2d26   : > { %v12086_v8 = vpop.permute.xlu0 %12085 }
0x2d27   : > { %v12087_v4 = vsel %vm1128_vm0, %v12084_v42, %v12086_v8 }
0x2d28   : > { %v12089_v46 = vadd.f32 %v12087_v4, %v19491_v18 }
0x2d29   : > { %v12100_v59 = vpop.permute.xlu1 %12099 }
0x2d2a   : > { %v13739_v15 = vmul.f32 -1.442695, %v12089_v46  ;;  %v12056_v54 = vpop.permute.xlu0 %12055 }
0x2d2b   : > { %v12058_v12 = vmul.f32 %v16086_v49, %v12056_v54 }
0x2d2c   : > { %16087 = vpow2.f32 %v13739_v15 }
0x2d2d   : > { %12060 = vrot.lane.b32.xlu0 %v12058_v12, %s16213_s17 }
0x2d36   : > { %v16088_v23 = vpop.eup %16087 }
0x2d37   : > { %v12093_v6 = vadd.f32 1.0, %v16088_v23 }
0x2d39   : > { %16089 = vrcp.f32 %v12093_v6 }
0x2d43   : > { %v16090_v63 = vpop.eup %16089 }
0x2d44   : > { %v12102_v53 = vmul.f32 %v16090_v63, %v12100_v59 }
0x2d46   : > { %12104 = vrot.lane.b32.xlu1 %v12102_v53, %s16213_s17 }
0x2d9f   : > { %v12061_v21 = vpop.permute.xlu0 %12060 }
0x2da0   : > { %v12063_v58 = vadd.f32 %v12061_v21, %v19485_v3 }
0x2da2   : > { %16091 = vtanh.f32 %v12063_v58 }
0x2dac   : > { %v16092_v36 = vpop.eup %16091 }
0x2dad   : > { %v12066_v13 = vrot.slane %v16092_v36, 1 }
0x2daf   : > { %v12068_v20 = vsub.f32 %v19585_v51, %v12066_v13 }
0x2db1   : > { %v12070_v34 = vrot.slane %v12068_v20, 7 }
0x2db3   : > { %12071 = vrot.lane.b32.xlu0 %v12070_v34, %s16215_s21 }
0x2db8   : > { %v12105_v48 = vpop.permute.xlu1 %12104 }
0x2db9   : > { %v12107_v0 = vadd.f32 %v12105_v48, %v19491_v18 }
0x2dbb   : > { %16093 = vtanh.f32 %v12107_v0 }
0x2dc5   : > { %v16094_v7 = vpop.eup %16093 }
0x2dc6   : > { %v12110_v44 = vrot.slane %v16094_v7, 7 }
0x2dc8   : > { %v12112_v32 = vsub.f32 %v19589_v25, %v12110_v44 }
0x2dca   : > { %v12114_v1 = vrot.slane %v12112_v32, 1 }
0x2dcc   : > { %12115 = vrot.lane.b32.xlu1 %v12114_v1, %s16215_s21 }
0x2e25   : > { %v12072_v50 = vpop.permute.xlu0 %12071 }
0x2e26   : > { %v12074_v41 = vmul.f32 %v16086_v49, %v12072_v50 }
0x2e28   : > { %12076 = vrot.lane.b32.xlu0 %v12074_v41, %s16212_s14 }
0x2e3e   : > { %v12116_v9 = vpop.permute.xlu1 %12115 }
0x2e3f   : > { %v12118_v51 = vmul.f32 %v16090_v63, %v12116_v9 }
0x2e41   : > { %12120 = vrot.lane.b32.xlu1 %v12118_v51, %s16212_s14 }
0x2e9a   : > { %v12077_v33 = vpop.permute.xlu0 %12076 }
0x2e9b   : > { %v19626_v26 = vadd.f32 %v16092_v36, %v12077_v33 }
0x2e9d   : > { %12125 = vrot.lane.b32.xlu1 %v19626_v26, %s16213_s17 }
0x2eb3   : > { %v12121_v16 = vpop.permute.xlu1 %12120 }
0x2eb4   : > { %v19630_v11 = vadd.f32 %v16094_v7, %v12121_v16 }
0x2eb6   : > { %v12129_v39 = vrot.slane %v19630_v11, 1 }
0x2eb8   : > { %12130 = vrot.lane.b32.xlu0 %v12129_v39, %s16215_s21 }
0x2f0f   : > { %v19634_v29 = vpop.permute.xlu1 %12125 }
0x2f2a   : > { %v12131_v27 = vpop.permute.xlu0 %12130 }
0x2f2b   : > { %v12133_v30 = vsel %vm1128_vm0, %v19634_v29, %v12131_v27 }
0x2f2c   : > { %v12134_v17 = vpack.c.bf16 %v12133_v30, %v12133_v30 }
0x2f2e   : > { %v12136_v24 = vshrl.u32 %v12134_v17, 16 }
0x2f30   : > { %v12138_v38 = vrot.slane %v12136_v24, 1 }
0x2f32   : > { %13740 = vmatmul.mubr.msk.bf16.vlgmr.msra.gmra.mrb[84].mxu1 %vm9090_vm11, %v12138_v38 }
0x2f33   : > { %12423 = vmatpush1.bf16.msra.mxu1 %v19410_v56  ;;  %12454 = vmatprep.mubr.bf16.mxu1 %v20234_v60 }
0x2f34   : > { %12424 = vmatprep.subr.bf16.mxu1 %v19415_v40 }
0x2f37   : > { %12425 = vmatpush1.bf16.msra.mxu1 %v19423_v45 }
0x2f38   : > { %12426 = vmatprep.subr.bf16.mxu1 %v19430_v57 }
0x2f3b   : > { %12427 = vmatpush1.bf16.msra.mxu1 %v19439_v5 }
0x2f3c   : > { %12428 = vmatprep.subr.bf16.mxu1 %v19445_v22 }
0x2f3f   : > { %12429 = vmatpush1.bf16.msra.mxu1 %v19453_v61 }
0x2f40   : > { %15243 = vmatprep.subr.bf16.mxu1 %v16210_v43 }
0x3005   : > { %v12176_v19 = vpop.f32.mrb[84].mxu1 }
0x3006   : > { %v12222_v55 = vrot.slane %v12176_v19, 5  ;;  %v12178_v62 = vpop.f32.mrb[85].mxu1  ;;  %v12193_v52 = vadd.f32 %v12176_v19, %v19475_v28  ;;  %v12184_v15 = vrot.slane %v12176_v19, 4 }
0x3007   : > { %v12223_v2 = vrot.slane %v12178_v62, 5  ;;  %v12237_v42 = vadd.f32 %v12178_v62, %v19472_v37  ;;  %v12180_v8 = vpop.f32.mrb[86].mxu1 }
0x3008   : > { %12224 = vrot.lane.b32.xlu1 %v12222_v55, %s16212_s14  ;;  %v12181_v4 = vpop.f32.mrb[87].mxu1  ;;  %v12195_v49 = vrot.slane %v12193_v52, 4  ;;  %v12186_v54 = vadd.f32 %v12184_v15, %v19485_v3 }
0x3009   : > { %v12239_v46 = vrot.slane %v12237_v42, 5  ;;  %12226 = vrot.lane.b32.xlu0 %v12223_v2, %s16212_s14 }
0x300a   : > { %v13741_v12 = vmul.f32 -1.442695, %v12186_v54 }
0x300c   : > { %12240 = vrot.lane.b32.xlu1 %v12239_v46, %s16215_s21  ;;  %16095 = vpow2.f32 %v13741_v12 }
0x300d   : > { %12196 = vrot.lane.b32.xlu0 %v12195_v49, %s16213_s17 }
0x3016   : > { %v16096_v23 = vpop.eup %16095 }
0x3017   : > { %v12190_v6 = vadd.f32 1.0, %v16096_v23 }
0x3019   : > { %16097 = vrcp.f32 %v12190_v6 }
0x3023   : > { %v16098_v58 = vpop.eup %16097 }
0x307a   : > { %v12225_v63 = vpop.permute.xlu1 %12224 }
0x307b   : > { %v12227_v59 = vpop.permute.xlu0 %12226 }
0x307c   : > { %v12228_v53 = vsel %vm1128_vm0, %v12225_v63, %v12227_v59 }
0x307d   : > { %v12230_v21 = vadd.f32 %v12228_v53, %v19491_v18 }
0x307e   : > { %v12241_v7 = vpop.permute.xlu1 %12240 }
0x307f   : > { %v13742_v36 = vmul.f32 -1.442695, %v12230_v21  ;;  %v12197_v13 = vpop.permute.xlu0 %12196 }
0x3080   : > { %v12199_v20 = vmul.f32 %v16098_v58, %v12197_v13 }
0x3081   : > { %16099 = vpow2.f32 %v13742_v36 }
0x3082   : > { %12201 = vrot.lane.b32.xlu0 %v12199_v20, %s16213_s17 }
0x308b   : > { %v16100_v34 = vpop.eup %16099 }
0x308c   : > { %v12234_v48 = vadd.f32 1.0, %v16100_v34 }
0x308e   : > { %16101 = vrcp.f32 %v12234_v48 }
0x3098   : > { %v16102_v0 = vpop.eup %16101 }
0x3099   : > { %v12243_v44 = vmul.f32 %v16102_v0, %v12241_v7 }
0x309b   : > { %12245 = vrot.lane.b32.xlu1 %v12243_v44, %s16213_s17 }
0x30f4   : > { %v12202_v32 = vpop.permute.xlu0 %12201 }
0x30f5   : > { %v12204_v1 = vadd.f32 %v12202_v32, %v19485_v3 }
0x30f7   : > { %16103 = vtanh.f32 %v12204_v1 }
0x3101   : > { %v16104_v50 = vpop.eup %16103 }
0x3102   : > { %v12207_v41 = vrot.slane %v16104_v50, 1 }
0x3104   : > { %v12209_v9 = vsub.f32 %v19626_v26, %v12207_v41 }
0x3106   : > { %v12211_v51 = vrot.slane %v12209_v9, 7 }
0x3108   : > { %12212 = vrot.lane.b32.xlu0 %v12211_v51, %s16215_s21 }
0x310d   : > { %v12246_v33 = vpop.permute.xlu1 %12245 }
0x310e   : > { %v12248_v16 = vadd.f32 %v12246_v33, %v19491_v18 }
0x3110   : > { %16105 = vtanh.f32 %v12248_v16 }
0x311a   : > { %v16106_v39 = vpop.eup %16105 }
0x311b   : > { %v12251_v27 = vrot.slane %v16106_v39, 7 }
0x311d   : > { %v12253_v30 = vsub.f32 %v19630_v11, %v12251_v27 }
0x311f   : > { %v12255_v17 = vrot.slane %v12253_v30, 1 }
0x3121   : > { %12256 = vrot.lane.b32.xlu1 %v12255_v17, %s16215_s21 }
0x317a   : > { %v12213_v24 = vpop.permute.xlu0 %12212 }
0x317b   : > { %v12215_v38 = vmul.f32 %v16098_v58, %v12213_v24 }
0x317d   : > { %12217 = vrot.lane.b32.xlu0 %v12215_v38, %s16212_s14 }
0x3193   : > { %v12257_v19 = vpop.permute.xlu1 %12256 }
0x3194   : > { %v12259_v26 = vmul.f32 %v16102_v0, %v12257_v19 }
0x3196   : > { %12261 = vrot.lane.b32.xlu1 %v12259_v26, %s16212_s14 }
0x31ef   : > { %v12218_v55 = vpop.permute.xlu0 %12217 }
0x31f0   : > { %v19667_v62 = vadd.f32 %v16104_v50, %v12218_v55 }
0x31f2   : > { %12266 = vrot.lane.b32.xlu1 %v19667_v62, %s16213_s17 }
0x3208   : > { %v12262_v52 = vpop.permute.xlu1 %12261 }
0x3209   : > { %v19671_v2 = vadd.f32 %v16106_v39, %v12262_v52 }
0x320b   : > { %v12270_v42 = vrot.slane %v19671_v2, 7 }
0x320d   : > { %12271 = vrot.lane.b32.xlu0 %v12270_v42, %s16215_s21 }
0x3264   : > { %v19675_v8 = vpop.permute.xlu1 %12266 }
0x327f   : > { %v12272_v4 = vpop.permute.xlu0 %12271 }
0x3280   : > { %v12274_v46 = vsel %vm1128_vm0, %v19675_v8, %v12272_v4 }
0x3281   : > { %v12275_v49 = vpack.c.bf16 %v12274_v46, %v12274_v46 }
0x3283   : > { %v12277_v15 = vrot.slane %v12275_v49, 2 }
0x3285   : > { %13743 = vmatmul.mubr.msk.bf16.vlgmr.msra.gmra.mrb[12].mxu0 %vm9090_vm11, %v12277_v15 }
0x3286   : > { %12562 = vmatpush1.bf16.msra.mxu0 %v19410_v56  ;;  %12593 = vmatprep.mubr.bf16.mxu0 %v20234_v60 }
0x3287   : > { %12563 = vmatprep.subr.bf16.mxu0 %v19415_v40 }
0x328a   : > { %12564 = vmatpush1.bf16.msra.mxu0 %v19423_v45 }
0x328b   : > { %12565 = vmatprep.subr.bf16.mxu0 %v19430_v57 }
0x328e   : > { %12566 = vmatpush1.bf16.msra.mxu0 %v19439_v5 }
0x328f   : > { %12567 = vmatprep.subr.bf16.mxu0 %v19445_v22 }
0x3292   : > { %12568 = vmatpush1.bf16.msra.mxu0 %v19453_v61 }
0x3358   : > { %v12315_v54 = vpop.f32.mrb[12].mxu0 }
0x3359   : > { %v12361_v12 = vrot.slane %v12315_v54, 6  ;;  %v12317_v23 = vpop.f32.mrb[13].mxu0  ;;  %v12332_v6 = vadd.f32 %v12315_v54, %v19475_v28  ;;  %v12323_v5 = vrot.slane %v12315_v54, 3 }
0x335a   : > { %v12362_v56 = vrot.slane %v12317_v23, 6  ;;  %v12376_v60 = vadd.f32 %v12317_v23, %v19472_v37  ;;  %v12319_v63 = vpop.f32.mrb[14].mxu0 }
0x335b   : > { %12363 = vrot.lane.b32.xlu1 %v12361_v12, %s16212_s14  ;;  %v12320_v40 = vpop.f32.mrb[15].mxu0  ;;  %v12334_v57 = vrot.slane %v12332_v6, 3  ;;  %v12325_v22 = vadd.f32 %v12323_v5, %v19485_v3 }
0x335c   : > { %v12378_v45 = vrot.slane %v12376_v60, 6  ;;  %12365 = vrot.lane.b32.xlu0 %v12362_v56, %s16212_s14 }
0x335d   : > { %v13744_v61 = vmul.f32 -1.442695, %v12325_v22 }
0x335f   : > { %12379 = vrot.lane.b32.xlu1 %v12378_v45, %s16215_s21  ;;  %16107 = vpow2.f32 %v13744_v61 }
0x3360   : > { %12335 = vrot.lane.b32.xlu0 %v12334_v57, %s16213_s17 }
0x3369   : > { %v16108_v59 = vpop.eup %16107 }
0x336a   : > { %v12329_v53 = vadd.f32 1.0, %v16108_v59 }
0x336c   : > { %16109 = vrcp.f32 %v12329_v53 }
0x3376   : > { %v16110_v20 = vpop.eup %16109 }
0x33cd   : > { %v12364_v21 = vpop.permute.xlu1 %12363 }
0x33ce   : > { %v12366_v58 = vpop.permute.xlu0 %12365 }
0x33cf   : > { %v12367_v36 = vsel %vm1128_vm0, %v12364_v21, %v12366_v58 }
0x33d0   : > { %v12369_v13 = vadd.f32 %v12367_v36, %v19491_v18 }
0x33d1   : > { %v12380_v1 = vpop.permute.xlu1 %12379 }
0x33d2   : > { %v13745_v34 = vmul.f32 -1.442695, %v12369_v13  ;;  %v12336_v48 = vpop.permute.xlu0 %12335 }
0x33d3   : > { %v12338_v0 = vmul.f32 %v16110_v20, %v12336_v48 }
0x33d4   : > { %16111 = vpow2.f32 %v13745_v34 }
0x33d5   : > { %12340 = vrot.lane.b32.xlu0 %v12338_v0, %s16213_s17 }
0x33de   : > { %v16112_v7 = vpop.eup %16111 }
0x33df   : > { %v12373_v44 = vadd.f32 1.0, %v16112_v7 }
0x33e1   : > { %16113 = vrcp.f32 %v12373_v44 }
0x33eb   : > { %v16114_v32 = vpop.eup %16113 }
0x33ec   : > { %v12382_v50 = vmul.f32 %v16114_v32, %v12380_v1 }
0x33ee   : > { %12384 = vrot.lane.b32.xlu1 %v12382_v50, %s16213_s17 }
0x3447   : > { %v12341_v41 = vpop.permute.xlu0 %12340 }
0x3448   : > { %v12343_v9 = vadd.f32 %v12341_v41, %v19485_v3 }
0x344a   : > { %16115 = vtanh.f32 %v12343_v9 }
0x3454   : > { %v16116_v51 = vpop.eup %16115 }
0x3455   : > { %v12346_v33 = vrot.slane %v16116_v51, 1 }
0x3457   : > { %v12348_v16 = vsub.f32 %v19667_v62, %v12346_v33 }
0x3459   : > { %v12350_v39 = vrot.slane %v12348_v16, 7 }
0x345b   : > { %12351 = vrot.lane.b32.xlu0 %v12350_v39, %s16215_s21 }
0x3460   : > { %v12385_v27 = vpop.permute.xlu1 %12384 }
0x3461   : > { %v12387_v30 = vadd.f32 %v12385_v27, %v19491_v18 }
0x3463   : > { %16117 = vtanh.f32 %v12387_v30 }
0x346d   : > { %v16118_v17 = vpop.eup %16117 }
0x346e   : > { %v12390_v24 = vrot.slane %v16118_v17, 7 }
0x3470   : > { %v12392_v38 = vsub.f32 %v19671_v2, %v12390_v24 }
0x3472   : > { %v12394_v19 = vrot.slane %v12392_v38, 1 }
0x3474   : > { %12395 = vrot.lane.b32.xlu1 %v12394_v19, %s16215_s21 }
0x34cd   : > { %v12352_v26 = vpop.permute.xlu0 %12351 }
0x34ce   : > { %v12354_v55 = vmul.f32 %v16110_v20, %v12352_v26 }
0x34d0   : > { %12356 = vrot.lane.b32.xlu0 %v12354_v55, %s16212_s14 }
0x34e6   : > { %v12396_v52 = vpop.permute.xlu1 %12395 }
0x34e7   : > { %v12398_v62 = vmul.f32 %v16114_v32, %v12396_v52 }
0x34e9   : > { %12400 = vrot.lane.b32.xlu1 %v12398_v62, %s16212_s14 }
0x3542   : > { %v12357_v42 = vpop.permute.xlu0 %12356 }
0x3543   : > { %v12359_v4 = vadd.f32 %v16116_v51, %v12357_v42 }
0x3545   : > { %12405 = vrot.lane.b32.xlu1 %v12359_v4, %s16213_s17 }
0x355b   : > { %v12401_v46 = vpop.permute.xlu1 %12400 }
0x355c   : > { %v19708_v49 = vadd.f32 %v16118_v17, %v12401_v46 }
0x355e   : > { %v12409_v15 = vrot.slane %v19708_v49, 5 }
0x3560   : > { %12410 = vrot.lane.b32.xlu0 %v12409_v15, %s16215_s21 }
0x35b7   : > { %v19712_v54 = vpop.permute.xlu1 %12405 }
0x35d2   : > { %v12411_v12 = vpop.permute.xlu0 %12410 }
0x35d3   : > { %v12413_v23 = vsel %vm1128_vm0, %v19712_v54, %v12411_v12 }
0x35d4   : > { %v12414_v6 = vpack.c.bf16 %v12413_v23, %v12413_v23 }
0x35d6   : > { %v12416_v56 = vshrl.u32 %v12414_v6, 16 }
0x35d8   : > { %v12418_v60 = vrot.slane %v12416_v56, 2 }
0x35da   : > { %13746 = vmatmul.mubr.msk.bf16.vlgmr.msra.gmra.mrb[88].mxu1 %vm9090_vm11, %v12418_v60 }
0x35db   : > { %15251 = vmatprep.mubr.msk.bf16.mxu1 %vm16211_vm10, %v16210_v43 }
0x36ad   : > { %v12456_v63 = vpop.f32.mrb[88].mxu1 }
0x36ae   : > { %v12502_v40 = vrot.slane %v12456_v63, 7  ;;  %v12458_v45 = vpop.f32.mrb[89].mxu1  ;;  %v12473_v57 = vadd.f32 %v12456_v63, %v19475_v28  ;;  %v12464_v58 = vrot.slane %v12456_v63, 2 }
0x36af   : > { %v12503_v5 = vrot.slane %v12458_v45, 7  ;;  %v12517_v22 = vadd.f32 %v12458_v45, %v19472_v37  ;;  %v12460_v61 = vpop.f32.mrb[90].mxu1 }
0x36b0   : > { %12504 = vrot.lane.b32.xlu1 %v12502_v40, %s16212_s14  ;;  %v12461_v59 = vpop.f32.mrb[91].mxu1  ;;  %v12475_v21 = vrot.slane %v12473_v57, 2  ;;  %v12466_v36 = vadd.f32 %v12464_v58, %v19485_v3 }
0x36b1   : > { %v12519_v53 = vrot.slane %v12517_v22, 7  ;;  %12506 = vrot.lane.b32.xlu0 %v12503_v5, %s16212_s14 }
0x36b2   : > { %v13747_v13 = vmul.f32 -1.442695, %v12466_v36 }
0x36b4   : > { %12520 = vrot.lane.b32.xlu1 %v12519_v53, %s16215_s21  ;;  %16119 = vpow2.f32 %v13747_v13 }
0x36b5   : > { %12476 = vrot.lane.b32.xlu0 %v12475_v21, %s16213_s17 }
0x36be   : > { %v16120_v20 = vpop.eup %16119 }
0x36bf   : > { %v12470_v34 = vadd.f32 1.0, %v16120_v20 }
0x36c1   : > { %16121 = vrcp.f32 %v12470_v34 }
0x36cb   : > { %v16122_v32 = vpop.eup %16121 }
0x3722   : > { %v12505_v48 = vpop.permute.xlu1 %12504 }
0x3723   : > { %v12507_v0 = vpop.permute.xlu0 %12506 }
0x3724   : > { %v12508_v7 = vsel %vm1128_vm0, %v12505_v48, %v12507_v0 }
0x3725   : > { %v12510_v44 = vadd.f32 %v12508_v7, %v19491_v18 }
0x3726   : > { %v12521_v16 = vpop.permute.xlu1 %12520 }
0x3727   : > { %v13748_v1 = vmul.f32 -1.442695, %v12510_v44  ;;  %v12477_v50 = vpop.permute.xlu0 %12476 }
0x3728   : > { %v12479_v41 = vmul.f32 %v16122_v32, %v12477_v50 }
0x3729   : > { %16123 = vpow2.f32 %v13748_v1 }
0x372a   : > { %12481 = vrot.lane.b32.xlu0 %v12479_v41, %s16213_s17 }
0x3733   : > { %v16124_v9 = vpop.eup %16123 }
0x3734   : > { %v12514_v51 = vadd.f32 1.0, %v16124_v9 }
0x3736   : > { %16125 = vrcp.f32 %v12514_v51 }
0x3740   : > { %v16126_v33 = vpop.eup %16125 }
0x3741   : > { %v12523_v39 = vmul.f32 %v16126_v33, %v12521_v16 }
0x3743   : > { %12525 = vrot.lane.b32.xlu1 %v12523_v39, %s16213_s17 }
0x379c   : > { %v12482_v27 = vpop.permute.xlu0 %12481 }
0x379d   : > { %v12484_v30 = vadd.f32 %v12482_v27, %v19485_v3 }
0x379f   : > { %16127 = vtanh.f32 %v12484_v30 }
0x37a9   : > { %v16128_v17 = vpop.eup %16127 }
0x37aa   : > { %v12487_v24 = vrot.slane %v16128_v17, 1 }
0x37ac   : > { %v12489_v38 = vsub.f32 %v12359_v4, %v12487_v24 }
0x37ae   : > { %v12491_v19 = vrot.slane %v12489_v38, 7 }
0x37b0   : > { %12492 = vrot.lane.b32.xlu0 %v12491_v19, %s16215_s21 }
0x37b5   : > { %v12526_v26 = vpop.permute.xlu1 %12525 }
0x37b6   : > { %v12528_v55 = vadd.f32 %v12526_v26, %v19491_v18 }
0x37b8   : > { %16129 = vtanh.f32 %v12528_v55 }
0x37c2   : > { %v16130_v52 = vpop.eup %16129 }
0x37c3   : > { %v12531_v62 = vrot.slane %v16130_v52, 7 }
0x37c5   : > { %v12533_v42 = vsub.f32 %v19708_v49, %v12531_v62 }
0x37c7   : > { %v12535_v46 = vrot.slane %v12533_v42, 1 }
0x37c9   : > { %12536 = vrot.lane.b32.xlu1 %v12535_v46, %s16215_s21 }
0x3822   : > { %v12493_v15 = vpop.permute.xlu0 %12492 }
0x3823   : > { %v12495_v12 = vmul.f32 %v16122_v32, %v12493_v15 }
0x3825   : > { %12497 = vrot.lane.b32.xlu0 %v12495_v12, %s16212_s14 }
0x383b   : > { %v12537_v23 = vpop.permute.xlu1 %12536 }
0x383c   : > { %v12539_v4 = vmul.f32 %v16126_v33, %v12537_v23 }
0x383e   : > { %12541 = vrot.lane.b32.xlu1 %v12539_v4, %s16212_s14  ;;  %v15675_v4 = vpack.i.bf16 %v19671_v2, %v19708_v49  ;;  %v15948_v2 = vld [vmem:[%s19836_s11 + $0x8] sm:$0xff]  }
0x3897   : > { %v12498_v6 = vpop.permute.xlu0 %12497 }
0x3898   : > { %v12500_v56 = vadd.f32 %v16128_v17, %v12498_v6 }
0x389a   : > { %12546 = vrot.lane.b32.xlu1 %v12500_v56, %s16213_s17 }
0x38b0   : > { %v12542_v60 = vpop.permute.xlu1 %12541 }
0x38b1   : > { %v19738_v63 = vadd.f32 %v16130_v52, %v12542_v60  ;;  %v15947_v60 = vld [vmem:[%s19836_s11] sm:$0xff]  }
0x38b2   : > { %15244 = vmatpush3.bf16.msra.mxu1 %v15947_v60 }
0x38b3   : > { %v12550_v40 = vrot.slane %v19738_v63, 3  ;;  %15245 = vmatprep.subr.bf16.mxu1 %v16210_v43 }
0x38b5   : > { %12551 = vrot.lane.b32.xlu0 %v12550_v40, %s16215_s21 }
0x38b6   : > { %15246 = vmatpush3.bf16.msra.mxu1 %v15948_v2 }
0x38b7   : > { %15247 = vmatprep.subr.bf16.mxu1 %v16210_v43 }
0x390c   : > { %v19742_v45 = vpop.permute.xlu1 %12546 }
0x3927   : > { %v12552_v57 = vpop.permute.xlu0 %12551 }
0x3928   : > { %v12554_v5 = vsel %vm1128_vm0, %v19742_v45, %v12552_v57  ;;  %v15950_v57 = vld [vmem:[%s19836_s11 + $0x18] sm:$0xff]  }
0x3929   : > { %v12555_v22 = vpack.c.bf16 %v12554_v5, %v12554_v5  ;;  %v15685_v5 = vpack.i.bf16 %v19589_v25, %v19630_v11 }
0x392b   : > { %v12557_v61 = vrot.slane %v12555_v22, 3 }
0x392d   : > { %13749 = vmatmul.mubr.msk.bf16.vlgmr.msra.gmra.mrb[16].mxu0 %vm9090_vm11, %v12557_v61 }
0x3a00   : > { %v12595_v59 = vpop.f32.mrb[16].mxu0 }
0x3a01   : > { %v12612_v53 = vadd.f32 %v12595_v59, %v19475_v28  ;;  %12641 = vrot.lane.b32.xlu1 %v12595_v59, %s16212_s14  ;;  %v12597_v21 = vpop.f32.mrb[17].mxu0  ;;  %v12603_v34 = vrot.slane %v12595_v59, 1 }
0x3a02   : > { %v12654_v58 = vadd.f32 %v12597_v21, %v19472_v37  ;;  %12643 = vrot.lane.b32.xlu0 %v12597_v21, %s16212_s14  ;;  %v12599_v36 = vpop.f32.mrb[18].mxu0 }
0x3a03   : > { %v12614_v13 = vrot.slane %v12612_v53, 1  ;;  %v12600_v20 = vpop.f32.mrb[19].mxu0  ;;  %v12605_v48 = vadd.f32 %v12603_v34, %v19485_v3 }
0x3a05   : > { %12656 = vrot.lane.b32.xlu1 %v12654_v58, %s16215_s21  ;;  %v13750_v0 = vmul.f32 -1.442695, %v12605_v48 }
0x3a06   : > { %12615 = vrot.lane.b32.xlu0 %v12614_v13, %s16213_s17 }
0x3a07   : > { %16131 = vpow2.f32 %v13750_v0 }
0x3a11   : > { %v16132_v28 = vpop.eup %16131 }
0x3a12   : > { %v12609_v7 = vadd.f32 1.0, %v16132_v28 }
0x3a14   : > { %16133 = vrcp.f32 %v12609_v7 }
0x3a1e   : > { %v16134_v50 = vpop.eup %16133 }
0x3a73   : > { %v12642_v44 = vpop.permute.xlu1 %12641 }
0x3a74   : > { %v12644_v32 = vpop.permute.xlu0 %12643 }
0x3a75   : > { %v12645_v37 = vsel %vm1128_vm0, %v12642_v44, %v12644_v32 }
0x3a76   : > { %v12647_v1 = vadd.f32 %v12645_v37, %v19491_v18 }
0x3a77   : > { %v12657_v27 = vpop.permute.xlu1 %12656 }
0x3a78   : > { %v13751_v41 = vmul.f32 -1.442695, %v12647_v1  ;;  %v12616_v9 = vpop.permute.xlu0 %12615 }
0x3a79   : > { %v12618_v51 = vmul.f32 %v16134_v50, %v12616_v9 }
0x3a7a   : > { %16135 = vpow2.f32 %v13751_v41 }
0x3a7b   : > { %12620 = vrot.lane.b32.xlu0 %v12618_v51, %s16213_s17 }
0x3a84   : > { %v16136_v33 = vpop.eup %16135 }
0x3a85   : > { %v12651_v16 = vadd.f32 1.0, %v16136_v33 }
0x3a87   : > { %16137 = vrcp.f32 %v12651_v16 }
0x3a91   : > { %v16138_v39 = vpop.eup %16137 }
0x3a92   : > { %v12659_v30 = vmul.f32 %v16138_v39, %v12657_v27 }
0x3a94   : > { %12661 = vrot.lane.b32.xlu1 %v12659_v30, %s16213_s17 }
0x3aed   : > { %v12621_v17 = vpop.permute.xlu0 %12620 }
0x3aee   : > { %v12623_v24 = vadd.f32 %v12621_v17, %v19485_v3 }
0x3af0   : > { %16139 = vtanh.f32 %v12623_v24 }
0x3afa   : > { %v16140_v38 = vpop.eup %16139 }
0x3afb   : > { %v12626_v19 = vrot.slane %v16140_v38, 1 }
0x3afd   : > { %v12628_v26 = vsub.f32 %v12500_v56, %v12626_v19 }
0x3aff   : > { %v12630_v55 = vrot.slane %v12628_v26, 7 }
0x3b01   : > { %12631 = vrot.lane.b32.xlu0 %v12630_v55, %s16215_s21 }
0x3b06   : > { %v12662_v52 = vpop.permute.xlu1 %12661 }
0x3b07   : > { %v12664_v62 = vadd.f32 %v12662_v52, %v19491_v18  ;;  %v15690_v18 = vpack.i.bf16 %v19507_v10, %v19548_v14  ;;  %v15949_v10 = vld [vmem:[%s19836_s11 + $0x10] sm:$0xff]  }
0x3b08   : > { %15248 = vmatpush3.bf16.msra.mxu1 %v15949_v10 }
0x3b09   : > { %16141 = vtanh.f32 %v12664_v62  ;;  %15249 = vmatprep.subr.bf16.mxu1 %v16210_v43 }
0x3b0c   : > { %15250 = vmatpush3.bf16.msra.mxu1 %v15950_v57 }
0x3b13   : > { %v16142_v42 = vpop.eup %16141 }
0x3b14   : > { %v12667_v46 = vrot.slane %v16142_v42, 7 }
0x3b16   : > { %v12669_v15 = vsub.f32 %v19738_v63, %v12667_v46 }
0x3b18   : > { %v12671_v12 = vrot.slane %v12669_v15, 1 }
0x3b1a   : > { %12672 = vrot.lane.b32.xlu1 %v12671_v12, %s16215_s21 }
0x3b73   : > { %v12632_v23 = vpop.permute.xlu0 %12631 }
0x3b74   : > { %v12634_v3 = vmul.f32 %v16134_v50, %v12632_v23 }
0x3b76   : > { %12636 = vrot.lane.b32.xlu0 %v12634_v3, %s16212_s14 }
0x3b7a   : > { %15676 = vrot.lane.b32.xlu0 %v15675_v4, %s16215_s21 }
0x3b7e   : > { %15691 = vrot.lane.b32.xlu0 %v15690_v18, %s16215_s21 }
0x3b8c   : > { %v12673_v6 = vpop.permute.xlu1 %12672 }
0x3b8d   : > { %v12675_v56 = vmul.f32 %v16138_v39, %v12673_v6 }
0x3b8f   : > { %12677 = vrot.lane.b32.xlu1 %v12675_v56, %s16212_s14 }
0x3be8   : > { %v12637_v22 = vpop.permute.xlu0 %12636 }
0x3be9   : > { %v12639_v61 = vadd.f32 %v16140_v38, %v12637_v22 }
0x3bec   : > { %v15677_v59 = vpop.permute.xlu0 %15676 }
0x3bed   : > { %v15678_v53 = vunpack.i.l.bf16 %v15677_v59 }
0x3bef   : > { %v12693_v11 = vsel %vm1128_vm0, %v19593_v47, %v15678_v53 }
0x3bf0   : > { %v15692_v36 = vpop.permute.xlu0 %15691 }
0x3bf1   : > { %v15693_v0 = vunpack.i.l.bf16 %v15692_v36  ;;  %v15694_v32 = vunpack.i.h.bf16 %v15692_v36 }
0x3bf3   : > { %v12709_v1 = vsel %vm1128_vm0, %v19742_v45, %v15693_v0 }
0x3c01   : > { %v12678_v14 = vpop.permute.xlu1 %12677 }
0x3c02   : > { %v12680_v49 = vadd.f32 %v16142_v42, %v12678_v14 }
0x3c04   : > { %v15680_v40 = vpack.i.bf16 %v19738_v63, %v12680_v49  ;;  %v15679_v63 = vunpack.i.h.bf16 %v15677_v59 }
0x3c06   : > { %15681 = vrot.lane.b32.xlu1 %v15680_v40, %s16215_s21  ;;  %v12697_v25 = vsel %vm1128_vm0, %v19634_v29, %v15679_v63 }
0x3c0a   : > { %15686 = vrot.lane.b32.xlu1 %v15685_v5, %s16215_s21 }
0x3c0e   : > { %12711 = vrot.lane.b32.xlu1 %v12639_v61, %s16213_s17  ;;  %s12868_s17 = sshll.u32 %s20236_s26, 3 }
0x3c0f   : > { %s438_s30 = scalar_lea.vmem %s19838_s13, %s12868_s17 }
0x3c78   : > { %v15682_v43 = vpop.permute.xlu1 %15681 }
0x3c79   : > { %v15684_v21 = vunpack.i.h.bf16 %v15682_v43  ;;  %v15683_v58 = vunpack.i.l.bf16 %v15682_v43 }
0x3c7b   : > { %v12689_v13 = vsel %vm1128_vm0, %v19552_v31, %v15684_v21  ;;  %v12685_v20 = vsel %vm1128_vm0, %v19511_v35, %v15683_v58 }
0x3c7c   : > { %v12718_v34 = vsel %vm11347_vm12, %v12685_v20, %v12689_v13  ;;  %v15687_v48 = vpop.permute.xlu1 %15686 }
0x3c7d   : > { %v12719_v28 = vsel %vm11349_vm13, %v12718_v34, %v12693_v11  ;;  %v15689_v7 = vunpack.i.h.bf16 %v15687_v48  ;;  %v15688_v44 = vunpack.i.l.bf16 %v15687_v48 }
0x3c7e   : > { %v12720_v31 = vsel %vm11351_vm14, %v12719_v28, %v12697_v25 }
0x3c7f   : > { %v12705_v35 = vsel %vm1128_vm0, %v19712_v54, %v15689_v7  ;;  %v12701_v29 = vsel %vm1128_vm0, %v19675_v8, %v15688_v44  ;;  %v13752_v8 = vld [vmem:[%s19837_s12] ss:$0 sm:$0xff] }
0x3c80   : > { %v12721_v47 = vsel %vm11353_vm15, %v12720_v31, %v12701_v29  ;;  %v12712_v37 = vpop.permute.xlu1 %12711 }
0x3c81   : > { %v12717_v50 = vsel %vm1128_vm0, %v12712_v37, %v15694_v32  ;;  %v12722_v41 = vsel %vm11355_vm1, %v12721_v47, %v12705_v35 }
0x3c82   : > { %v12723_v9 = vsel %vm11357_vm2, %v12722_v41, %v12709_v1 }
0x3c83   : > { %v12724_v51 = vsel %vm11359_vm3, %v12723_v9, %v12717_v50 }
0x3c84   : > { %v12725_v33 = vpack.c.bf16 %v12724_v51, %v12724_v51 }
0x3c86   : > { %15252 = vmatmul.mubr.msk.bf16.vlgmr.msra.gmra.mrb[92].mxu1 %vm9090_vm11, %v12725_v33 }
0x3d59   : > { %v12802_v54 = vpop.f32.mrb[92].mxu1 }
0x3d5a   : > { %v12803_v45 = vadd.f32 %v13752_v8, %v12802_v54  ;;  %v15253_v16 = vpop.f32.mrb[93].mxu1 }
0x3d5b   : > { %v12805_v39 = vpop.f32.mrb[94].mxu1 }
0x3d5c   : > { %12808 = vst [vmem:[%s438_s30] sm:$0xff] %v12803_v45  ;;  %v15254_v27 = vpop.f32.mrb[95].mxu1 }
0x3d5d PF: > { %s23_s25 = sadd.s32 1, %s16207_s25  }
0x3d5e   : > { %p20_p4 = scmp.ge.s32.totalorder %s23_s25, 4  }
0x3d60   :  { %22 = sbr.rel (!%p20_p4) target bundleno = 1 (0x1), region = 138 }

</bundles_post_ra>
